<compile_context>
chip_gen: v5e
topology: v5e:2x2
jax: 0.10.0
libtpu: 0.0.40
codegen_flags: <defaults>
</compile_context>

<pallas_src>
import jax
import jax.numpy as jnp
from jax.experimental import pallas as pl
from jax.experimental.pallas import tpu as pltpu


# ------------------------- fused encoder (convs + pools) --------------------------
def _encoder_kernel(x_ref, w1_ref, b1_ref, w2_ref, b2_ref, w3_ref, b3_ref,
                    p3_ref, p2_ref, o_ref, a_sc, b_sc):
    # x_ref : (1, 80, 80, 3)   one full image (VMEM-resident, 77 KB)
    # w*    : (3, 3, Cin, Cout); b* : (1, Cout)
    # p3    : (26, 78) pooling matrix, entries 1/9 ; p2 : (12, 24), entries 1/4
    # a_sc  : VMEM (26, 26, 64)  conv1+relu+pool3 result
    # b_sc  : VMEM (12, 12, 32)  conv2+relu+pool2 result
    # o_ref : (1, 10, 10, 3)     conv3 result (encoder conv stack output)

    # -- stage 1: conv1 (3->64) + ReLU + AvgPool(3) : one pooled row per iteration
    def stage1(j, carry):
        rowsum = jnp.zeros((78, 64), jnp.float32)
        for r in range(3):                       # 3 conv rows feed pooled row j
            acc = jnp.zeros((78, 64), jnp.float32)
            for ky in range(3):
                row = 3 * j + r + ky
                for kx in range(3):
                    acc = acc + jnp.dot(x_ref[0, row, pl.ds(kx, 78), :],   # (78,3)
                                        w1_ref[ky, kx],                    # (3,64)
                                        preferred_element_type=jnp.float32)
            rowsum = rowsum + jnp.maximum(acc + b1_ref[...], 0.0)
        # pool along W on the MXU (includes the 1/9 factor)
        a_sc[j] = jnp.dot(p3_ref[...], rowsum, preferred_element_type=jnp.float32)
        return carry

    jax.lax.fori_loop(0, 26, stage1, 0)

    # -- stage 2: conv2 (64->32) + ReLU + AvgPool(2)
    def stage2(j, carry):
        rowsum = jnp.zeros((24, 32), jnp.float32)
        for r in range(2):
            acc = jnp.zeros((24, 32), jnp.float32)
            for ky in range(3):
                row = 2 * j + r + ky
                for kx in range(3):
                    acc = acc + jnp.dot(a_sc[row, pl.ds(kx, 24), :],       # (24,64)
                                        w2_ref[ky, kx],                    # (64,32)
                                        preferred_element_type=jnp.float32)
            rowsum = rowsum + jnp.maximum(acc + b2_ref[...], 0.0)
        b_sc[j] = jnp.dot(p2_ref[...], rowsum, preferred_element_type=jnp.float32)
        return carry

    jax.lax.fori_loop(0, 12, stage2, 0)

    # -- stage 3: conv3 (32->3), no activation
    def stage3(i, carry):
        acc = jnp.zeros((10, 3), jnp.float32)
        for ky in range(3):
            for kx in range(3):
                acc = acc + jnp.dot(b_sc[i + ky, pl.ds(kx, 10), :],        # (10,32)
                                    w3_ref[ky, kx],                        # (32,3)
                                    preferred_element_type=jnp.float32)
        o_ref[0, i] = (acc + b3_ref[...]).astype(o_ref.dtype)
        return carry

    jax.lax.fori_loop(0, 10, stage3, 0)


def _pool_matrix(size_out, k):
    rows = jnp.repeat(jnp.arange(size_out), k)
    cols = jnp.arange(size_out * k)
    return jnp.zeros((size_out, size_out * k), jnp.float32).at[rows, cols].set(1.0 / (k * k))


def encoder_convs(x_nhwc, kp):
    n = x_nhwc.shape[0]
    p3 = _pool_matrix(26, 3)
    p2 = _pool_matrix(12, 2)
    return pl.pallas_call(
        _encoder_kernel,
        out_shape=jax.ShapeDtypeStruct((n, 10, 10, 3), jnp.float32),
        grid=(n,),
        in_specs=[
            pl.BlockSpec((1, 80, 80, 3), lambda b: (b, 0, 0, 0)),
            pl.BlockSpec((3, 3, 3, 64), lambda b: (0, 0, 0, 0)),
            pl.BlockSpec((1, 64), lambda b: (0, 0)),
            pl.BlockSpec((3, 3, 64, 32), lambda b: (0, 0, 0, 0)),
            pl.BlockSpec((1, 32), lambda b: (0, 0)),
            pl.BlockSpec((3, 3, 32, 3), lambda b: (0, 0, 0, 0)),
            pl.BlockSpec((1, 3), lambda b: (0, 0)),
            pl.BlockSpec((26, 78), lambda b: (0, 0)),
            pl.BlockSpec((12, 24), lambda b: (0, 0)),
        ],
        out_specs=pl.BlockSpec((1, 10, 10, 3), lambda b: (b, 0, 0, 0)),
        scratch_shapes=[pltpu.VMEM((26, 26, 64), jnp.float32),
                        pltpu.VMEM((12, 12, 32), jnp.float32)],
        compiler_params=pltpu.CompilerParams(dimension_semantics=("parallel",)),
    )(x_nhwc, kp["w1"], kp["b1"], kp["w2"], kp["b2"], kp["w3"], kp["b3"], p3, p2)


# --------------------- fused decoder (Linear -> Linear+ReLU -> Linear) ------------
def _decoder_kernel(x_ref, wl1_ref, bl1_ref, wl2_ref, bl2_ref, wl3_ref, bl3_ref, o_ref):
    # x_ref: (N, 300); wl1: (300, nc); wl2: (nc, 300); wl3: (300, tile_n) bf16.
    # The tiny head is recomputed per output tile (few hundred FLOPs) so the grid
    # stays "parallel" — only wl3 streaming matters.
    enc = jnp.dot(x_ref[...], wl1_ref[...],
                  preferred_element_type=jnp.float32) + bl1_ref[...]
    h = jnp.maximum(jnp.dot(enc, wl2_ref[...],
                            preferred_element_type=jnp.float32) + bl2_ref[...], 0.0)
    y = jnp.dot(h.astype(wl3_ref.dtype), wl3_ref[...],
                preferred_element_type=jnp.float32)
    o_ref[...] = (y + bl3_ref[...]).astype(o_ref.dtype)


def decoder_linears(x300, kp, *, tile_n=3840):
    n = x300.shape[0]
    nc = kp["wl1"].shape[1]
    nout = kp["wl3"].shape[1]
    assert nout % tile_n == 0
    return pl.pallas_call(
        _decoder_kernel,
        out_shape=jax.ShapeDtypeStruct((n, nout), jnp.float32),
        grid=(nout // tile_n,),
        in_specs=[
            pl.BlockSpec((n, 300), lambda j: (0, 0)),
            pl.BlockSpec((300, nc), lambda j: (0, 0)),
            pl.BlockSpec((1, nc), lambda j: (0, 0)),
            pl.BlockSpec((nc, 300), lambda j: (0, 0)),
            pl.BlockSpec((1, 300), lambda j: (0, 0)),
            pl.BlockSpec((300, tile_n), lambda j: (0, j)),
            pl.BlockSpec((1, tile_n), lambda j: (0, j)),
        ],
        out_specs=pl.BlockSpec((n, tile_n), lambda j: (0, j)),
        compiler_params=pltpu.CompilerParams(dimension_semantics=("parallel",)),
    )(x300, kp["wl1"], kp["bl1"], kp["wl2"], kp["bl2"], kp["wl3"], kp["bl3"])


# --------------------------------- full forward -----------------------------------
def autoencoder_forward(x_nchw, kp):
    x = jnp.transpose(x_nchw, (0, 2, 3, 1))          # NCHW -> NHWC  (N, 80, 80, 3)
    feat = encoder_convs(x, kp)                       # (N, 10, 10, 3)
    # Natural NHWC flatten; the CHW->HWC row permutation is folded into wl1.
    x300 = feat.reshape(feat.shape[0], 300)           # (N, 300)
    return decoder_linears(x300, kp)                  # (N, 19200)


# ------------------------------ parameter handling --------------------------------
def init_torch_params(key, n_components):
    """Synthetic params in PyTorch layouts/init (U(-1/sqrt(fan_in), 1/sqrt(fan_in)))."""
    ks = jax.random.split(key, 12)

    def u(k, shape, fan_in):
        bound = 1.0 / float(fan_in) ** 0.5
        return jax.random.uniform(k, shape, jnp.float32, -bound, bound)

    return {
        "conv1_w": u(ks[0], (64, 3, 3, 3), 3 * 9),   "conv1_b": u(ks[1], (64,), 3 * 9),
        "conv2_w": u(ks[2], (32, 64, 3, 3), 64 * 9), "conv2_b": u(ks[3], (32,), 64 * 9),
        "conv3_w": u(ks[4], (3, 32, 3, 3), 32 * 9),  "conv3_b": u(ks[5], (3,), 32 * 9),
        "lin1_w": u(ks[6], (n_components, 300), 300),          "lin1_b": u(ks[7], (n_components,), 300),
        "lin2_w": u(ks[8], (300, n_components), n_components), "lin2_b": u(ks[9], (300,), n_components),
        "lin3_w": u(ks[10], (80 * 80 * 3, 300), 300),          "lin3_b": u(ks[11], (80 * 80 * 3,), 300),
    }


def prepare_params(tp):
    """PyTorch layouts -> kernel layouts."""
    nc = tp["lin1_w"].shape[0]
    # Conv: (Cout,Cin,kh,kw) -> (kh,kw,Cin,Cout)
    w1 = jnp.transpose(tp["conv1_w"], (2, 3, 1, 0))
    w2 = jnp.transpose(tp["conv2_w"], (2, 3, 1, 0))
    w3 = jnp.transpose(tp["conv3_w"], (2, 3, 1, 0))
    # Linear1: (nc,300) -> (300,nc); rows re-ordered from CHW-flat to HWC-flat so the
    # kernel can consume the natural NHWC flatten (matches nn.Flatten on NCHW).
    wl1 = jnp.transpose(jnp.reshape(tp["lin1_w"].T, (3, 10, 10, nc)),
                        (1, 2, 0, 3)).reshape(300, nc)
    wl2 = tp["lin2_w"].T                                        # (nc, 300)
    # Big decoder weight stored bf16 (halves HBM streaming); accumulation stays f32.
    wl3 = tp["lin3_w"].T.astype(jnp.bfloat16)                   # (300, 19200)
    return {
        "w1": w1, "b1": tp["conv1_b"].reshape(1, 64),
        "w2": w2, "b2": tp["conv2_b"].reshape(1, 32),
        "w3": w3, "b3": tp["conv3_b"].reshape(1, 3),
        "wl1": wl1, "bl1": tp["lin1_b"].reshape(1, nc),
        "wl2": wl2, "bl2": tp["lin2_b"].reshape(1, 300),
        "wl3": wl3, "bl3": tp["lin3_b"].reshape(1, 80 * 80 * 3),
    }


if __name__ == "__main__":
    n_components = 32
    key = jax.random.PRNGKey(0)
    kx_, kp_ = jax.random.split(key)
    # Linear(300, nc) / Linear(300, 80*80*3) force 80x80x3 inputs; batch kept small.
    x = jax.random.normal(kx_, (2, 3, 80, 80), jnp.float32)     # NCHW, batch=2
    kparams = prepare_params(init_torch_params(kp_, n_components))

    fwd = jax.jit(lambda inp: autoencoder_forward(inp, kparams))
    out = fwd(x)
    jax.block_until_ready(out)
    assert out.shape == (2, 80 * 80 * 3) and out.dtype == jnp.float32
    print("KERNEL_OK")
</pallas_src>

<mosaic_0001>
module attributes {stable_mosaic.version = 11 : i64} {
  func.func @_encoder_kernel(%arg0: i32, %arg1: memref<1x80x80x3xf32, #tpu.memory_space<vmem>>, %arg2: memref<3x3x3x64xf32, #tpu.memory_space<vmem>>, %arg3: memref<1x64xf32, #tpu.memory_space<vmem>>, %arg4: memref<3x3x64x32xf32, #tpu.memory_space<vmem>>, %arg5: memref<1x32xf32, #tpu.memory_space<vmem>>, %arg6: memref<3x3x32x3xf32, #tpu.memory_space<vmem>>, %arg7: memref<1x3xf32, #tpu.memory_space<vmem>>, %arg8: memref<26x78xf32, #tpu.memory_space<vmem>>, %arg9: memref<12x24xf32, #tpu.memory_space<vmem>>, %arg10: memref<1x10x10x3xf32, #tpu.memory_space<vmem>>, %arg11: memref<26x26x64xf32, #tpu.memory_space<vmem>>, %arg12: memref<12x12x32xf32, #tpu.memory_space<vmem>>) attributes {dimension_semantics = [#tpu.dimension_semantics<parallel>], iteration_bounds = array<i64: 2>, scalar_prefetch = 0 : i64, scratch_operands = 2 : i64, tpu.core_type = #tpu.core_type<tc>, window_params = [{transform_indices = @transform_0, window_bounds = array<i64: 1, 80, 80, 3>}, {pipeline_mode = #tpu.pipeline_mode<synchronous>, transform_indices = @transform_1, window_bounds = array<i64: 3, 3, 3, 64>}, {pipeline_mode = #tpu.pipeline_mode<synchronous>, transform_indices = @transform_2, window_bounds = array<i64: 1, 64>}, {pipeline_mode = #tpu.pipeline_mode<synchronous>, transform_indices = @transform_3, window_bounds = array<i64: 3, 3, 64, 32>}, {pipeline_mode = #tpu.pipeline_mode<synchronous>, transform_indices = @transform_4, window_bounds = array<i64: 1, 32>}, {pipeline_mode = #tpu.pipeline_mode<synchronous>, transform_indices = @transform_5, window_bounds = array<i64: 3, 3, 32, 3>}, {pipeline_mode = #tpu.pipeline_mode<synchronous>, transform_indices = @transform_6, window_bounds = array<i64: 1, 3>}, {pipeline_mode = #tpu.pipeline_mode<synchronous>, transform_indices = @transform_7, window_bounds = array<i64: 26, 78>}, {pipeline_mode = #tpu.pipeline_mode<synchronous>, transform_indices = @transform_8, window_bounds = array<i64: 12, 24>}, {transform_indices = @transform_9, window_bounds = array<i64: 1, 10, 10, 3>}]} {
    %c0_i32 = arith.constant 0 : i32
    %c26_i32 = arith.constant 26 : i32
    %0 = arith.addi %c0_i32, %c26_i32 : i32
    %c1_i32 = arith.constant 1 : i32
    scf.for %arg13 = %c0_i32 to %0 step %c1_i32  : i32 {
      %cst = arith.constant 0.000000e+00 : f32
      %3 = vector.broadcast %cst : f32 to vector<78x64xf32>
      %cst_7 = arith.constant 0.000000e+00 : f32
      %4 = vector.broadcast %cst_7 : f32 to vector<78x64xf32>
      %c3_i32 = arith.constant 3 : i32
      %5 = arith.muli %c3_i32, %arg13 : i32
      %c0_i32_8 = arith.constant 0 : i32
      %6 = arith.addi %5, %c0_i32_8 : i32
      %c0_i32_9 = arith.constant 0 : i32
      %7 = arith.addi %6, %c0_i32_9 : i32
      %c0 = arith.constant 0 : index
      %8 = arith.index_cast %7 : i32 to index
      %c0_10 = arith.constant 0 : index
      %c0_11 = arith.constant 0 : index
      %9 = vector.load %arg1[%c0, %8, %c0_10, %c0_11] : memref<1x80x80x3xf32, #tpu.memory_space<vmem>>, vector<1x1x78x3xf32>
      %10 = vector.shape_cast %9 : vector<1x1x78x3xf32> to vector<78x3xf32>
      %c0_12 = arith.constant 0 : index
      %c0_13 = arith.constant 0 : index
      %c0_14 = arith.constant 0 : index
      %c0_15 = arith.constant 0 : index
      %11 = vector.load %arg2[%c0_12, %c0_13, %c0_14, %c0_15] : memref<3x3x3x64xf32, #tpu.memory_space<vmem>>, vector<1x1x3x64xf32>
      %12 = vector.shape_cast %11 : vector<1x1x3x64xf32> to vector<3x64xf32>
      %cst_16 = arith.constant dense<0.000000e+00> : vector<78x64xf32>
      %13 = tpu.matmul %10, %12, %cst_16 {dimension_numbers = #tpu.dot_dimension_numbers<[1], [0], [0], [1], [0, 0, 1, 1], [], []>} : vector<78x3xf32>, vector<3x64xf32>, vector<78x64xf32> -> vector<78x64xf32>
      %14 = arith.addf %4, %13 : vector<78x64xf32>
      %c0_17 = arith.constant 0 : index
      %15 = arith.index_cast %7 : i32 to index
      %c1 = arith.constant 1 : index
      %c0_18 = arith.constant 0 : index
      %16 = vector.load %arg1[%c0_17, %15, %c1, %c0_18] : memref<1x80x80x3xf32, #tpu.memory_space<vmem>>, vector<1x1x78x3xf32>
      %17 = vector.shape_cast %16 : vector<1x1x78x3xf32> to vector<78x3xf32>
      %c0_19 = arith.constant 0 : index
      %c1_20 = arith.constant 1 : index
      %c0_21 = arith.constant 0 : index
      %c0_22 = arith.constant 0 : index
      %18 = vector.load %arg2[%c0_19, %c1_20, %c0_21, %c0_22] : memref<3x3x3x64xf32, #tpu.memory_space<vmem>>, vector<1x1x3x64xf32>
      %19 = vector.shape_cast %18 : vector<1x1x3x64xf32> to vector<3x64xf32>
      %cst_23 = arith.constant dense<0.000000e+00> : vector<78x64xf32>
      %20 = tpu.matmul %17, %19, %cst_23 {dimension_numbers = #tpu.dot_dimension_numbers<[1], [0], [0], [1], [0, 0, 1, 1], [], []>} : vector<78x3xf32>, vector<3x64xf32>, vector<78x64xf32> -> vector<78x64xf32>
      %21 = arith.addf %14, %20 : vector<78x64xf32>
      %c0_24 = arith.constant 0 : index
      %22 = arith.index_cast %7 : i32 to index
      %c2 = arith.constant 2 : index
      %c0_25 = arith.constant 0 : index
      %23 = vector.load %arg1[%c0_24, %22, %c2, %c0_25] : memref<1x80x80x3xf32, #tpu.memory_space<vmem>>, vector<1x1x78x3xf32>
      %24 = vector.shape_cast %23 : vector<1x1x78x3xf32> to vector<78x3xf32>
      %c0_26 = arith.constant 0 : index
      %c2_27 = arith.constant 2 : index
      %c0_28 = arith.constant 0 : index
      %c0_29 = arith.constant 0 : index
      %25 = vector.load %arg2[%c0_26, %c2_27, %c0_28, %c0_29] : memref<3x3x3x64xf32, #tpu.memory_space<vmem>>, vector<1x1x3x64xf32>
      %26 = vector.shape_cast %25 : vector<1x1x3x64xf32> to vector<3x64xf32>
      %cst_30 = arith.constant dense<0.000000e+00> : vector<78x64xf32>
      %27 = tpu.matmul %24, %26, %cst_30 {dimension_numbers = #tpu.dot_dimension_numbers<[1], [0], [0], [1], [0, 0, 1, 1], [], []>} : vector<78x3xf32>, vector<3x64xf32>, vector<78x64xf32> -> vector<78x64xf32>
      %28 = arith.addf %21, %27 : vector<78x64xf32>
      %c3_i32_31 = arith.constant 3 : i32
      %29 = arith.muli %c3_i32_31, %arg13 : i32
      %c0_i32_32 = arith.constant 0 : i32
      %30 = arith.addi %29, %c0_i32_32 : i32
      %c1_i32_33 = arith.constant 1 : i32
      %31 = arith.addi %30, %c1_i32_33 : i32
      %c0_34 = arith.constant 0 : index
      %32 = arith.index_cast %31 : i32 to index
      %c0_35 = arith.constant 0 : index
      %c0_36 = arith.constant 0 : index
      %33 = vector.load %arg1[%c0_34, %32, %c0_35, %c0_36] : memref<1x80x80x3xf32, #tpu.memory_space<vmem>>, vector<1x1x78x3xf32>
      %34 = vector.shape_cast %33 : vector<1x1x78x3xf32> to vector<78x3xf32>
      %c1_37 = arith.constant 1 : index
      %c0_38 = arith.constant 0 : index
      %c0_39 = arith.constant 0 : index
      %c0_40 = arith.constant 0 : index
      %35 = vector.load %arg2[%c1_37, %c0_38, %c0_39, %c0_40] : memref<3x3x3x64xf32, #tpu.memory_space<vmem>>, vector<1x1x3x64xf32>
      %36 = vector.shape_cast %35 : vector<1x1x3x64xf32> to vector<3x64xf32>
      %cst_41 = arith.constant dense<0.000000e+00> : vector<78x64xf32>
      %37 = tpu.matmul %34, %36, %cst_41 {dimension_numbers = #tpu.dot_dimension_numbers<[1], [0], [0], [1], [0, 0, 1, 1], [], []>} : vector<78x3xf32>, vector<3x64xf32>, vector<78x64xf32> -> vector<78x64xf32>
      %38 = arith.addf %28, %37 : vector<78x64xf32>
      %c0_42 = arith.constant 0 : index
      %39 = arith.index_cast %31 : i32 to index
      %c1_43 = arith.constant 1 : index
      %c0_44 = arith.constant 0 : index
      %40 = vector.load %arg1[%c0_42, %39, %c1_43, %c0_44] : memref<1x80x80x3xf32, #tpu.memory_space<vmem>>, vector<1x1x78x3xf32>
      %41 = vector.shape_cast %40 : vector<1x1x78x3xf32> to vector<78x3xf32>
      %c1_45 = arith.constant 1 : index
      %c1_46 = arith.constant 1 : index
      %c0_47 = arith.constant 0 : index
      %c0_48 = arith.constant 0 : index
      %42 = vector.load %arg2[%c1_45, %c1_46, %c0_47, %c0_48] : memref<3x3x3x64xf32, #tpu.memory_space<vmem>>, vector<1x1x3x64xf32>
      %43 = vector.shape_cast %42 : vector<1x1x3x64xf32> to vector<3x64xf32>
      %cst_49 = arith.constant dense<0.000000e+00> : vector<78x64xf32>
      %44 = tpu.matmul %41, %43, %cst_49 {dimension_numbers = #tpu.dot_dimension_numbers<[1], [0], [0], [1], [0, 0, 1, 1], [], []>} : vector<78x3xf32>, vector<3x64xf32>, vector<78x64xf32> -> vector<78x64xf32>
      %45 = arith.addf %38, %44 : vector<78x64xf32>
      %c0_50 = arith.constant 0 : index
      %46 = arith.index_cast %31 : i32 to index
      %c2_51 = arith.constant 2 : index
      %c0_52 = arith.constant 0 : index
      %47 = vector.load %arg1[%c0_50, %46, %c2_51, %c0_52] : memref<1x80x80x3xf32, #tpu.memory_space<vmem>>, vector<1x1x78x3xf32>
      %48 = vector.shape_cast %47 : vector<1x1x78x3xf32> to vector<78x3xf32>
      %c1_53 = arith.constant 1 : index
      %c2_54 = arith.constant 2 : index
      %c0_55 = arith.constant 0 : index
      %c0_56 = arith.constant 0 : index
      %49 = vector.load %arg2[%c1_53, %c2_54, %c0_55, %c0_56] : memref<3x3x3x64xf32, #tpu.memory_space<vmem>>, vector<1x1x3x64xf32>
      %50 = vector.shape_cast %49 : vector<1x1x3x64xf32> to vector<3x64xf32>
      %cst_57 = arith.constant dense<0.000000e+00> : vector<78x64xf32>
      %51 = tpu.matmul %48, %50, %cst_57 {dimension_numbers = #tpu.dot_dimension_numbers<[1], [0], [0], [1], [0, 0, 1, 1], [], []>} : vector<78x3xf32>, vector<3x64xf32>, vector<78x64xf32> -> vector<78x64xf32>
      %52 = arith.addf %45, %51 : vector<78x64xf32>
      %c3_i32_58 = arith.constant 3 : i32
      %53 = arith.muli %c3_i32_58, %arg13 : i32
      %c0_i32_59 = arith.constant 0 : i32
      %54 = arith.addi %53, %c0_i32_59 : i32
      %c2_i32 = arith.constant 2 : i32
      %55 = arith.addi %54, %c2_i32 : i32
      %c0_60 = arith.constant 0 : index
      %56 = arith.index_cast %55 : i32 to index
      %c0_61 = arith.constant 0 : index
      %c0_62 = arith.constant 0 : index
      %57 = vector.load %arg1[%c0_60, %56, %c0_61, %c0_62] : memref<1x80x80x3xf32, #tpu.memory_space<vmem>>, vector<1x1x78x3xf32>
      %58 = vector.shape_cast %57 : vector<1x1x78x3xf32> to vector<78x3xf32>
      %c2_63 = arith.constant 2 : index
      %c0_64 = arith.constant 0 : index
      %c0_65 = arith.constant 0 : index
      %c0_66 = arith.constant 0 : index
      %59 = vector.load %arg2[%c2_63, %c0_64, %c0_65, %c0_66] : memref<3x3x3x64xf32, #tpu.memory_space<vmem>>, vector<1x1x3x64xf32>
      %60 = vector.shape_cast %59 : vector<1x1x3x64xf32> to vector<3x64xf32>
      %cst_67 = arith.constant dense<0.000000e+00> : vector<78x64xf32>
      %61 = tpu.matmul %58, %60, %cst_67 {dimension_numbers = #tpu.dot_dimension_numbers<[1], [0], [0], [1], [0, 0, 1, 1], [], []>} : vector<78x3xf32>, vector<3x64xf32>, vector<78x64xf32> -> vector<78x64xf32>
      %62 = arith.addf %52, %61 : vector<78x64xf32>
      %c0_68 = arith.constant 0 : index
      %63 = arith.index_cast %55 : i32 to index
      %c1_69 = arith.constant 1 : index
      %c0_70 = arith.constant 0 : index
      %64 = vector.load %arg1[%c0_68, %63, %c1_69, %c0_70] : memref<1x80x80x3xf32, #tpu.memory_space<vmem>>, vector<1x1x78x3xf32>
      %65 = vector.shape_cast %64 : vector<1x1x78x3xf32> to vector<78x3xf32>
      %c2_71 = arith.constant 2 : index
      %c1_72 = arith.constant 1 : index
      %c0_73 = arith.constant 0 : index
      %c0_74 = arith.constant 0 : index
      %66 = vector.load %arg2[%c2_71, %c1_72, %c0_73, %c0_74] : memref<3x3x3x64xf32, #tpu.memory_space<vmem>>, vector<1x1x3x64xf32>
      %67 = vector.shape_cast %66 : vector<1x1x3x64xf32> to vector<3x64xf32>
      %cst_75 = arith.constant dense<0.000000e+00> : vector<78x64xf32>
      %68 = tpu.matmul %65, %67, %cst_75 {dimension_numbers = #tpu.dot_dimension_numbers<[1], [0], [0], [1], [0, 0, 1, 1], [], []>} : vector<78x3xf32>, vector<3x64xf32>, vector<78x64xf32> -> vector<78x64xf32>
      %69 = arith.addf %62, %68 : vector<78x64xf32>
      %c0_76 = arith.constant 0 : index
      %70 = arith.index_cast %55 : i32 to index
      %c2_77 = arith.constant 2 : index
      %c0_78 = arith.constant 0 : index
      %71 = vector.load %arg1[%c0_76, %70, %c2_77, %c0_78] : memref<1x80x80x3xf32, #tpu.memory_space<vmem>>, vector<1x1x78x3xf32>
      %72 = vector.shape_cast %71 : vector<1x1x78x3xf32> to vector<78x3xf32>
      %c2_79 = arith.constant 2 : index
      %c2_80 = arith.constant 2 : index
      %c0_81 = arith.constant 0 : index
      %c0_82 = arith.constant 0 : index
      %73 = vector.load %arg2[%c2_79, %c2_80, %c0_81, %c0_82] : memref<3x3x3x64xf32, #tpu.memory_space<vmem>>, vector<1x1x3x64xf32>
      %74 = vector.shape_cast %73 : vector<1x1x3x64xf32> to vector<3x64xf32>
      %cst_83 = arith.constant dense<0.000000e+00> : vector<78x64xf32>
      %75 = tpu.matmul %72, %74, %cst_83 {dimension_numbers = #tpu.dot_dimension_numbers<[1], [0], [0], [1], [0, 0, 1, 1], [], []>} : vector<78x3xf32>, vector<3x64xf32>, vector<78x64xf32> -> vector<78x64xf32>
      %76 = arith.addf %69, %75 : vector<78x64xf32>
      %c0_84 = arith.constant 0 : index
      %c0_85 = arith.constant 0 : index
      %77 = vector.load %arg3[%c0_84, %c0_85] : memref<1x64xf32, #tpu.memory_space<vmem>>, vector<1x64xf32>
      %78 = vector.broadcast %77 : vector<1x64xf32> to vector<78x64xf32>
      %79 = arith.addf %76, %78 : vector<78x64xf32>
      %cst_86 = arith.constant 0.000000e+00 : f32
      %80 = vector.broadcast %cst_86 : f32 to vector<78x64xf32>
      %81 = arith.maximumf %79, %80 : vector<78x64xf32>
      %82 = arith.addf %3, %81 : vector<78x64xf32>
      %cst_87 = arith.constant 0.000000e+00 : f32
      %83 = vector.broadcast %cst_87 : f32 to vector<78x64xf32>
      %c3_i32_88 = arith.constant 3 : i32
      %84 = arith.muli %c3_i32_88, %arg13 : i32
      %c1_i32_89 = arith.constant 1 : i32
      %85 = arith.addi %84, %c1_i32_89 : i32
      %c0_i32_90 = arith.constant 0 : i32
      %86 = arith.addi %85, %c0_i32_90 : i32
      %c0_91 = arith.constant 0 : index
      %87 = arith.index_cast %86 : i32 to index
      %c0_92 = arith.constant 0 : index
      %c0_93 = arith.constant 0 : index
      %88 = vector.load %arg1[%c0_91, %87, %c0_92, %c0_93] : memref<1x80x80x3xf32, #tpu.memory_space<vmem>>, vector<1x1x78x3xf32>
      %89 = vector.shape_cast %88 : vector<1x1x78x3xf32> to vector<78x3xf32>
      %c0_94 = arith.constant 0 : index
      %c0_95 = arith.constant 0 : index
      %c0_96 = arith.constant 0 : index
      %c0_97 = arith.constant 0 : index
      %90 = vector.load %arg2[%c0_94, %c0_95, %c0_96, %c0_97] : memref<3x3x3x64xf32, #tpu.memory_space<vmem>>, vector<1x1x3x64xf32>
      %91 = vector.shape_cast %90 : vector<1x1x3x64xf32> to vector<3x64xf32>
      %cst_98 = arith.constant dense<0.000000e+00> : vector<78x64xf32>
      %92 = tpu.matmul %89, %91, %cst_98 {dimension_numbers = #tpu.dot_dimension_numbers<[1], [0], [0], [1], [0, 0, 1, 1], [], []>} : vector<78x3xf32>, vector<3x64xf32>, vector<78x64xf32> -> vector<78x64xf32>
      %93 = arith.addf %83, %92 : vector<78x64xf32>
      %c0_99 = arith.constant 0 : index
      %94 = arith.index_cast %86 : i32 to index
      %c1_100 = arith.constant 1 : index
      %c0_101 = arith.constant 0 : index
      %95 = vector.load %arg1[%c0_99, %94, %c1_100, %c0_101] : memref<1x80x80x3xf32, #tpu.memory_space<vmem>>, vector<1x1x78x3xf32>
      %96 = vector.shape_cast %95 : vector<1x1x78x3xf32> to vector<78x3xf32>
      %c0_102 = arith.constant 0 : index
      %c1_103 = arith.constant 1 : index
      %c0_104 = arith.constant 0 : index
      %c0_105 = arith.constant 0 : index
      %97 = vector.load %arg2[%c0_102, %c1_103, %c0_104, %c0_105] : memref<3x3x3x64xf32, #tpu.memory_space<vmem>>, vector<1x1x3x64xf32>
      %98 = vector.shape_cast %97 : vector<1x1x3x64xf32> to vector<3x64xf32>
      %cst_106 = arith.constant dense<0.000000e+00> : vector<78x64xf32>
      %99 = tpu.matmul %96, %98, %cst_106 {dimension_numbers = #tpu.dot_dimension_numbers<[1], [0], [0], [1], [0, 0, 1, 1], [], []>} : vector<78x3xf32>, vector<3x64xf32>, vector<78x64xf32> -> vector<78x64xf32>
      %100 = arith.addf %93, %99 : vector<78x64xf32>
      %c0_107 = arith.constant 0 : index
      %101 = arith.index_cast %86 : i32 to index
      %c2_108 = arith.constant 2 : index
      %c0_109 = arith.constant 0 : index
      %102 = vector.load %arg1[%c0_107, %101, %c2_108, %c0_109] : memref<1x80x80x3xf32, #tpu.memory_space<vmem>>, vector<1x1x78x3xf32>
      %103 = vector.shape_cast %102 : vector<1x1x78x3xf32> to vector<78x3xf32>
      %c0_110 = arith.constant 0 : index
      %c2_111 = arith.constant 2 : index
      %c0_112 = arith.constant 0 : index
      %c0_113 = arith.constant 0 : index
      %104 = vector.load %arg2[%c0_110, %c2_111, %c0_112, %c0_113] : memref<3x3x3x64xf32, #tpu.memory_space<vmem>>, vector<1x1x3x64xf32>
      %105 = vector.shape_cast %104 : vector<1x1x3x64xf32> to vector<3x64xf32>
      %cst_114 = arith.constant dense<0.000000e+00> : vector<78x64xf32>
      %106 = tpu.matmul %103, %105, %cst_114 {dimension_numbers = #tpu.dot_dimension_numbers<[1], [0], [0], [1], [0, 0, 1, 1], [], []>} : vector<78x3xf32>, vector<3x64xf32>, vector<78x64xf32> -> vector<78x64xf32>
      %107 = arith.addf %100, %106 : vector<78x64xf32>
      %c3_i32_115 = arith.constant 3 : i32
      %108 = arith.muli %c3_i32_115, %arg13 : i32
      %c1_i32_116 = arith.constant 1 : i32
      %109 = arith.addi %108, %c1_i32_116 : i32
      %c1_i32_117 = arith.constant 1 : i32
      %110 = arith.addi %109, %c1_i32_117 : i32
      %c0_118 = arith.constant 0 : index
      %111 = arith.index_cast %110 : i32 to index
      %c0_119 = arith.constant 0 : index
      %c0_120 = arith.constant 0 : index
      %112 = vector.load %arg1[%c0_118, %111, %c0_119, %c0_120] : memref<1x80x80x3xf32, #tpu.memory_space<vmem>>, vector<1x1x78x3xf32>
      %113 = vector.shape_cast %112 : vector<1x1x78x3xf32> to vector<78x3xf32>
      %c1_121 = arith.constant 1 : index
      %c0_122 = arith.constant 0 : index
      %c0_123 = arith.constant 0 : index
      %c0_124 = arith.constant 0 : index
      %114 = vector.load %arg2[%c1_121, %c0_122, %c0_123, %c0_124] : memref<3x3x3x64xf32, #tpu.memory_space<vmem>>, vector<1x1x3x64xf32>
      %115 = vector.shape_cast %114 : vector<1x1x3x64xf32> to vector<3x64xf32>
      %cst_125 = arith.constant dense<0.000000e+00> : vector<78x64xf32>
      %116 = tpu.matmul %113, %115, %cst_125 {dimension_numbers = #tpu.dot_dimension_numbers<[1], [0], [0], [1], [0, 0, 1, 1], [], []>} : vector<78x3xf32>, vector<3x64xf32>, vector<78x64xf32> -> vector<78x64xf32>
      %117 = arith.addf %107, %116 : vector<78x64xf32>
      %c0_126 = arith.constant 0 : index
      %118 = arith.index_cast %110 : i32 to index
      %c1_127 = arith.constant 1 : index
      %c0_128 = arith.constant 0 : index
      %119 = vector.load %arg1[%c0_126, %118, %c1_127, %c0_128] : memref<1x80x80x3xf32, #tpu.memory_space<vmem>>, vector<1x1x78x3xf32>
      %120 = vector.shape_cast %119 : vector<1x1x78x3xf32> to vector<78x3xf32>
      %c1_129 = arith.constant 1 : index
      %c1_130 = arith.constant 1 : index
      %c0_131 = arith.constant 0 : index
      %c0_132 = arith.constant 0 : index
      %121 = vector.load %arg2[%c1_129, %c1_130, %c0_131, %c0_132] : memref<3x3x3x64xf32, #tpu.memory_space<vmem>>, vector<1x1x3x64xf32>
      %122 = vector.shape_cast %121 : vector<1x1x3x64xf32> to vector<3x64xf32>
      %cst_133 = arith.constant dense<0.000000e+00> : vector<78x64xf32>
      %123 = tpu.matmul %120, %122, %cst_133 {dimension_numbers = #tpu.dot_dimension_numbers<[1], [0], [0], [1], [0, 0, 1, 1], [], []>} : vector<78x3xf32>, vector<3x64xf32>, vector<78x64xf32> -> vector<78x64xf32>
      %124 = arith.addf %117, %123 : vector<78x64xf32>
      %c0_134 = arith.constant 0 : index
      %125 = arith.index_cast %110 : i32 to index
      %c2_135 = arith.constant 2 : index
      %c0_136 = arith.constant 0 : index
      %126 = vector.load %arg1[%c0_134, %125, %c2_135, %c0_136] : memref<1x80x80x3xf32, #tpu.memory_space<vmem>>, vector<1x1x78x3xf32>
      %127 = vector.shape_cast %126 : vector<1x1x78x3xf32> to vector<78x3xf32>
      %c1_137 = arith.constant 1 : index
      %c2_138 = arith.constant 2 : index
      %c0_139 = arith.constant 0 : index
      %c0_140 = arith.constant 0 : index
      %128 = vector.load %arg2[%c1_137, %c2_138, %c0_139, %c0_140] : memref<3x3x3x64xf32, #tpu.memory_space<vmem>>, vector<1x1x3x64xf32>
      %129 = vector.shape_cast %128 : vector<1x1x3x64xf32> to vector<3x64xf32>
      %cst_141 = arith.constant dense<0.000000e+00> : vector<78x64xf32>
      %130 = tpu.matmul %127, %129, %cst_141 {dimension_numbers = #tpu.dot_dimension_numbers<[1], [0], [0], [1], [0, 0, 1, 1], [], []>} : vector<78x3xf32>, vector<3x64xf32>, vector<78x64xf32> -> vector<78x64xf32>
      %131 = arith.addf %124, %130 : vector<78x64xf32>
      %c3_i32_142 = arith.constant 3 : i32
      %132 = arith.muli %c3_i32_142, %arg13 : i32
      %c1_i32_143 = arith.constant 1 : i32
      %133 = arith.addi %132, %c1_i32_143 : i32
      %c2_i32_144 = arith.constant 2 : i32
      %134 = arith.addi %133, %c2_i32_144 : i32
      %c0_145 = arith.constant 0 : index
      %135 = arith.index_cast %134 : i32 to index
      %c0_146 = arith.constant 0 : index
      %c0_147 = arith.constant 0 : index
      %136 = vector.load %arg1[%c0_145, %135, %c0_146, %c0_147] : memref<1x80x80x3xf32, #tpu.memory_space<vmem>>, vector<1x1x78x3xf32>
      %137 = vector.shape_cast %136 : vector<1x1x78x3xf32> to vector<78x3xf32>
      %c2_148 = arith.constant 2 : index
      %c0_149 = arith.constant 0 : index
      %c0_150 = arith.constant 0 : index
      %c0_151 = arith.constant 0 : index
      %138 = vector.load %arg2[%c2_148, %c0_149, %c0_150, %c0_151] : memref<3x3x3x64xf32, #tpu.memory_space<vmem>>, vector<1x1x3x64xf32>
      %139 = vector.shape_cast %138 : vector<1x1x3x64xf32> to vector<3x64xf32>
      %cst_152 = arith.constant dense<0.000000e+00> : vector<78x64xf32>
      %140 = tpu.matmul %137, %139, %cst_152 {dimension_numbers = #tpu.dot_dimension_numbers<[1], [0], [0], [1], [0, 0, 1, 1], [], []>} : vector<78x3xf32>, vector<3x64xf32>, vector<78x64xf32> -> vector<78x64xf32>
      %141 = arith.addf %131, %140 : vector<78x64xf32>
      %c0_153 = arith.constant 0 : index
      %142 = arith.index_cast %134 : i32 to index
      %c1_154 = arith.constant 1 : index
      %c0_155 = arith.constant 0 : index
      %143 = vector.load %arg1[%c0_153, %142, %c1_154, %c0_155] : memref<1x80x80x3xf32, #tpu.memory_space<vmem>>, vector<1x1x78x3xf32>
      %144 = vector.shape_cast %143 : vector<1x1x78x3xf32> to vector<78x3xf32>
      %c2_156 = arith.constant 2 : index
      %c1_157 = arith.constant 1 : index
      %c0_158 = arith.constant 0 : index
      %c0_159 = arith.constant 0 : index
      %145 = vector.load %arg2[%c2_156, %c1_157, %c0_158, %c0_159] : memref<3x3x3x64xf32, #tpu.memory_space<vmem>>, vector<1x1x3x64xf32>
      %146 = vector.shape_cast %145 : vector<1x1x3x64xf32> to vector<3x64xf32>
      %cst_160 = arith.constant dense<0.000000e+00> : vector<78x64xf32>
      %147 = tpu.matmul %144, %146, %cst_160 {dimension_numbers = #tpu.dot_dimension_numbers<[1], [0], [0], [1], [0, 0, 1, 1], [], []>} : vector<78x3xf32>, vector<3x64xf32>, vector<78x64xf32> -> vector<78x64xf32>
      %148 = arith.addf %141, %147 : vector<78x64xf32>
      %c0_161 = arith.constant 0 : index
      %149 = arith.index_cast %134 : i32 to index
      %c2_162 = arith.constant 2 : index
      %c0_163 = arith.constant 0 : index
      %150 = vector.load %arg1[%c0_161, %149, %c2_162, %c0_163] : memref<1x80x80x3xf32, #tpu.memory_space<vmem>>, vector<1x1x78x3xf32>
      %151 = vector.shape_cast %150 : vector<1x1x78x3xf32> to vector<78x3xf32>
      %c2_164 = arith.constant 2 : index
      %c2_165 = arith.constant 2 : index
      %c0_166 = arith.constant 0 : index
      %c0_167 = arith.constant 0 : index
      %152 = vector.load %arg2[%c2_164, %c2_165, %c0_166, %c0_167] : memref<3x3x3x64xf32, #tpu.memory_space<vmem>>, vector<1x1x3x64xf32>
      %153 = vector.shape_cast %152 : vector<1x1x3x64xf32> to vector<3x64xf32>
      %cst_168 = arith.constant dense<0.000000e+00> : vector<78x64xf32>
      %154 = tpu.matmul %151, %153, %cst_168 {dimension_numbers = #tpu.dot_dimension_numbers<[1], [0], [0], [1], [0, 0, 1, 1], [], []>} : vector<78x3xf32>, vector<3x64xf32>, vector<78x64xf32> -> vector<78x64xf32>
      %155 = arith.addf %148, %154 : vector<78x64xf32>
      %c0_169 = arith.constant 0 : index
      %c0_170 = arith.constant 0 : index
      %156 = vector.load %arg3[%c0_169, %c0_170] : memref<1x64xf32, #tpu.memory_space<vmem>>, vector<1x64xf32>
      %157 = vector.broadcast %156 : vector<1x64xf32> to vector<78x64xf32>
      %158 = arith.addf %155, %157 : vector<78x64xf32>
      %cst_171 = arith.constant 0.000000e+00 : f32
      %159 = vector.broadcast %cst_171 : f32 to vector<78x64xf32>
      %160 = arith.maximumf %158, %159 : vector<78x64xf32>
      %161 = arith.addf %82, %160 : vector<78x64xf32>
      %cst_172 = arith.constant 0.000000e+00 : f32
      %162 = vector.broadcast %cst_172 : f32 to vector<78x64xf32>
      %c3_i32_173 = arith.constant 3 : i32
      %163 = arith.muli %c3_i32_173, %arg13 : i32
      %c2_i32_174 = arith.constant 2 : i32
      %164 = arith.addi %163, %c2_i32_174 : i32
      %c0_i32_175 = arith.constant 0 : i32
      %165 = arith.addi %164, %c0_i32_175 : i32
      %c0_176 = arith.constant 0 : index
      %166 = arith.index_cast %165 : i32 to index
      %c0_177 = arith.constant 0 : index
      %c0_178 = arith.constant 0 : index
      %167 = vector.load %arg1[%c0_176, %166, %c0_177, %c0_178] : memref<1x80x80x3xf32, #tpu.memory_space<vmem>>, vector<1x1x78x3xf32>
      %168 = vector.shape_cast %167 : vector<1x1x78x3xf32> to vector<78x3xf32>
      %c0_179 = arith.constant 0 : index
      %c0_180 = arith.constant 0 : index
      %c0_181 = arith.constant 0 : index
      %c0_182 = arith.constant 0 : index
      %169 = vector.load %arg2[%c0_179, %c0_180, %c0_181, %c0_182] : memref<3x3x3x64xf32, #tpu.memory_space<vmem>>, vector<1x1x3x64xf32>
      %170 = vector.shape_cast %169 : vector<1x1x3x64xf32> to vector<3x64xf32>
      %cst_183 = arith.constant dense<0.000000e+00> : vector<78x64xf32>
      %171 = tpu.matmul %168, %170, %cst_183 {dimension_numbers = #tpu.dot_dimension_numbers<[1], [0], [0], [1], [0, 0, 1, 1], [], []>} : vector<78x3xf32>, vector<3x64xf32>, vector<78x64xf32> -> vector<78x64xf32>
      %172 = arith.addf %162, %171 : vector<78x64xf32>
      %c0_184 = arith.constant 0 : index
      %173 = arith.index_cast %165 : i32 to index
      %c1_185 = arith.constant 1 : index
      %c0_186 = arith.constant 0 : index
      %174 = vector.load %arg1[%c0_184, %173, %c1_185, %c0_186] : memref<1x80x80x3xf32, #tpu.memory_space<vmem>>, vector<1x1x78x3xf32>
      %175 = vector.shape_cast %174 : vector<1x1x78x3xf32> to vector<78x3xf32>
      %c0_187 = arith.constant 0 : index
      %c1_188 = arith.constant 1 : index
      %c0_189 = arith.constant 0 : index
      %c0_190 = arith.constant 0 : index
      %176 = vector.load %arg2[%c0_187, %c1_188, %c0_189, %c0_190] : memref<3x3x3x64xf32, #tpu.memory_space<vmem>>, vector<1x1x3x64xf32>
      %177 = vector.shape_cast %176 : vector<1x1x3x64xf32> to vector<3x64xf32>
      %cst_191 = arith.constant dense<0.000000e+00> : vector<78x64xf32>
      %178 = tpu.matmul %175, %177, %cst_191 {dimension_numbers = #tpu.dot_dimension_numbers<[1], [0], [0], [1], [0, 0, 1, 1], [], []>} : vector<78x3xf32>, vector<3x64xf32>, vector<78x64xf32> -> vector<78x64xf32>
      %179 = arith.addf %172, %178 : vector<78x64xf32>
      %c0_192 = arith.constant 0 : index
      %180 = arith.index_cast %165 : i32 to index
      %c2_193 = arith.constant 2 : index
      %c0_194 = arith.constant 0 : index
      %181 = vector.load %arg1[%c0_192, %180, %c2_193, %c0_194] : memref<1x80x80x3xf32, #tpu.memory_space<vmem>>, vector<1x1x78x3xf32>
      %182 = vector.shape_cast %181 : vector<1x1x78x3xf32> to vector<78x3xf32>
      %c0_195 = arith.constant 0 : index
      %c2_196 = arith.constant 2 : index
      %c0_197 = arith.constant 0 : index
      %c0_198 = arith.constant 0 : index
      %183 = vector.load %arg2[%c0_195, %c2_196, %c0_197, %c0_198] : memref<3x3x3x64xf32, #tpu.memory_space<vmem>>, vector<1x1x3x64xf32>
      %184 = vector.shape_cast %183 : vector<1x1x3x64xf32> to vector<3x64xf32>
      %cst_199 = arith.constant dense<0.000000e+00> : vector<78x64xf32>
      %185 = tpu.matmul %182, %184, %cst_199 {dimension_numbers = #tpu.dot_dimension_numbers<[1], [0], [0], [1], [0, 0, 1, 1], [], []>} : vector<78x3xf32>, vector<3x64xf32>, vector<78x64xf32> -> vector<78x64xf32>
      %186 = arith.addf %179, %185 : vector<78x64xf32>
      %c3_i32_200 = arith.constant 3 : i32
      %187 = arith.muli %c3_i32_200, %arg13 : i32
      %c2_i32_201 = arith.constant 2 : i32
      %188 = arith.addi %187, %c2_i32_201 : i32
      %c1_i32_202 = arith.constant 1 : i32
      %189 = arith.addi %188, %c1_i32_202 : i32
      %c0_203 = arith.constant 0 : index
      %190 = arith.index_cast %189 : i32 to index
      %c0_204 = arith.constant 0 : index
      %c0_205 = arith.constant 0 : index
      %191 = vector.load %arg1[%c0_203, %190, %c0_204, %c0_205] : memref<1x80x80x3xf32, #tpu.memory_space<vmem>>, vector<1x1x78x3xf32>
      %192 = vector.shape_cast %191 : vector<1x1x78x3xf32> to vector<78x3xf32>
      %c1_206 = arith.constant 1 : index
      %c0_207 = arith.constant 0 : index
      %c0_208 = arith.constant 0 : index
      %c0_209 = arith.constant 0 : index
      %193 = vector.load %arg2[%c1_206, %c0_207, %c0_208, %c0_209] : memref<3x3x3x64xf32, #tpu.memory_space<vmem>>, vector<1x1x3x64xf32>
      %194 = vector.shape_cast %193 : vector<1x1x3x64xf32> to vector<3x64xf32>
      %cst_210 = arith.constant dense<0.000000e+00> : vector<78x64xf32>
      %195 = tpu.matmul %192, %194, %cst_210 {dimension_numbers = #tpu.dot_dimension_numbers<[1], [0], [0], [1], [0, 0, 1, 1], [], []>} : vector<78x3xf32>, vector<3x64xf32>, vector<78x64xf32> -> vector<78x64xf32>
      %196 = arith.addf %186, %195 : vector<78x64xf32>
      %c0_211 = arith.constant 0 : index
      %197 = arith.index_cast %189 : i32 to index
      %c1_212 = arith.constant 1 : index
      %c0_213 = arith.constant 0 : index
      %198 = vector.load %arg1[%c0_211, %197, %c1_212, %c0_213] : memref<1x80x80x3xf32, #tpu.memory_space<vmem>>, vector<1x1x78x3xf32>
      %199 = vector.shape_cast %198 : vector<1x1x78x3xf32> to vector<78x3xf32>
      %c1_214 = arith.constant 1 : index
      %c1_215 = arith.constant 1 : index
      %c0_216 = arith.constant 0 : index
      %c0_217 = arith.constant 0 : index
      %200 = vector.load %arg2[%c1_214, %c1_215, %c0_216, %c0_217] : memref<3x3x3x64xf32, #tpu.memory_space<vmem>>, vector<1x1x3x64xf32>
      %201 = vector.shape_cast %200 : vector<1x1x3x64xf32> to vector<3x64xf32>
      %cst_218 = arith.constant dense<0.000000e+00> : vector<78x64xf32>
      %202 = tpu.matmul %199, %201, %cst_218 {dimension_numbers = #tpu.dot_dimension_numbers<[1], [0], [0], [1], [0, 0, 1, 1], [], []>} : vector<78x3xf32>, vector<3x64xf32>, vector<78x64xf32> -> vector<78x64xf32>
      %203 = arith.addf %196, %202 : vector<78x64xf32>
      %c0_219 = arith.constant 0 : index
      %204 = arith.index_cast %189 : i32 to index
      %c2_220 = arith.constant 2 : index
      %c0_221 = arith.constant 0 : index
      %205 = vector.load %arg1[%c0_219, %204, %c2_220, %c0_221] : memref<1x80x80x3xf32, #tpu.memory_space<vmem>>, vector<1x1x78x3xf32>
      %206 = vector.shape_cast %205 : vector<1x1x78x3xf32> to vector<78x3xf32>
      %c1_222 = arith.constant 1 : index
      %c2_223 = arith.constant 2 : index
      %c0_224 = arith.constant 0 : index
      %c0_225 = arith.constant 0 : index
      %207 = vector.load %arg2[%c1_222, %c2_223, %c0_224, %c0_225] : memref<3x3x3x64xf32, #tpu.memory_space<vmem>>, vector<1x1x3x64xf32>
      %208 = vector.shape_cast %207 : vector<1x1x3x64xf32> to vector<3x64xf32>
      %cst_226 = arith.constant dense<0.000000e+00> : vector<78x64xf32>
      %209 = tpu.matmul %206, %208, %cst_226 {dimension_numbers = #tpu.dot_dimension_numbers<[1], [0], [0], [1], [0, 0, 1, 1], [], []>} : vector<78x3xf32>, vector<3x64xf32>, vector<78x64xf32> -> vector<78x64xf32>
      %210 = arith.addf %203, %209 : vector<78x64xf32>
      %c3_i32_227 = arith.constant 3 : i32
      %211 = arith.muli %c3_i32_227, %arg13 : i32
      %c2_i32_228 = arith.constant 2 : i32
      %212 = arith.addi %211, %c2_i32_228 : i32
      %c2_i32_229 = arith.constant 2 : i32
      %213 = arith.addi %212, %c2_i32_229 : i32
      %c0_230 = arith.constant 0 : index
      %214 = arith.index_cast %213 : i32 to index
      %c0_231 = arith.constant 0 : index
      %c0_232 = arith.constant 0 : index
      %215 = vector.load %arg1[%c0_230, %214, %c0_231, %c0_232] : memref<1x80x80x3xf32, #tpu.memory_space<vmem>>, vector<1x1x78x3xf32>
      %216 = vector.shape_cast %215 : vector<1x1x78x3xf32> to vector<78x3xf32>
      %c2_233 = arith.constant 2 : index
      %c0_234 = arith.constant 0 : index
      %c0_235 = arith.constant 0 : index
      %c0_236 = arith.constant 0 : index
      %217 = vector.load %arg2[%c2_233, %c0_234, %c0_235, %c0_236] : memref<3x3x3x64xf32, #tpu.memory_space<vmem>>, vector<1x1x3x64xf32>
      %218 = vector.shape_cast %217 : vector<1x1x3x64xf32> to vector<3x64xf32>
      %cst_237 = arith.constant dense<0.000000e+00> : vector<78x64xf32>
      %219 = tpu.matmul %216, %218, %cst_237 {dimension_numbers = #tpu.dot_dimension_numbers<[1], [0], [0], [1], [0, 0, 1, 1], [], []>} : vector<78x3xf32>, vector<3x64xf32>, vector<78x64xf32> -> vector<78x64xf32>
      %220 = arith.addf %210, %219 : vector<78x64xf32>
      %c0_238 = arith.constant 0 : index
      %221 = arith.index_cast %213 : i32 to index
      %c1_239 = arith.constant 1 : index
      %c0_240 = arith.constant 0 : index
      %222 = vector.load %arg1[%c0_238, %221, %c1_239, %c0_240] : memref<1x80x80x3xf32, #tpu.memory_space<vmem>>, vector<1x1x78x3xf32>
      %223 = vector.shape_cast %222 : vector<1x1x78x3xf32> to vector<78x3xf32>
      %c2_241 = arith.constant 2 : index
      %c1_242 = arith.constant 1 : index
      %c0_243 = arith.constant 0 : index
      %c0_244 = arith.constant 0 : index
      %224 = vector.load %arg2[%c2_241, %c1_242, %c0_243, %c0_244] : memref<3x3x3x64xf32, #tpu.memory_space<vmem>>, vector<1x1x3x64xf32>
      %225 = vector.shape_cast %224 : vector<1x1x3x64xf32> to vector<3x64xf32>
      %cst_245 = arith.constant dense<0.000000e+00> : vector<78x64xf32>
      %226 = tpu.matmul %223, %225, %cst_245 {dimension_numbers = #tpu.dot_dimension_numbers<[1], [0], [0], [1], [0, 0, 1, 1], [], []>} : vector<78x3xf32>, vector<3x64xf32>, vector<78x64xf32> -> vector<78x64xf32>
      %227 = arith.addf %220, %226 : vector<78x64xf32>
      %c0_246 = arith.constant 0 : index
      %228 = arith.index_cast %213 : i32 to index
      %c2_247 = arith.constant 2 : index
      %c0_248 = arith.constant 0 : index
      %229 = vector.load %arg1[%c0_246, %228, %c2_247, %c0_248] : memref<1x80x80x3xf32, #tpu.memory_space<vmem>>, vector<1x1x78x3xf32>
      %230 = vector.shape_cast %229 : vector<1x1x78x3xf32> to vector<78x3xf32>
      %c2_249 = arith.constant 2 : index
      %c2_250 = arith.constant 2 : index
      %c0_251 = arith.constant 0 : index
      %c0_252 = arith.constant 0 : index
      %231 = vector.load %arg2[%c2_249, %c2_250, %c0_251, %c0_252] : memref<3x3x3x64xf32, #tpu.memory_space<vmem>>, vector<1x1x3x64xf32>
      %232 = vector.shape_cast %231 : vector<1x1x3x64xf32> to vector<3x64xf32>
      %cst_253 = arith.constant dense<0.000000e+00> : vector<78x64xf32>
      %233 = tpu.matmul %230, %232, %cst_253 {dimension_numbers = #tpu.dot_dimension_numbers<[1], [0], [0], [1], [0, 0, 1, 1], [], []>} : vector<78x3xf32>, vector<3x64xf32>, vector<78x64xf32> -> vector<78x64xf32>
      %234 = arith.addf %227, %233 : vector<78x64xf32>
      %c0_254 = arith.constant 0 : index
      %c0_255 = arith.constant 0 : index
      %235 = vector.load %arg3[%c0_254, %c0_255] : memref<1x64xf32, #tpu.memory_space<vmem>>, vector<1x64xf32>
      %236 = vector.broadcast %235 : vector<1x64xf32> to vector<78x64xf32>
      %237 = arith.addf %234, %236 : vector<78x64xf32>
      %cst_256 = arith.constant 0.000000e+00 : f32
      %238 = vector.broadcast %cst_256 : f32 to vector<78x64xf32>
      %239 = arith.maximumf %237, %238 : vector<78x64xf32>
      %240 = arith.addf %161, %239 : vector<78x64xf32>
      %c0_257 = arith.constant 0 : index
      %c0_258 = arith.constant 0 : index
      %241 = vector.load %arg8[%c0_257, %c0_258] : memref<26x78xf32, #tpu.memory_space<vmem>>, vector<26x78xf32>
      %cst_259 = arith.constant dense<0.000000e+00> : vector<26x64xf32>
      %242 = tpu.matmul %241, %240, %cst_259 {dimension_numbers = #tpu.dot_dimension_numbers<[1], [0], [0], [1], [0, 0, 1, 1], [], []>} : vector<26x78xf32>, vector<78x64xf32>, vector<26x64xf32> -> vector<26x64xf32>
      %243 = arith.index_cast %arg13 : i32 to index
      %c0_260 = arith.constant 0 : index
      %c0_261 = arith.constant 0 : index
      %244 = vector.load %arg11[%243, %c0_260, %c0_261] : memref<26x26x64xf32, #tpu.memory_space<vmem>>, vector<1x26x64xf32>
      %245 = vector.shape_cast %244 : vector<1x26x64xf32> to vector<26x64xf32>
      %246 = vector.shape_cast %242 : vector<26x64xf32> to vector<1x26x64xf32>
      tpu.vector_store %arg11[%243, %c0_260, %c0_261], %246 {strides = array<i32>} : memref<26x26x64xf32, #tpu.memory_space<vmem>>, vector<1x26x64xf32>,
    }
    %c26_i32_0 = arith.constant 26 : i32
    %c0_i32_1 = arith.constant 0 : i32
    %c12_i32 = arith.constant 12 : i32
    %1 = arith.addi %c0_i32_1, %c12_i32 : i32
    %c1_i32_2 = arith.constant 1 : i32
    scf.for %arg13 = %c0_i32_1 to %1 step %c1_i32_2  : i32 {
      %cst = arith.constant 0.000000e+00 : f32
      %3 = vector.broadcast %cst : f32 to vector<24x32xf32>
      %cst_7 = arith.constant 0.000000e+00 : f32
      %4 = vector.broadcast %cst_7 : f32 to vector<24x32xf32>
      %c2_i32 = arith.constant 2 : i32
      %5 = arith.muli %c2_i32, %arg13 : i32
      %c0_i32_8 = arith.constant 0 : i32
      %6 = arith.addi %5, %c0_i32_8 : i32
      %c0_i32_9 = arith.constant 0 : i32
      %7 = arith.addi %6, %c0_i32_9 : i32
      %8 = arith.index_cast %7 : i32 to index
      %c0 = arith.constant 0 : index
      %c0_10 = arith.constant 0 : index
      %9 = vector.load %arg11[%8, %c0, %c0_10] : memref<26x26x64xf32, #tpu.memory_space<vmem>>, vector<1x24x64xf32>
      %10 = vector.shape_cast %9 : vector<1x24x64xf32> to vector<24x64xf32>
      %c0_11 = arith.constant 0 : index
      %c0_12 = arith.constant 0 : index
      %c0_13 = arith.constant 0 : index
      %c0_14 = arith.constant 0 : index
      %11 = vector.load %arg4[%c0_11, %c0_12, %c0_13, %c0_14] : memref<3x3x64x32xf32, #tpu.memory_space<vmem>>, vector<1x1x64x32xf32>
      %12 = vector.shape_cast %11 : vector<1x1x64x32xf32> to vector<64x32xf32>
      %cst_15 = arith.constant dense<0.000000e+00> : vector<24x32xf32>
      %13 = tpu.matmul %10, %12, %cst_15 {dimension_numbers = #tpu.dot_dimension_numbers<[1], [0], [0], [1], [0, 0, 1, 1], [], []>} : vector<24x64xf32>, vector<64x32xf32>, vector<24x32xf32> -> vector<24x32xf32>
      %14 = arith.addf %4, %13 : vector<24x32xf32>
      %15 = arith.index_cast %7 : i32 to index
      %c1 = arith.constant 1 : index
      %c0_16 = arith.constant 0 : index
      %16 = vector.load %arg11[%15, %c1, %c0_16] : memref<26x26x64xf32, #tpu.memory_space<vmem>>, vector<1x24x64xf32>
      %17 = vector.shape_cast %16 : vector<1x24x64xf32> to vector<24x64xf32>
      %c0_17 = arith.constant 0 : index
      %c1_18 = arith.constant 1 : index
      %c0_19 = arith.constant 0 : index
      %c0_20 = arith.constant 0 : index
      %18 = vector.load %arg4[%c0_17, %c1_18, %c0_19, %c0_20] : memref<3x3x64x32xf32, #tpu.memory_space<vmem>>, vector<1x1x64x32xf32>
      %19 = vector.shape_cast %18 : vector<1x1x64x32xf32> to vector<64x32xf32>
      %cst_21 = arith.constant dense<0.000000e+00> : vector<24x32xf32>
      %20 = tpu.matmul %17, %19, %cst_21 {dimension_numbers = #tpu.dot_dimension_numbers<[1], [0], [0], [1], [0, 0, 1, 1], [], []>} : vector<24x64xf32>, vector<64x32xf32>, vector<24x32xf32> -> vector<24x32xf32>
      %21 = arith.addf %14, %20 : vector<24x32xf32>
      %22 = arith.index_cast %7 : i32 to index
      %c2 = arith.constant 2 : index
      %c0_22 = arith.constant 0 : index
      %23 = vector.load %arg11[%22, %c2, %c0_22] : memref<26x26x64xf32, #tpu.memory_space<vmem>>, vector<1x24x64xf32>
      %24 = vector.shape_cast %23 : vector<1x24x64xf32> to vector<24x64xf32>
      %c0_23 = arith.constant 0 : index
      %c2_24 = arith.constant 2 : index
      %c0_25 = arith.constant 0 : index
      %c0_26 = arith.constant 0 : index
      %25 = vector.load %arg4[%c0_23, %c2_24, %c0_25, %c0_26] : memref<3x3x64x32xf32, #tpu.memory_space<vmem>>, vector<1x1x64x32xf32>
      %26 = vector.shape_cast %25 : vector<1x1x64x32xf32> to vector<64x32xf32>
      %cst_27 = arith.constant dense<0.000000e+00> : vector<24x32xf32>
      %27 = tpu.matmul %24, %26, %cst_27 {dimension_numbers = #tpu.dot_dimension_numbers<[1], [0], [0], [1], [0, 0, 1, 1], [], []>} : vector<24x64xf32>, vector<64x32xf32>, vector<24x32xf32> -> vector<24x32xf32>
      %28 = arith.addf %21, %27 : vector<24x32xf32>
      %c2_i32_28 = arith.constant 2 : i32
      %29 = arith.muli %c2_i32_28, %arg13 : i32
      %c0_i32_29 = arith.constant 0 : i32
      %30 = arith.addi %29, %c0_i32_29 : i32
      %c1_i32_30 = arith.constant 1 : i32
      %31 = arith.addi %30, %c1_i32_30 : i32
      %32 = arith.index_cast %31 : i32 to index
      %c0_31 = arith.constant 0 : index
      %c0_32 = arith.constant 0 : index
      %33 = vector.load %arg11[%32, %c0_31, %c0_32] : memref<26x26x64xf32, #tpu.memory_space<vmem>>, vector<1x24x64xf32>
      %34 = vector.shape_cast %33 : vector<1x24x64xf32> to vector<24x64xf32>
      %c1_33 = arith.constant 1 : index
      %c0_34 = arith.constant 0 : index
      %c0_35 = arith.constant 0 : index
      %c0_36 = arith.constant 0 : index
      %35 = vector.load %arg4[%c1_33, %c0_34, %c0_35, %c0_36] : memref<3x3x64x32xf32, #tpu.memory_space<vmem>>, vector<1x1x64x32xf32>
      %36 = vector.shape_cast %35 : vector<1x1x64x32xf32> to vector<64x32xf32>
      %cst_37 = arith.constant dense<0.000000e+00> : vector<24x32xf32>
      %37 = tpu.matmul %34, %36, %cst_37 {dimension_numbers = #tpu.dot_dimension_numbers<[1], [0], [0], [1], [0, 0, 1, 1], [], []>} : vector<24x64xf32>, vector<64x32xf32>, vector<24x32xf32> -> vector<24x32xf32>
      %38 = arith.addf %28, %37 : vector<24x32xf32>
      %39 = arith.index_cast %31 : i32 to index
      %c1_38 = arith.constant 1 : index
      %c0_39 = arith.constant 0 : index
      %40 = vector.load %arg11[%39, %c1_38, %c0_39] : memref<26x26x64xf32, #tpu.memory_space<vmem>>, vector<1x24x64xf32>
      %41 = vector.shape_cast %40 : vector<1x24x64xf32> to vector<24x64xf32>
      %c1_40 = arith.constant 1 : index
      %c1_41 = arith.constant 1 : index
      %c0_42 = arith.constant 0 : index
      %c0_43 = arith.constant 0 : index
      %42 = vector.load %arg4[%c1_40, %c1_41, %c0_42, %c0_43] : memref<3x3x64x32xf32, #tpu.memory_space<vmem>>, vector<1x1x64x32xf32>
      %43 = vector.shape_cast %42 : vector<1x1x64x32xf32> to vector<64x32xf32>
      %cst_44 = arith.constant dense<0.000000e+00> : vector<24x32xf32>
      %44 = tpu.matmul %41, %43, %cst_44 {dimension_numbers = #tpu.dot_dimension_numbers<[1], [0], [0], [1], [0, 0, 1, 1], [], []>} : vector<24x64xf32>, vector<64x32xf32>, vector<24x32xf32> -> vector<24x32xf32>
      %45 = arith.addf %38, %44 : vector<24x32xf32>
      %46 = arith.index_cast %31 : i32 to index
      %c2_45 = arith.constant 2 : index
      %c0_46 = arith.constant 0 : index
      %47 = vector.load %arg11[%46, %c2_45, %c0_46] : memref<26x26x64xf32, #tpu.memory_space<vmem>>, vector<1x24x64xf32>
      %48 = vector.shape_cast %47 : vector<1x24x64xf32> to vector<24x64xf32>
      %c1_47 = arith.constant 1 : index
      %c2_48 = arith.constant 2 : index
      %c0_49 = arith.constant 0 : index
      %c0_50 = arith.constant 0 : index
      %49 = vector.load %arg4[%c1_47, %c2_48, %c0_49, %c0_50] : memref<3x3x64x32xf32, #tpu.memory_space<vmem>>, vector<1x1x64x32xf32>
      %50 = vector.shape_cast %49 : vector<1x1x64x32xf32> to vector<64x32xf32>
      %cst_51 = arith.constant dense<0.000000e+00> : vector<24x32xf32>
      %51 = tpu.matmul %48, %50, %cst_51 {dimension_numbers = #tpu.dot_dimension_numbers<[1], [0], [0], [1], [0, 0, 1, 1], [], []>} : vector<24x64xf32>, vector<64x32xf32>, vector<24x32xf32> -> vector<24x32xf32>
      %52 = arith.addf %45, %51 : vector<24x32xf32>
      %c2_i32_52 = arith.constant 2 : i32
      %53 = arith.muli %c2_i32_52, %arg13 : i32
      %c0_i32_53 = arith.constant 0 : i32
      %54 = arith.addi %53, %c0_i32_53 : i32
      %c2_i32_54 = arith.constant 2 : i32
      %55 = arith.addi %54, %c2_i32_54 : i32
      %56 = arith.index_cast %55 : i32 to index
      %c0_55 = arith.constant 0 : index
      %c0_56 = arith.constant 0 : index
      %57 = vector.load %arg11[%56, %c0_55, %c0_56] : memref<26x26x64xf32, #tpu.memory_space<vmem>>, vector<1x24x64xf32>
      %58 = vector.shape_cast %57 : vector<1x24x64xf32> to vector<24x64xf32>
      %c2_57 = arith.constant 2 : index
      %c0_58 = arith.constant 0 : index
      %c0_59 = arith.constant 0 : index
      %c0_60 = arith.constant 0 : index
      %59 = vector.load %arg4[%c2_57, %c0_58, %c0_59, %c0_60] : memref<3x3x64x32xf32, #tpu.memory_space<vmem>>, vector<1x1x64x32xf32>
      %60 = vector.shape_cast %59 : vector<1x1x64x32xf32> to vector<64x32xf32>
      %cst_61 = arith.constant dense<0.000000e+00> : vector<24x32xf32>
      %61 = tpu.matmul %58, %60, %cst_61 {dimension_numbers = #tpu.dot_dimension_numbers<[1], [0], [0], [1], [0, 0, 1, 1], [], []>} : vector<24x64xf32>, vector<64x32xf32>, vector<24x32xf32> -> vector<24x32xf32>
      %62 = arith.addf %52, %61 : vector<24x32xf32>
      %63 = arith.index_cast %55 : i32 to index
      %c1_62 = arith.constant 1 : index
      %c0_63 = arith.constant 0 : index
      %64 = vector.load %arg11[%63, %c1_62, %c0_63] : memref<26x26x64xf32, #tpu.memory_space<vmem>>, vector<1x24x64xf32>
      %65 = vector.shape_cast %64 : vector<1x24x64xf32> to vector<24x64xf32>
      %c2_64 = arith.constant 2 : index
      %c1_65 = arith.constant 1 : index
      %c0_66 = arith.constant 0 : index
      %c0_67 = arith.constant 0 : index
      %66 = vector.load %arg4[%c2_64, %c1_65, %c0_66, %c0_67] : memref<3x3x64x32xf32, #tpu.memory_space<vmem>>, vector<1x1x64x32xf32>
      %67 = vector.shape_cast %66 : vector<1x1x64x32xf32> to vector<64x32xf32>
      %cst_68 = arith.constant dense<0.000000e+00> : vector<24x32xf32>
      %68 = tpu.matmul %65, %67, %cst_68 {dimension_numbers = #tpu.dot_dimension_numbers<[1], [0], [0], [1], [0, 0, 1, 1], [], []>} : vector<24x64xf32>, vector<64x32xf32>, vector<24x32xf32> -> vector<24x32xf32>
      %69 = arith.addf %62, %68 : vector<24x32xf32>
      %70 = arith.index_cast %55 : i32 to index
      %c2_69 = arith.constant 2 : index
      %c0_70 = arith.constant 0 : index
      %71 = vector.load %arg11[%70, %c2_69, %c0_70] : memref<26x26x64xf32, #tpu.memory_space<vmem>>, vector<1x24x64xf32>
      %72 = vector.shape_cast %71 : vector<1x24x64xf32> to vector<24x64xf32>
      %c2_71 = arith.constant 2 : index
      %c2_72 = arith.constant 2 : index
      %c0_73 = arith.constant 0 : index
      %c0_74 = arith.constant 0 : index
      %73 = vector.load %arg4[%c2_71, %c2_72, %c0_73, %c0_74] : memref<3x3x64x32xf32, #tpu.memory_space<vmem>>, vector<1x1x64x32xf32>
      %74 = vector.shape_cast %73 : vector<1x1x64x32xf32> to vector<64x32xf32>
      %cst_75 = arith.constant dense<0.000000e+00> : vector<24x32xf32>
      %75 = tpu.matmul %72, %74, %cst_75 {dimension_numbers = #tpu.dot_dimension_numbers<[1], [0], [0], [1], [0, 0, 1, 1], [], []>} : vector<24x64xf32>, vector<64x32xf32>, vector<24x32xf32> -> vector<24x32xf32>
      %76 = arith.addf %69, %75 : vector<24x32xf32>
      %c0_76 = arith.constant 0 : index
      %c0_77 = arith.constant 0 : index
      %77 = vector.load %arg5[%c0_76, %c0_77] : memref<1x32xf32, #tpu.memory_space<vmem>>, vector<1x32xf32>
      %78 = vector.broadcast %77 : vector<1x32xf32> to vector<24x32xf32>
      %79 = arith.addf %76, %78 : vector<24x32xf32>
      %cst_78 = arith.constant 0.000000e+00 : f32
      %80 = vector.broadcast %cst_78 : f32 to vector<24x32xf32>
      %81 = arith.maximumf %79, %80 : vector<24x32xf32>
      %82 = arith.addf %3, %81 : vector<24x32xf32>
      %cst_79 = arith.constant 0.000000e+00 : f32
      %83 = vector.broadcast %cst_79 : f32 to vector<24x32xf32>
      %c2_i32_80 = arith.constant 2 : i32
      %84 = arith.muli %c2_i32_80, %arg13 : i32
      %c1_i32_81 = arith.constant 1 : i32
      %85 = arith.addi %84, %c1_i32_81 : i32
      %c0_i32_82 = arith.constant 0 : i32
      %86 = arith.addi %85, %c0_i32_82 : i32
      %87 = arith.index_cast %86 : i32 to index
      %c0_83 = arith.constant 0 : index
      %c0_84 = arith.constant 0 : index
      %88 = vector.load %arg11[%87, %c0_83, %c0_84] : memref<26x26x64xf32, #tpu.memory_space<vmem>>, vector<1x24x64xf32>
      %89 = vector.shape_cast %88 : vector<1x24x64xf32> to vector<24x64xf32>
      %c0_85 = arith.constant 0 : index
      %c0_86 = arith.constant 0 : index
      %c0_87 = arith.constant 0 : index
      %c0_88 = arith.constant 0 : index
      %90 = vector.load %arg4[%c0_85, %c0_86, %c0_87, %c0_88] : memref<3x3x64x32xf32, #tpu.memory_space<vmem>>, vector<1x1x64x32xf32>
      %91 = vector.shape_cast %90 : vector<1x1x64x32xf32> to vector<64x32xf32>
      %cst_89 = arith.constant dense<0.000000e+00> : vector<24x32xf32>
      %92 = tpu.matmul %89, %91, %cst_89 {dimension_numbers = #tpu.dot_dimension_numbers<[1], [0], [0], [1], [0, 0, 1, 1], [], []>} : vector<24x64xf32>, vector<64x32xf32>, vector<24x32xf32> -> vector<24x32xf32>
      %93 = arith.addf %83, %92 : vector<24x32xf32>
      %94 = arith.index_cast %86 : i32 to index
      %c1_90 = arith.constant 1 : index
      %c0_91 = arith.constant 0 : index
      %95 = vector.load %arg11[%94, %c1_90, %c0_91] : memref<26x26x64xf32, #tpu.memory_space<vmem>>, vector<1x24x64xf32>
      %96 = vector.shape_cast %95 : vector<1x24x64xf32> to vector<24x64xf32>
      %c0_92 = arith.constant 0 : index
      %c1_93 = arith.constant 1 : index
      %c0_94 = arith.constant 0 : index
      %c0_95 = arith.constant 0 : index
      %97 = vector.load %arg4[%c0_92, %c1_93, %c0_94, %c0_95] : memref<3x3x64x32xf32, #tpu.memory_space<vmem>>, vector<1x1x64x32xf32>
      %98 = vector.shape_cast %97 : vector<1x1x64x32xf32> to vector<64x32xf32>
      %cst_96 = arith.constant dense<0.000000e+00> : vector<24x32xf32>
      %99 = tpu.matmul %96, %98, %cst_96 {dimension_numbers = #tpu.dot_dimension_numbers<[1], [0], [0], [1], [0, 0, 1, 1], [], []>} : vector<24x64xf32>, vector<64x32xf32>, vector<24x32xf32> -> vector<24x32xf32>
      %100 = arith.addf %93, %99 : vector<24x32xf32>
      %101 = arith.index_cast %86 : i32 to index
      %c2_97 = arith.constant 2 : index
      %c0_98 = arith.constant 0 : index
      %102 = vector.load %arg11[%101, %c2_97, %c0_98] : memref<26x26x64xf32, #tpu.memory_space<vmem>>, vector<1x24x64xf32>
      %103 = vector.shape_cast %102 : vector<1x24x64xf32> to vector<24x64xf32>
      %c0_99 = arith.constant 0 : index
      %c2_100 = arith.constant 2 : index
      %c0_101 = arith.constant 0 : index
      %c0_102 = arith.constant 0 : index
      %104 = vector.load %arg4[%c0_99, %c2_100, %c0_101, %c0_102] : memref<3x3x64x32xf32, #tpu.memory_space<vmem>>, vector<1x1x64x32xf32>
      %105 = vector.shape_cast %104 : vector<1x1x64x32xf32> to vector<64x32xf32>
      %cst_103 = arith.constant dense<0.000000e+00> : vector<24x32xf32>
      %106 = tpu.matmul %103, %105, %cst_103 {dimension_numbers = #tpu.dot_dimension_numbers<[1], [0], [0], [1], [0, 0, 1, 1], [], []>} : vector<24x64xf32>, vector<64x32xf32>, vector<24x32xf32> -> vector<24x32xf32>
      %107 = arith.addf %100, %106 : vector<24x32xf32>
      %c2_i32_104 = arith.constant 2 : i32
      %108 = arith.muli %c2_i32_104, %arg13 : i32
      %c1_i32_105 = arith.constant 1 : i32
      %109 = arith.addi %108, %c1_i32_105 : i32
      %c1_i32_106 = arith.constant 1 : i32
      %110 = arith.addi %109, %c1_i32_106 : i32
      %111 = arith.index_cast %110 : i32 to index
      %c0_107 = arith.constant 0 : index
      %c0_108 = arith.constant 0 : index
      %112 = vector.load %arg11[%111, %c0_107, %c0_108] : memref<26x26x64xf32, #tpu.memory_space<vmem>>, vector<1x24x64xf32>
      %113 = vector.shape_cast %112 : vector<1x24x64xf32> to vector<24x64xf32>
      %c1_109 = arith.constant 1 : index
      %c0_110 = arith.constant 0 : index
      %c0_111 = arith.constant 0 : index
      %c0_112 = arith.constant 0 : index
      %114 = vector.load %arg4[%c1_109, %c0_110, %c0_111, %c0_112] : memref<3x3x64x32xf32, #tpu.memory_space<vmem>>, vector<1x1x64x32xf32>
      %115 = vector.shape_cast %114 : vector<1x1x64x32xf32> to vector<64x32xf32>
      %cst_113 = arith.constant dense<0.000000e+00> : vector<24x32xf32>
      %116 = tpu.matmul %113, %115, %cst_113 {dimension_numbers = #tpu.dot_dimension_numbers<[1], [0], [0], [1], [0, 0, 1, 1], [], []>} : vector<24x64xf32>, vector<64x32xf32>, vector<24x32xf32> -> vector<24x32xf32>
      %117 = arith.addf %107, %116 : vector<24x32xf32>
      %118 = arith.index_cast %110 : i32 to index
      %c1_114 = arith.constant 1 : index
      %c0_115 = arith.constant 0 : index
      %119 = vector.load %arg11[%118, %c1_114, %c0_115] : memref<26x26x64xf32, #tpu.memory_space<vmem>>, vector<1x24x64xf32>
      %120 = vector.shape_cast %119 : vector<1x24x64xf32> to vector<24x64xf32>
      %c1_116 = arith.constant 1 : index
      %c1_117 = arith.constant 1 : index
      %c0_118 = arith.constant 0 : index
      %c0_119 = arith.constant 0 : index
      %121 = vector.load %arg4[%c1_116, %c1_117, %c0_118, %c0_119] : memref<3x3x64x32xf32, #tpu.memory_space<vmem>>, vector<1x1x64x32xf32>
      %122 = vector.shape_cast %121 : vector<1x1x64x32xf32> to vector<64x32xf32>
      %cst_120 = arith.constant dense<0.000000e+00> : vector<24x32xf32>
      %123 = tpu.matmul %120, %122, %cst_120 {dimension_numbers = #tpu.dot_dimension_numbers<[1], [0], [0], [1], [0, 0, 1, 1], [], []>} : vector<24x64xf32>, vector<64x32xf32>, vector<24x32xf32> -> vector<24x32xf32>
      %124 = arith.addf %117, %123 : vector<24x32xf32>
      %125 = arith.index_cast %110 : i32 to index
      %c2_121 = arith.constant 2 : index
      %c0_122 = arith.constant 0 : index
      %126 = vector.load %arg11[%125, %c2_121, %c0_122] : memref<26x26x64xf32, #tpu.memory_space<vmem>>, vector<1x24x64xf32>
      %127 = vector.shape_cast %126 : vector<1x24x64xf32> to vector<24x64xf32>
      %c1_123 = arith.constant 1 : index
      %c2_124 = arith.constant 2 : index
      %c0_125 = arith.constant 0 : index
      %c0_126 = arith.constant 0 : index
      %128 = vector.load %arg4[%c1_123, %c2_124, %c0_125, %c0_126] : memref<3x3x64x32xf32, #tpu.memory_space<vmem>>, vector<1x1x64x32xf32>
      %129 = vector.shape_cast %128 : vector<1x1x64x32xf32> to vector<64x32xf32>
      %cst_127 = arith.constant dense<0.000000e+00> : vector<24x32xf32>
      %130 = tpu.matmul %127, %129, %cst_127 {dimension_numbers = #tpu.dot_dimension_numbers<[1], [0], [0], [1], [0, 0, 1, 1], [], []>} : vector<24x64xf32>, vector<64x32xf32>, vector<24x32xf32> -> vector<24x32xf32>
      %131 = arith.addf %124, %130 : vector<24x32xf32>
      %c2_i32_128 = arith.constant 2 : i32
      %132 = arith.muli %c2_i32_128, %arg13 : i32
      %c1_i32_129 = arith.constant 1 : i32
      %133 = arith.addi %132, %c1_i32_129 : i32
      %c2_i32_130 = arith.constant 2 : i32
      %134 = arith.addi %133, %c2_i32_130 : i32
      %135 = arith.index_cast %134 : i32 to index
      %c0_131 = arith.constant 0 : index
      %c0_132 = arith.constant 0 : index
      %136 = vector.load %arg11[%135, %c0_131, %c0_132] : memref<26x26x64xf32, #tpu.memory_space<vmem>>, vector<1x24x64xf32>
      %137 = vector.shape_cast %136 : vector<1x24x64xf32> to vector<24x64xf32>
      %c2_133 = arith.constant 2 : index
      %c0_134 = arith.constant 0 : index
      %c0_135 = arith.constant 0 : index
      %c0_136 = arith.constant 0 : index
      %138 = vector.load %arg4[%c2_133, %c0_134, %c0_135, %c0_136] : memref<3x3x64x32xf32, #tpu.memory_space<vmem>>, vector<1x1x64x32xf32>
      %139 = vector.shape_cast %138 : vector<1x1x64x32xf32> to vector<64x32xf32>
      %cst_137 = arith.constant dense<0.000000e+00> : vector<24x32xf32>
      %140 = tpu.matmul %137, %139, %cst_137 {dimension_numbers = #tpu.dot_dimension_numbers<[1], [0], [0], [1], [0, 0, 1, 1], [], []>} : vector<24x64xf32>, vector<64x32xf32>, vector<24x32xf32> -> vector<24x32xf32>
      %141 = arith.addf %131, %140 : vector<24x32xf32>
      %142 = arith.index_cast %134 : i32 to index
      %c1_138 = arith.constant 1 : index
      %c0_139 = arith.constant 0 : index
      %143 = vector.load %arg11[%142, %c1_138, %c0_139] : memref<26x26x64xf32, #tpu.memory_space<vmem>>, vector<1x24x64xf32>
      %144 = vector.shape_cast %143 : vector<1x24x64xf32> to vector<24x64xf32>
      %c2_140 = arith.constant 2 : index
      %c1_141 = arith.constant 1 : index
      %c0_142 = arith.constant 0 : index
      %c0_143 = arith.constant 0 : index
      %145 = vector.load %arg4[%c2_140, %c1_141, %c0_142, %c0_143] : memref<3x3x64x32xf32, #tpu.memory_space<vmem>>, vector<1x1x64x32xf32>
      %146 = vector.shape_cast %145 : vector<1x1x64x32xf32> to vector<64x32xf32>
      %cst_144 = arith.constant dense<0.000000e+00> : vector<24x32xf32>
      %147 = tpu.matmul %144, %146, %cst_144 {dimension_numbers = #tpu.dot_dimension_numbers<[1], [0], [0], [1], [0, 0, 1, 1], [], []>} : vector<24x64xf32>, vector<64x32xf32>, vector<24x32xf32> -> vector<24x32xf32>
      %148 = arith.addf %141, %147 : vector<24x32xf32>
      %149 = arith.index_cast %134 : i32 to index
      %c2_145 = arith.constant 2 : index
      %c0_146 = arith.constant 0 : index
      %150 = vector.load %arg11[%149, %c2_145, %c0_146] : memref<26x26x64xf32, #tpu.memory_space<vmem>>, vector<1x24x64xf32>
      %151 = vector.shape_cast %150 : vector<1x24x64xf32> to vector<24x64xf32>
      %c2_147 = arith.constant 2 : index
      %c2_148 = arith.constant 2 : index
      %c0_149 = arith.constant 0 : index
      %c0_150 = arith.constant 0 : index
      %152 = vector.load %arg4[%c2_147, %c2_148, %c0_149, %c0_150] : memref<3x3x64x32xf32, #tpu.memory_space<vmem>>, vector<1x1x64x32xf32>
      %153 = vector.shape_cast %152 : vector<1x1x64x32xf32> to vector<64x32xf32>
      %cst_151 = arith.constant dense<0.000000e+00> : vector<24x32xf32>
      %154 = tpu.matmul %151, %153, %cst_151 {dimension_numbers = #tpu.dot_dimension_numbers<[1], [0], [0], [1], [0, 0, 1, 1], [], []>} : vector<24x64xf32>, vector<64x32xf32>, vector<24x32xf32> -> vector<24x32xf32>
      %155 = arith.addf %148, %154 : vector<24x32xf32>
      %c0_152 = arith.constant 0 : index
      %c0_153 = arith.constant 0 : index
      %156 = vector.load %arg5[%c0_152, %c0_153] : memref<1x32xf32, #tpu.memory_space<vmem>>, vector<1x32xf32>
      %157 = vector.broadcast %156 : vector<1x32xf32> to vector<24x32xf32>
      %158 = arith.addf %155, %157 : vector<24x32xf32>
      %cst_154 = arith.constant 0.000000e+00 : f32
      %159 = vector.broadcast %cst_154 : f32 to vector<24x32xf32>
      %160 = arith.maximumf %158, %159 : vector<24x32xf32>
      %161 = arith.addf %82, %160 : vector<24x32xf32>
      %c0_155 = arith.constant 0 : index
      %c0_156 = arith.constant 0 : index
      %162 = vector.load %arg9[%c0_155, %c0_156] : memref<12x24xf32, #tpu.memory_space<vmem>>, vector<12x24xf32>
      %cst_157 = arith.constant dense<0.000000e+00> : vector<12x32xf32>
      %163 = tpu.matmul %162, %161, %cst_157 {dimension_numbers = #tpu.dot_dimension_numbers<[1], [0], [0], [1], [0, 0, 1, 1], [], []>} : vector<12x24xf32>, vector<24x32xf32>, vector<12x32xf32> -> vector<12x32xf32>
      %164 = arith.index_cast %arg13 : i32 to index
      %c0_158 = arith.constant 0 : index
      %c0_159 = arith.constant 0 : index
      %165 = vector.load %arg12[%164, %c0_158, %c0_159] : memref<12x12x32xf32, #tpu.memory_space<vmem>>, vector<1x12x32xf32>
      %166 = vector.shape_cast %165 : vector<1x12x32xf32> to vector<12x32xf32>
      %167 = vector.shape_cast %163 : vector<12x32xf32> to vector<1x12x32xf32>
      tpu.vector_store %arg12[%164, %c0_158, %c0_159], %167 {strides = array<i32>} : memref<12x12x32xf32, #tpu.memory_space<vmem>>, vector<1x12x32xf32>,
    }
    %c12_i32_3 = arith.constant 12 : i32
    %c0_i32_4 = arith.constant 0 : i32
    %c10_i32 = arith.constant 10 : i32
    %2 = arith.addi %c0_i32_4, %c10_i32 : i32
    %c1_i32_5 = arith.constant 1 : i32
    scf.for %arg13 = %c0_i32_4 to %2 step %c1_i32_5  : i32 {
      %cst = arith.constant 0.000000e+00 : f32
      %3 = vector.broadcast %cst : f32 to vector<10x3xf32>
      %c0_i32_7 = arith.constant 0 : i32
      %4 = arith.addi %arg13, %c0_i32_7 : i32
      %5 = arith.index_cast %4 : i32 to index
      %c0 = arith.constant 0 : index
      %c0_8 = arith.constant 0 : index
      %6 = vector.load %arg12[%5, %c0, %c0_8] : memref<12x12x32xf32, #tpu.memory_space<vmem>>, vector<1x10x32xf32>
      %7 = vector.shape_cast %6 : vector<1x10x32xf32> to vector<10x32xf32>
      %c0_9 = arith.constant 0 : index
      %c0_10 = arith.constant 0 : index
      %c0_11 = arith.constant 0 : index
      %c0_12 = arith.constant 0 : index
      %8 = vector.load %arg6[%c0_9, %c0_10, %c0_11, %c0_12] : memref<3x3x32x3xf32, #tpu.memory_space<vmem>>, vector<1x1x32x3xf32>
      %9 = vector.shape_cast %8 : vector<1x1x32x3xf32> to vector<32x3xf32>
      %cst_13 = arith.constant dense<0.000000e+00> : vector<10x3xf32>
      %10 = tpu.matmul %7, %9, %cst_13 {dimension_numbers = #tpu.dot_dimension_numbers<[1], [0], [0], [1], [0, 0, 1, 1], [], []>} : vector<10x32xf32>, vector<32x3xf32>, vector<10x3xf32> -> vector<10x3xf32>
      %11 = arith.addf %3, %10 : vector<10x3xf32>
      %c0_i32_14 = arith.constant 0 : i32
      %12 = arith.addi %arg13, %c0_i32_14 : i32
      %13 = arith.index_cast %12 : i32 to index
      %c1 = arith.constant 1 : index
      %c0_15 = arith.constant 0 : index
      %14 = vector.load %arg12[%13, %c1, %c0_15] : memref<12x12x32xf32, #tpu.memory_space<vmem>>, vector<1x10x32xf32>
      %15 = vector.shape_cast %14 : vector<1x10x32xf32> to vector<10x32xf32>
      %c0_16 = arith.constant 0 : index
      %c1_17 = arith.constant 1 : index
      %c0_18 = arith.constant 0 : index
      %c0_19 = arith.constant 0 : index
      %16 = vector.load %arg6[%c0_16, %c1_17, %c0_18, %c0_19] : memref<3x3x32x3xf32, #tpu.memory_space<vmem>>, vector<1x1x32x3xf32>
      %17 = vector.shape_cast %16 : vector<1x1x32x3xf32> to vector<32x3xf32>
      %cst_20 = arith.constant dense<0.000000e+00> : vector<10x3xf32>
      %18 = tpu.matmul %15, %17, %cst_20 {dimension_numbers = #tpu.dot_dimension_numbers<[1], [0], [0], [1], [0, 0, 1, 1], [], []>} : vector<10x32xf32>, vector<32x3xf32>, vector<10x3xf32> -> vector<10x3xf32>
      %19 = arith.addf %11, %18 : vector<10x3xf32>
      %c0_i32_21 = arith.constant 0 : i32
      %20 = arith.addi %arg13, %c0_i32_21 : i32
      %21 = arith.index_cast %20 : i32 to index
      %c2 = arith.constant 2 : index
      %c0_22 = arith.constant 0 : index
      %22 = vector.load %arg12[%21, %c2, %c0_22] : memref<12x12x32xf32, #tpu.memory_space<vmem>>, vector<1x10x32xf32>
      %23 = vector.shape_cast %22 : vector<1x10x32xf32> to vector<10x32xf32>
      %c0_23 = arith.constant 0 : index
      %c2_24 = arith.constant 2 : index
      %c0_25 = arith.constant 0 : index
      %c0_26 = arith.constant 0 : index
      %24 = vector.load %arg6[%c0_23, %c2_24, %c0_25, %c0_26] : memref<3x3x32x3xf32, #tpu.memory_space<vmem>>, vector<1x1x32x3xf32>
      %25 = vector.shape_cast %24 : vector<1x1x32x3xf32> to vector<32x3xf32>
      %cst_27 = arith.constant dense<0.000000e+00> : vector<10x3xf32>
      %26 = tpu.matmul %23, %25, %cst_27 {dimension_numbers = #tpu.dot_dimension_numbers<[1], [0], [0], [1], [0, 0, 1, 1], [], []>} : vector<10x32xf32>, vector<32x3xf32>, vector<10x3xf32> -> vector<10x3xf32>
      %27 = arith.addf %19, %26 : vector<10x3xf32>
      %c1_i32_28 = arith.constant 1 : i32
      %28 = arith.addi %arg13, %c1_i32_28 : i32
      %29 = arith.index_cast %28 : i32 to index
      %c0_29 = arith.constant 0 : index
      %c0_30 = arith.constant 0 : index
      %30 = vector.load %arg12[%29, %c0_29, %c0_30] : memref<12x12x32xf32, #tpu.memory_space<vmem>>, vector<1x10x32xf32>
      %31 = vector.shape_cast %30 : vector<1x10x32xf32> to vector<10x32xf32>
      %c1_31 = arith.constant 1 : index
      %c0_32 = arith.constant 0 : index
      %c0_33 = arith.constant 0 : index
      %c0_34 = arith.constant 0 : index
      %32 = vector.load %arg6[%c1_31, %c0_32, %c0_33, %c0_34] : memref<3x3x32x3xf32, #tpu.memory_space<vmem>>, vector<1x1x32x3xf32>
      %33 = vector.shape_cast %32 : vector<1x1x32x3xf32> to vector<32x3xf32>
      %cst_35 = arith.constant dense<0.000000e+00> : vector<10x3xf32>
      %34 = tpu.matmul %31, %33, %cst_35 {dimension_numbers = #tpu.dot_dimension_numbers<[1], [0], [0], [1], [0, 0, 1, 1], [], []>} : vector<10x32xf32>, vector<32x3xf32>, vector<10x3xf32> -> vector<10x3xf32>
      %35 = arith.addf %27, %34 : vector<10x3xf32>
      %c1_i32_36 = arith.constant 1 : i32
      %36 = arith.addi %arg13, %c1_i32_36 : i32
      %37 = arith.index_cast %36 : i32 to index
      %c1_37 = arith.constant 1 : index
      %c0_38 = arith.constant 0 : index
      %38 = vector.load %arg12[%37, %c1_37, %c0_38] : memref<12x12x32xf32, #tpu.memory_space<vmem>>, vector<1x10x32xf32>
      %39 = vector.shape_cast %38 : vector<1x10x32xf32> to vector<10x32xf32>
      %c1_39 = arith.constant 1 : index
      %c1_40 = arith.constant 1 : index
      %c0_41 = arith.constant 0 : index
      %c0_42 = arith.constant 0 : index
      %40 = vector.load %arg6[%c1_39, %c1_40, %c0_41, %c0_42] : memref<3x3x32x3xf32, #tpu.memory_space<vmem>>, vector<1x1x32x3xf32>
      %41 = vector.shape_cast %40 : vector<1x1x32x3xf32> to vector<32x3xf32>
      %cst_43 = arith.constant dense<0.000000e+00> : vector<10x3xf32>
      %42 = tpu.matmul %39, %41, %cst_43 {dimension_numbers = #tpu.dot_dimension_numbers<[1], [0], [0], [1], [0, 0, 1, 1], [], []>} : vector<10x32xf32>, vector<32x3xf32>, vector<10x3xf32> -> vector<10x3xf32>
      %43 = arith.addf %35, %42 : vector<10x3xf32>
      %c1_i32_44 = arith.constant 1 : i32
      %44 = arith.addi %arg13, %c1_i32_44 : i32
      %45 = arith.index_cast %44 : i32 to index
      %c2_45 = arith.constant 2 : index
      %c0_46 = arith.constant 0 : index
      %46 = vector.load %arg12[%45, %c2_45, %c0_46] : memref<12x12x32xf32, #tpu.memory_space<vmem>>, vector<1x10x32xf32>
      %47 = vector.shape_cast %46 : vector<1x10x32xf32> to vector<10x32xf32>
      %c1_47 = arith.constant 1 : index
      %c2_48 = arith.constant 2 : index
      %c0_49 = arith.constant 0 : index
      %c0_50 = arith.constant 0 : index
      %48 = vector.load %arg6[%c1_47, %c2_48, %c0_49, %c0_50] : memref<3x3x32x3xf32, #tpu.memory_space<vmem>>, vector<1x1x32x3xf32>
      %49 = vector.shape_cast %48 : vector<1x1x32x3xf32> to vector<32x3xf32>
      %cst_51 = arith.constant dense<0.000000e+00> : vector<10x3xf32>
      %50 = tpu.matmul %47, %49, %cst_51 {dimension_numbers = #tpu.dot_dimension_numbers<[1], [0], [0], [1], [0, 0, 1, 1], [], []>} : vector<10x32xf32>, vector<32x3xf32>, vector<10x3xf32> -> vector<10x3xf32>
      %51 = arith.addf %43, %50 : vector<10x3xf32>
      %c2_i32 = arith.constant 2 : i32
      %52 = arith.addi %arg13, %c2_i32 : i32
      %53 = arith.index_cast %52 : i32 to index
      %c0_52 = arith.constant 0 : index
      %c0_53 = arith.constant 0 : index
      %54 = vector.load %arg12[%53, %c0_52, %c0_53] : memref<12x12x32xf32, #tpu.memory_space<vmem>>, vector<1x10x32xf32>
      %55 = vector.shape_cast %54 : vector<1x10x32xf32> to vector<10x32xf32>
      %c2_54 = arith.constant 2 : index
      %c0_55 = arith.constant 0 : index
      %c0_56 = arith.constant 0 : index
      %c0_57 = arith.constant 0 : index
      %56 = vector.load %arg6[%c2_54, %c0_55, %c0_56, %c0_57] : memref<3x3x32x3xf32, #tpu.memory_space<vmem>>, vector<1x1x32x3xf32>
      %57 = vector.shape_cast %56 : vector<1x1x32x3xf32> to vector<32x3xf32>
      %cst_58 = arith.constant dense<0.000000e+00> : vector<10x3xf32>
      %58 = tpu.matmul %55, %57, %cst_58 {dimension_numbers = #tpu.dot_dimension_numbers<[1], [0], [0], [1], [0, 0, 1, 1], [], []>} : vector<10x32xf32>, vector<32x3xf32>, vector<10x3xf32> -> vector<10x3xf32>
      %59 = arith.addf %51, %58 : vector<10x3xf32>
      %c2_i32_59 = arith.constant 2 : i32
      %60 = arith.addi %arg13, %c2_i32_59 : i32
      %61 = arith.index_cast %60 : i32 to index
      %c1_60 = arith.constant 1 : index
      %c0_61 = arith.constant 0 : index
      %62 = vector.load %arg12[%61, %c1_60, %c0_61] : memref<12x12x32xf32, #tpu.memory_space<vmem>>, vector<1x10x32xf32>
      %63 = vector.shape_cast %62 : vector<1x10x32xf32> to vector<10x32xf32>
      %c2_62 = arith.constant 2 : index
      %c1_63 = arith.constant 1 : index
      %c0_64 = arith.constant 0 : index
      %c0_65 = arith.constant 0 : index
      %64 = vector.load %arg6[%c2_62, %c1_63, %c0_64, %c0_65] : memref<3x3x32x3xf32, #tpu.memory_space<vmem>>, vector<1x1x32x3xf32>
      %65 = vector.shape_cast %64 : vector<1x1x32x3xf32> to vector<32x3xf32>
      %cst_66 = arith.constant dense<0.000000e+00> : vector<10x3xf32>
      %66 = tpu.matmul %63, %65, %cst_66 {dimension_numbers = #tpu.dot_dimension_numbers<[1], [0], [0], [1], [0, 0, 1, 1], [], []>} : vector<10x32xf32>, vector<32x3xf32>, vector<10x3xf32> -> vector<10x3xf32>
      %67 = arith.addf %59, %66 : vector<10x3xf32>
      %c2_i32_67 = arith.constant 2 : i32
      %68 = arith.addi %arg13, %c2_i32_67 : i32
      %69 = arith.index_cast %68 : i32 to index
      %c2_68 = arith.constant 2 : index
      %c0_69 = arith.constant 0 : index
      %70 = vector.load %arg12[%69, %c2_68, %c0_69] : memref<12x12x32xf32, #tpu.memory_space<vmem>>, vector<1x10x32xf32>
      %71 = vector.shape_cast %70 : vector<1x10x32xf32> to vector<10x32xf32>
      %c2_70 = arith.constant 2 : index
      %c2_71 = arith.constant 2 : index
      %c0_72 = arith.constant 0 : index
      %c0_73 = arith.constant 0 : index
      %72 = vector.load %arg6[%c2_70, %c2_71, %c0_72, %c0_73] : memref<3x3x32x3xf32, #tpu.memory_space<vmem>>, vector<1x1x32x3xf32>
      %73 = vector.shape_cast %72 : vector<1x1x32x3xf32> to vector<32x3xf32>
      %cst_74 = arith.constant dense<0.000000e+00> : vector<10x3xf32>
      %74 = tpu.matmul %71, %73, %cst_74 {dimension_numbers = #tpu.dot_dimension_numbers<[1], [0], [0], [1], [0, 0, 1, 1], [], []>} : vector<10x32xf32>, vector<32x3xf32>, vector<10x3xf32> -> vector<10x3xf32>
      %75 = arith.addf %67, %74 : vector<10x3xf32>
      %c0_75 = arith.constant 0 : index
      %c0_76 = arith.constant 0 : index
      %76 = vector.load %arg7[%c0_75, %c0_76] : memref<1x3xf32, #tpu.memory_space<vmem>>, vector<1x3xf32>
      %77 = vector.broadcast %76 : vector<1x3xf32> to vector<10x3xf32>
      %78 = arith.addf %75, %77 : vector<10x3xf32>
      %c0_77 = arith.constant 0 : index
      %79 = arith.index_cast %arg13 : i32 to index
      %c0_78 = arith.constant 0 : index
      %c0_79 = arith.constant 0 : index
      %80 = vector.load %arg10[%c0_77, %79, %c0_78, %c0_79] : memref<1x10x10x3xf32, #tpu.memory_space<vmem>>, vector<1x1x10x3xf32>
      %81 = vector.shape_cast %80 : vector<1x1x10x3xf32> to vector<10x3xf32>
      %82 = vector.shape_cast %78 : vector<10x3xf32> to vector<1x1x10x3xf32>
      tpu.vector_store %arg10[%c0_77, %79, %c0_78, %c0_79], %82 {strides = array<i32>} : memref<1x10x10x3xf32, #tpu.memory_space<vmem>>, vector<1x1x10x3xf32>,
    }
    %c10_i32_6 = arith.constant 10 : i32
    return
  }
  func.func @transform_0(%arg0: i32) -> (i32, i32, i32, i32) {
    %c0_i32 = arith.constant 0 : i32
    %c0_i32_0 = arith.constant 0 : i32
    %c0_i32_1 = arith.constant 0 : i32
    %c0_i32_2 = arith.constant 0 : i32
    return %arg0, %c0_i32, %c0_i32_0, %c0_i32_1 : i32, i32, i32, i32
  }
  func.func @transform_1(%arg0: i32) -> (i32, i32, i32, i32) {
    %c0_i32 = arith.constant 0 : i32
    %c0_i32_0 = arith.constant 0 : i32
    %c0_i32_1 = arith.constant 0 : i32
    %c0_i32_2 = arith.constant 0 : i32
    %c0_i32_3 = arith.constant 0 : i32
    return %c0_i32, %c0_i32_0, %c0_i32_1, %c0_i32_2 : i32, i32, i32, i32
  }
  func.func @transform_2(%arg0: i32) -> (i32, i32) {
    %c0_i32 = arith.constant 0 : i32
    %c0_i32_0 = arith.constant 0 : i32
    %c0_i32_1 = arith.constant 0 : i32
    return %c0_i32, %c0_i32_0 : i32, i32
  }
  func.func @transform_3(%arg0: i32) -> (i32, i32, i32, i32) {
    %c0_i32 = arith.constant 0 : i32
    %c0_i32_0 = arith.constant 0 : i32
    %c0_i32_1 = arith.constant 0 : i32
    %c0_i32_2 = arith.constant 0 : i32
    %c0_i32_3 = arith.constant 0 : i32
    return %c0_i32, %c0_i32_0, %c0_i32_1, %c0_i32_2 : i32, i32, i32, i32
  }
  func.func @transform_4(%arg0: i32) -> (i32, i32) {
    %c0_i32 = arith.constant 0 : i32
    %c0_i32_0 = arith.constant 0 : i32
    %c0_i32_1 = arith.constant 0 : i32
    return %c0_i32, %c0_i32_0 : i32, i32
  }
  func.func @transform_5(%arg0: i32) -> (i32, i32, i32, i32) {
    %c0_i32 = arith.constant 0 : i32
    %c0_i32_0 = arith.constant 0 : i32
    %c0_i32_1 = arith.constant 0 : i32
    %c0_i32_2 = arith.constant 0 : i32
    %c0_i32_3 = arith.constant 0 : i32
    return %c0_i32, %c0_i32_0, %c0_i32_1, %c0_i32_2 : i32, i32, i32, i32
  }
  func.func @transform_6(%arg0: i32) -> (i32, i32) {
    %c0_i32 = arith.constant 0 : i32
    %c0_i32_0 = arith.constant 0 : i32
    %c0_i32_1 = arith.constant 0 : i32
    return %c0_i32, %c0_i32_0 : i32, i32
  }
  func.func @transform_7(%arg0: i32) -> (i32, i32) {
    %c0_i32 = arith.constant 0 : i32
    %c0_i32_0 = arith.constant 0 : i32
    %c0_i32_1 = arith.constant 0 : i32
    return %c0_i32, %c0_i32_0 : i32, i32
  }
  func.func @transform_8(%arg0: i32) -> (i32, i32) {
    %c0_i32 = arith.constant 0 : i32
    %c0_i32_0 = arith.constant 0 : i32
    %c0_i32_1 = arith.constant 0 : i32
    return %c0_i32, %c0_i32_0 : i32, i32
  }
  func.func @transform_9(%arg0: i32) -> (i32, i32, i32, i32) {
    %c0_i32 = arith.constant 0 : i32
    %c0_i32_0 = arith.constant 0 : i32
    %c0_i32_1 = arith.constant 0 : i32
    %c0_i32_2 = arith.constant 0 : i32
    return %arg0, %c0_i32, %c0_i32_0, %c0_i32_1 : i32, i32, i32, i32
  }
}

module attributes {stable_mosaic.version = 11 : i64} {
  func.func @_decoder_kernel(%arg0: i32, %arg1: memref<2x300xf32, #tpu.memory_space<vmem>>, %arg2: memref<300x32xf32, #tpu.memory_space<vmem>>, %arg3: memref<1x32xf32, #tpu.memory_space<vmem>>, %arg4: memref<32x300xf32, #tpu.memory_space<vmem>>, %arg5: memref<1x300xf32, #tpu.memory_space<vmem>>, %arg6: memref<300x3840xbf16, #tpu.memory_space<vmem>>, %arg7: memref<1x3840xf32, #tpu.memory_space<vmem>>, %arg8: memref<2x3840xf32, #tpu.memory_space<vmem>>) attributes {dimension_semantics = [#tpu.dimension_semantics<parallel>], iteration_bounds = array<i64: 5>, scalar_prefetch = 0 : i64, scratch_operands = 0 : i64, tpu.core_type = #tpu.core_type<tc>, window_params = [{pipeline_mode = #tpu.pipeline_mode<synchronous>, transform_indices = @transform_0, window_bounds = array<i64: 2, 300>}, {pipeline_mode = #tpu.pipeline_mode<synchronous>, transform_indices = @transform_1, window_bounds = array<i64: 300, 32>}, {pipeline_mode = #tpu.pipeline_mode<synchronous>, transform_indices = @transform_2, window_bounds = array<i64: 1, 32>}, {pipeline_mode = #tpu.pipeline_mode<synchronous>, transform_indices = @transform_3, window_bounds = array<i64: 32, 300>}, {pipeline_mode = #tpu.pipeline_mode<synchronous>, transform_indices = @transform_4, window_bounds = array<i64: 1, 300>}, {transform_indices = @transform_5, window_bounds = array<i64: 300, 3840>}, {transform_indices = @transform_6, window_bounds = array<i64: 1, 3840>}, {transform_indices = @transform_7, window_bounds = array<i64: 2, 3840>}]} {
    %c0 = arith.constant 0 : index
    %c0_0 = arith.constant 0 : index
    %0 = vector.load %arg1[%c0, %c0_0] : memref<2x300xf32, #tpu.memory_space<vmem>>, vector<2x300xf32>
    %c0_1 = arith.constant 0 : index
    %c0_2 = arith.constant 0 : index
    %1 = vector.load %arg2[%c0_1, %c0_2] : memref<300x32xf32, #tpu.memory_space<vmem>>, vector<300x32xf32>
    %cst = arith.constant dense<0.000000e+00> : vector<2x32xf32>
    %2 = tpu.matmul %0, %1, %cst {dimension_numbers = #tpu.dot_dimension_numbers<[1], [0], [0], [1], [0, 0, 1, 1], [], []>} : vector<2x300xf32>, vector<300x32xf32>, vector<2x32xf32> -> vector<2x32xf32>
    %c0_3 = arith.constant 0 : index
    %c0_4 = arith.constant 0 : index
    %3 = vector.load %arg3[%c0_3, %c0_4] : memref<1x32xf32, #tpu.memory_space<vmem>>, vector<1x32xf32>
    %4 = vector.broadcast %3 : vector<1x32xf32> to vector<2x32xf32>
    %5 = arith.addf %2, %4 : vector<2x32xf32>
    %c0_5 = arith.constant 0 : index
    %c0_6 = arith.constant 0 : index
    %6 = vector.load %arg4[%c0_5, %c0_6] : memref<32x300xf32, #tpu.memory_space<vmem>>, vector<32x300xf32>
    %cst_7 = arith.constant dense<0.000000e+00> : vector<2x300xf32>
    %7 = tpu.matmul %5, %6, %cst_7 {dimension_numbers = #tpu.dot_dimension_numbers<[1], [0], [0], [1], [0, 0, 1, 1], [], []>} : vector<2x32xf32>, vector<32x300xf32>, vector<2x300xf32> -> vector<2x300xf32>
    %c0_8 = arith.constant 0 : index
    %c0_9 = arith.constant 0 : index
    %8 = vector.load %arg5[%c0_8, %c0_9] : memref<1x300xf32, #tpu.memory_space<vmem>>, vector<1x300xf32>
    %9 = vector.broadcast %8 : vector<1x300xf32> to vector<2x300xf32>
    %10 = arith.addf %7, %9 : vector<2x300xf32>
    %cst_10 = arith.constant 0.000000e+00 : f32
    %11 = vector.broadcast %cst_10 : f32 to vector<2x300xf32>
    %12 = arith.maximumf %10, %11 : vector<2x300xf32>
    %13 = arith.truncf %12 : vector<2x300xf32> to vector<2x300xbf16>
    %c0_11 = arith.constant 0 : index
    %c0_12 = arith.constant 0 : index
    %14 = vector.load %arg6[%c0_11, %c0_12] : memref<300x3840xbf16, #tpu.memory_space<vmem>>, vector<300x3840xbf16>
    %cst_13 = arith.constant dense<0.000000e+00> : vector<2x3840xf32>
    %15 = tpu.matmul %13, %14, %cst_13 {dimension_numbers = #tpu.dot_dimension_numbers<[1], [0], [0], [1], [0, 0, 1, 1], [], []>} : vector<2x300xbf16>, vector<300x3840xbf16>, vector<2x3840xf32> -> vector<2x3840xf32>
    %c0_14 = arith.constant 0 : index
    %c0_15 = arith.constant 0 : index
    %16 = vector.load %arg7[%c0_14, %c0_15] : memref<1x3840xf32, #tpu.memory_space<vmem>>, vector<1x3840xf32>
    %17 = vector.broadcast %16 : vector<1x3840xf32> to vector<2x3840xf32>
    %18 = arith.addf %15, %17 : vector<2x3840xf32>
    %c0_16 = arith.constant 0 : index
    %c0_17 = arith.constant 0 : index
    %19 = vector.load %arg8[%c0_16, %c0_17] : memref<2x3840xf32, #tpu.memory_space<vmem>>, vector<2x3840xf32>
    tpu.vector_store %arg8[%c0_16, %c0_17], %18 {strides = array<i32>} : memref<2x3840xf32, #tpu.memory_space<vmem>>, vector<2x3840xf32>,
    return
  }
  func.func @transform_0(%arg0: i32) -> (i32, i32) {
    %c0_i32 = arith.constant 0 : i32
    %c0_i32_0 = arith.constant 0 : i32
    %c0_i32_1 = arith.constant 0 : i32
    return %c0_i32, %c0_i32_0 : i32, i32
  }
  func.func @transform_1(%arg0: i32) -> (i32, i32) {
    %c0_i32 = arith.constant 0 : i32
    %c0_i32_0 = arith.constant 0 : i32
    %c0_i32_1 = arith.constant 0 : i32
    return %c0_i32, %c0_i32_0 : i32, i32
  }
  func.func @transform_2(%arg0: i32) -> (i32, i32) {
    %c0_i32 = arith.constant 0 : i32
    %c0_i32_0 = arith.constant 0 : i32
    %c0_i32_1 = arith.constant 0 : i32
    return %c0_i32, %c0_i32_0 : i32, i32
  }
  func.func @transform_3(%arg0: i32) -> (i32, i32) {
    %c0_i32 = arith.constant 0 : i32
    %c0_i32_0 = arith.constant 0 : i32
    %c0_i32_1 = arith.constant 0 : i32
    return %c0_i32, %c0_i32_0 : i32, i32
  }
  func.func @transform_4(%arg0: i32) -> (i32, i32) {
    %c0_i32 = arith.constant 0 : i32
    %c0_i32_0 = arith.constant 0 : i32
    %c0_i32_1 = arith.constant 0 : i32
    return %c0_i32, %c0_i32_0 : i32, i32
  }
  func.func @transform_5(%arg0: i32) -> (i32, i32) {
    %c0_i32 = arith.constant 0 : i32
    %c0_i32_0 = arith.constant 0 : i32
    return %c0_i32, %arg0 : i32, i32
  }
  func.func @transform_6(%arg0: i32) -> (i32, i32) {
    %c0_i32 = arith.constant 0 : i32
    %c0_i32_0 = arith.constant 0 : i32
    return %c0_i32, %arg0 : i32, i32
  }
  func.func @transform_7(%arg0: i32) -> (i32, i32) {
    %c0_i32 = arith.constant 0 : i32
    %c0_i32_0 = arith.constant 0 : i32
    return %c0_i32, %arg0 : i32, i32
  }
}

</mosaic_0001>

<bundles_post_ra>
// kernel: _lambda_.2
= control target key start
LH: loop header
LB: loop body
LE: loop exit
PB: predicated region body
PF: predicated region fallthrough
CT: control target
= control target key end

     0   :  { %14 = vsyncpa [#allocation5], 0  ;;  %s6885_s0 = inlined_call_operand.vmem [shape: f32[2,80,80,3], index: 0, kind: input, shape index: {}]   ;;  %s6886_s1 = inlined_call_operand.hbm [shape: f32[3,3,3,64], index: 1, kind: input, shape index: {}]   ;;  %s6887_s2 = inlined_call_operand.hbm [shape: f32[1,64], index: 2, kind: input, shape index: {}]   ;;  %s6888_s3 = inlined_call_operand.hbm [shape: f32[3,3,64,32], index: 3, kind: input, shape index: {}]   ;;  %s6889_s4 = inlined_call_operand.hbm [shape: f32[1,32], index: 4, kind: input, shape index: {}]   ;;  %s6890_s5 = inlined_call_operand.hbm [shape: f32[3,3,32,3], index: 5, kind: input, shape index: {}]   ;;  %s6891_s6 = inlined_call_operand.hbm [shape: f32[1,3], index: 6, kind: input, shape index: {}]   ;;  %s6892_s7 = inlined_call_operand.vmem [shape: f32[26,78], index: 7, kind: input, shape index: {}]   ;;  %s6893_s8 = inlined_call_operand.vmem [shape: f32[12,24], index: 8, kind: input, shape index: {}]   ;;  %s6894_s9 = inlined_call_operand.vmem [shape: f32[2,10,10,3], index: 9, kind: output, shape index: {}]  }
   0x1   :  { %15 = vsyncpa [#allocation7], 0 }
   0x2   :  { %16 = vsyncpa [#allocation10], 0 }
   0x3   :  { %17 = vsyncpa [#allocation13], 0  ;;  %s5060_s30 = smov 0  }
   0x4 LB: > { %s274_s12 = sshll.u32 %s6887_s2, 4  ;;  %s5069_s13 = sadd.s32 4294967295, %s4986_s30   ;;  %s4986_s30 = sphi %s5060_s30, %s23_s30   ;;  %s275_s12 = int_to_ptr.hbm [resolvable:$true] %s274_s12 }
   0x5   : > { %p4079_p0 = scmp.ge.s32.totalorder %s4986_s30, 1  ;;  %p248_p1 = scmp.lt.s32.totalorder %s4986_s30, 3 }
   0x6   : > { %p4715_p2 = scmp.eq.s32.totalorder %s5069_s13, 0  ;;  %s5000_s15 = smov [#allocation6]  }
   0x7   : > { %p5074_p3 = pnand %p4079_p0, %p248_p1  ;;  %s276_s16 = sshll.u32 %s5000_s15, 4  ;;  %s277_s16 = int_to_ptr.vmem [resolvable:$true] %s276_s16 }
   0x8   : > { %s300_s19 = sshll.u32 %s6889_s4, 4  ;;  %s259_s22 = sshll.u32 %s6886_s1, 4  ;;  %s301_s19 = int_to_ptr.hbm [resolvable:$true] %s300_s19  ;;  %s260_s22 = int_to_ptr.hbm [resolvable:$true] %s259_s22 }
   0x9   : > { %p4696_p4 = pneg %p5074_p3  ;;  %s5001_s24 = smov [#allocation9]  }
   0xa   : > { %s302_s25 = sshll.u32 %s5001_s24, 4  ;;  %s5002_s26 = smov [#allocation4]   ;;  %s303_s25 = int_to_ptr.vmem [resolvable:$true] %s302_s25 }
   0xb   : > { %p5088_p5 = pnand %p4715_p2, %p4696_p4  ;;  %s261_s27 = sshll.u32 %s5002_s26, 4  ;;  %s262_s27 = int_to_ptr.vmem [resolvable:$true] %s261_s27 }
   0xc   : > { %s5003_s28 = smov 64   ;;  %s5004_s29 = smov 4  }
   0xd   : > { %4702 = dma.hbm_to_vmem [thread:$0]  (!%p5088_p5), %s275_s12, 16, %s277_s16, [#allocation7]  }
   0xe   : > { %4708 = dma.hbm_to_vmem [thread:$0]  (!%p5088_p5), %s301_s19, 16, %s303_s25, [#allocation10]  }
   0xf   : > { %4699 = dma.hbm_to_vmem [thread:$0]  (!%p5088_p5), %s260_s22, 576, %s262_s27, [#allocation5], %s5003_s28, %s5003_s28, %s5004_s29  }
  0x10   : > { %s285_s15 = sshll.u32 %s6888_s3, 4  ;;  %s5005_s17 = smov [#allocation8]   ;;  %s286_s15 = int_to_ptr.hbm [resolvable:$true] %s285_s15 }
  0x11   : > { %s287_s18 = sshll.u32 %s5005_s17, 4  ;;  %s311_s19 = sshll.u32 %s6890_s5, 4  ;;  %s288_s18 = int_to_ptr.vmem [resolvable:$true] %s287_s18  ;;  %s312_s19 = int_to_ptr.hbm [resolvable:$true] %s311_s19 }
  0x12   : > { %s5006_s20 = smov 128   ;;  %s5007_s21 = smov 8  }
  0x13   : > { %4705 = dma.hbm_to_vmem [thread:$0]  (!%p5088_p5), %s286_s15, 9216, %s288_s18, [#allocation7], %s5006_s20, %s5006_s20, %s5007_s21  }
  0x14   : > { %s5008_s24 = smov [#allocation11]   ;;  %s326_s27 = sshll.u32 %s6891_s6, 4  ;;  %s327_s27 = int_to_ptr.hbm [resolvable:$true] %s326_s27 }
  0x15   : > { %s313_s22 = sshll.u32 %s5008_s24, 4  ;;  %s5009_s28 = smov [#allocation12]   ;;  %s314_s22 = int_to_ptr.vmem [resolvable:$true] %s313_s22 }
  0x16   : > { %4711 = dma.hbm_to_vmem [thread:$0]  (!%p5088_p5), %s312_s19, 4608, %s314_s22, [#allocation10], %s5006_s20, %s5006_s20, %s5007_s21  }
  0x17   : > { %s328_s29 = sshll.u32 %s5009_s28, 4  ;;  %355 = sbr.rel (%p5074_p3) target bundleno = 1496 (0x5d8), region = 56  ;;  %s329_s29 = int_to_ptr.vmem [resolvable:$true] %s328_s29 }
  0x18   : > { %4714 = dma.hbm_to_vmem [thread:$0]  (!%p5088_p5), %s327_s27, 16, %s329_s29, [#allocation13]  }
  0x1c   : > { %4969 = dma.done.wait (%p4715_p2), [#allocation5], 576  }
  0x1d   : > { %4971 = vsyncadd (%p4715_p2), [#allocation5], 4294966720 }
  0x1e   : > { %4973 = dma.done.wait (%p4715_p2), [#allocation7], 9232  }
  0x1f   : > { %4975 = vsyncadd (%p4715_p2), [#allocation7], 4294958064 }
  0x20   : > { %4977 = dma.done.wait (%p4715_p2), [#allocation10], 4624  }
  0x21   : > { %4979 = vsyncadd (%p4715_p2), [#allocation10], 4294962672 }
  0x22   : > { %4981 = dma.done.wait (%p4715_p2), [#allocation13], 16  }
  0x23   : > { %4983 = vsyncadd (%p4715_p2), [#allocation13], 4294967280  ;;  %p417_p6 = scmp.lt.s32.totalorder %s5069_s13, 1  ;;  %s5143_s16 = smov 0  }
  0x25   : > { %s7039_s13 = smov (!%p417_p6, %s5069_s13), 1 }
  0x26   : > { %s4670_s14 = smul.u32 6400, %s7039_s13 }
  0x27   : > { %s4671_s23 = smul.u32 160, %s7039_s13 }
  0x28   : > { %s5136_s15 = scalar_lea.vmem %s6885_s0, %s4670_s14 }
  0x29   : > { %s5141_s12 = scalar_lea.vmem %s6894_s9, %s4671_s23 }
  0x2a LB: >> { %v5148_v0 = vld [vmem:[#allocation4 + $0x4] sm:$0x7]  ;;  %vm490_vm0 = vcmask 1042432   ;;  %v5150_v1 = vld [vmem:[#allocation4 + $0x8] sm:$0x7]  ;;  %s4096_s13 = smul.u32 240, %s4990_s16  ;;  %s4990_s16 = sphi %s5143_s16, %s432_s16  }
  0x2b   : >> { %4097 = vmatpush.msk.msra.mxu0 %vm490_vm0, %v5148_v0  ;;  %4655 = vmatpush.msk.msra.mxu3 %vm490_vm0, %v5148_v0  ;;  %v5156_v2 = vld [vmem:[#allocation4] sm:$0x7]  ;;  %vm459_vm1 = vcmask 23552   ;;  %v5182_v11 = vld [vmem:[#allocation4 + $0xc] sm:$0x7]  ;;  %vm2684_vm2 = vcmask 1045504  }
  0x2c   : >> { %4119 = vmatpush.msk.msra.mxu2 %vm490_vm0, %v5150_v1  ;;  %4108 = vmatpush.msk.msra.mxu1 %vm490_vm0, %v5156_v2  ;;  %s5166_s19 = scalar_lea.vmem %s5136_s15, %s4096_s13  ;;  %v5209_v20 = vld [vmem:[#allocation4 + $0x18] sm:$0x7]  ;;  %v5211_v21 = vld [vmem:[#allocation4 + $0x10] sm:$0x7]  ;;  %v5230_v26 = vld [vmem:[#allocation4 + $0x14] sm:$0x7] }
  0x2d   : >> { %4656 = vmatpush.msk.msrb.mxu3 %vm490_vm0, %v5156_v2  ;;  %v447_v3 = vld [vmem:[%s5166_s19 + $0x1] sm:$0xff]  ;;  %v456_v4 = vld [vmem:[%s5166_s19 + $0x49] sm:$0x3f]  ;;  %v449_v12 = vld [vmem:[%s5166_s19 + $0x11] sm:$0xff]  ;;  %6940 = vst [vmem:[#allocation18_spill] sm:$0xff] %v5209_v20  ;;  %4162 = vmatpush.msk.msrb.mxu0 %vm490_vm0, %v5211_v21  ;;  %vm2671_vm3 = vcmask 637952  }
  0x2e   : >> { %v621_v5 = vld [vmem:[%s5166_s19 + $0x2] sm:$0xff]  ;;  %4098 = vmatmul.msk.f32.vlgmr.msra.gmra.mxu0 %vm459_vm1, %v447_v3  ;;  %4107 = vmatmul.msk.f32.vlgmr.msra.gmra.mxu3 %vm459_vm1, %v456_v4  ;;  %v622_v9 = vld [vmem:[%s5166_s19 + $0xa] sm:$0xff]  ;;  %v623_v14 = vld [vmem:[%s5166_s19 + $0x12] sm:$0xff]  ;;  %6941 = vst [vmem:[#allocation19_spill] sm:$0xff] %v5230_v26  ;;  %s4523_s29 = sshll.u32 %s4990_s16, 5  ;;  %vm2719_vm4 = vcmask 523264  }
  0x2f   : >> { %v436_v6 = vld [vmem:[%s5166_s19] sm:$0xff]  ;;  %4120 = vmatmul.msk.f32.vlgmr.msra.gmra.mxu2 %vm459_vm1, %v621_v5  ;;  %4657 = vmatpush.msk.msra.mxu3 %vm490_vm0, %v5150_v1  ;;  %v448_v7 = vld [vmem:[%s5166_s19 + $0x9] sm:$0xff]  ;;  %v439_v19 = vld [vmem:[%s5166_s19 + $0x18] sm:$0xff]  ;;  %s2718_s14 = scalar_lea.vmem [#allocation2], %s4523_s29  ;;  %vm2723_vm5 = vcmask 517120   ;;  %s432_s16 = sadd.s32 1, %s4990_s16  }
  0x30   : >> { %4109 = vmatmul.msk.f32.vlgmr.msra.gmra.mxu1 %vm459_vm1, %v436_v6  ;;  %v445_v8 = vld [vmem:[%s5166_s19 + $0x48] sm:$0x3f]  ;;  %v438_v15 = vld [vmem:[%s5166_s19 + $0x10] sm:$0xff]  ;;  %v450_v16 = vld [vmem:[%s5166_s19 + $0x19] sm:$0xff]  ;;  %4205 = vmatpush.msk.msrb.mxu2 %vm490_vm0, %v5209_v20  ;;  %p429_p7 = scmp.ge.s32.totalorder %s432_s16, 26  }
  0x31   : >> { %v437_v10 = vld [vmem:[%s5166_s19 + $0x8] sm:$0xff]  ;;  %v5200_v17 = vld [vmem:[%s5166_s19 + $0x50] sm:$0xff]  ;;  %v624_v18 = vld [vmem:[%s5166_s19 + $0x1a] sm:$0xff]  ;;  %4183 = vmatpush.msk.msrb.mxu1 %vm490_vm0, %v5230_v26  ;;  %s6361_s23 = smov (%p429_p7), 0  }
  0x32   : >> { %v630_v13 = vld [vmem:[%s5166_s19 + $0x4a] sm:$0x3f]  ;;  %4269 = vmatpush.msk.msra.mxu2 %vm490_vm0, %v5156_v2  ;;  %v451_v22 = vld [vmem:[%s5166_s19 + $0x21] sm:$0xff]  ;;  %v5221_v23 = vld [vmem:[%s5166_s19 + $0x58] sm:$0xff] }
  0x33   : >> { %v625_v24 = vld [vmem:[%s5166_s19 + $0x22] sm:$0xff]  ;;  %4258 = vmatpush.msk.msra.mxu1 %vm490_vm0, %v5148_v0  ;;  %v626_v29 = vld [vmem:[%s5166_s19 + $0x2a] sm:$0xff]  ;;  %v627_v33 = vld [vmem:[%s5166_s19 + $0x32] sm:$0xff] }
  0x34   : >> { %v440_v25 = vld [vmem:[%s5166_s19 + $0x20] sm:$0xff]  ;;  %v452_v27 = vld [vmem:[%s5166_s19 + $0x29] sm:$0xff]  ;;  %v453_v31 = vld [vmem:[%s5166_s19 + $0x31] sm:$0xff] }
  0x35   : >> { %v5238_v28 = vld [vmem:[%s5166_s19 + $0x60] sm:$0xff]  ;;  %v441_v30 = vld [vmem:[%s5166_s19 + $0x28] sm:$0xff]  ;;  %v442_v34 = vld [vmem:[%s5166_s19 + $0x30] sm:$0xff] }
  0x36   : >> { %4099 = vmatmul.msk.f32.gmra.mxu0 %vm459_vm1, %v448_v7  ;;  %4118 = vmatmul.msk.f32.vlgmr.msrb.gmra.mxu3 %vm459_vm1, %v445_v8  ;;  %v5249_v32 = vld [vmem:[%s5166_s19 + $0x68] sm:$0xff]  ;;  %v454_v35 = vld [vmem:[%s5166_s19 + $0x39] sm:$0xff]  ;;  %v5260_v36 = vld [vmem:[%s5166_s19 + $0x70] sm:$0xff] }
  0x37   : >> { %4121 = vmatmul.msk.f32.gmra.mxu2 %vm459_vm1, %v622_v9  ;;  %4141 = vmatpush.msk.msrb.mxu3 %vm490_vm0, %v5182_v11  ;;  %v628_v37 = vld [vmem:[%s5166_s19 + $0x3a] sm:$0xff]  ;;  %v629_v41 = vld [vmem:[%s5166_s19 + $0x42] sm:$0xff]  ;;  %v5290_v45 = vld [vmem:[%s5166_s19 + $0x51] sm:$0xff] }
  0x38   : >> { %4110 = vmatmul.msk.f32.gmra.mxu1 %vm459_vm1, %v437_v10  ;;  %v443_v38 = vld [vmem:[%s5166_s19 + $0x38] sm:$0xff]  ;;  %v455_v39 = vld [vmem:[%s5166_s19 + $0x41] sm:$0xff]  ;;  %v5331_v52 = vld [vmem:[%s5166_s19 + $0x90] sm:$0xff] }
  0x39   : >> { %v5271_v40 = vld [vmem:[%s5166_s19 + $0x78] sm:$0xff]  ;;  %v444_v42 = vld [vmem:[%s5166_s19 + $0x40] sm:$0xff]  ;;  %v5311_v48 = vld [vmem:[%s5166_s19 + $0x88] sm:$0xff] }
  0x3a   : >> { %v5280_v43 = vld [vmem:[#allocation4 + $0x1c] sm:$0x7]  ;;  %v5287_v44 = vld [vmem:[%s5166_s19 + $0x80] sm:$0xff]  ;;  %v5296_v47 = vld [vmem:[%s5166_s19 + $0x52] sm:$0xff] }
  0x3b   : >> { %6942 = vst [vmem:[#allocation20_spill] sm:$0xff] %v5280_v43  ;;  %v5293_v46 = vld [vmem:[%s5166_s19 + $0xa0] sm:$0xff]  ;;  %v5317_v50 = vld [vmem:[%s5166_s19 + $0xa8] sm:$0xff]  ;;  %v5337_v54 = vld [vmem:[%s5166_s19 + $0xb0] sm:$0xff] }
  0x3c   : >> { %v5314_v49 = vld [vmem:[%s5166_s19 + $0x59] sm:$0xff]  ;;  %v5334_v53 = vld [vmem:[%s5166_s19 + $0x61] sm:$0xff]  ;;  %v5354_v57 = vld [vmem:[%s5166_s19 + $0x69] sm:$0xff] }
  0x3d   : >> { %v5320_v51 = vld [vmem:[%s5166_s19 + $0x5a] sm:$0xff]  ;;  %v5340_v55 = vld [vmem:[%s5166_s19 + $0x62] sm:$0xff]  ;;  %v5360_v59 = vld [vmem:[%s5166_s19 + $0x6a] sm:$0xff] }
  0x3e   : >> { %4100 = vmatmul.msk.f32.gmra.mxu0 %vm459_vm1, %v449_v12  ;;  %4129 = vmatmul.msk.f32.vlgmr.msra.gmra.mxu3 %vm459_vm1, %v630_v13  ;;  %v5351_v56 = vld [vmem:[%s5166_s19 + $0x98] sm:$0x3f]  ;;  %v5374_v61 = vld [vmem:[%s5166_s19 + $0xa1] sm:$0xff]  ;;  %v5402_v5 = vld [vmem:[%s5166_s19 + $0xa9] sm:$0xff] }
  0x3f   : >> { %4122 = vmatmul.msk.f32.gmra.mxu2 %vm459_vm1, %v623_v14  ;;  %4226 = vmatpush.msk.msra.mxu3 %vm490_vm0, %v5280_v43  ;;  %v5357_v58 = vld [vmem:[%s5166_s19 + $0xb8] sm:$0xff]  ;;  %v5377_v62 = vld [vmem:[%s5166_s19 + $0xc0] sm:$0xff]  ;;  %v5405_v6 = vld [vmem:[%s5166_s19 + $0xc8] sm:$0xff] }
  0x40   : >> { %4111 = vmatmul.msk.f32.gmra.mxu1 %vm459_vm1, %v438_v15  ;;  %v5371_v60 = vld [vmem:[%s5166_s19 + $0x71] sm:$0xff]  ;;  %6943 = vst [vmem:[#allocation21_spill] sm:$0xff] %v5377_v62  ;;  %v5382_v3 = vld [vmem:[#allocation4 + $0x20] sm:$0x7]  ;;  %v5439_v14 = vld [vmem:[%s5166_s19 + $0x89] sm:$0xff] }
  0x41   : >> { %v5380_v63 = vld [vmem:[%s5166_s19 + $0x72] sm:$0xff]  ;;  %6944 = vst [vmem:[#allocation22_spill] sm:$0xff] %v5382_v3  ;;  %4247 = vmatpush.msk.msra.mxu0 %vm490_vm0, %v5382_v3  ;;  %v5408_v7 = vld [vmem:[%s5166_s19 + $0x7a] sm:$0xff]  ;;  %v5428_v12 = vld [vmem:[%s5166_s19 + $0x82] sm:$0xff] }
  0x42   : >> { %v5399_v4 = vld [vmem:[%s5166_s19 + $0x79] sm:$0xff]  ;;  %6945 = vst [vmem:[#allocation23_spill] sm:$0xff] %v5405_v6  ;;  %v5419_v8 = vld [vmem:[%s5166_s19 + $0x81] sm:$0xff]  ;;  %v5422_v9 = vld [vmem:[%s5166_s19 + $0xb1] sm:$0xff] }
  0x43   : >> { %v5425_v10 = vld [vmem:[%s5166_s19 + $0xd0] sm:$0xff]  ;;  %v5442_v15 = vld [vmem:[%s5166_s19 + $0xb9] sm:$0xff] }
  0x44   : >> { %6946 = vst [vmem:[#allocation24_spill] sm:$0xff] %v5425_v10 }
  0x46   : >> { %4101 = vmatmul.msk.f32.gmra.mxu0 %vm459_vm1, %v450_v16  ;;  %4142 = vmatmul.msk.f32.vlgmr.msrb.gmra.mxu3 %vm459_vm1, %v5200_v17 }
  0x47   : >> { %4123 = vmatmul.msk.f32.gmra.mxu2 %vm459_vm1, %v624_v18  ;;  %4280 = vmatpush.msk.msrb.mxu3 %vm490_vm0, %v5150_v1  ;;  %v5445_v18 = vld [vmem:[%s5166_s19 + $0xd8] sm:$0xff] }
  0x48   : >> { %4112 = vmatmul.msk.f32.gmra.mxu1 %vm459_vm1, %v439_v19  ;;  %6947 = vst [vmem:[#allocation25_spill] sm:$0xff] %v5445_v18  ;;  %v5448_v19 = vld [vmem:[%s5166_s19 + $0x8a] sm:$0xff] }
  0x4e   : >> { %4102 = vmatmul.msk.f32.gmra.mxu0 %vm459_vm1, %v451_v22  ;;  %4143 = vmatmul.msk.f32.gmra.mxu3 %vm459_vm1, %v5221_v23 }
  0x4f   : >> { %4124 = vmatmul.msk.f32.gmra.mxu2 %vm459_vm1, %v625_v24 }
  0x50   : >> { %4113 = vmatmul.msk.f32.gmra.mxu1 %vm459_vm1, %v440_v25 }
  0x56   : >> { %4103 = vmatmul.msk.f32.gmra.mxu0 %vm459_vm1, %v452_v27  ;;  %4144 = vmatmul.msk.f32.gmra.mxu3 %vm459_vm1, %v5238_v28  ;;  %v5459_v27 = vld [vmem:[%s5166_s19 + $0x91] sm:$0xff] }
  0x57   : >> { %4125 = vmatmul.msk.f32.gmra.mxu2 %vm459_vm1, %v626_v29  ;;  %v5462_v29 = vld [vmem:[%s5166_s19 + $0xc1] sm:$0xff] }
  0x58   : >> { %4114 = vmatmul.msk.f32.gmra.mxu1 %vm459_vm1, %v441_v30  ;;  %6948 = vst [vmem:[#allocation26_spill] sm:$0xff] %v5462_v29 }
  0x5e   : >> { %4104 = vmatmul.msk.f32.gmra.mxu0 %vm459_vm1, %v453_v31  ;;  %4145 = vmatmul.msk.f32.gmra.mxu3 %vm459_vm1, %v5249_v32  ;;  %v5465_v31 = vld [vmem:[%s5166_s19 + $0xe0] sm:$0xff] }
  0x5f   : >> { %4126 = vmatmul.msk.f32.gmra.mxu2 %vm459_vm1, %v627_v33  ;;  %6949 = vst [vmem:[#allocation27_spill] sm:$0xff] %v5465_v31  ;;  %v5468_v33 = vld [vmem:[%s5166_s19 + $0x92] sm:$0xff] }
  0x60   : >> { %4115 = vmatmul.msk.f32.gmra.mxu1 %vm459_vm1, %v442_v34 }
  0x66   : >> { %4105 = vmatmul.msk.f32.gmra.mxu0 %vm459_vm1, %v454_v35  ;;  %4146 = vmatmul.msk.f32.gmra.mxu3 %vm459_vm1, %v5260_v36 }
  0x67   : >> { %4127 = vmatmul.msk.f32.gmra.mxu2 %vm459_vm1, %v628_v37 }
  0x68   : >> { %4116 = vmatmul.msk.f32.gmra.mxu1 %vm459_vm1, %v443_v38 }
  0x6e   : >> { %4106 = vmatmul.msk.f32.gmra.mxu0 %vm459_vm1, %v455_v39  ;;  %4147 = vmatmul.msk.f32.gmra.mxu3 %vm459_vm1, %v5271_v40  ;;  %v5479_v39 = vld [vmem:[%s5166_s19 + $0x99] sm:$0x3f] }
  0x6f   : >> { %4128 = vmatmul.msk.f32.gmra.mxu2 %vm459_vm1, %v629_v41  ;;  %v5482_v41 = vld [vmem:[%s5166_s19 + $0xc9] sm:$0xff] }
  0x70   : >> { %4117 = vmatmul.msk.f32.gmra.mxu1 %vm459_vm1, %v444_v42 }
  0x76   : >> { %4148 = vmatmul.msk.f32.gmra.mxu3 %vm459_vm1, %v5287_v44  ;;  %4163 = vmatmul.msk.f32.vlgmr.msrb.gmra.mxu0 %vm459_vm1, %v5290_v45 }
  0x77   : >> { %4206 = vmatmul.msk.f32.vlgmr.msrb.gmra.mxu2 %vm459_vm1, %v5293_v46  ;;  %4291 = vmatpush.msk.msrb.mxu0 %vm490_vm0, %v5182_v11 }
  0x78   : >> { %4184 = vmatmul.msk.f32.vlgmr.msrb.gmra.mxu1 %vm459_vm1, %v5296_v47  ;;  %4313 = vmatpush.msk.msrb.mxu2 %vm490_vm0, %v5230_v26  ;;  %v5504_v26 = vld [vmem:[%s5166_s19 + $0xa2] sm:$0xff] }
  0x79   : >> { %4302 = vmatpush.msk.msrb.mxu1 %vm490_vm0, %v5211_v21 }
  0x7e   : >> { %4149 = vmatmul.msk.f32.gmra.mxu3 %vm459_vm1, %v5311_v48  ;;  %4164 = vmatmul.msk.f32.gmra.mxu0 %vm459_vm1, %v5314_v49 }
  0x7f   : >> { %4207 = vmatmul.msk.f32.gmra.mxu2 %vm459_vm1, %v5317_v50 }
  0x80   : >> { %4185 = vmatmul.msk.f32.gmra.mxu1 %vm459_vm1, %v5320_v51 }
  0x86   : >> { %4150 = vmatmul.msk.f32.gmra.mxu3 %vm459_vm1, %v5331_v52  ;;  %4165 = vmatmul.msk.f32.gmra.mxu0 %vm459_vm1, %v5334_v53 }
  0x87   : >> { %4208 = vmatmul.msk.f32.gmra.mxu2 %vm459_vm1, %v5337_v54 }
  0x88   : >> { %4186 = vmatmul.msk.f32.gmra.mxu1 %vm459_vm1, %v5340_v55 }
  0x8e   : >> { %4151 = vmatmul.msk.f32.gmra.mxu3 %vm459_vm1, %v5351_v56  ;;  %4166 = vmatmul.msk.f32.gmra.mxu0 %vm459_vm1, %v5354_v57 }
  0x8f   : >> { %4209 = vmatmul.msk.f32.gmra.mxu2 %vm459_vm1, %v5357_v58 }
  0x90   : >> { %4187 = vmatmul.msk.f32.gmra.mxu1 %vm459_vm1, %v5360_v59 }
  0x96   : >> { %4167 = vmatmul.msk.f32.gmra.mxu0 %vm459_vm1, %v5371_v60  ;;  %4227 = vmatmul.msk.f32.vlgmr.msra.gmra.mxu3 %vm459_vm1, %v5374_v61 }
  0x97   : >> { %4210 = vmatmul.msk.f32.gmra.mxu2 %vm459_vm1, %v5377_v62  ;;  %4335 = vmatpush.msk.msra.mxu3 %vm490_vm0, %v5209_v20  ;;  %v5485_v20 = vld [vmem:[%s5166_s19 + $0xe8] sm:$0x3f] }
  0x98   : >> { %4188 = vmatmul.msk.f32.gmra.mxu1 %vm459_vm1, %v5380_v63  ;;  %6950 = vst [vmem:[#allocation28_spill] sm:$0xff] %v5485_v20 }
  0x9e   : >> { %4168 = vmatmul.msk.f32.gmra.mxu0 %vm459_vm1, %v5399_v4  ;;  %4228 = vmatmul.msk.f32.gmra.mxu3 %vm459_vm1, %v5402_v5 }
  0x9f   : >> { %4211 = vmatmul.msk.f32.gmra.mxu2 %vm459_vm1, %v5405_v6  ;;  %v5501_v6 = vld [vmem:[%s5166_s19 + $0xd1] sm:$0xff] }
  0xa0   : >> { %4189 = vmatmul.msk.f32.gmra.mxu1 %vm459_vm1, %v5408_v7  ;;  %6951 = vst [vmem:[#allocation29_spill] sm:$0xff] %v5501_v6 }
  0xa6   : >> { %4169 = vmatmul.msk.f32.gmra.mxu0 %vm459_vm1, %v5419_v8  ;;  %4229 = vmatmul.msk.f32.gmra.mxu3 %vm459_vm1, %v5422_v9 }
  0xa7   : >> { %4212 = vmatmul.msk.f32.gmra.mxu2 %vm459_vm1, %v5425_v10 }
  0xa8   : >> { %4190 = vmatmul.msk.f32.gmra.mxu1 %vm459_vm1, %v5428_v12 }
  0xab   : >> { %v511_v13 = vpop.f32.mrf.mxu0 }
  0xad   : >> { %v591_v16 = vpop.f32.mrf.mxu1 }
  0xae   : >> { %4170 = vmatmul.msk.f32.gmra.mxu0 %vm459_vm1, %v5439_v14  ;;  %4230 = vmatmul.msk.f32.gmra.mxu3 %vm459_vm1, %v5442_v15  ;;  %v592_v62 = vadd.f32 %v591_v16, %v511_v13 }
  0xaf   : >> { %4213 = vmatmul.msk.f32.gmra.mxu2 %vm459_vm1, %v5445_v18  ;;  %v5488_v18 = vld [vmem:[%s5166_s19 + $0x9a] sm:$0x3f] }
  0xb0   : >> { %4191 = vmatmul.msk.f32.gmra.mxu1 %vm459_vm1, %v5448_v19 }
  0xb1   : >> { %v538_v22 = vpop.f32.mrf.mxu3 }
  0xb2   : >> { %v683_v24 = vpop.f32.mrf.mxu2 }
  0xb3   : >> { %v514_v25 = vpop.f32.mrf.mxu0 }
  0xb5   : >> { %v594_v30 = vpop.f32.mrf.mxu1 }
  0xb6   : >> { %4171 = vmatmul.msk.f32.gmra.mxu0 %vm459_vm1, %v5459_v27  ;;  %4231 = vmatmul.msk.f32.gmra.mxu3 %vm459_vm1, %v5462_v29 }
  0xb7   : >> { %4214 = vmatmul.msk.f32.gmra.mxu2 %vm459_vm1, %v5465_v31 }
  0xb8   : >> { %4192 = vmatmul.msk.f32.gmra.mxu1 %vm459_vm1, %v5468_v33 }
  0xb9   : >> { %v618_v34 = vpop.f32.mrf.mxu3 }
  0xba   : >> { %v619_v35 = vadd.f32 %v618_v34, %v538_v22  ;;  %v686_v37 = vpop.f32.mrf.mxu2 }
  0xbb   : >> { %v517_v38 = vpop.f32.mrf.mxu0 }
  0xbd   : >> { %v597_v42 = vpop.f32.mrf.mxu1 }
  0xbe   : >> { %4172 = vmatmul.msk.f32.gmra.mxu0 %vm459_vm1, %v5479_v39  ;;  %4232 = vmatmul.msk.f32.gmra.mxu3 %vm459_vm1, %v5482_v41 }
  0xbf   : >> { %4215 = vmatmul.msk.f32.gmra.mxu2 %vm459_vm1, %v5485_v20  ;;  %v5523_v20 = vld [vmem:[%s5166_s19 + $0xd9] sm:$0xff] }
  0xc0   : >> { %4193 = vmatmul.msk.f32.gmra.mxu1 %vm459_vm1, %v5488_v18  ;;  %6952 = vst [vmem:[#allocation30_spill] sm:$0xff] %v5523_v20 }
  0xc1   : >> { %v710_v22 = vpop.f32.mrf.mxu3 }
  0xc2   : >> { %v689_v34 = vpop.f32.mrf.mxu2  ;;  %v5498_v31 = vadd.f32 %v710_v22, %v619_v35  ;;  %v713_v35 = vadd.f32 %v683_v24, %v592_v62  ;;  %v595_v24 = vadd.f32 %v594_v30, %v514_v25  ;;  %v5539_v30 = vld [vmem:[%s5166_s19 + $0xe1] sm:$0xff] }
  0xc3   : >> { %v520_v10 = vpop.f32.mrf.mxu0  ;;  %6953 = vst [vmem:[#allocation31_spill] sm:$0xff] %v5539_v30 }
  0xc5   : >> { %v600_v29 = vpop.f32.mrf.mxu1 }
  0xc6   : >> { %4233 = vmatmul.msk.f32.gmra.mxu3 %vm459_vm1, %v5501_v6  ;;  %4248 = vmatmul.msk.f32.vlgmr.msra.gmra.mxu0 %vm459_vm1, %v5504_v26  ;;  %v598_v6 = vadd.f32 %v597_v42, %v517_v38  ;;  %v5555_v38 = vld [vmem:[%s5166_s19 + $0xe9] sm:$0x3f]  ;;  %v5558_v42 = vld [vmem:[%s5166_s19 + $0xba] sm:$0xff] }
  0xc7   : >> { %4270 = vmatmul.msk.f32.vlgmr.msra.gmra.mxu2 %vm459_vm1, %v5200_v17  ;;  %4356 = vmatpush.msk.msra.mxu0 %vm490_vm0, %v5280_v43 }
  0xc8   : >> { %4259 = vmatmul.msk.f32.vlgmr.msra.gmra.mxu1 %vm459_vm1, %v5290_v45  ;;  %4388 = vmatpush.msk.msra.mxu2 %vm490_vm0, %v5148_v0  ;;  %v5526_v45 = vld [vmem:[%s5166_s19 + $0xaa] sm:$0xff]  ;;  %v714_v0 = vadd.f32 %v686_v37, %v595_v24 }
  0xc9   : >> { %v788_v13 = vpop.f32.mrf.mxu3  ;;  %4377 = vmatpush.msk.msra.mxu1 %vm490_vm0, %v5382_v3  ;;  %v5542_v3 = vld [vmem:[%s5166_s19 + $0xb2] sm:$0xff] }
  0xca   : >> { %v692_v16 = vpop.f32.mrf.mxu2  ;;  %v5520_v22 = vadd.f32 %v788_v13, %v713_v35 }
  0xcb   : >> { %v523_v17 = vpop.f32.mrf.mxu0 }
  0xcd   : >> { %v603_v62 = vpop.f32.mrf.mxu1 }
  0xce   : >> { %4234 = vmatmul.msk.f32.gmra.mxu3 %vm459_vm1, %v5523_v20  ;;  %4249 = vmatmul.msk.f32.gmra.mxu0 %vm459_vm1, %v5526_v45 }
  0xcf   : >> { %4271 = vmatmul.msk.f32.gmra.mxu2 %vm459_vm1, %v5221_v23  ;;  %v715_v23 = vadd.f32 %v689_v34, %v598_v6 }
  0xd0   : >> { %4260 = vmatmul.msk.f32.gmra.mxu1 %vm459_vm1, %v5314_v49 }
  0xd1   : >> { %v791_v35 = vpop.f32.mrf.mxu3 }
  0xd2   : >> { %v695_v13 = vpop.f32.mrf.mxu2  ;;  %v5536_v43 = vadd.f32 %v791_v35, %v714_v0 }
  0xd3   : >> { %v526_v25 = vpop.f32.mrf.mxu0 }
  0xd5   : >> { %v606_v20 = vpop.f32.mrf.mxu1 }
  0xd6   : >> { %4235 = vmatmul.msk.f32.gmra.mxu3 %vm459_vm1, %v5539_v30  ;;  %4250 = vmatmul.msk.f32.gmra.mxu0 %vm459_vm1, %v5542_v3  ;;  %v601_v30 = vadd.f32 %v600_v29, %v520_v10  ;;  %v5571_v10 = vld [vmem:[%s5166_s19 + $0xc2] sm:$0xff] }
  0xd7   : >> { %4272 = vmatmul.msk.f32.gmra.mxu2 %vm459_vm1, %v5238_v28 }
  0xd8   : >> { %4261 = vmatmul.msk.f32.gmra.mxu1 %vm459_vm1, %v5334_v53  ;;  %v716_v28 = vadd.f32 %v692_v16, %v601_v30  ;;  %v5586_v30 = vld [vmem:[%s5166_s19 + $0xca] sm:$0xff] }
  0xd9   : >> { %v794_v49 = vpop.f32.mrf.mxu3 }
  0xda   : >> { %v698_v37 = vpop.f32.mrf.mxu2  ;;  %v5552_v24 = vadd.f32 %v794_v49, %v715_v23  ;;  %v604_v49 = vadd.f32 %v603_v62, %v523_v17 }
  0xdb   : >> { %v529_v0 = vpop.f32.mrf.mxu0 }
  0xdd   : >> { %v609_v35 = vpop.f32.mrf.mxu1 }
  0xde   : >> { %4236 = vmatmul.msk.f32.gmra.mxu3 %vm459_vm1, %v5555_v38  ;;  %4251 = vmatmul.msk.f32.gmra.mxu0 %vm459_vm1, %v5558_v42 }
  0xdf   : >> { %4273 = vmatmul.msk.f32.gmra.mxu2 %vm459_vm1, %v5249_v32  ;;  %v717_v32 = vadd.f32 %v695_v13, %v604_v49 }
  0xe0   : >> { %4262 = vmatmul.msk.f32.gmra.mxu1 %vm459_vm1, %v5354_v57 }
  0xe1   : >> { %v797_v53 = vpop.f32.mrf.mxu3 }
  0xe2   : >> { %v701_v6 = vpop.f32.mrf.mxu2  ;;  %v5568_v34 = vadd.f32 %v797_v53, %v716_v28 }
  0xe3   : >> { %v532_v23 = vpop.f32.mrf.mxu0 }
  0xe5   : >> { %v612_v29 = vpop.f32.mrf.mxu1 }
  0xe6   : >> { %4252 = vmatmul.msk.f32.gmra.mxu0 %vm459_vm1, %v5571_v10  ;;  %4281 = vmatmul.msk.f32.vlgmr.msrb.gmra.mxu3 %vm459_vm1, %v5296_v47  ;;  %v607_v47 = vadd.f32 %v606_v20, %v526_v25  ;;  %v5599_v20 = vld [vmem:[%s5166_s19 + $0xd2] sm:$0xff] }
  0xe7   : >> { %4274 = vmatmul.msk.f32.gmra.mxu2 %vm459_vm1, %v5260_v36  ;;  %4399 = vmatpush.msk.msrb.mxu3 %vm490_vm0, %v5156_v2 }
  0xe8   : >> { %4263 = vmatmul.msk.f32.gmra.mxu1 %vm459_vm1, %v5371_v60  ;;  %v718_v2 = vadd.f32 %v698_v37, %v607_v47 }
  0xe9   : >> { %v800_v57 = vpop.f32.mrf.mxu3 }
  0xea   : >> { %v704_v16 = vpop.f32.mrf.mxu2  ;;  %v5583_v17 = vadd.f32 %v800_v57, %v717_v32  ;;  %v610_v32 = vadd.f32 %v609_v35, %v529_v0  ;;  %v5613_v35 = vld [vmem:[%s5166_s19 + $0xda] sm:$0xff] }
  0xeb   : >> { %v535_v62 = vpop.f32.mrf.mxu0 }
  0xed   : >> { %v615_v28 = vpop.f32.mrf.mxu1 }
  0xee   : >> { %4253 = vmatmul.msk.f32.gmra.mxu0 %vm459_vm1, %v5586_v30  ;;  %4282 = vmatmul.msk.f32.gmra.mxu3 %vm459_vm1, %v5320_v51 }
  0xef   : >> { %4275 = vmatmul.msk.f32.gmra.mxu2 %vm459_vm1, %v5271_v40  ;;  %v719_v40 = vadd.f32 %v701_v6, %v610_v32 }
  0xf0   : >> { %4264 = vmatmul.msk.f32.gmra.mxu1 %vm459_vm1, %v5399_v4 }
  0xf1   : >> { %v803_v36 = vpop.f32.mrf.mxu3 }
  0xf2   : >> { %v707_v60 = vpop.f32.mrf.mxu2  ;;  %v5596_v13 = vadd.f32 %v803_v36, %v718_v2  ;;  %v613_v2 = vadd.f32 %v612_v29, %v532_v23  ;;  %v5627_v29 = vld [vmem:[%s5166_s19 + $0xe2] sm:$0xff] }
  0xf3   : >> { %v890_v53 = vpop.f32.mrf.mxu0  ;;  %6954 = vst [vmem:[#allocation32_spill] sm:$0xff] %v5627_v29 }
  0xf4   : >> { %v920_v49 = vadd.f32 %v890_v53, %v5520_v22 }
  0xf5   : >> { %v992_v25 = vpop.f32.mrf.mxu1 }
  0xf6   : >> { %4254 = vmatmul.msk.f32.gmra.mxu0 %vm459_vm1, %v5599_v20  ;;  %4283 = vmatmul.msk.f32.gmra.mxu3 %vm459_vm1, %v5340_v55  ;;  %v1022_v51 = vadd.f32 %v992_v25, %v920_v49  ;;  %v616_v49 = vadd.f32 %v615_v28, %v535_v62  ;;  %v5641_v28 = vld [vmem:[%s5166_s19 + $0xea] sm:$0x3f] }
  0xf7   : >> { %4276 = vmatmul.msk.f32.gmra.mxu2 %vm459_vm1, %v5287_v44  ;;  %v720_v44 = vadd.f32 %v704_v16, %v613_v2  ;;  %6955 = vst [vmem:[#allocation33_spill] sm:$0xff] %v5641_v28 }
  0xf8   : >> { %4265 = vmatmul.msk.f32.gmra.mxu1 %vm459_vm1, %v5419_v8 }
  0xf9   : >> { %v806_v4 = vpop.f32.mrf.mxu3 }
  0xfa   : >> { %v5610_v37 = vadd.f32 %v806_v4, %v719_v40  ;;  %v1097_v57 = vpop.f32.mrf.mxu2 }
  0xfb   : >> { %v1127_v22 = vadd.f32 %v1097_v57, %v1022_v51  ;;  %v893_v0 = vpop.f32.mrf.mxu0 }
  0xfc   : >> { %v921_v55 = vadd.f32 %v893_v0, %v5536_v43 }
  0xfd   : >> { %v995_v47 = vpop.f32.mrf.mxu1 }
  0xfe   : >> { %4255 = vmatmul.msk.f32.gmra.mxu0 %vm459_vm1, %v5613_v35  ;;  %4284 = vmatmul.msk.f32.gmra.mxu3 %vm459_vm1, %v5360_v59  ;;  %v1023_v8 = vadd.f32 %v995_v47, %v921_v55 }
  0xff   : >> { %4277 = vmatmul.msk.f32.gmra.mxu2 %vm459_vm1, %v5311_v48  ;;  %v721_v48 = vadd.f32 %v707_v60, %v616_v49 }
 0x100   : >> { %4266 = vmatmul.msk.f32.gmra.mxu1 %vm459_vm1, %v5439_v14 }
 0x101   : >> { %v809_v6 = vpop.f32.mrf.mxu3 }
 0x102   : >> { %v5624_v36 = vadd.f32 %v809_v6, %v720_v44  ;;  %v1100_v53 = vpop.f32.mrf.mxu2 }
 0x103   : >> { %v1128_v43 = vadd.f32 %v1100_v53, %v1023_v8  ;;  %v896_v23 = vpop.f32.mrf.mxu0 }
 0x104   : >> { %v922_v59 = vadd.f32 %v896_v23, %v5552_v24 }
 0x105   : >> { %v998_v25 = vpop.f32.mrf.mxu1 }
 0x106   : >> { %4256 = vmatmul.msk.f32.gmra.mxu0 %vm459_vm1, %v5627_v29  ;;  %4285 = vmatmul.msk.f32.gmra.mxu3 %vm459_vm1, %v5380_v63  ;;  %v1024_v14 = vadd.f32 %v998_v25, %v922_v59 }
 0x107   : >> { %4278 = vmatmul.msk.f32.gmra.mxu2 %vm459_vm1, %v5331_v52 }
 0x108   : >> { %4267 = vmatmul.msk.f32.gmra.mxu1 %vm459_vm1, %v5459_v27 }
 0x109   : >> { %v812_v16 = vpop.f32.mrf.mxu3 }
 0x10a   : >> { %v5638_v32 = vadd.f32 %v812_v16, %v721_v48  ;;  %v1103_v40 = vpop.f32.mrf.mxu2 }
 0x10b   : >> { %v1129_v24 = vadd.f32 %v1103_v40, %v1024_v14  ;;  %v899_v62 = vpop.f32.mrf.mxu0 }
 0x10c   : >> { %v923_v4 = vadd.f32 %v899_v62, %v5568_v34 }
 0x10d   : >> { %v1001_v51 = vpop.f32.mrf.mxu1 }
 0x10e   : >> { %4257 = vmatmul.msk.f32.gmra.mxu0 %vm459_vm1, %v5641_v28  ;;  %4286 = vmatmul.msk.f32.gmra.mxu3 %vm459_vm1, %v5408_v7  ;;  %v1025_v52 = vadd.f32 %v1001_v51, %v923_v4  ;;  %v6958_v51 = vld [vmem:[#allocation21_spill] sm:$0xff]  ;;  %v6959_v4 = vld [vmem:[#allocation26_spill] sm:$0xff] }
 0x10f   : >> { %4279 = vmatmul.msk.f32.gmra.mxu2 %vm459_vm1, %v5351_v56 }
 0x110   : >> { %4268 = vmatmul.msk.f32.gmra.mxu1 %vm459_vm1, %v5479_v39 }
 0x111   : >> { %v815_v63 = vpop.f32.mrf.mxu3 }
 0x112   : >> { %v5653_v27 = vadd.f32 %v815_v63, %v5498_v31  ;;  %v1106_v60 = vpop.f32.mrf.mxu2 }
 0x113   : >> { %v1130_v57 = vadd.f32 %v1106_v60, %v1025_v52  ;;  %v902_v34 = vpop.f32.mrf.mxu0  ;;  %v6960_v52 = vld [vmem:[#allocation19_spill] sm:$0xff] }
 0x114   : >> { %v924_v47 = vadd.f32 %v902_v34, %v5583_v17 }
 0x115   : >> { %v1004_v0 = vpop.f32.mrf.mxu1 }
 0x116   : >> { %4287 = vmatmul.msk.f32.gmra.mxu3 %vm459_vm1, %v5428_v12  ;;  %4292 = vmatmul.msk.f32.vlgmr.msrb.gmra.mxu0 %vm459_vm1, %v5293_v46  ;;  %v1026_v56 = vadd.f32 %v1004_v0, %v924_v47  ;;  %v5722_v47 = vld [vmem:[%s5166_s19 + $0xf8] sm:$0xff] }
 0x117   : >> { %4314 = vmatmul.msk.f32.vlgmr.msrb.gmra.mxu2 %vm459_vm1, %v5504_v26  ;;  %4410 = vmatpush.msk.msrb.mxu0 %vm490_vm0, %v5150_v1 }
 0x118   : >> { %4303 = vmatmul.msk.f32.vlgmr.msrb.gmra.mxu1 %vm459_vm1, %v5374_v61  ;;  %4432 = vmatpush.msk.msrb.mxu2 %vm490_vm0, %v5211_v21 }
 0x119   : >> { %v1199_v7 = vpop.f32.mrf.mxu3  ;;  %4421 = vmatpush.msk.msrb.mxu1 %vm490_vm0, %v5182_v11 }
 0x11a   : >> { %v1109_v12 = vpop.f32.mrf.mxu2  ;;  %v5670_v31 = vadd.f32 %v1199_v7, %v1127_v22 }
 0x11b   : >> { %v1131_v39 = vadd.f32 %v1109_v12, %v1026_v56  ;;  %v905_v17 = vpop.f32.mrf.mxu0  ;;  %v6962_v12 = vld [vmem:[#allocation23_spill] sm:$0xff] }
 0x11c   : >> { %v925_v2 = vadd.f32 %v905_v17, %v5596_v13 }
 0x11d   : >> { %v1007_v55 = vpop.f32.mrf.mxu1 }
 0x11e   : >> { %4288 = vmatmul.msk.f32.gmra.mxu3 %vm459_vm1, %v5448_v19  ;;  %4293 = vmatmul.msk.f32.gmra.mxu0 %vm459_vm1, %v5317_v50  ;;  %v1027_v1 = vadd.f32 %v1007_v55, %v925_v2 }
 0x11f   : >> { %4315 = vmatmul.msk.f32.gmra.mxu2 %vm459_vm1, %v5526_v45 }
 0x120   : >> { %4304 = vmatmul.msk.f32.gmra.mxu1 %vm459_vm1, %v5402_v5 }
 0x121   : >> { %v1202_v11 = vpop.f32.mrf.mxu3 }
 0x122   : >> { %v1112_v21 = vpop.f32.mrf.mxu2  ;;  %v5681_v22 = vadd.f32 %v1202_v11, %v1128_v43  ;;  %v5738_v11 = vld [vmem:[%s5166_s19 + $0x100] sm:$0xff] }
 0x123   : >> { %v1132_v44 = vadd.f32 %v1112_v21, %v1027_v1  ;;  %v908_v8 = vpop.f32.mrf.mxu0 }
 0x124   : >> { %v926_v6 = vadd.f32 %v908_v8, %v5610_v37  ;;  %v6964_v8 = vld [vmem:[#allocation24_spill] sm:$0xff] }
 0x125   : >> { %v1010_v13 = vpop.f32.mrf.mxu1 }
 0x126   : >> { %4289 = vmatmul.msk.f32.gmra.mxu3 %vm459_vm1, %v5468_v33  ;;  %4294 = vmatmul.msk.f32.gmra.mxu0 %vm459_vm1, %v5337_v54  ;;  %v1028_v19 = vadd.f32 %v1010_v13, %v926_v6  ;;  %v6965_v13 = vld [vmem:[#allocation29_spill] sm:$0xff] }
 0x127   : >> { %4316 = vmatmul.msk.f32.gmra.mxu2 %vm459_vm1, %v5542_v3 }
 0x128   : >> { %4305 = vmatmul.msk.f32.gmra.mxu1 %vm459_vm1, %v5422_v9 }
 0x129   : >> { %v1205_v53 = vpop.f32.mrf.mxu3 }
 0x12a   : >> { %v1115_v43 = vpop.f32.mrf.mxu2  ;;  %v5692_v23 = vadd.f32 %v1205_v53, %v1129_v24  ;;  %v5706_v24 = vld [vmem:[%s5166_s19 + $0xf0] sm:$0xff] }
 0x12b   : >> { %v1133_v25 = vadd.f32 %v1115_v43, %v1028_v19  ;;  %v911_v37 = vpop.f32.mrf.mxu0 }
 0x12c   : >> { %6956 = vst [vmem:[#allocation34_spill] sm:$0xff] %v5692_v23  ;;  %v927_v33 = vadd.f32 %v911_v37, %v5624_v36  ;;  %v5753_v37 = vld [vmem:[%s5166_s19 + $0x108] sm:$0xff] }
 0x12d   : >> { %v1013_v59 = vpop.f32.mrf.mxu1  ;;  %v5942_v23 = vld [vmem:[%s5166_s19 + $0x12a] sm:$0xff] }
 0x12e   : >> { %4290 = vmatmul.msk.f32.gmra.mxu3 %vm459_vm1, %v5488_v18  ;;  %4295 = vmatmul.msk.f32.gmra.mxu0 %vm459_vm1, %v5357_v58  ;;  %v1029_v49 = vadd.f32 %v1013_v59, %v927_v33  ;;  %v6967_v33 = vld [vmem:[#allocation25_spill] sm:$0xff] }
 0x12f   : >> { %4317 = vmatmul.msk.f32.gmra.mxu2 %vm459_vm1, %v5558_v42 }
 0x130   : >> { %4306 = vmatmul.msk.f32.gmra.mxu1 %vm459_vm1, %v5442_v15 }
 0x131   : >> { %v1208_v48 = vpop.f32.mrf.mxu3 }
 0x132   : >> { %v1118_v14 = vpop.f32.mrf.mxu2  ;;  %v5703_v16 = vadd.f32 %v1208_v48, %v1130_v57 }
 0x133   : >> { %v1134_v40 = vadd.f32 %v1118_v14, %v1029_v49  ;;  %v914_v36 = vpop.f32.mrf.mxu0  ;;  %v6968_v49 = vld [vmem:[#allocation30_spill] sm:$0xff] }
 0x134   : >> { %6957 = vst [vmem:[#allocation35_spill] sm:$0xff] %v5703_v16  ;;  %v928_v62 = vadd.f32 %v914_v36, %v5638_v32  ;;  %v5873_v16 = vld [vmem:[%s5166_s19 + $0x10a] sm:$0xff] }
 0x135   : >> { %v1016_v18 = vpop.f32.mrf.mxu1 }
 0x136   : >> { %4296 = vmatmul.msk.f32.gmra.mxu0 %vm459_vm1, %v6958_v51  ;;  %4336 = vmatmul.msk.f32.vlgmr.msra.gmra.mxu3 %vm459_vm1, %v5706_v24  ;;  %v1030_v63 = vadd.f32 %v1016_v18, %v928_v62  ;;  %v5768_v62 = vld [vmem:[%s5166_s19 + $0x110] sm:$0xff] }
 0x137   : >> { %4318 = vmatmul.msk.f32.gmra.mxu2 %vm459_vm1, %v5571_v10  ;;  %4443 = vmatpush.msk.msra.mxu3 %vm490_vm0, %v6960_v52 }
 0x138   : >> { %4307 = vmatmul.msk.f32.gmra.mxu1 %vm459_vm1, %v6959_v4 }
 0x139   : >> { %v1211_v60 = vpop.f32.mrf.mxu3 }
 0x13a   : >> { %v1121_v57 = vpop.f32.mrf.mxu2  ;;  %v5719_v34 = vadd.f32 %v1211_v60, %v1131_v39  ;;  %v6972_v60 = vld [vmem:[#allocation31_spill] sm:$0xff] }
 0x13b   : >> { %v1135_v32 = vadd.f32 %v1121_v57, %v1030_v63  ;;  %v917_v0 = vpop.f32.mrf.mxu0  ;;  %v6971_v63 = vld [vmem:[#allocation27_spill] sm:$0xff] }
 0x13c   : >> { %6961 = vst [vmem:[#allocation21_spill] sm:$0xff] %v5719_v34  ;;  %v929_v7 = vadd.f32 %v917_v0, %v5653_v27  ;;  %v5852_v34 = vld [vmem:[%s5166_s19 + $0x102] sm:$0xff] }
 0x13d   : >> { %v1019_v56 = vpop.f32.mrf.mxu1 }
 0x13e   : >> { %4297 = vmatmul.msk.f32.gmra.mxu0 %vm459_vm1, %v6962_v12  ;;  %4337 = vmatmul.msk.f32.gmra.mxu3 %vm459_vm1, %v5722_v47  ;;  %v1031_v39 = vadd.f32 %v1019_v56, %v929_v7 }
 0x13f   : >> { %4319 = vmatmul.msk.f32.gmra.mxu2 %vm459_vm1, %v5586_v30 }
 0x140   : >> { %4308 = vmatmul.msk.f32.gmra.mxu1 %vm459_vm1, %v5482_v41 }
 0x141   : >> { %v1214_v17 = vpop.f32.mrf.mxu3 }
 0x142   : >> { %v1124_v55 = vpop.f32.mrf.mxu2  ;;  %v5733_v2 = vadd.f32 %v1214_v17, %v1132_v44 }
 0x143   : >> { %v1136_v1 = vadd.f32 %v1124_v55, %v1031_v39  ;;  %v5735_v27 = vpop.f32.mrf.mxu0  ;;  %v5783_v39 = vld [vmem:[%s5166_s19 + $0x118] sm:$0xff] }
 0x144   : >> { %6963 = vst [vmem:[#allocation26_spill] sm:$0xff] %v5733_v2  ;;  %v6975_v55 = vld [vmem:[#allocation28_spill] sm:$0xff] }
 0x145   : >> { %v1392_v21 = vpop.f32.mrf.mxu1  ;;  %v5831_v2 = vld [vmem:[%s5166_s19 + $0xfa] sm:$0xff] }
 0x146   : >> { %4298 = vmatmul.msk.f32.gmra.mxu0 %vm459_vm1, %v6964_v8  ;;  %4338 = vmatmul.msk.f32.gmra.mxu3 %vm459_vm1, %v5738_v11 }
 0x147   : >> { %4320 = vmatmul.msk.f32.gmra.mxu2 %vm459_vm1, %v5599_v20 }
 0x148   : >> { %4309 = vmatmul.msk.f32.gmra.mxu1 %vm459_vm1, %v6965_v13 }
 0x149   : >> { %v1217_v44 = vpop.f32.mrf.mxu3 }
 0x14a   : >> { %v5748_v6 = vadd.f32 %v1217_v44, %v1133_v25  ;;  %v1439_v19 = vpop.f32.mrf.mxu2 }
 0x14b   : >> { %v1440_v53 = vadd.f32 %v1439_v19, %v1392_v21  ;;  %v5750_v43 = vpop.f32.mrf.mxu0 }
 0x14c   : >> { %6966 = vst [vmem:[#allocation19_spill] sm:$0xff] %v5748_v6  ;;  %v5828_v6 = vld [vmem:[%s5166_s19 + $0xf9] sm:$0xff] }
 0x14d   : >> { %v1395_v59 = vpop.f32.mrf.mxu1 }
 0x14e   : >> { %4299 = vmatmul.msk.f32.gmra.mxu0 %vm459_vm1, %v6967_v33  ;;  %4339 = vmatmul.msk.f32.gmra.mxu3 %vm459_vm1, %v5753_v37 }
 0x14f   : >> { %4321 = vmatmul.msk.f32.gmra.mxu2 %vm459_vm1, %v5613_v35 }
 0x150   : >> { %4310 = vmatmul.msk.f32.gmra.mxu1 %vm459_vm1, %v6968_v49 }
 0x151   : >> { %v1220_v25 = vpop.f32.mrf.mxu3 }
 0x152   : >> { %v5763_v48 = vadd.f32 %v1220_v25, %v1134_v40  ;;  %v1442_v14 = vpop.f32.mrf.mxu2  ;;  %v5798_v25 = vld [vmem:[%s5166_s19 + $0x120] sm:$0xff] }
 0x153   : >> { %v1443_v36 = vadd.f32 %v1442_v14, %v1395_v59  ;;  %v5765_v18 = vpop.f32.mrf.mxu0  ;;  %v5801_v14 = vld [vmem:[%s5166_s19 + $0xf1] sm:$0xff] }
 0x154   : >> { %6969 = vst [vmem:[#allocation23_spill] sm:$0xff] %v5763_v48  ;;  %v5825_v48 = vld [vmem:[%s5166_s19 + $0x128] sm:$0xff] }
 0x155   : >> { %6970 = vst [vmem:[#allocation24_spill] sm:$0xff] %v5765_v18  ;;  %v1398_v52 = vpop.f32.mrf.mxu1  ;;  %v5909_v18 = vld [vmem:[%s5166_s19 + $0x11a] sm:$0xff] }
 0x156   : >> { %4300 = vmatmul.msk.f32.gmra.mxu0 %vm459_vm1, %v6971_v63  ;;  %4340 = vmatmul.msk.f32.gmra.mxu3 %vm459_vm1, %v5768_v62  ;;  %6989 = vst [vmem:[#allocation39_spill] sm:$0xff] %v5909_v18 }
 0x157   : >> { %4322 = vmatmul.msk.f32.gmra.mxu2 %vm459_vm1, %v5627_v29 }
 0x158   : >> { %4311 = vmatmul.msk.f32.gmra.mxu1 %vm459_vm1, %v6972_v60 }
 0x159   : >> { %v1223_v40 = vpop.f32.mrf.mxu3 }
 0x15a   : >> { %v5778_v57 = vadd.f32 %v1223_v40, %v1135_v32  ;;  %v1445_v0 = vpop.f32.mrf.mxu2  ;;  %v5804_v40 = vld [vmem:[%s5166_s19 + $0xf2] sm:$0xff] }
 0x15b   : >> { %v1446_v56 = vadd.f32 %v1445_v0, %v1398_v52  ;;  %v5780_v7 = vpop.f32.mrf.mxu0  ;;  %v6979_v0 = vld [vmem:[#allocation18_spill] sm:$0xff] }
 0x15c   : >> { %6973 = vst [vmem:[#allocation29_spill] sm:$0xff] %v5778_v57 }
 0x15d   : >> { %6974 = vst [vmem:[#allocation25_spill] sm:$0xff] %v5780_v7  ;;  %v1401_v17 = vpop.f32.mrf.mxu1 }
 0x15e   : >> { %4301 = vmatmul.msk.f32.gmra.mxu0 %vm459_vm1, %v6975_v55  ;;  %4341 = vmatmul.msk.f32.gmra.mxu3 %vm459_vm1, %v5783_v39 }
 0x15f   : >> { %4323 = vmatmul.msk.f32.gmra.mxu2 %vm459_vm1, %v5641_v28  ;;  %v5870_v28 = vld [vmem:[%s5166_s19 + $0x109] sm:$0xff] }
 0x160   : >> { %4312 = vmatmul.msk.f32.gmra.mxu1 %vm459_vm1, %v5555_v38 }
 0x161   : >> { %v1226_v32 = vpop.f32.mrf.mxu3 }
 0x162   : >> { %v5793_v21 = vadd.f32 %v1226_v32, %v1136_v1  ;;  %v1448_v44 = vpop.f32.mrf.mxu2  ;;  %v6978_v1 = vld [vmem:[#allocation22_spill] sm:$0xff]  ;;  %v6980_v32 = vld [vmem:[#allocation20_spill] sm:$0xff] }
 0x163   : >> { %v1449_v19 = vadd.f32 %v1448_v44, %v1401_v17  ;;  %v5795_v59 = vpop.f32.mrf.mxu0 }
 0x164   : >> { %6976 = vst [vmem:[#allocation30_spill] sm:$0xff] %v5793_v21 }
 0x165   : >> { %6977 = vst [vmem:[#allocation27_spill] sm:$0xff] %v5795_v59  ;;  %v1404_v52 = vpop.f32.mrf.mxu1 }
 0x166   : >> { %4342 = vmatmul.msk.f32.gmra.mxu3 %vm459_vm1, %v5798_v25  ;;  %4357 = vmatmul.msk.f32.vlgmr.msra.gmra.mxu0 %vm459_vm1, %v5801_v14 }
 0x167   : >> { %4389 = vmatmul.msk.f32.vlgmr.msra.gmra.mxu2 %vm459_vm1, %v5374_v61  ;;  %4465 = vmatpush.msk.msra.mxu0 %vm490_vm0, %v6979_v0 }
 0x168   : >> { %4378 = vmatmul.msk.f32.vlgmr.msra.gmra.mxu1 %vm459_vm1, %v5804_v40  ;;  %4507 = vmatpush.msk.msra.mxu2 %vm490_vm0, %v6978_v1 }
 0x169   : >> { %v1486_v17 = vpop.f32.mrf.mxu3  ;;  %4486 = vmatpush.msk.msra.mxu1 %vm490_vm0, %v6980_v32 }
 0x16a   : >> { %v1451_v44 = vpop.f32.mrf.mxu2  ;;  %v5820_v21 = vadd.f32 %v1486_v17, %v1440_v53 }
 0x16b   : >> { %v1452_v57 = vadd.f32 %v1451_v44, %v1404_v52  ;;  %v5822_v61 = vpop.f32.mrf.mxu0  ;;  %v5846_v44 = vld [vmem:[%s5166_s19 + $0x130] sm:$0xff] }
 0x16c   : >> { %6981 = vst [vmem:[#allocation31_spill] sm:$0xff] %v5822_v61  ;;  %v5849_v61 = vld [vmem:[%s5166_s19 + $0x101] sm:$0xff] }
 0x16d   : >> { %v1407_v1 = vpop.f32.mrf.mxu1  ;;  %6983 = vst [vmem:[#allocation22_spill] sm:$0xff] %v5846_v44 }
 0x16e   : >> { %4343 = vmatmul.msk.f32.gmra.mxu3 %vm459_vm1, %v5825_v48  ;;  %4358 = vmatmul.msk.f32.gmra.mxu0 %vm459_vm1, %v5828_v6 }
 0x16f   : >> { %4390 = vmatmul.msk.f32.gmra.mxu2 %vm459_vm1, %v5402_v5 }
 0x170   : >> { %4379 = vmatmul.msk.f32.gmra.mxu1 %vm459_vm1, %v5831_v2 }
 0x171   : >> { %v1489_v53 = vpop.f32.mrf.mxu3 }
 0x172   : >> { %v1454_v52 = vpop.f32.mrf.mxu2  ;;  %v5841_v0 = vadd.f32 %v1489_v53, %v1443_v36 }
 0x173   : >> { %v1455_v17 = vadd.f32 %v1454_v52, %v1407_v1  ;;  %v5843_v32 = vpop.f32.mrf.mxu0 }
 0x174   : >> { %6982 = vst [vmem:[#allocation28_spill] sm:$0xff] %v5843_v32  ;;  %v5867_v32 = vld [vmem:[%s5166_s19 + $0x138] sm:$0x3f] }
 0x175   : >> { %v1410_v59 = vpop.f32.mrf.mxu1  ;;  %6985 = vst [vmem:[#allocation20_spill] sm:$0xff] %v5867_v32 }
 0x176   : >> { %4344 = vmatmul.msk.f32.gmra.mxu3 %vm459_vm1, %v5846_v44  ;;  %4359 = vmatmul.msk.f32.gmra.mxu0 %vm459_vm1, %v5849_v61  ;;  %v5891_v44 = vld [vmem:[%s5166_s19 + $0x112] sm:$0xff] }
 0x177   : >> { %4391 = vmatmul.msk.f32.gmra.mxu2 %vm459_vm1, %v5422_v9  ;;  %6987 = vst [vmem:[#allocation37_spill] sm:$0xff] %v5891_v44 }
 0x178   : >> { %4380 = vmatmul.msk.f32.gmra.mxu1 %vm459_vm1, %v5852_v34 }
 0x179   : >> { %v1492_v5 = vpop.f32.mrf.mxu3 }
 0x17a   : >> { %v1457_v36 = vpop.f32.mrf.mxu2  ;;  %v5862_v1 = vadd.f32 %v1492_v5, %v1446_v56 }
 0x17b   : >> { %v1458_v53 = vadd.f32 %v1457_v36, %v1410_v59  ;;  %v5864_v52 = vpop.f32.mrf.mxu0 }
 0x17c   : >> { %6984 = vst [vmem:[#allocation18_spill] sm:$0xff] %v5864_v52  ;;  %v5888_v52 = vld [vmem:[%s5166_s19 + $0x111] sm:$0xff] }
 0x17d   : >> { %v1413_v7 = vpop.f32.mrf.mxu1 }
 0x17e   : >> { %4345 = vmatmul.msk.f32.gmra.mxu3 %vm459_vm1, %v5867_v32  ;;  %4360 = vmatmul.msk.f32.gmra.mxu0 %vm459_vm1, %v5870_v28 }
 0x17f   : >> { %4392 = vmatmul.msk.f32.gmra.mxu2 %vm459_vm1, %v5442_v15 }
 0x180   : >> { %4381 = vmatmul.msk.f32.gmra.mxu1 %vm459_vm1, %v5873_v16 }
 0x181   : >> { %v1495_v9 = vpop.f32.mrf.mxu3 }
 0x182   : >> { %v1460_v56 = vpop.f32.mrf.mxu2  ;;  %v5883_v59 = vadd.f32 %v1495_v9, %v1449_v19 }
 0x183   : >> { %v1461_v5 = vadd.f32 %v1460_v56, %v1413_v7  ;;  %v5885_v36 = vpop.f32.mrf.mxu0 }
 0x184   : >> { %6986 = vst [vmem:[#allocation36_spill] sm:$0xff] %v5885_v36  ;;  %v5906_v36 = vld [vmem:[%s5166_s19 + $0x119] sm:$0xff] }
 0x185   : >> { %v1416_v32 = vpop.f32.mrf.mxu1 }
 0x186   : >> { %4361 = vmatmul.msk.f32.gmra.mxu0 %vm459_vm1, %v5888_v52  ;;  %4400 = vmatmul.msk.f32.vlgmr.msrb.gmra.mxu3 %vm459_vm1, %v5293_v46 }
 0x187   : >> { %4393 = vmatmul.msk.f32.gmra.mxu2 %vm459_vm1, %v6959_v4 }
 0x188   : >> { %4382 = vmatmul.msk.f32.gmra.mxu1 %vm459_vm1, %v5891_v44  ;;  %v5925_v44 = vld [vmem:[%s5166_s19 + $0x122] sm:$0xff] }
 0x189   : >> { %v1498_v15 = vpop.f32.mrf.mxu3 }
 0x18a   : >> { %v1463_v7 = vpop.f32.mrf.mxu2  ;;  %v5901_v19 = vadd.f32 %v1498_v15, %v1452_v57 }
 0x18b   : >> { %v1464_v9 = vadd.f32 %v1463_v7, %v1416_v32  ;;  %v5903_v56 = vpop.f32.mrf.mxu0  ;;  %v5922_v7 = vld [vmem:[%s5166_s19 + $0x121] sm:$0xff] }
 0x18c   : >> { %6988 = vst [vmem:[#allocation38_spill] sm:$0xff] %v5903_v56 }
 0x18d   : >> { %v1419_v29 = vpop.f32.mrf.mxu1 }
 0x18e   : >> { %4362 = vmatmul.msk.f32.gmra.mxu0 %vm459_vm1, %v5906_v36  ;;  %4401 = vmatmul.msk.f32.gmra.mxu3 %vm459_vm1, %v5317_v50 }
 0x18f   : >> { %4394 = vmatmul.msk.f32.gmra.mxu2 %vm459_vm1, %v5482_v41 }
 0x190   : >> { %4383 = vmatmul.msk.f32.gmra.mxu1 %vm459_vm1, %v5909_v18 }
 0x191   : >> { %v1501_v46 = vpop.f32.mrf.mxu3 }
 0x192   : >> { %v1466_v4 = vpop.f32.mrf.mxu2  ;;  %v5919_v57 = vadd.f32 %v1501_v46, %v1455_v17 }
 0x193   : >> { %v1467_v32 = vadd.f32 %v1466_v4, %v1419_v29  ;;  %v1543_v15 = vpop.f32.mrf.mxu0 }
 0x194   : >> { %v1573_v50 = vadd.f32 %v1543_v15, %v5820_v21  ;;  %v5939_v15 = vld [vmem:[%s5166_s19 + $0x129] sm:$0xff] }
 0x195   : >> { %v1600_v56 = vpop.f32.mrf.mxu1 }
 0x196   : >> { %4363 = vmatmul.msk.f32.gmra.mxu0 %vm459_vm1, %v5922_v7  ;;  %4402 = vmatmul.msk.f32.gmra.mxu3 %vm459_vm1, %v5337_v54  ;;  %v1630_v41 = vadd.f32 %v1600_v56, %v1573_v50 }
 0x197   : >> { %4395 = vmatmul.msk.f32.gmra.mxu2 %vm459_vm1, %v6965_v13 }
 0x198   : >> { %4384 = vmatmul.msk.f32.gmra.mxu1 %vm459_vm1, %v5925_v44 }
 0x199   : >> { %v1504_v29 = vpop.f32.mrf.mxu3 }
 0x19a   : >> { %v5936_v17 = vadd.f32 %v1504_v29, %v1458_v53  ;;  %v1657_v46 = vpop.f32.mrf.mxu2  ;;  %v5956_v29 = vld [vmem:[%s5166_s19 + $0x131] sm:$0xff] }
 0x19b   : >> { %v1687_v4 = vadd.f32 %v1657_v46, %v1630_v41  ;;  %v1546_v21 = vpop.f32.mrf.mxu0 }
 0x19c   : >> { %v1574_v54 = vadd.f32 %v1546_v21, %v5841_v0  ;;  %v5959_v21 = vld [vmem:[%s5166_s19 + $0x132] sm:$0xff] }
 0x19d   : >> { %v1603_v18 = vpop.f32.mrf.mxu1 }
 0x19e   : >> { %4364 = vmatmul.msk.f32.gmra.mxu0 %vm459_vm1, %v5939_v15  ;;  %4403 = vmatmul.msk.f32.gmra.mxu3 %vm459_vm1, %v5357_v58  ;;  %v1631_v13 = vadd.f32 %v1603_v18, %v1574_v54 }
 0x19f   : >> { %4396 = vmatmul.msk.f32.gmra.mxu2 %vm459_vm1, %v6968_v49 }
 0x1a0   : >> { %4385 = vmatmul.msk.f32.gmra.mxu1 %vm459_vm1, %v5942_v23 }
 0x1a1   : >> { %v1507_v53 = vpop.f32.mrf.mxu3 }
 0x1a2   : >> { %v5953_v56 = vadd.f32 %v1507_v53, %v1461_v5  ;;  %v1660_v50 = vpop.f32.mrf.mxu2 }
 0x1a3   : >> { %v1688_v41 = vadd.f32 %v1660_v50, %v1631_v13  ;;  %v1549_v0 = vpop.f32.mrf.mxu0 }
 0x1a4   : >> { %v1575_v58 = vadd.f32 %v1549_v0, %v5862_v1  ;;  %v5973_v1 = vld [vmem:[%s5166_s19 + $0x139] sm:$0x3f] }
 0x1a5   : >> { %v1606_v46 = vpop.f32.mrf.mxu1  ;;  %v5976_v0 = vld [vmem:[%s5166_s19 + $0x13a] sm:$0x3f] }
 0x1a6   : >> { %4365 = vmatmul.msk.f32.gmra.mxu0 %vm459_vm1, %v5956_v29  ;;  %4404 = vmatmul.msk.f32.gmra.mxu3 %vm459_vm1, %v6958_v51  ;;  %v1632_v49 = vadd.f32 %v1606_v46, %v1575_v58 }
 0x1a7   : >> { %4397 = vmatmul.msk.f32.gmra.mxu2 %vm459_vm1, %v6972_v60 }
 0x1a8   : >> { %4386 = vmatmul.msk.f32.gmra.mxu1 %vm459_vm1, %v5959_v21 }
 0x1a9   : >> { %v1510_v18 = vpop.f32.mrf.mxu3 }
 0x1aa   : >> { %v5970_v5 = vadd.f32 %v1510_v18, %v1464_v9  ;;  %v1663_v54 = vpop.f32.mrf.mxu2 }
 0x1ab   : >> { %v1689_v13 = vadd.f32 %v1663_v54, %v1632_v49  ;;  %v1552_v53 = vpop.f32.mrf.mxu0 }
 0x1ac   : >> { %v1576_v51 = vadd.f32 %v1552_v53, %v5883_v59 }
 0x1ad   : >> { %v1609_v50 = vpop.f32.mrf.mxu1 }
 0x1ae   : >> { %4366 = vmatmul.msk.f32.gmra.mxu0 %vm459_vm1, %v5973_v1  ;;  %4405 = vmatmul.msk.f32.gmra.mxu3 %vm459_vm1, %v6962_v12  ;;  %v1633_v60 = vadd.f32 %v1609_v50, %v1576_v51 }
 0x1af   : >> { %4398 = vmatmul.msk.f32.gmra.mxu2 %vm459_vm1, %v5555_v38 }
 0x1b0   : >> { %4387 = vmatmul.msk.f32.gmra.mxu1 %vm459_vm1, %v5976_v0 }
 0x1b1   : >> { %v1513_v9 = vpop.f32.mrf.mxu3 }
 0x1b2   : >> { %v5987_v46 = vadd.f32 %v1513_v9, %v1467_v32  ;;  %v1666_v58 = vpop.f32.mrf.mxu2 }
 0x1b3   : >> { %v1690_v49 = vadd.f32 %v1666_v58, %v1633_v60  ;;  %v1555_v18 = vpop.f32.mrf.mxu0 }
 0x1b4   : >> { %v1577_v54 = vadd.f32 %v1555_v18, %v5901_v19 }
 0x1b5   : >> { %v1612_v59 = vpop.f32.mrf.mxu1 }
 0x1b6   : >> { %4406 = vmatmul.msk.f32.gmra.mxu3 %vm459_vm1, %v6964_v8  ;;  %4411 = vmatmul.msk.f32.vlgmr.msrb.gmra.mxu0 %vm459_vm1, %v5504_v26  ;;  %v1634_v38 = vadd.f32 %v1612_v59, %v1577_v54 }
 0x1b7   : >> { %4433 = vmatmul.msk.f32.vlgmr.msrb.gmra.mxu2 %vm459_vm1, %v5801_v14 }
 0x1b8   : >> { %4422 = vmatmul.msk.f32.vlgmr.msrb.gmra.mxu1 %vm459_vm1, %v5706_v24 }
 0x1b9   : >> { %v1757_v12 = vpop.f32.mrf.mxu3 }
 0x1ba   : >> { %v1669_v32 = vpop.f32.mrf.mxu2  ;;  %v5998_v53 = vadd.f32 %v1757_v12, %v1687_v4 }
 0x1bb   : >> { %v1691_v50 = vadd.f32 %v1669_v32, %v1634_v38  ;;  %v1558_v51 = vpop.f32.mrf.mxu0  ;;  %v6061_v32 = vld [vmem:[#allocation6] ss:$0 sm:$0xff] }
 0x1bc   : >> { %v1578_v60 = vadd.f32 %v1558_v51, %v5919_v57 }
 0x1bd   : >> { %v1615_v19 = vpop.f32.mrf.mxu1 }
 0x1be   : >> { %4407 = vmatmul.msk.f32.gmra.mxu3 %vm459_vm1, %v6967_v33  ;;  %4412 = vmatmul.msk.f32.gmra.mxu0 %vm459_vm1, %v5526_v45  ;;  %v1635_v26 = vadd.f32 %v1615_v19, %v1578_v60 }
 0x1bf   : >> { %4434 = vmatmul.msk.f32.gmra.mxu2 %vm459_vm1, %v5828_v6 }
 0x1c0   : >> { %4423 = vmatmul.msk.f32.gmra.mxu1 %vm459_vm1, %v5722_v47 }
 0x1c1   : >> { %v1760_v24 = vpop.f32.mrf.mxu3 }
 0x1c2   : >> { %v1672_v8 = vpop.f32.mrf.mxu2  ;;  %v6009_v14 = vadd.f32 %v1760_v24, %v1688_v41 }
 0x1c3   : >> { %v1692_v4 = vadd.f32 %v1672_v8, %v1635_v26  ;;  %v1561_v9 = vpop.f32.mrf.mxu0 }
 0x1c4   : >> { %v1579_v58 = vadd.f32 %v1561_v9, %v5936_v17  ;;  %v6990_v9 = vld [vmem:[#allocation34_spill] sm:$0xff] }
 0x1c5   : >> { %v1618_v57 = vpop.f32.mrf.mxu1 }
 0x1c6   : >> { %4408 = vmatmul.msk.f32.gmra.mxu3 %vm459_vm1, %v6971_v63  ;;  %4413 = vmatmul.msk.f32.gmra.mxu0 %vm459_vm1, %v5542_v3  ;;  %v1636_v45 = vadd.f32 %v1618_v57, %v1579_v58  ;;  %v6991_v57 = vld [vmem:[#allocation24_spill] sm:$0xff] }
 0x1c7   : >> { %4435 = vmatmul.msk.f32.gmra.mxu2 %vm459_vm1, %v5849_v61  ;;  %v1333_v58 = vadd.f32 %v6991_v57, %v6990_v9  ;;  %v7002_v57 = vld [vmem:[#allocation26_spill] sm:$0xff] }
 0x1c8   : >> { %4424 = vmatmul.msk.f32.gmra.mxu1 %vm459_vm1, %v5738_v11 }
 0x1c9   : >> { %v1763_v47 = vpop.f32.mrf.mxu3 }
 0x1ca   : >> { %v1675_v6 = vpop.f32.mrf.mxu2  ;;  %v6020_v33 = vadd.f32 %v1763_v47, %v1689_v13 }
 0x1cb   : >> { %v6022_v41 = vadd.f32 %v1675_v6, %v1636_v45  ;;  %v1564_v17 = vpop.f32.mrf.mxu0 }
 0x1cc   : >> { %v1580_v63 = vadd.f32 %v1564_v17, %v5953_v56 }
 0x1cd   : >> { %v1621_v18 = vpop.f32.mrf.mxu1 }
 0x1ce   : >> { %4409 = vmatmul.msk.f32.gmra.mxu3 %vm459_vm1, %v6975_v55  ;;  %4414 = vmatmul.msk.f32.gmra.mxu0 %vm459_vm1, %v5558_v42  ;;  %v1637_v3 = vadd.f32 %v1621_v18, %v1580_v63  ;;  %v6992_v18 = vld [vmem:[#allocation32_spill] sm:$0xff]  ;;  %v6993_v63 = vld [vmem:[#allocation37_spill] sm:$0xff] }
 0x1cf   : >> { %4436 = vmatmul.msk.f32.gmra.mxu2 %vm459_vm1, %v5870_v28 }
 0x1d0   : >> { %4425 = vmatmul.msk.f32.gmra.mxu1 %vm459_vm1, %v5753_v37 }
 0x1d1   : >> { %v1766_v11 = vpop.f32.mrf.mxu3 }
 0x1d2   : >> { %v1678_v61 = vpop.f32.mrf.mxu2  ;;  %v6033_v13 = vadd.f32 %v1766_v11, %v1690_v49 }
 0x1d3   : >> { %v6035_v59 = vadd.f32 %v1678_v61, %v1637_v3  ;;  %v1567_v56 = vpop.f32.mrf.mxu0  ;;  %v6994_v3 = vld [vmem:[#allocation22_spill] sm:$0xff] }
 0x1d4   : >> { %v1581_v55 = vadd.f32 %v1567_v56, %v5970_v5  ;;  %v6995_v56 = vld [vmem:[#allocation35_spill] sm:$0xff] }
 0x1d5   : >> { %v1624_v54 = vpop.f32.mrf.mxu1 }
 0x1d6   : >> { %4415 = vmatmul.msk.f32.gmra.mxu0 %vm459_vm1, %v5571_v10  ;;  %4444 = vmatmul.msk.f32.vlgmr.msra.gmra.mxu3 %vm459_vm1, %v5804_v40  ;;  %v1638_v42 = vadd.f32 %v1624_v54, %v1581_v55  ;;  %v6996_v54 = vld [vmem:[#allocation25_spill] sm:$0xff] }
 0x1d7   : >> { %4437 = vmatmul.msk.f32.gmra.mxu2 %vm459_vm1, %v5888_v52  ;;  %v1331_v52 = vadd.f32 %v5735_v27, %v5670_v31  ;;  %v1334_v55 = vadd.f32 %v6996_v54, %v6995_v56  ;;  %v7005_v54 = vld [vmem:[#allocation28_spill] sm:$0xff] }
 0x1d8   : >> { %4426 = vmatmul.msk.f32.gmra.mxu1 %vm459_vm1, %v5768_v62 }
 0x1d9   : >> { %v1769_v28 = vpop.f32.mrf.mxu3 }
 0x1da   : >> { %v1681_v37 = vpop.f32.mrf.mxu2  ;;  %v6046_v49 = vadd.f32 %v1769_v28, %v1691_v50 }
 0x1db   : >> { %v6048_v38 = vadd.f32 %v1681_v37, %v1638_v42  ;;  %v1570_v5 = vpop.f32.mrf.mxu0 }
 0x1dc   : >> { %v1582_v10 = vadd.f32 %v1570_v5, %v5987_v46 }
 0x1dd   : >> { %v1627_v12 = vpop.f32.mrf.mxu1 }
 0x1de   : >> { %4416 = vmatmul.msk.f32.gmra.mxu0 %vm459_vm1, %v5586_v30  ;;  %4445 = vmatmul.msk.f32.gmra.mxu3 %vm459_vm1, %v5831_v2  ;;  %v1639_v62 = vadd.f32 %v1627_v12, %v1582_v10  ;;  %v1348_v10 = vadd.f32 %v6061_v32, %v1334_v55 }
 0x1df   : >> { %4438 = vmatmul.msk.f32.gmra.mxu2 %vm459_vm1, %v5906_v36  ;;  %v1345_v36 = vadd.f32 %v6061_v32, %v1331_v52  ;;  %v6998_v52 = vld [vmem:[#allocation39_spill] sm:$0xff] }
 0x1e0   : >> { %4427 = vmatmul.msk.f32.gmra.mxu1 %vm459_vm1, %v5783_v39 }
 0x1e1   : >> { %v1772_v40 = vpop.f32.mrf.mxu3  ;;  %v1355_v39 = vmax.f32 %v1345_v36, 0.0  ;;  %v7001_v36 = vld [vmem:[#allocation27_spill] sm:$0xff] }
 0x1e2   : >> { %v1684_v46 = vpop.f32.mrf.mxu2  ;;  %v6063_v50 = vadd.f32 %v1772_v40, %v1692_v4  ;;  %v6997_v40 = vld [vmem:[#allocation33_spill] sm:$0xff] }
 0x1e3   : >> { %v6065_v30 = vadd.f32 %v1684_v46, %v1639_v62  ;;  %v1854_v51 = vpop.f32.mrf.mxu0  ;;  %v6999_v46 = vld [vmem:[#allocation20_spill] sm:$0xff] }
 0x1e4   : >> { %v1884_v2 = vadd.f32 %v1854_v51, %v5998_v53  ;;  %v1332_v53 = vadd.f32 %v5750_v43, %v5681_v22 }
 0x1e5   : >> { %v1951_v19 = vpop.f32.mrf.mxu1 }
 0x1e6   : >> { %v1981_v60 = vadd.f32 %v1951_v19, %v1884_v2  ;;  %4417 = vmatmul.msk.f32.gmra.mxu0 %vm459_vm1, %v5599_v20  ;;  %4446 = vmatmul.msk.f32.gmra.mxu3 %vm459_vm1, %v5852_v34  ;;  %v1358_v2 = vmax.f32 %v1348_v10, 0.0  ;;  %v7000_v19 = vld [vmem:[#allocation21_spill] sm:$0xff] }
 0x1e7   : >> { %4439 = vmatmul.msk.f32.gmra.mxu2 %vm459_vm1, %v5922_v7  ;;  %v1346_v7 = vadd.f32 %v6061_v32, %v1332_v53 }
 0x1e8   : >> { %4428 = vmatmul.msk.f32.gmra.mxu1 %vm459_vm1, %v5798_v25  ;;  %v1991_v31 = vadd.f32 %v6061_v32, %v1981_v60  ;;  %v1335_v60 = vadd.f32 %v7001_v36, %v7000_v19 }
 0x1e9   : >> { %v6078_v27 = vpop.f32.mrf.mxu3 }
 0x1ea   : >> { %v2001_v26 = vmax.f32 %v1991_v31, 0.0  ;;  %v6082_v24 = vpop.f32.mrf.mxu2 }
 0x1eb   : >> { %v1857_v20 = vpop.f32.mrf.mxu0 }
 0x1ec   : >> { %v1885_v34 = vadd.f32 %v1857_v20, %v6009_v14  ;;  %v6085_v4 = vadd.f32 %v2001_v26, %v1355_v39  ;;  %v1356_v14 = vmax.f32 %v1346_v7, 0.0  ;;  %v4455_v26 = vld [vmem:[%s5166_s19 + $0x140] sm:$0xff] }
 0x1ed   : >> { %v1954_v8 = vpop.f32.mrf.mxu1 }
 0x1ee   : >> { %v1982_v25 = vadd.f32 %v1954_v8, %v1885_v34  ;;  %4418 = vmatmul.msk.f32.gmra.mxu0 %vm459_vm1, %v5613_v35  ;;  %4447 = vmatmul.msk.f32.gmra.mxu3 %vm459_vm1, %v5873_v16  ;;  %v4476_v8 = vld [vmem:[%s5166_s19 + $0x141] sm:$0xff] }
 0x1ef   : >> { %4440 = vmatmul.msk.f32.gmra.mxu2 %vm459_vm1, %v5939_v15  ;;  %v1347_v15 = vadd.f32 %v6061_v32, %v1333_v58  ;;  %v7003_v58 = vld [vmem:[#allocation31_spill] sm:$0xff] }
 0x1f0   : >> { %4429 = vmatmul.msk.f32.gmra.mxu1 %vm459_vm1, %v5825_v48  ;;  %v1992_v22 = vadd.f32 %v6061_v32, %v1982_v25  ;;  %v1349_v25 = vadd.f32 %v6061_v32, %v1335_v60 }
 0x1f1   : >> { %v6097_v43 = vpop.f32.mrf.mxu3  ;;  %v1357_v61 = vmax.f32 %v1347_v15, 0.0  ;;  %v4456_v15 = vld [vmem:[%s5166_s19 + $0x148] sm:$0xff] }
 0x1f2   : >> { %v2002_v45 = vmax.f32 %v1992_v22, 0.0  ;;  %v6101_v47 = vpop.f32.mrf.mxu2  ;;  %v1359_v9 = vmax.f32 %v1349_v25, 0.0  ;;  %v4458_v25 = vld [vmem:[%s5166_s19 + $0x158] sm:$0xff] }
 0x1f3   : >> { %v1860_v35 = vpop.f32.mrf.mxu0 }
 0x1f4   : >> { %v1886_v16 = vadd.f32 %v1860_v35, %v6020_v33  ;;  %v6104_v17 = vadd.f32 %v2002_v45, %v1356_v14  ;;  %v1336_v45 = vadd.f32 %v7003_v58, %v7002_v57  ;;  %v4479_v57 = vld [vmem:[%s5166_s19 + $0x159] sm:$0xff] }
 0x1f5   : >> { %v1957_v6 = vpop.f32.mrf.mxu1 }
 0x1f6   : >> { %v1983_v48 = vadd.f32 %v1957_v6, %v1886_v16  ;;  %4419 = vmatmul.msk.f32.gmra.mxu0 %vm459_vm1, %v6992_v18  ;;  %4448 = vmatmul.msk.f32.gmra.mxu3 %vm459_vm1, %v6993_v63  ;;  %v4498_v63 = vld [vmem:[%s5166_s19 + $0x14a] sm:$0xff] }
 0x1f7   : >> { %4441 = vmatmul.msk.f32.gmra.mxu2 %vm459_vm1, %v5956_v29 }
 0x1f8   : >> { %4430 = vmatmul.msk.f32.gmra.mxu1 %vm459_vm1, %v6994_v3  ;;  %v1993_v33 = vadd.f32 %v6061_v32, %v1983_v48  ;;  %v4477_v3 = vld [vmem:[%s5166_s19 + $0x149] sm:$0xff] }
 0x1f9   : >> { %v6116_v11 = vpop.f32.mrf.mxu3 }
 0x1fa   : >> { %v2003_v42 = vmax.f32 %v1993_v33, 0.0  ;;  %v6120_v28 = vpop.f32.mrf.mxu2 }
 0x1fb   : >> { %v1863_v37 = vpop.f32.mrf.mxu0 }
 0x1fc   : >> { %v1887_v5 = vadd.f32 %v1863_v37, %v6033_v13  ;;  %v6123_v29 = vadd.f32 %v2003_v42, %v1357_v61  ;;  %v1350_v61 = vadd.f32 %v6061_v32, %v1336_v45 }
 0x1fd   : >> { %v1960_v12 = vpop.f32.mrf.mxu1 }
 0x1fe   : >> { %v1984_v62 = vadd.f32 %v1960_v12, %v1887_v5  ;;  %4420 = vmatmul.msk.f32.gmra.mxu0 %vm459_vm1, %v6997_v40  ;;  %4449 = vmatmul.msk.f32.gmra.mxu3 %vm459_vm1, %v6998_v52  ;;  %v1360_v37 = vmax.f32 %v1350_v61, 0.0  ;;  %v1793_v5 = vadd.f32 %v6078_v27, %v6022_v41  ;;  %v4457_v40 = vld [vmem:[%s5166_s19 + $0x150] sm:$0xff]  ;;  %v4459_v61 = vld [vmem:[%s5166_s19 + $0x160] sm:$0xff] }
 0x1ff   : >> { %4442 = vmatmul.msk.f32.gmra.mxu2 %vm459_vm1, %v5973_v1  ;;  %v4497_v1 = vld [vmem:[%s5166_s19 + $0x142] sm:$0xff] }
 0x200   : >> { %4431 = vmatmul.msk.f32.gmra.mxu1 %vm459_vm1, %v6999_v46  ;;  %v1994_v13 = vadd.f32 %v6061_v32, %v1984_v62 }
 0x201   : >> { %v6135_v51 = vpop.f32.mrf.mxu3 }
 0x202   : >> { %v2004_v31 = vmax.f32 %v1994_v13, 0.0  ;;  %v6139_v39 = vpop.f32.mrf.mxu2  ;;  %v4499_v13 = vld [vmem:[%s5166_s19 + $0x152] sm:$0xff] }
 0x203   : >> { %v1866_v53 = vpop.f32.mrf.mxu0 }
 0x204   : >> { %v1888_v20 = vadd.f32 %v1866_v53, %v6046_v49  ;;  %v6145_v7 = vadd.f32 %v2004_v31, %v1358_v2  ;;  %v4478_v2 = vld [vmem:[%s5166_s19 + $0x151] sm:$0xff] }
 0x205   : >> { %v1963_v34 = vpop.f32.mrf.mxu1  ;;  %v7006_v31 = vld [vmem:[#allocation23_spill] sm:$0xff]  ;;  %v7007_v53 = vld [vmem:[#allocation18_spill] sm:$0xff] }
 0x206   : >> { %v1985_v22 = vadd.f32 %v1963_v34, %v1888_v20  ;;  %4450 = vmatmul.msk.f32.gmra.mxu3 %vm459_vm1, %v5925_v44  ;;  %4466 = vmatmul.msk.f32.vlgmr.msra.gmra.mxu0 %vm459_vm1, %v4455_v26  ;;  %v1338_v26 = vadd.f32 %v7007_v53, %v7006_v31  ;;  %v1794_v20 = vadd.f32 %v6097_v43, %v6035_v59  ;;  %v7008_v43 = vld [vmem:[#allocation29_spill] sm:$0xff] }
 0x207   : >> { %4508 = vmatmul.msk.f32.vlgmr.msra.gmra.mxu2 %vm459_vm1, %v4497_v1  ;;  %v4481_v31 = vld [vmem:[%s5166_s19 + $0x169] sm:$0xff] }
 0x208   : >> { %4487 = vmatmul.msk.f32.vlgmr.msra.gmra.mxu1 %vm459_vm1, %v4476_v8  ;;  %v1995_v49 = vadd.f32 %v6061_v32, %v1985_v22  ;;  %v1352_v58 = vadd.f32 %v6061_v32, %v1338_v26 }
 0x209   : >> { %v2085_v14 = vpop.f32.mrf.mxu3 }
 0x20a   : >> { %v2005_v35 = vmax.f32 %v1995_v49, 0.0  ;;  %v6156_v16 = vpop.f32.mrf.mxu2  ;;  %v6159_v6 = vadd.f32 %v2085_v14, %v6082_v24  ;;  %v7004_v24 = vld [vmem:[#allocation19_spill] sm:$0xff] }
 0x20b   : >> { %v1869_v44 = vpop.f32.mrf.mxu0  ;;  %v1337_v55 = vadd.f32 %v7005_v54, %v7004_v24  ;;  %v4501_v54 = vld [vmem:[%s5166_s19 + $0x162] sm:$0xff] }
 0x20c   : >> { %v1889_v48 = vadd.f32 %v1869_v44, %v6063_v50  ;;  %v6165_v33 = vadd.f32 %v2005_v35, %v1359_v9  ;;  %v4500_v9 = vld [vmem:[%s5166_s19 + $0x15a] sm:$0xff] }
 0x20d   : >> { %v1966_v18 = vpop.f32.mrf.mxu1  ;;  %v1351_v36 = vadd.f32 %v6061_v32, %v1337_v55  ;;  %v4480_v55 = vld [vmem:[%s5166_s19 + $0x161] sm:$0xff] }
 0x20e   : >> { %v1986_v56 = vadd.f32 %v1966_v18, %v1889_v48  ;;  %4451 = vmatmul.msk.f32.gmra.mxu3 %vm459_vm1, %v5942_v23  ;;  %4467 = vmatmul.msk.f32.gmra.mxu0 %vm459_vm1, %v4456_v15  ;;  %v1362_v15 = vmax.f32 %v1352_v58, 0.0  ;;  %v1795_v48 = vadd.f32 %v6116_v11, %v6048_v38  ;;  %v4503_v58 = vld [vmem:[%s5166_s19 + $0x172] sm:$0xff] }
 0x20f   : >> { %4509 = vmatmul.msk.f32.gmra.mxu2 %vm459_vm1, %v4498_v63  ;;  %v1361_v27 = vmax.f32 %v1351_v36, 0.0  ;;  %v4460_v36 = vld [vmem:[%s5166_s19 + $0x168] sm:$0xff] }
 0x210   : >> { %4488 = vmatmul.msk.f32.gmra.mxu1 %vm459_vm1, %v4477_v3  ;;  %v1996_v50 = vadd.f32 %v6061_v32, %v1986_v56 }
 0x211   : >> { %v2088_v42 = vpop.f32.mrf.mxu3 }
 0x212   : >> { %v2006_v12 = vmax.f32 %v1996_v50, 0.0  ;;  %v6178_v23 = vpop.f32.mrf.mxu2  ;;  %v6181_v10 = vadd.f32 %v2088_v42, %v6101_v47 }
 0x213   : >> { %v1872_v62 = vpop.f32.mrf.mxu0 }
 0x214   : >> { %v1890_v52 = vadd.f32 %v1872_v62, %v1793_v5  ;;  %v6186_v19 = vadd.f32 %v2006_v12, %v1360_v37  ;;  %v7010_v5 = vld [vmem:[#allocation30_spill] sm:$0xff] }
 0x215   : >> { %v1969_v46 = vpop.f32.mrf.mxu1  ;;  %v7011_v12 = vld [vmem:[#allocation38_spill] sm:$0xff] }
 0x216   : >> { %v1987_v60 = vadd.f32 %v1969_v46, %v1890_v52  ;;  %4452 = vmatmul.msk.f32.gmra.mxu3 %vm459_vm1, %v5959_v21  ;;  %4468 = vmatmul.msk.f32.gmra.mxu0 %vm459_vm1, %v4457_v40  ;;  %v1340_v62 = vadd.f32 %v7011_v12, %v7010_v5  ;;  %v1796_v40 = vadd.f32 %v6135_v51, %v6065_v30 }
 0x217   : >> { %4510 = vmatmul.msk.f32.gmra.mxu2 %vm459_vm1, %v4499_v13 }
 0x218   : >> { %4489 = vmatmul.msk.f32.gmra.mxu1 %vm459_vm1, %v4478_v2  ;;  %v1997_v41 = vadd.f32 %v6061_v32, %v1987_v60  ;;  %v1354_v53 = vadd.f32 %v6061_v32, %v1340_v62 }
 0x219   : >> { %v2091_v47 = vpop.f32.mrf.mxu3 }
 0x21a   : >> { %v2007_v34 = vmax.f32 %v1997_v41, 0.0  ;;  %v6199_v21 = vpop.f32.mrf.mxu2  ;;  %v6202_v1 = vadd.f32 %v2091_v47, %v6120_v28  ;;  %v7009_v28 = vld [vmem:[#allocation36_spill] sm:$0xff]  ;;  %v4502_v47 = vld [vmem:[%s5166_s19 + $0x16a] sm:$0xff] }
 0x21b   : >> { %v1875_v8 = vpop.f32.mrf.mxu0  ;;  %v1339_v35 = vadd.f32 %v7009_v28, %v7008_v43 }
 0x21c   : >> { %v6205_v22 = vadd.f32 %v2007_v34, %v1361_v27  ;;  %v1891_v49 = vadd.f32 %v1875_v8, %v1794_v20 }
 0x21d   : >> { %v1972_v14 = vpop.f32.mrf.mxu1  ;;  %v1353_v42 = vadd.f32 %v6061_v32, %v1339_v35 }
 0x21e   : >> { %v1988_v45 = vadd.f32 %v1972_v14, %v1891_v49  ;;  %4453 = vmatmul.msk.f32.gmra.mxu3 %vm459_vm1, %v5976_v0  ;;  %4469 = vmatmul.msk.f32.gmra.mxu0 %vm459_vm1, %v4458_v25  ;;  %v4461_v49 = vld [vmem:[%s5166_s19 + $0x170] sm:$0xff] }
 0x21f   : >> { %4511 = vmatmul.msk.f32.gmra.mxu2 %vm459_vm1, %v4500_v9  ;;  %v1363_v11 = vmax.f32 %v1353_v42, 0.0 }
 0x220   : >> { %4490 = vmatmul.msk.f32.gmra.mxu1 %vm459_vm1, %v4479_v57  ;;  %v1998_v59 = vadd.f32 %v6061_v32, %v1988_v45  ;;  %v4482_v45 = vld [vmem:[%s5166_s19 + $0x171] sm:$0xff] }
 0x221   : >> { %v2094_v44 = vpop.f32.mrf.mxu3 }
 0x222   : >> { %v2008_v18 = vmax.f32 %v1998_v59, 0.0  ;;  %v6220_v0 = vpop.f32.mrf.mxu2  ;;  %v6223_v63 = vadd.f32 %v2094_v44, %v6139_v39 }
 0x223   : >> { %v1878_v3 = vpop.f32.mrf.mxu0 }
 0x224   : >> { %v6226_v56 = vadd.f32 %v2008_v18, %v1362_v15  ;;  %v1892_v50 = vadd.f32 %v1878_v3, %v1795_v48  ;;  %v4504_v18 = vld [vmem:[%s5166_s19 + $0x17a] sm:$0xff] }
 0x225   : >> { %v1975_v24 = vpop.f32.mrf.mxu1  ;;  %v4483_v3 = vld [vmem:[%s5166_s19 + $0x179] sm:$0xff] }
 0x226   : >> { %v1989_v37 = vadd.f32 %v1975_v24, %v1892_v50  ;;  %4470 = vmatmul.msk.f32.gmra.mxu0 %vm459_vm1, %v4459_v61 }
 0x227   : >> { %4512 = vmatmul.msk.f32.gmra.mxu2 %vm459_vm1, %v4501_v54 }
 0x228   : >> { %4491 = vmatmul.msk.f32.gmra.mxu1 %vm459_vm1, %v4480_v55  ;;  %v1999_v38 = vadd.f32 %v6061_v32, %v1989_v37 }
 0x229   : >> { %v2097_v39 = vpop.f32.mrf.mxu3 }
 0x22a   : >> { %v2009_v52 = vmax.f32 %v1999_v38, 0.0  ;;  %v2062_v46 = vpop.f32.mrf.mxu2  ;;  %v6240_v13 = vadd.f32 %v2097_v39, %v6156_v16  ;;  %v1364_v16 = vmax.f32 %v1354_v53, 0.0  ;;  %v4505_v38 = vld [vmem:[%s5166_s19 + $0x182] sm:$0xff] }
 0x22b   : >> { %v1881_v2 = vpop.f32.mrf.mxu0 }
 0x22c   : >> { %v6243_v60 = vadd.f32 %v2009_v52, %v1363_v11  ;;  %v1893_v41 = vadd.f32 %v1881_v2, %v1796_v40  ;;  %v4484_v11 = vld [vmem:[%s5166_s19 + $0x181] sm:$0xff] }
 0x22d   : >> { %v1978_v27 = vpop.f32.mrf.mxu1  ;;  %v4464_v52 = vld [vmem:[%s5166_s19 + $0x188] sm:$0x3f] }
 0x22e   : >> { %v1990_v26 = vadd.f32 %v1978_v27, %v1893_v41  ;;  %4471 = vmatmul.msk.f32.gmra.mxu0 %vm459_vm1, %v4460_v36  ;;  %v4506_v36 = vld [vmem:[%s5166_s19 + $0x18a] sm:$0x3f] }
 0x22f   : >> { %4513 = vmatmul.msk.f32.gmra.mxu2 %vm459_vm1, %v4502_v47  ;;  %v4485_v41 = vld [vmem:[%s5166_s19 + $0x189] sm:$0x3f] }
 0x230   : >> { %4492 = vmatmul.msk.f32.gmra.mxu1 %vm459_vm1, %v4481_v31  ;;  %v2000_v30 = vadd.f32 %v6061_v32, %v1990_v26 }
 0x231   : >> { %v2100_v51 = vpop.f32.mrf.mxu3 }
 0x232   : >> { %v2010_v20 = vmax.f32 %v2000_v30, 0.0  ;;  %v2065_v34 = vpop.f32.mrf.mxu2  ;;  %v6253_v8 = vadd.f32 %v2100_v51, %v6178_v23 }
 0x233   : >> { %v2132_v25 = vpop.f32.mrf.mxu0 }
 0x234   : >> { %v6256_v14 = vadd.f32 %v2010_v20, %v1364_v16  ;;  %v2162_v9 = vadd.f32 %v2132_v25, %v6159_v6  ;;  %v4462_v6 = vld [vmem:[%s5166_s19 + $0x178] sm:$0xff] }
 0x235   : >> { %v2189_v57 = vpop.f32.mrf.mxu1 }
 0x236   : >> { %v2219_v59 = vadd.f32 %v2189_v57, %v2162_v9  ;;  %4472 = vmatmul.msk.f32.gmra.mxu0 %vm459_vm1, %v4461_v49 }
 0x237   : >> { %4514 = vmatmul.msk.f32.gmra.mxu2 %vm459_vm1, %v4503_v58 }
 0x238   : >> { %4493 = vmatmul.msk.f32.gmra.mxu1 %vm459_vm1, %v4482_v45 }
 0x239   : >> { %v2103_v23 = vpop.f32.mrf.mxu3 }
 0x23a   : >> { %v2104_v43 = vadd.f32 %v2103_v23, %v6199_v21  ;;  %v2246_v28 = vpop.f32.mrf.mxu2 }
 0x23b   : >> { %v2276_v35 = vadd.f32 %v2246_v28, %v2219_v59  ;;  %v2135_v44 = vpop.f32.mrf.mxu0 }
 0x23c   : >> { %v2163_v15 = vadd.f32 %v2135_v44, %v6181_v10  ;;  %v4463_v10 = vld [vmem:[%s5166_s19 + $0x180] sm:$0xff] }
 0x23d   : >> { %v2192_v48 = vpop.f32.mrf.mxu1 }
 0x23e   : >> { %v2220_v61 = vadd.f32 %v2192_v48, %v2163_v15  ;;  %4473 = vmatmul.msk.f32.gmra.mxu0 %vm459_vm1, %v4462_v6 }
 0x23f   : >> { %4515 = vmatmul.msk.f32.gmra.mxu2 %vm459_vm1, %v4504_v18 }
 0x240   : >> { %4494 = vmatmul.msk.f32.gmra.mxu1 %vm459_vm1, %v4483_v3 }
 0x241   : >> { %v2106_v21 = vpop.f32.mrf.mxu3 }
 0x242   : >> { %v2107_v50 = vadd.f32 %v2106_v21, %v6220_v0  ;;  %v2249_v24 = vpop.f32.mrf.mxu2 }
 0x243   : >> { %v2277_v54 = vadd.f32 %v2249_v24, %v2220_v61  ;;  %v2138_v55 = vpop.f32.mrf.mxu0 }
 0x244   : >> { %v2164_v42 = vadd.f32 %v2138_v55, %v6202_v1 }
 0x245   : >> { %v2195_v37 = vpop.f32.mrf.mxu1 }
 0x246   : >> { %v2221_v39 = vadd.f32 %v2195_v37, %v2164_v42  ;;  %4474 = vmatmul.msk.f32.gmra.mxu0 %vm459_vm1, %v4463_v10 }
 0x247   : >> { %4516 = vmatmul.msk.f32.gmra.mxu2 %vm459_vm1, %v4505_v38 }
 0x248   : >> { %4495 = vmatmul.msk.f32.gmra.mxu1 %vm459_vm1, %v4484_v11 }
 0x249   : >> { %v2109_v0 = vpop.f32.mrf.mxu3 }
 0x24a   : >> { %v2110_v5 = vadd.f32 %v2109_v0, %v2062_v46  ;;  %v2252_v12 = vpop.f32.mrf.mxu2 }
 0x24b   : >> { %v2278_v62 = vadd.f32 %v2252_v12, %v2221_v39  ;;  %v2141_v40 = vpop.f32.mrf.mxu0 }
 0x24c   : >> { %v2165_v1 = vadd.f32 %v2141_v40, %v6223_v63 }
 0x24d   : >> { %v2198_v2 = vpop.f32.mrf.mxu1 }
 0x24e   : >> { %v2222_v27 = vadd.f32 %v2198_v2, %v2165_v1  ;;  %4475 = vmatmul.msk.f32.gmra.mxu0 %vm459_vm1, %v4464_v52 }
 0x24f   : >> { %4517 = vmatmul.msk.f32.gmra.mxu2 %vm459_vm1, %v4506_v36 }
 0x250   : >> { %4496 = vmatmul.msk.f32.gmra.mxu1 %vm459_vm1, %v4485_v41 }
 0x251   : >> { %v2112_v47 = vpop.f32.mrf.mxu3 }
 0x252   : >> { %v2113_v31 = vadd.f32 %v2112_v47, %v2065_v34  ;;  %v2255_v53 = vpop.f32.mrf.mxu2 }
 0x253   : >> { %v6287_v46 = vadd.f32 %v2255_v53, %v2222_v27  ;;  %v2144_v26 = vpop.f32.mrf.mxu0 }
 0x254   : >> { %v2166_v30 = vadd.f32 %v2144_v26, %v6240_v13 }
 0x255   : >> { %v2201_v51 = vpop.f32.mrf.mxu1 }
 0x256   : >> { %v2223_v63 = vadd.f32 %v2201_v51, %v2166_v30 }
 0x259   : >> { %v2303_v16 = vpop.f32.mrf.mxu3 }
 0x25a   : >> { %v2258_v20 = vpop.f32.mrf.mxu2  ;;  %v2333_v25 = vadd.f32 %v2303_v16, %v2276_v35 }
 0x25b   : >> { %v6290_v49 = vadd.f32 %v2258_v20, %v2223_v63  ;;  %v2147_v9 = vpop.f32.mrf.mxu0 }
 0x25c   : >> { %v2167_v57 = vadd.f32 %v2147_v9, %v6253_v8 }
 0x25d   : >> { %v2204_v58 = vpop.f32.mrf.mxu1 }
 0x25e   : >> { %v2224_v45 = vadd.f32 %v2204_v58, %v2167_v57 }
 0x261   : >> { %v2306_v59 = vpop.f32.mrf.mxu3 }
 0x262   : >> { %v2261_v34 = vpop.f32.mrf.mxu2  ;;  %v2334_v23 = vadd.f32 %v2306_v59, %v2277_v54 }
 0x263   : >> { %v6293_v28 = vadd.f32 %v2261_v34, %v2224_v45  ;;  %v2150_v44 = vpop.f32.mrf.mxu0 }
 0x264   : >> { %v2168_v6 = vadd.f32 %v2150_v44, %v2104_v43 }
 0x265   : >> { %v2207_v13 = vpop.f32.mrf.mxu1 }
 0x266   : >> { %v2225_v15 = vadd.f32 %v2207_v13, %v2168_v6 }
 0x269   : >> { %v2309_v48 = vpop.f32.mrf.mxu3 }
 0x26a   : >> { %v2264_v18 = vpop.f32.mrf.mxu2  ;;  %v2335_v3 = vadd.f32 %v2309_v48, %v2278_v62 }
 0x26b   : >> { %v6295_v35 = vadd.f32 %v2264_v18, %v2225_v15  ;;  %v2153_v61 = vpop.f32.mrf.mxu0 }
 0x26c   : >> { %v2169_v21 = vadd.f32 %v2153_v61, %v2107_v50 }
 0x26d   : >> { %v2210_v24 = vpop.f32.mrf.mxu1 }
 0x26e   : >> { %v2226_v8 = vadd.f32 %v2210_v24, %v2169_v21 }
 0x272   : >> { %v2267_v55 = vpop.f32.mrf.mxu2 }
 0x273   : >> { %v6297_v10 = vadd.f32 %v2267_v55, %v2226_v8  ;;  %v2156_v42 = vpop.f32.mrf.mxu0 }
 0x274   : >> { %v2170_v54 = vadd.f32 %v2156_v42, %v2110_v5  ;;  %v2312_v5 = vpop.f32.mrf.mxu3 }
 0x275   : >> { %v2213_v37 = vpop.f32.mrf.mxu1  ;;  %v2336_v6 = vadd.f32 %v2312_v5, %v6287_v46 }
 0x276   : >> { %v2227_v38 = vadd.f32 %v2213_v37, %v2170_v54 }
 0x27a   : >> { %v2270_v11 = vpop.f32.mrf.mxu2 }
 0x27b   : >> { %v6299_v43 = vadd.f32 %v2270_v11, %v2227_v38  ;;  %v2159_v39 = vpop.f32.mrf.mxu0 }
 0x27c   : >> { %v2171_v0 = vadd.f32 %v2159_v39, %v2113_v31  ;;  %v2315_v45 = vpop.f32.mrf.mxu3 }
 0x27d   : >> { %v2216_v12 = vpop.f32.mrf.mxu1  ;;  %v2337_v55 = vadd.f32 %v2315_v45, %v6290_v49 }
 0x27e   : >> { %v2228_v62 = vadd.f32 %v2216_v12, %v2171_v0 }
 0x282   : >> { %v2273_v40 = vpop.f32.mrf.mxu2 }
 0x283   : >> { %v6301_v52 = vadd.f32 %v2273_v40, %v2228_v62  ;;  %v2403_v50 = vpop.f32.mrf.mxu0 }
 0x284   : >> { %v2433_v1 = vadd.f32 %v2403_v50, %v2333_v25 }
 0x285   : >> { %v2500_v2 = vpop.f32.mrf.mxu1 }
 0x286   : >> { %v2530_v36 = vadd.f32 %v2500_v2, %v2433_v1 }
 0x28a   : >> { %v2597_v41 = vpop.f32.mrf.mxu2 }
 0x28b   : >> { %v2627_v27 = vadd.f32 %v2597_v41, %v2530_v36  ;;  %v2406_v47 = vpop.f32.mrf.mxu0 }
 0x28c   : >> { %v2434_v53 = vadd.f32 %v2406_v47, %v2334_v23 }
 0x28d   : >> { %v2503_v26 = vpop.f32.mrf.mxu1  ;;  %v2637_v30 = vadd.f32 %v6061_v32, %v2627_v27 }
 0x28e   : >> { %v2531_v51 = vadd.f32 %v2503_v26, %v2434_v53 }
 0x28f   : >> { %v2647_v63 = vmax.f32 %v2637_v30, 0.0 }
 0x291   : >> { %v6305_v31 = vadd.f32 %v2647_v63, %v6085_v4 }
 0x292   : >> { %v2600_v16 = vpop.f32.mrf.mxu2 }
 0x293   : >> { %v2628_v20 = vadd.f32 %v2600_v16, %v2531_v51  ;;  %v2409_v9 = vpop.f32.mrf.mxu0 }
 0x294   : >> { %v2435_v57 = vadd.f32 %v2409_v9, %v2335_v3  ;;  %v2318_v3 = vpop.f32.mrf.mxu3 }
 0x295   : >> { %v2506_v25 = vpop.f32.mrf.mxu1  ;;  %v2638_v58 = vadd.f32 %v6061_v32, %v2628_v20  ;;  %v2338_v62 = vadd.f32 %v2318_v3, %v6293_v28 }
 0x296   : >> { %v2532_v59 = vadd.f32 %v2506_v25, %v2435_v57 }
 0x297   : >> { %v2648_v34 = vmax.f32 %v2638_v58, 0.0 }
 0x299   : >> { %v6309_v23 = vadd.f32 %v2648_v34, %v6104_v17 }
 0x29a   : >> { %v2603_v44 = vpop.f32.mrf.mxu2 }
 0x29b   : >> { %v2629_v13 = vadd.f32 %v2603_v44, %v2532_v59  ;;  %v2412_v15 = vpop.f32.mrf.mxu0 }
 0x29c   : >> { %v2436_v18 = vadd.f32 %v2412_v15, %v2336_v6  ;;  %v2321_v0 = vpop.f32.mrf.mxu3 }
 0x29d   : >> { %v2509_v4 = vpop.f32.mrf.mxu1  ;;  %v2639_v48 = vadd.f32 %v6061_v32, %v2629_v13  ;;  %v2339_v47 = vadd.f32 %v2321_v0, %v6295_v35 }
 0x29e   : >> { %v2533_v21 = vadd.f32 %v2509_v4, %v2436_v18 }
 0x29f   : >> { %v2649_v61 = vmax.f32 %v2639_v48, 0.0 }
 0x2a1   : >> { %v6314_v24 = vadd.f32 %v2649_v61, %v6123_v29 }
 0x2a2   : >> { %v2606_v8 = vpop.f32.mrf.mxu2 }
 0x2a3   : >> { %v2630_v17 = vadd.f32 %v2606_v8, %v2533_v21  ;;  %v2415_v42 = vpop.f32.mrf.mxu0 }
 0x2a4   : >> { %v2437_v37 = vadd.f32 %v2415_v42, %v2337_v55  ;;  %v2324_v53 = vpop.f32.mrf.mxu3 }
 0x2a5   : >> { %v2512_v54 = vpop.f32.mrf.mxu1  ;;  %v2640_v46 = vadd.f32 %v6061_v32, %v2630_v17  ;;  %v2340_v9 = vadd.f32 %v2324_v53, %v6297_v10 }
 0x2a6   : >> { %v2534_v11 = vadd.f32 %v2512_v54, %v2437_v37 }
 0x2a7   : >> { %v2650_v38 = vmax.f32 %v2640_v46, 0.0 }
 0x2a9   : >> { %v6319_v39 = vadd.f32 %v2650_v38, %v6145_v7 }
 0x2aa   : >> { %v2609_v12 = vpop.f32.mrf.mxu2 }
 0x2ab   : >> { %v2631_v29 = vadd.f32 %v2609_v12, %v2534_v11  ;;  %v2418_v40 = vpop.f32.mrf.mxu0 }
 0x2ac   : >> { %v2438_v1 = vadd.f32 %v2418_v40, %v2338_v62  ;;  %v2327_v45 = vpop.f32.mrf.mxu3 }
 0x2ad   : >> { %v2515_v50 = vpop.f32.mrf.mxu1  ;;  %v2641_v49 = vadd.f32 %v6061_v32, %v2631_v29  ;;  %v2341_v13 = vadd.f32 %v2327_v45, %v6299_v43 }
 0x2ae   : >> { %v2535_v36 = vadd.f32 %v2515_v50, %v2438_v1 }
 0x2af   : >> { %v2651_v2 = vmax.f32 %v2641_v49, 0.0 }
 0x2b1   : >> { %v2661_v41 = vadd.f32 %v2651_v2, %v6165_v33 }
 0x2b2   : >> { %v2612_v27 = vpop.f32.mrf.mxu2 }
 0x2b3   : >> { %v2632_v5 = vadd.f32 %v2612_v27, %v2535_v36  ;;  %v2421_v7 = vpop.f32.mrf.mxu0 }
 0x2b4   : >> { %v2439_v28 = vadd.f32 %v2421_v7, %v2339_v47  ;;  %v2330_v61 = vpop.f32.mrf.mxu3 }
 0x2b5   : >> { %v2518_v26 = vpop.f32.mrf.mxu1  ;;  %v2642_v30 = vadd.f32 %v6061_v32, %v2632_v5  ;;  %v2342_v55 = vadd.f32 %v2330_v61, %v6301_v52  ;;  %v2670_v52 = vld [vmem:[%s6892_s7 + $0x18] sm:$0x3] }
 0x2b6   : >> { %v2536_v63 = vadd.f32 %v2518_v26, %v2439_v28 }
 0x2b7   : >> { %v2652_v51 = vmax.f32 %v2642_v30, 0.0 }
 0x2b9   : >> { %v2662_v16 = vadd.f32 %v2652_v51, %v6186_v19 }
 0x2ba   : >> { %v2615_v20 = vpop.f32.mrf.mxu2 }
 0x2bb   : >> { %v2633_v57 = vadd.f32 %v2615_v20, %v2536_v63  ;;  %v2424_v25 = vpop.f32.mrf.mxu0 }
 0x2bc   : >> { %v2440_v35 = vadd.f32 %v2424_v25, %v2340_v9 }
 0x2bd   : >> { %v2521_v33 = vpop.f32.mrf.mxu1  ;;  %v2643_v58 = vadd.f32 %v6061_v32, %v2633_v57 }
 0x2be   : >> { %v2537_v34 = vadd.f32 %v2521_v33, %v2440_v35 }
 0x2bf   : >> { %v2653_v59 = vmax.f32 %v2643_v58, 0.0 }
 0x2c1   : >> { %v2663_v44 = vadd.f32 %v2653_v59, %v6205_v22 }
 0x2c2   : >> { %v2618_v6 = vpop.f32.mrf.mxu2 }
 0x2c3   : >> { %v2634_v15 = vadd.f32 %v2618_v6, %v2537_v34  ;;  %v2427_v4 = vpop.f32.mrf.mxu0 }
 0x2c4   : >> { %v2441_v10 = vadd.f32 %v2427_v4, %v2341_v13 }
 0x2c5   : >> { %v2524_v19 = vpop.f32.mrf.mxu1  ;;  %v2644_v48 = vadd.f32 %v6061_v32, %v2634_v15 }
 0x2c6   : >> { %v2538_v3 = vadd.f32 %v2524_v19, %v2441_v10 }
 0x2c7   : >> { %v2654_v18 = vmax.f32 %v2644_v48, 0.0 }
 0x2c9   : >> { %v2664_v21 = vadd.f32 %v2654_v18, %v6226_v56 }
 0x2ca   : >> { %v2621_v8 = vpop.f32.mrf.mxu2 }
 0x2cb   : >> { %v2635_v17 = vadd.f32 %v2621_v8, %v2538_v3  ;;  %v2430_v42 = vpop.f32.mrf.mxu0 }
 0x2cc   : >> { %v2442_v54 = vadd.f32 %v2430_v42, %v2342_v55 }
 0x2cd   : >> { %v2645_v22 = vadd.f32 %v6061_v32, %v2635_v17  ;;  %v2527_v43 = vpop.f32.mrf.mxu1 }
 0x2ce   : >> { %v2539_v37 = vadd.f32 %v2527_v43, %v2442_v54 }
 0x2cf   : >> { %v2655_v46 = vmax.f32 %v2645_v22, 0.0 }
 0x2d1   : >> { %v2665_v38 = vadd.f32 %v2655_v46, %v6243_v60  ;;  %v2668_v60 = vld [vmem:[%s6892_s7 + $0x8] sm:$0xff] }
 0x2d2   : >> { %v2624_v11 = vpop.f32.mrf.mxu2 }
 0x2d3   : >> { %v2636_v0 = vadd.f32 %v2624_v11, %v2539_v37 }
 0x2d5   : >> { %v2646_v12 = vadd.f32 %v6061_v32, %v2636_v0  ;;  %v2667_v32 = vld [vmem:[%s6892_s7] sm:$0xff] }
 0x2d7   : >> { %v2656_v62 = vmax.f32 %v2646_v12, 0.0 }
 0x2d9   : >> { %v2666_v56 = vadd.f32 %v2656_v62, %v6256_v14  ;;  %v2669_v14 = vld [vmem:[%s6892_s7 + $0x10] sm:$0xff] }
 0x2db   : >> { %4518 = vmatpush.msk.msrb.mxu3 %vm2684_vm2, %v2666_v56 }
 0x2dd   : >> { %2695 = vmatpush.msrb.mxu3 %v2665_v38 }
 0x2df   : >> { %2696 = vmatpush.msrb.mxu3 %v2664_v21 }
 0x2e1   : >> { %2697 = vmatpush.msrb.mxu3 %v2663_v44 }
 0x2e3   : >> { %2698 = vmatpush.msrb.mxu3 %v2662_v16 }
 0x2e5   : >> { %2699 = vmatpush.msrb.mxu3 %v2661_v41 }
 0x2e7   : >> { %2700 = vmatpush.msrb.mxu3 %v6319_v39 }
 0x2e9   : >> { %2701 = vmatpush.msrb.mxu3 %v6314_v24 }
 0x2eb   : >> { %2702 = vmatpush.msrb.mxu3 %v6309_v23 }
 0x2ed   : >> { %2703 = vmatpush.msrb.mxu3 %v6305_v31 }
 0x2ee   : >> { %4519 = vmatmul.msk.f32.vlgmr.msrb.gmra.mxu3 %vm2671_vm3, %v2667_v32 }
 0x2f6   : >> { %4520 = vmatmul.msk.f32.gmra.mxu3 %vm2671_vm3, %v2668_v60 }
 0x2fe   : >> { %4521 = vmatmul.msk.f32.gmra.mxu3 %vm2671_vm3, %v2669_v14 }
 0x306   : >> { %4522 = vmatmul.msk.f32.gmra.mxu3 %vm2671_vm3, %v2670_v52 }
 0x371   : >> { %v2705_v23 = vpop.f32.mrf.mxu3 }
 0x372   : >> { %2720 = vst.msk [vmem:[%s2718_s14] sm:$0xff] %vm2719_vm4, %v2705_v23 }
 0x379   : >> { %v2708_v31 = vpop.f32.mrf.mxu3 }
 0x37a   : >> { %2721 = vst.msk [vmem:[%s2718_s14 + $0x8] sm:$0xff] %vm2719_vm4, %v2708_v31 }
 0x381   : >> { %v2711_v24 = vpop.f32.mrf.mxu3 }
 0x382   : >> { %2722 = vst.msk [vmem:[%s2718_s14 + $0x10] sm:$0xff] %vm2719_vm4, %v2711_v24 }
 0x386   : > { %431 = sbr.rel (!%p429_p7) target bundleno = 42 (0x2a), region = 171 }
 0x389   : >> { %v2714_v39 = vpop.f32.mrf.mxu3 }
 0x38a   : >> { %2724 = vst.msk [vmem:[%s2718_s14 + $0x18] sm:$0x3] %vm2723_vm5, %v2714_v39 }
 0x38b LB: >> { %v6366_v29 = vld [vmem:[#allocation8 + $0x78] sm:$0xff]  ;;  %v6374_v49 = vld [vmem:[#allocation8 + $0x70] sm:$0xff]  ;;  %v6382_v36 = vld [vmem:[#allocation8 + $0x68] sm:$0xff]  ;;  %s4651_s10 = sshll.u32 %s4994_s23, 6  ;;  %vm3502_vm6 = vcmask 195584   ;;  %s4615_s13 = sshll.u32 %s4994_s23, 4  ;;  %s4994_s23 = sphi %s6361_s23, %s2730_s23  }
 0x38c   : >> { %v6368_v40 = vld [vmem:[#allocation8 + $0x38] sm:$0xff]  ;;  %4658 = vmatpush.msra.mxu3 %v6366_v29  ;;  %v6376_v1 = vld [vmem:[#allocation8 + $0x30] sm:$0xff]  ;;  %2775 = vmatpush.msra.mxu0 %v6366_v29  ;;  %v6384_v41 = vld [vmem:[#allocation8 + $0x28] sm:$0xff]  ;;  %s6443_s11 = scalar_lea.vmem [#allocation2], %s4651_s10  ;;  %vm3534_vm7 = vcmask 261120   ;;  %s3533_s19 = scalar_lea.vmem [#allocation3], %s4615_s13 }
 0x38d   : >> { %v6370_v50 = vld [vmem:[#allocation8 + $0xb8] sm:$0xff]  ;;  %2810 = vmatpush.msra.mxu1 %v6368_v40  ;;  %v6378_v2 = vld [vmem:[#allocation8 + $0xb0] sm:$0xff]  ;;  %v6388_v27 = vld [vmem:[#allocation8 + $0xa8] sm:$0xff]  ;;  %vm3536_vm8 = vcmask 257024   ;;  %s2730_s23 = sadd.s32 1, %s4994_s23  }
 0x38e   : >> { %2857 = vmatpush.msra.mxu2 %v6370_v50  ;;  %4659 = vmatpush.msra.mxu3 %v6374_v49  ;;  %v6392_v47 = vld [vmem:[#allocation8 + $0x60] sm:$0xff]  ;;  %v6402_v53 = vld [vmem:[#allocation8 + $0x58] sm:$0xff]  ;;  %v6412_v28 = vld [vmem:[#allocation8 + $0x50] sm:$0xff]  ;;  %p2727_p8 = scmp.ge.s32.totalorder %s2730_s23, 12  }
 0x38f   : >> { %2811 = vmatpush.msra.mxu1 %v6376_v1  ;;  %2776 = vmatpush.msra.mxu0 %v6374_v49  ;;  %v6394_v5 = vld [vmem:[#allocation8 + $0x20] sm:$0xff]  ;;  %v6404_v26 = vld [vmem:[#allocation8 + $0x18] sm:$0xff]  ;;  %v6414_v51 = vld [vmem:[#allocation8 + $0x10] sm:$0xff]  ;;  %s6829_s20 = smov (%p2727_p8), 0  }
 0x390   : >> { %2858 = vmatpush.msra.mxu2 %v6378_v2  ;;  %4660 = vmatpush.msra.mxu3 %v6382_v36  ;;  %v6398_v7 = vld [vmem:[#allocation8 + $0xa0] sm:$0xff]  ;;  %v6408_v30 = vld [vmem:[#allocation8 + $0x98] sm:$0xff]  ;;  %v6419_v63 = vld [vmem:[#allocation8 + $0x90] sm:$0xff] }
 0x391   : >> { %2812 = vmatpush.msra.mxu1 %v6384_v41  ;;  %2777 = vmatpush.msra.mxu0 %v6382_v36  ;;  %v6423_v16 = vld [vmem:[#allocation8 + $0x48] sm:$0xff]  ;;  %v6433_v57 = vld [vmem:[#allocation8 + $0x40] sm:$0xff]  ;;  %v6449_v45 = vld [vmem:[#allocation8 + $0xf8] sm:$0xff] }
 0x392   : >> { %2859 = vmatpush.msra.mxu2 %v6388_v27  ;;  %4661 = vmatpush.msra.mxu3 %v6392_v47  ;;  %v6425_v20 = vld [vmem:[#allocation8 + $0x8] sm:$0xff]  ;;  %v6435_v25 = vld [vmem:[#allocation8] sm:$0xff]  ;;  %v6455_v44 = vld [vmem:[#allocation8 + $0x138] sm:$0xff] }
 0x393   : >> { %2813 = vmatpush.msra.mxu1 %v6394_v5  ;;  %2778 = vmatpush.msra.mxu0 %v6392_v47  ;;  %v6429_v9 = vld [vmem:[#allocation8 + $0x88] sm:$0xff]  ;;  %v6439_v33 = vld [vmem:[#allocation8 + $0x80] sm:$0xff]  ;;  %v6459_v6 = vld [vmem:[#allocation8 + $0xf0] sm:$0xff] }
 0x394   : >> { %2860 = vmatpush.msra.mxu2 %v6398_v7  ;;  %4662 = vmatpush.msra.mxu3 %v6402_v53  ;;  %v2734_v58 = vld [vmem:[%s6443_s11] sm:$0xff]  ;;  %v2747_v34 = vld [vmem:[%s6443_s11 + $0x11] sm:$0xff]  ;;  %v2735_v21 = vld [vmem:[%s6443_s11 + $0x8] sm:$0xff] }
 0x395   : >> { %2814 = vmatpush.msra.mxu1 %v6404_v26  ;;  %2779 = vmatpush.msra.mxu0 %v6402_v53  ;;  %v2828_v35 = vld [vmem:[%s6443_s11 + $0x2] sm:$0xff]  ;;  %v6465_v15 = vld [vmem:[#allocation8 + $0x130] sm:$0xff]  ;;  %v6469_v19 = vld [vmem:[#allocation8 + $0xe8] sm:$0xff] }
 0x396   : >> { %2861 = vmatpush.msra.mxu2 %v6408_v30  ;;  %4663 = vmatpush.msra.mxu3 %v6412_v28  ;;  %v2745_v59 = vld [vmem:[%s6443_s11 + $0x1] sm:$0xff]  ;;  %v6473_v48 = vld [vmem:[#allocation8 + $0x1b0] sm:$0xff]  ;;  %v6477_v10 = vld [vmem:[#allocation8 + $0x128] sm:$0xff] }
 0x397   : >> { %2815 = vmatpush.msra.mxu1 %v6414_v51  ;;  %2780 = vmatpush.msra.mxu0 %v6412_v28  ;;  %v6461_v13 = vld [vmem:[#allocation8 + $0x1b8] sm:$0xff]  ;;  %v6479_v18 = vld [vmem:[#allocation8 + $0x170] sm:$0xff]  ;;  %v6481_v61 = vld [vmem:[#allocation8 + $0xe0] sm:$0xff] }
 0x398   : >> { %2862 = vmatpush.msra.mxu2 %v6419_v63  ;;  %4664 = vmatpush.msra.mxu3 %v6423_v16  ;;  %v6467_v4 = vld [vmem:[#allocation8 + $0x178] sm:$0xff]  ;;  %v6485_v3 = vld [vmem:[#allocation8 + $0x1a8] sm:$0xff]  ;;  %v6498_v42 = vld [vmem:[#allocation8 + $0x120] sm:$0xff] }
 0x399   : >> { %2816 = vmatpush.msra.mxu1 %v6425_v20  ;;  %2781 = vmatpush.msra.mxu0 %v6423_v16  ;;  %v2829_v8 = vld [vmem:[%s6443_s11 + $0xa] sm:$0xff]  ;;  %v6491_v55 = vld [vmem:[#allocation8 + $0xd8] sm:$0xff]  ;;  %v6504_v54 = vld [vmem:[#allocation8 + $0xd0] sm:$0xff] }
 0x39a   : >> { %2863 = vmatpush.msra.mxu2 %v6429_v9  ;;  %4665 = vmatpush.msra.mxu3 %v6433_v57  ;;  %v2746_v17 = vld [vmem:[%s6443_s11 + $0x9] sm:$0xff]  ;;  %v6510_v46 = vld [vmem:[#allocation8 + $0x118] sm:$0xff]  ;;  %v6522_v0 = vld [vmem:[#allocation8 + $0x110] sm:$0xff] }
 0x39b   : >> { %2817 = vmatpush.msra.mxu1 %v6435_v25  ;;  %2782 = vmatpush.msra.mxu0 %v6433_v57  ;;  %v6500_v22 = vld [vmem:[#allocation8 + $0x168] sm:$0xff]  ;;  %v6506_v43 = vld [vmem:[#allocation8 + $0x1a0] sm:$0xff]  ;;  %v6518_v11 = vld [vmem:[#allocation8 + $0x198] sm:$0xff] }
 0x39c   : >> { %2864 = vmatpush.msra.mxu2 %v6439_v33  ;;  %4529 = vmatmul.msk.f32.vlgmr.msra.gmra.mxu1 %vm2719_vm4, %v2734_v58  ;;  %v6512_v37 = vld [vmem:[#allocation8 + $0x160] sm:$0xff]  ;;  %v6514_v38 = vld [vmem:[#allocation8 + $0xc8] sm:$0xff]  ;;  %7012 = vst [vmem:[#allocation40_spill] sm:$0xff] %v6518_v11  ;;  %v6524_v12 = vld [vmem:[#allocation8 + $0x158] sm:$0xff] }
 0x39d   : >> { %4532 = vmatmul.msk.f32.vlgmr.msra.gmra.mxu2 %vm2719_vm4, %v2828_v35  ;;  %2910 = vmatpush.msrb.mxu3 %v6449_v45  ;;  %v6526_v62 = vld [vmem:[#allocation8 + $0xc0] sm:$0xff]  ;;  %v6530_v56 = vld [vmem:[#allocation8 + $0x190] sm:$0xff]  ;;  %v6541_v52 = vld [vmem:[#allocation8 + $0x108] sm:$0xff] }
 0x39e   : >> { %4526 = vmatmul.msk.f32.vlgmr.msra.gmra.mxu0 %vm2719_vm4, %v2745_v59  ;;  %4528 = vmatmul.msk.f32.vlgmr.msra.gmra.mxu3 %vm2719_vm4, %v2747_v34  ;;  %7013 = vst [vmem:[#allocation41_spill] sm:$0xff] %v6530_v56  ;;  %v6534_v32 = vld [vmem:[%s6443_s11 + $0x20] sm:$0xff]  ;;  %v2736_v60 = vld [vmem:[%s6443_s11 + $0x10] sm:$0xff] }
 0x39f   : >> { %2960 = vmatpush.msrb.mxu0 %v6455_v44  ;;  %2911 = vmatpush.msrb.mxu3 %v6459_v6  ;;  %v2830_v14 = vld [vmem:[%s6443_s11 + $0x12] sm:$0xff]  ;;  %v6552_v24 = vld [vmem:[#allocation8 + $0x100] sm:$0xff]  ;;  %v6554_v39 = vld [vmem:[#allocation8 + $0x1f8] sm:$0xff] }
 0x3a0   : >> { %3063 = vmatpush.msrb.mxu2 %v6461_v13  ;;  %3010 = vmatpush.msrb.mxu1 %v6467_v4  ;;  %v6545_v23 = vld [vmem:[#allocation8 + $0x150] sm:$0xff]  ;;  %v6547_v31 = vld [vmem:[#allocation8 + $0x188] sm:$0xff]  ;;  %v6561_v35 = vld [vmem:[%s6443_s11 + $0x21] sm:$0xff] }
 0x3a1   : >> { %2961 = vmatpush.msrb.mxu0 %v6465_v15  ;;  %2912 = vmatpush.msrb.mxu3 %v6469_v19  ;;  %7014 = vst [vmem:[#allocation42_spill] sm:$0xff] %v6547_v31  ;;  %v6558_v58 = vld [vmem:[#allocation8 + $0x148] sm:$0xff]  ;;  %v6565_v59 = vld [vmem:[#allocation8 + $0x180] sm:$0xff]  ;;  %v6567_v34 = vld [vmem:[#allocation8 + $0x1f0] sm:$0xff] }
 0x3a2   : >> { %3064 = vmatpush.msrb.mxu2 %v6473_v48  ;;  %3011 = vmatpush.msrb.mxu1 %v6479_v18  ;;  %7015 = vst [vmem:[#allocation43_spill] sm:$0xff] %v6565_v59 }
 0x3a3   : >> { %2962 = vmatpush.msrb.mxu0 %v6477_v10  ;;  %2913 = vmatpush.msrb.mxu3 %v6481_v61  ;;  %7016 = vst [vmem:[#allocation44_spill] sm:$0xff] %v6567_v34 }
 0x3a4   : >> { %3065 = vmatpush.msrb.mxu2 %v6485_v3  ;;  %4530 = vmatmul.msk.f32.gmra.mxu1 %vm2719_vm4, %v2735_v21  ;;  %v6570_v21 = vld [vmem:[#allocation8 + $0x140] sm:$0xff] }
 0x3a5   : >> { %4533 = vmatmul.msk.f32.gmra.mxu2 %vm2719_vm4, %v2829_v8  ;;  %2914 = vmatpush.msrb.mxu3 %v6491_v55  ;;  %v6573_v8 = vld [vmem:[#allocation8 + $0x238] sm:$0xff] }
 0x3a6   : >> { %4527 = vmatmul.msk.f32.gmra.mxu0 %vm2719_vm4, %v2746_v17  ;;  %3012 = vmatpush.msrb.mxu1 %v6500_v22  ;;  %7017 = vst [vmem:[#allocation45_spill] sm:$0xff] %v6573_v8  ;;  %v6578_v17 = vld [vmem:[#allocation8 + $0x1e8] sm:$0xff] }
 0x3a7   : >> { %2963 = vmatpush.msrb.mxu0 %v6498_v42  ;;  %2915 = vmatpush.msrb.mxu3 %v6504_v54  ;;  %7018 = vst [vmem:[#allocation46_spill] sm:$0xff] %v6578_v17 }
 0x3a8   : >> { %3066 = vmatpush.msrb.mxu2 %v6506_v43  ;;  %3013 = vmatpush.msrb.mxu1 %v6512_v37 }
 0x3a9   : >> { %2964 = vmatpush.msrb.mxu0 %v6510_v46  ;;  %2916 = vmatpush.msrb.mxu3 %v6514_v38 }
 0x3aa   : >> { %3067 = vmatpush.msrb.mxu2 %v6518_v11  ;;  %3014 = vmatpush.msrb.mxu1 %v6524_v12  ;;  %v6597_v11 = vld [vmem:[#allocation8 + $0x230] sm:$0xff] }
 0x3ab   : >> { %2965 = vmatpush.msrb.mxu0 %v6522_v0  ;;  %2917 = vmatpush.msrb.mxu3 %v6526_v62  ;;  %7021 = vst [vmem:[#allocation49_spill] sm:$0xff] %v6597_v11 }
 0x3ac   : >> { %3068 = vmatpush.msrb.mxu2 %v6530_v56  ;;  %4540 = vmatmul.msk.f32.vlgmr.msrb.gmra.mxu3 %vm2719_vm4, %v6534_v32  ;;  %v6592_v56 = vld [vmem:[#allocation8 + $0x1e0] sm:$0xff] }
 0x3ad   : >> { %4531 = vmatmul.msk.f32.gmra.mxu1 %vm2719_vm4, %v2736_v60  ;;  %4534 = vmatmul.msk.f32.gmra.mxu2 %vm2719_vm4, %v2830_v14  ;;  %v6581_v60 = vld [vmem:[%s6443_s11 + $0x28] sm:$0xff]  ;;  %7020 = vst [vmem:[#allocation48_spill] sm:$0xff] %v6592_v56 }
 0x3ae   : >> { %2966 = vmatpush.msrb.mxu0 %v6541_v52  ;;  %3015 = vmatpush.msrb.mxu1 %v6545_v23  ;;  %v6585_v14 = vld [vmem:[%s6443_s11 + $0x22] sm:$0xff] }
 0x3af   : >> { %3069 = vmatpush.msrb.mxu2 %v6547_v31  ;;  %3113 = vmatpush.msra.mxu3 %v6554_v39  ;;  %v6590_v31 = vld [vmem:[%s6443_s11 + $0x40] sm:$0xff] }
 0x3b0   : >> { %2967 = vmatpush.msrb.mxu0 %v6552_v24  ;;  %3016 = vmatpush.msrb.mxu1 %v6558_v58  ;;  %7019 = vst [vmem:[#allocation47_spill] sm:$0xff] %v6590_v31 }
 0x3b1   : >> { %4546 = vmatmul.msk.f32.vlgmr.msrb.gmra.mxu0 %vm2719_vm4, %v6561_v35  ;;  %3070 = vmatpush.msrb.mxu2 %v6565_v59  ;;  %v6603_v59 = vld [vmem:[#allocation8 + $0x1d8] sm:$0xff] }
 0x3b2   : >> { %3114 = vmatpush.msra.mxu3 %v6567_v34  ;;  %3017 = vmatpush.msrb.mxu1 %v6570_v21  ;;  %v6615_v34 = vld [vmem:[#allocation8 + $0x228] sm:$0xff] }
 0x3b3   : >> { %3163 = vmatpush.msra.mxu0 %v6573_v8  ;;  %3231 = vmatpush.msra.mxu2 %v6368_v40  ;;  %v6611_v40 = vld [vmem:[#allocation8 + $0x1d0] sm:$0xff] }
 0x3b4   : >> { %3115 = vmatpush.msra.mxu3 %v6578_v17  ;;  %v6609_v17 = vld [vmem:[%s6443_s11 + $0x29] sm:$0xff]  ;;  %7022 = vst [vmem:[#allocation50_spill] sm:$0xff] %v6611_v40  ;;  %3205 = vmatpush.msra.mxu1 %v6366_v29 }
 0x3b5   : >> { %4541 = vmatmul.msk.f32.gmra.mxu3 %vm2719_vm4, %v6581_v60  ;;  %4552 = vmatmul.msk.f32.vlgmr.msrb.gmra.mxu1 %vm2719_vm4, %v6585_v14  ;;  %v6627_v8 = vld [vmem:[%s6443_s11 + $0x30] sm:$0xff]  ;;  %v6635_v29 = vld [vmem:[%s6443_s11 + $0x48] sm:$0xff] }
 0x3b6   : >> { %4560 = vmatmul.msk.f32.vlgmr.msrb.gmra.mxu2 %vm2719_vm4, %v6590_v31  ;;  %3116 = vmatpush.msra.mxu3 %v6592_v56  ;;  %v6621_v31 = vld [vmem:[#allocation8 + $0x1c8] sm:$0xff]  ;;  %v6624_v56 = vld [vmem:[#allocation8 + $0x220] sm:$0xff] }
 0x3b7   : >> { %3164 = vmatpush.msra.mxu0 %v6597_v11  ;;  %3232 = vmatpush.msra.mxu2 %v6376_v1  ;;  %7023 = vst [vmem:[#allocation51_spill] sm:$0xff] %v6621_v31  ;;  %v6630_v11 = vld [vmem:[%s6443_s11 + $0x2a] sm:$0xff] }
 0x3b8   : >> { %3117 = vmatpush.msra.mxu3 %v6603_v59  ;;  %3206 = vmatpush.msra.mxu1 %v6374_v49  ;;  %v6638_v1 = vld [vmem:[#allocation8 + $0x1c0] sm:$0xff]  ;;  %v6643_v49 = vld [vmem:[#allocation8 + $0x218] sm:$0xff] }
 0x3b9   : >> { %4547 = vmatmul.msk.f32.gmra.mxu0 %vm2719_vm4, %v6609_v17  ;;  %3233 = vmatpush.msra.mxu2 %v6384_v41  ;;  %7024 = vst [vmem:[#allocation52_spill] sm:$0xff] %v6638_v1  ;;  %v6657_v41 = vld [vmem:[#allocation8 + $0x210] sm:$0xff] }
 0x3ba   : >> { %3118 = vmatpush.msra.mxu3 %v6611_v40  ;;  %3165 = vmatpush.msra.mxu0 %v6615_v34  ;;  %v6670_v40 = vld [vmem:[%s6443_s11 + $0x32] sm:$0xff] }
 0x3bb   : >> { %3207 = vmatpush.msra.mxu1 %v6382_v36  ;;  %v6653_v36 = vld [vmem:[%s6443_s11 + $0x31] sm:$0xff]  ;;  %3234 = vmatpush.msra.mxu2 %v6394_v5 }
 0x3bc   : >> { %3119 = vmatpush.msra.mxu3 %v6621_v31  ;;  %3166 = vmatpush.msra.mxu0 %v6624_v56  ;;  %v6664_v31 = vld [vmem:[#allocation8 + $0x208] sm:$0xff] }
 0x3bd   : >> { %4542 = vmatmul.msk.f32.gmra.mxu3 %vm2719_vm4, %v6627_v8  ;;  %4553 = vmatmul.msk.f32.gmra.mxu1 %vm2719_vm4, %v6630_v11  ;;  %v6675_v5 = vld [vmem:[%s6443_s11 + $0x50] sm:$0xff] }
 0x3be   : >> { %4561 = vmatmul.msk.f32.gmra.mxu2 %vm2719_vm4, %v6635_v29  ;;  %3120 = vmatpush.msra.mxu3 %v6638_v1  ;;  %v6667_v1 = vld [vmem:[%s6443_s11 + $0x41] sm:$0xff] }
 0x3bf   : >> { %3167 = vmatpush.msra.mxu0 %v6643_v49  ;;  %3208 = vmatpush.msra.mxu1 %v6392_v47  ;;  %v6691_v47 = vld [vmem:[%s6443_s11 + $0x42] sm:$0xff] }
 0x3c0   : >> { %3257 = vmatpush.msrb.mxu3 %v6370_v50  ;;  %3235 = vmatpush.msra.mxu2 %v6404_v26  ;;  %v6678_v50 = vld [vmem:[#allocation8 + $0x200] sm:$0xff]  ;;  %v7025_v26 = vld [vmem:[#allocation45_spill] sm:$0xff] }
 0x3c1   : >> { %4548 = vmatmul.msk.f32.gmra.mxu0 %vm2719_vm4, %v6653_v36  ;;  %3209 = vmatpush.msra.mxu1 %v6402_v53  ;;  %v4571_v53 = vld [vmem:[%s6443_s11 + $0x52] sm:$0xff] }
 0x3c2   : >> { %3168 = vmatpush.msra.mxu0 %v6657_v41  ;;  %3236 = vmatpush.msra.mxu2 %v6414_v51  ;;  %v7028_v51 = vld [vmem:[#allocation44_spill] sm:$0xff] }
 0x3c3   : >> { %3258 = vmatpush.msrb.mxu3 %v6378_v2  ;;  %3210 = vmatpush.msra.mxu1 %v6412_v28  ;;  %v6701_v2 = vld [vmem:[%s6443_s11 + $0x49] sm:$0xff] }
 0x3c4   : >> { %3169 = vmatpush.msra.mxu0 %v6664_v31  ;;  %3237 = vmatpush.msra.mxu2 %v6425_v20  ;;  %v7027_v28 = vld [vmem:[#allocation40_spill] sm:$0xff]  ;;  %v7031_v20 = vld [vmem:[#allocation46_spill] sm:$0xff] }
 0x3c5   : >> { %4566 = vmatmul.msk.f32.vlgmr.msra.gmra.mxu3 %vm2719_vm4, %v6667_v1  ;;  %4554 = vmatmul.msk.f32.gmra.mxu1 %vm2719_vm4, %v6670_v40 }
 0x3c6   : >> { %4562 = vmatmul.msk.f32.gmra.mxu2 %vm2719_vm4, %v6675_v5  ;;  %3170 = vmatpush.msra.mxu0 %v6678_v50 }
 0x3c7   : >> { %3211 = vmatpush.msra.mxu1 %v6423_v16  ;;  %3259 = vmatpush.msrb.mxu3 %v6388_v27  ;;  %v4570_v27 = vld [vmem:[%s6443_s11 + $0x4a] sm:$0xff]  ;;  %v7030_v16 = vld [vmem:[#allocation41_spill] sm:$0xff] }
 0x3c8   : >> { %3286 = vmatpush.msrb.mxu0 %v6449_v45  ;;  %3238 = vmatpush.msra.mxu2 %v6435_v25  ;;  %v7034_v25 = vld [vmem:[#allocation43_spill] sm:$0xff] }
 0x3c9   : >> { %4572 = vmatmul.msk.f32.vlgmr.msra.gmra.mxu0 %vm2719_vm4, %v6691_v47  ;;  %3212 = vmatpush.msra.mxu1 %v6433_v57  ;;  %v7033_v57 = vld [vmem:[#allocation48_spill] sm:$0xff]  ;;  %v7036_v45 = vld [vmem:[#allocation51_spill] sm:$0xff] }
 0x3ca   : >> { %3260 = vmatpush.msrb.mxu3 %v6398_v7  ;;  %3344 = vmatpush.msrb.mxu2 %v6467_v4  ;;  %v4565_v7 = vld [vmem:[%s6443_s11 + $0x51] sm:$0xff]  ;;  %v4607_v4 = vld [vmem:[%s6443_s11 + $0x62] sm:$0xff] }
 0x3cb   : >> { %3287 = vmatpush.msrb.mxu0 %v6459_v6  ;;  %3315 = vmatpush.msrb.mxu1 %v6455_v44  ;;  %v7037_v44 = vld [vmem:[#allocation52_spill] sm:$0xff]  ;;  %v4595_v6 = vld [vmem:[%s6443_s11 + $0x60] sm:$0xff] }
 0x3cc   : >> { %3261 = vmatpush.msrb.mxu3 %v6408_v30  ;;  %3345 = vmatpush.msrb.mxu2 %v6479_v18  ;;  %v7026_v30 = vld [vmem:[#allocation47_spill] sm:$0xff]  ;;  %v4603_v18 = vld [vmem:[%s6443_s11 + $0x71] sm:$0xff] }
 0x3cd   : >> { %4567 = vmatmul.msk.f32.gmra.mxu3 %vm2719_vm4, %v6701_v2  ;;  %4575 = vmatmul.msk.f32.vlgmr.msra.gmra.mxu1 %vm2719_vm4, %v6561_v35 }
 0x3ce   : >> { %4578 = vmatmul.msk.f32.vlgmr.msra.gmra.mxu2 %vm2719_vm4, %v6534_v32  ;;  %3262 = vmatpush.msrb.mxu3 %v6419_v63  ;;  %v7029_v63 = vld [vmem:[#allocation49_spill] sm:$0xff] }
 0x3cf   : >> { %3288 = vmatpush.msrb.mxu0 %v6469_v19  ;;  %3316 = vmatpush.msrb.mxu1 %v6465_v15  ;;  %v4596_v15 = vld [vmem:[%s6443_s11 + $0x68] sm:$0xff] }
 0x3d0   : >> { %3263 = vmatpush.msrb.mxu3 %v6429_v9  ;;  %3346 = vmatpush.msrb.mxu2 %v6500_v22  ;;  %v7032_v9 = vld [vmem:[#allocation42_spill] sm:$0xff]  ;;  %v4602_v19 = vld [vmem:[%s6443_s11 + $0x69] sm:$0xff] }
 0x3d1   : >> { %4573 = vmatmul.msk.f32.gmra.mxu0 %vm2719_vm4, %v4570_v27  ;;  %3317 = vmatpush.msrb.mxu1 %v6477_v10  ;;  %v4608_v10 = vld [vmem:[%s6443_s11 + $0x6a] sm:$0xff] }
 0x3d2   : >> { %3264 = vmatpush.msrb.mxu3 %v6439_v33  ;;  %3289 = vmatpush.msrb.mxu0 %v6481_v61  ;;  %v7035_v33 = vld [vmem:[#allocation50_spill] sm:$0xff]  ;;  %v4609_v61 = vld [vmem:[%s6443_s11 + $0x72] sm:$0xff] }
 0x3d3   : >> { %3347 = vmatpush.msrb.mxu2 %v6512_v37  ;;  %3318 = vmatpush.msrb.mxu1 %v6498_v42 }
 0x3d4   : >> { %3290 = vmatpush.msrb.mxu0 %v6491_v55  ;;  %3388 = vmatpush.msra.mxu3 %v6461_v13  ;;  %v4601_v13 = vld [vmem:[%s6443_s11 + $0x61] sm:$0xff] }
 0x3d5   : >> { %4568 = vmatmul.msk.f32.gmra.mxu3 %vm2719_vm4, %v4565_v7  ;;  %4576 = vmatmul.msk.f32.gmra.mxu1 %vm2719_vm4, %v6609_v17 }
 0x3d6   : >> { %4579 = vmatmul.msk.f32.gmra.mxu2 %vm2719_vm4, %v6581_v60  ;;  %3291 = vmatpush.msrb.mxu0 %v6504_v54 }
 0x3d7   : >> { %3348 = vmatpush.msrb.mxu2 %v6524_v12  ;;  %3319 = vmatpush.msrb.mxu1 %v6510_v46 }
 0x3d8   : >> { %3389 = vmatpush.msra.mxu3 %v6473_v48  ;;  %3292 = vmatpush.msrb.mxu0 %v6514_v38  ;;  %v4597_v48 = vld [vmem:[%s6443_s11 + $0x70] sm:$0xff] }
 0x3d9   : >> { %4574 = vmatmul.msk.f32.gmra.mxu0 %vm2719_vm4, %v4571_v53  ;;  %3349 = vmatpush.msrb.mxu2 %v6545_v23 }
 0x3da   : >> { %3320 = vmatpush.msrb.mxu1 %v6522_v0  ;;  %3390 = vmatpush.msra.mxu3 %v6485_v3 }
 0x3db   : >> { %3350 = vmatpush.msrb.mxu2 %v6558_v58  ;;  %3293 = vmatpush.msrb.mxu0 %v6526_v62 }
 0x3dc   : >> { %3321 = vmatpush.msrb.mxu1 %v6541_v52  ;;  %3391 = vmatpush.msra.mxu3 %v6506_v43 }
 0x3dd   : >> { %4581 = vmatmul.msk.f32.vlgmr.msrb.gmra.mxu3 %vm2719_vm4, %v6585_v14  ;;  %4577 = vmatmul.msk.f32.gmra.mxu1 %vm2719_vm4, %v6653_v36 }
 0x3de   : >> { %4580 = vmatmul.msk.f32.gmra.mxu2 %vm2719_vm4, %v6627_v8  ;;  %3322 = vmatpush.msrb.mxu1 %v6552_v24 }
 0x3df   : >> { %3351 = vmatpush.msrb.mxu2 %v6570_v21  ;;  %3429 = vmatpush.msra.mxu0 %v6554_v39 }
 0x3e0   : >> { %3470 = vmatpush.msra.mxu1 %v7025_v26  ;;  %3392 = vmatpush.msra.mxu3 %v7027_v28 }
 0x3e1   : >> { %4584 = vmatmul.msk.f32.vlgmr.msrb.gmra.mxu0 %vm2719_vm4, %v7026_v30 }
 0x3e2   : >> { %3430 = vmatpush.msra.mxu0 %v7028_v51  ;;  %3471 = vmatpush.msra.mxu1 %v7029_v63 }
 0x3e3   : >> { %3393 = vmatpush.msra.mxu3 %v7030_v16 }
 0x3e4   : >> { %3431 = vmatpush.msra.mxu0 %v7031_v20  ;;  %3472 = vmatpush.msra.mxu1 %v6615_v34 }
 0x3e5   : >> { %4582 = vmatmul.msk.f32.gmra.mxu3 %vm2719_vm4, %v6630_v11  ;;  %4587 = vmatmul.msk.f32.vlgmr.msrb.gmra.mxu1 %vm2719_vm4, %v6667_v1 }
 0x3e6   : >> { %4590 = vmatmul.msk.f32.vlgmr.msrb.gmra.mxu2 %vm2719_vm4, %v6691_v47  ;;  %3394 = vmatpush.msra.mxu3 %v7032_v9 }
 0x3e7   : >> { %3432 = vmatpush.msra.mxu0 %v7033_v57  ;;  %3473 = vmatpush.msra.mxu1 %v6624_v56 }
 0x3e8   : >> { %3395 = vmatpush.msra.mxu3 %v7034_v25 }
 0x3e9   : >> { %4585 = vmatmul.msk.f32.gmra.mxu0 %vm2719_vm4, %v6635_v29  ;;  %3474 = vmatpush.msra.mxu1 %v6643_v49 }
 0x3ea   : >> { %3433 = vmatpush.msra.mxu0 %v6603_v59 }
 0x3eb   : >> { %3475 = vmatpush.msra.mxu1 %v6657_v41 }
 0x3ec   : >> { %3434 = vmatpush.msra.mxu0 %v7035_v33 }
 0x3ed   : >> { %4583 = vmatmul.msk.f32.gmra.mxu3 %vm2719_vm4, %v6670_v40  ;;  %4588 = vmatmul.msk.f32.gmra.mxu1 %vm2719_vm4, %v6701_v2 }
 0x3ee   : >> { %4591 = vmatmul.msk.f32.gmra.mxu2 %vm2719_vm4, %v4570_v27  ;;  %3435 = vmatpush.msra.mxu0 %v7036_v45 }
 0x3ef   : >> { %3476 = vmatpush.msra.mxu1 %v6664_v31 }
 0x3f0   : >> { %3436 = vmatpush.msra.mxu0 %v7037_v44 }
 0x3f1   : >> { %4586 = vmatmul.msk.f32.gmra.mxu0 %vm2719_vm4, %v6675_v5  ;;  %3477 = vmatpush.msra.mxu1 %v6678_v50 }
 0x3f5   : >> { %4598 = vmatmul.msk.f32.vlgmr.msra.gmra.mxu3 %vm2719_vm4, %v4595_v6  ;;  %4589 = vmatmul.msk.f32.gmra.mxu1 %vm2719_vm4, %v4565_v7 }
 0x3f6   : >> { %4592 = vmatmul.msk.f32.gmra.mxu2 %vm2719_vm4, %v4571_v53 }
 0x3f9   : >> { %4604 = vmatmul.msk.f32.vlgmr.msra.gmra.mxu0 %vm2719_vm4, %v4601_v13 }
 0x3fd   : >> { %4599 = vmatmul.msk.f32.gmra.mxu3 %vm2719_vm4, %v4596_v15  ;;  %4610 = vmatmul.msk.f32.vlgmr.msra.gmra.mxu1 %vm2719_vm4, %v4607_v4 }
 0x401   : >> { %4605 = vmatmul.msk.f32.gmra.mxu0 %vm2719_vm4, %v4602_v19 }
 0x405   : >> { %4600 = vmatmul.msk.f32.gmra.mxu3 %vm2719_vm4, %v4597_v48  ;;  %4611 = vmatmul.msk.f32.gmra.mxu1 %vm2719_vm4, %v4608_v10 }
 0x409   : >> { %4606 = vmatmul.msk.f32.gmra.mxu0 %vm2719_vm4, %v4603_v18 }
 0x40d   : >> { %4612 = vmatmul.msk.f32.gmra.mxu1 %vm2719_vm4, %v4609_v61 }
 0x419   : >> { %v2819_v3 = vpop.f32.mrf.mxu1 }
 0x41b   : >> { %v2784_v55 = vpop.f32.mrf.mxu0 }
 0x41c   : >> { %v2820_v42 = vadd.f32 %v2819_v3, %v2784_v55 }
 0x420   : >> { %v2866_v22 = vpop.f32.mrf.mxu2 }
 0x421   : >> { %v2875_v54 = vadd.f32 %v2866_v22, %v2820_v42  ;;  %v2822_v43 = vpop.f32.mrf.mxu1  ;;  %v2790_v38 = vpop.f32.mrf.mxu3 }
 0x423   : >> { %v2787_v46 = vpop.f32.mrf.mxu0 }
 0x424   : >> { %v2823_v37 = vadd.f32 %v2822_v43, %v2787_v46 }
 0x428   : >> { %v2869_v11 = vpop.f32.mrf.mxu2 }
 0x429   : >> { %v2876_v0 = vadd.f32 %v2869_v11, %v2823_v37 }
 0x42a   : >> { %v2825_v12 = vpop.f32.mrf.mxu1 }
 0x42b   : >> { %v2826_v62 = vadd.f32 %v2825_v12, %v2790_v38 }
 0x42e   : >> { %v2969_v56 = vpop.f32.mrf.mxu0 }
 0x42f   : >> { %v2919_v32 = vpop.f32.mrf.mxu3 }
 0x430   : >> { %v2928_v52 = vadd.f32 %v2919_v32, %v2875_v54  ;;  %v2872_v23 = vpop.f32.mrf.mxu2 }
 0x431   : >> { %v2877_v31 = vadd.f32 %v2872_v23, %v2826_v62 }
 0x432   : >> { %v3019_v24 = vpop.f32.mrf.mxu1  ;;  %v2978_v39 = vadd.f32 %v2969_v56, %v2928_v52 }
 0x434   : >> { %v3028_v58 = vadd.f32 %v3019_v24, %v2978_v39 }
 0x436   : >> { %v2972_v35 = vpop.f32.mrf.mxu0 }
 0x438   : >> { %v2922_v59 = vpop.f32.mrf.mxu3 }
 0x439   : >> { %v2929_v34 = vadd.f32 %v2922_v59, %v2876_v0  ;;  %v3072_v21 = vpop.f32.mrf.mxu2 }
 0x43a   : >> { %v3081_v8 = vadd.f32 %v3072_v21, %v3028_v58  ;;  %v3022_v17 = vpop.f32.mrf.mxu1 }
 0x43b   : >> { %v2979_v60 = vadd.f32 %v2972_v35, %v2929_v34 }
 0x43d   : >> { %v3029_v14 = vadd.f32 %v3022_v17, %v2979_v60 }
 0x43e   : >> { %v2975_v40 = vpop.f32.mrf.mxu0 }
 0x440   : >> { %v2925_v29 = vpop.f32.mrf.mxu3 }
 0x441   : >> { %v2930_v1 = vadd.f32 %v2925_v29, %v2877_v31  ;;  %v3075_v49 = vpop.f32.mrf.mxu2 }
 0x442   : >> { %v3025_v36 = vpop.f32.mrf.mxu1  ;;  %v3082_v35 = vadd.f32 %v3075_v49, %v3029_v14 }
 0x443   : >> { %v2980_v41 = vadd.f32 %v2975_v40, %v2930_v1 }
 0x445   : >> { %v3030_v5 = vadd.f32 %v3025_v36, %v2980_v41 }
 0x446   : >> { %v3172_v50 = vpop.f32.mrf.mxu0 }
 0x448   : >> { %v3122_v47 = vpop.f32.mrf.mxu3 }
 0x449   : >> { %v3131_v2 = vadd.f32 %v3122_v47, %v3081_v8  ;;  %v3078_v27 = vpop.f32.mrf.mxu2  ;;  %v4770_v47 = vld [vmem:[#allocation9] ss:$0 sm:$0xff] }
 0x44a   : >> { %v3214_v7 = vpop.f32.mrf.mxu1  ;;  %v3083_v24 = vadd.f32 %v3078_v27, %v3030_v5 }
 0x44b   : >> { %v6815_v53 = vadd.f32 %v3172_v50, %v3131_v2 }
 0x44e   : >> { %v3175_v26 = vpop.f32.mrf.mxu0 }
 0x450   : >> { %v3125_v30 = vpop.f32.mrf.mxu3 }
 0x451   : >> { %v3240_v28 = vpop.f32.mrf.mxu2  ;;  %v3132_v8 = vadd.f32 %v3125_v30, %v3082_v35  ;;  %v3188_v30 = vadd.f32 %v4770_v47, %v6815_v53  ;;  %v3501_v53 = vld [vmem:[%s6893_s8 + $0x8] sm:$0xf] }
 0x452   : >> { %v3217_v51 = vpop.f32.mrf.mxu1  ;;  %v3241_v18 = vadd.f32 %v3240_v28, %v3214_v7 }
 0x453   : >> { %v3182_v2 = vadd.f32 %v3175_v26, %v3132_v8 }
 0x455   : >> { %v3189_v14 = vadd.f32 %v4770_v47, %v3182_v2 }
 0x456   : >> { %v3178_v63 = vpop.f32.mrf.mxu0 }
 0x458   : >> { %v3128_v16 = vpop.f32.mrf.mxu3 }
 0x459   : >> { %v3243_v9 = vpop.f32.mrf.mxu2  ;;  %v3133_v59 = vadd.f32 %v3128_v16, %v3083_v24 }
 0x45a   : >> { %v3220_v20 = vpop.f32.mrf.mxu1  ;;  %v3244_v10 = vadd.f32 %v3243_v9, %v3217_v51 }
 0x45b   : >> { %v3183_v1 = vadd.f32 %v3178_v63, %v3133_v59  ;;  %v3192_v63 = vmax.f32 %v3189_v14, 0.0 }
 0x45d   : >> { %v3190_v5 = vadd.f32 %v4770_v47, %v3183_v1 }
 0x45e   : >> { %v3295_v57 = vpop.f32.mrf.mxu0 }
 0x460   : >> { %v3266_v25 = vpop.f32.mrf.mxu3 }
 0x461   : >> { %v3246_v45 = vpop.f32.mrf.mxu2  ;;  %v3275_v55 = vadd.f32 %v3266_v25, %v3241_v18 }
 0x462   : >> { %v3324_v33 = vpop.f32.mrf.mxu1  ;;  %v3247_v46 = vadd.f32 %v3246_v45, %v3220_v20  ;;  %v3193_v20 = vmax.f32 %v3190_v5, 0.0  ;;  %v3191_v45 = vmax.f32 %v3188_v30, 0.0 }
 0x463   : >> { %v3304_v37 = vadd.f32 %v3295_v57, %v3275_v55 }
 0x465   : >> { %v3333_v12 = vadd.f32 %v3324_v33, %v3304_v37 }
 0x466   : >> { %v3298_v44 = vpop.f32.mrf.mxu0 }
 0x468   : >> { %v3269_v6 = vpop.f32.mrf.mxu3 }
 0x469   : >> { %v3353_v4 = vpop.f32.mrf.mxu2  ;;  %v3276_v61 = vadd.f32 %v3269_v6, %v3244_v10  ;;  %v3500_v6 = vld [vmem:[%s6893_s8] sm:$0xff] }
 0x46a   : >> { %v3327_v13 = vpop.f32.mrf.mxu1  ;;  %v3362_v32 = vadd.f32 %v3353_v4, %v3333_v12 }
 0x46b   : >> { %v3305_v22 = vadd.f32 %v3298_v44, %v3276_v61 }
 0x46d   : >> { %v3334_v38 = vadd.f32 %v3327_v13, %v3305_v22 }
 0x46e   : >> { %v3301_v15 = vpop.f32.mrf.mxu0 }
 0x470   : >> { %v3272_v19 = vpop.f32.mrf.mxu3 }
 0x471   : >> { %v3356_v54 = vpop.f32.mrf.mxu2  ;;  %v3277_v11 = vadd.f32 %v3272_v19, %v3247_v46 }
 0x472   : >> { %v3330_v48 = vpop.f32.mrf.mxu1  ;;  %v3363_v62 = vadd.f32 %v3356_v54, %v3334_v38 }
 0x473   : >> { %v3306_v52 = vadd.f32 %v3301_v15, %v3277_v11 }
 0x475   : >> { %v3335_v34 = vadd.f32 %v3330_v48, %v3306_v52 }
 0x476   : >> { %v3438_v3 = vpop.f32.mrf.mxu0 }
 0x478   : >> { %v3397_v42 = vpop.f32.mrf.mxu3 }
 0x479   : >> { %v3406_v39 = vadd.f32 %v3397_v42, %v3362_v32  ;;  %v3359_v58 = vpop.f32.mrf.mxu2 }
 0x47a   : >> { %v3479_v43 = vpop.f32.mrf.mxu1  ;;  %v3364_v17 = vadd.f32 %v3359_v58, %v3335_v34 }
 0x47b   : >> { %v3447_v60 = vadd.f32 %v3438_v3, %v3406_v39 }
 0x47d   : >> { %v3488_v7 = vadd.f32 %v3479_v43, %v3447_v60 }
 0x47e   : >> { %v3441_v0 = vpop.f32.mrf.mxu0 }
 0x47f   : >> { %v3491_v49 = vadd.f32 %v4770_v47, %v3488_v7 }
 0x480   : >> { %v3400_v56 = vpop.f32.mrf.mxu3 }
 0x481   : >> { %v3407_v23 = vadd.f32 %v3400_v56, %v3363_v62  ;;  %v3494_v25 = vmax.f32 %v3491_v49, 0.0 }
 0x482   : >> { %v3482_v31 = vpop.f32.mrf.mxu1 }
 0x483   : >> { %v3448_v21 = vadd.f32 %v3441_v0, %v3407_v23  ;;  %v3497_v44 = vadd.f32 %v3494_v25, %v3191_v45 }
 0x485   : >> { %v3489_v36 = vadd.f32 %v3482_v31, %v3448_v21 }
 0x486   : >> { %v3444_v29 = vpop.f32.mrf.mxu0 }
 0x487   : >> { %v3492_v27 = vadd.f32 %v4770_v47, %v3489_v36 }
 0x488   : >> { %v3403_v40 = vpop.f32.mrf.mxu3 }
 0x489   : >> { %v3408_v41 = vadd.f32 %v3403_v40, %v3364_v17  ;;  %v3495_v9 = vmax.f32 %v3492_v27, 0.0 }
 0x48a   : >> { %v3485_v50 = vpop.f32.mrf.mxu1 }
 0x48b   : >> { %v3449_v28 = vadd.f32 %v3444_v29, %v3408_v41  ;;  %v3498_v26 = vadd.f32 %v3495_v9, %v3192_v63 }
 0x48d   : >> { %v3490_v51 = vadd.f32 %v3485_v50, %v3449_v28 }
 0x48f   : >> { %v3493_v16 = vadd.f32 %v4770_v47, %v3490_v51 }
 0x491   : >> { %v3496_v57 = vmax.f32 %v3493_v16, 0.0 }
 0x493   : >> { %v3499_v33 = vadd.f32 %v3496_v57, %v3193_v20 }
 0x495   : >> { %3522 = vmatpush.msra.mxu2 %v3499_v33 }
 0x497   : >> { %3523 = vmatpush.msra.mxu2 %v3498_v26 }
 0x499   : >> { %3524 = vmatpush.msra.mxu2 %v3497_v44 }
 0x49a   : >> { %4613 = vmatmul.msk.f32.vlgmr.msra.gmra.mxu2 %vm3502_vm6, %v3500_v6 }
 0x4a2   : >> { %4614 = vmatmul.msk.f32.gmra.mxu2 %vm3502_vm6, %v3501_v53 }
 0x51d   : >> { %v3526_v13 = vpop.f32.mrf.mxu2 }
 0x51e   : >> { %3535 = vst.msk [vmem:[%s3533_s19] sm:$0xff] %vm3534_vm7, %v3526_v13 }
 0x522   : > { %2729 = sbr.rel (!%p2727_p8) target bundleno = 907 (0x38b), region = 182 }
 0x525   : >> { %v3529_v15 = vpop.f32.mrf.mxu2 }
 0x526   : >> { %3537 = vst.msk [vmem:[%s3533_s19 + $0x8] sm:$0xf] %vm3536_vm8, %v3529_v15 }
 0x527 LB: >> { %v3558_v4 = vld [vmem:[#allocation11 + $0x38] sm:$0xff]  ;;  %v3557_v19 = vld [vmem:[#allocation11 + $0x30] sm:$0xff]  ;;  %v3556_v18 = vld [vmem:[#allocation11 + $0x28] sm:$0xff]  ;;  %s4616_s21 = sshll.u32 %s4998_s20, 4  ;;  %vm3899_vm9 = vcmask 17408   ;;  %s3543_s20 = sadd.s32 1, %s4998_s20   ;;  %s4998_s20 = sphi %s6829_s20, %s3543_s20  }
 0x528   : >> { %4666 = vmatpush.msra.mxu1 %v3558_v4  ;;  %v3624_v48 = vld [vmem:[#allocation11 + $0x58] sm:$0xff]  ;;  %3578 = vmatpush.msra.mxu0 %v3558_v4  ;;  %v3623_v10 = vld [vmem:[#allocation11 + $0x50] sm:$0xff]  ;;  %v3622_v3 = vld [vmem:[#allocation11 + $0x48] sm:$0xff]  ;;  %s6837_s24 = scalar_lea.vmem [#allocation3], %s4616_s21  ;;  %s3896_s22 = scalar_lea.vmem %s5141_s12, %s4616_s21 }
 0x529   : >> { %3643 = vmatpush.msra.mxu2 %v3624_v48  ;;  %v3665_v61 = vld [vmem:[#allocation11 + $0x78] sm:$0xff]  ;;  %v3664_v55 = vld [vmem:[#allocation11 + $0x70] sm:$0xff]  ;;  %v3555_v42 = vld [vmem:[#allocation11 + $0x20] sm:$0xff]  ;;  %p3540_p9 = scmp.ge.s32.totalorder %s3543_s20, 10  }
 0x52a   : >> { %4667 = vmatpush.msra.mxu1 %v3557_v19  ;;  %3684 = vmatpush.msra.mxu3 %v3665_v61  ;;  %v3663_v22 = vld [vmem:[#allocation11 + $0x68] sm:$0xff]  ;;  %v3621_v43 = vld [vmem:[#allocation11 + $0x40] sm:$0xff]  ;;  %v3551_v46 = vld [vmem:[#allocation11 + $0x18] sm:$0xff] }
 0x52b   : >> { %3644 = vmatpush.msra.mxu2 %v3623_v10  ;;  %3579 = vmatpush.msra.mxu0 %v3557_v19  ;;  %v3782_v38 = vld [vmem:[#allocation11 + $0xd8] sm:$0xff]  ;;  %v3550_v11 = vld [vmem:[#allocation11 + $0x10] sm:$0xff]  ;;  %v3662_v0 = vld [vmem:[#allocation11 + $0x60] sm:$0xff] }
 0x52c   : >> { %4668 = vmatpush.msra.mxu1 %v3556_v18  ;;  %3685 = vmatpush.msra.mxu3 %v3664_v55  ;;  %v3549_v56 = vld [vmem:[#allocation11 + $0x8] sm:$0xff]  ;;  %v3703_v32 = vld [vmem:[#allocation11 + $0x98] sm:$0xff]  ;;  %v3781_v23 = vld [vmem:[#allocation11 + $0xd0] sm:$0xff] }
 0x52d   : >> { %v3553_v54 = vld [vmem:[%s6837_s24 + $0x9] sm:$0x3]  ;;  %3645 = vmatpush.msra.mxu2 %v3622_v3  ;;  %3580 = vmatpush.msra.mxu0 %v3556_v18  ;;  %v3552_v12 = vld [vmem:[%s6837_s24 + $0x1] sm:$0xff]  ;;  %v4624_v62 = vld [vmem:[%s6837_s24 + $0x10] sm:$0xff] }
 0x52e   : >> { %v3618_v37 = vld [vmem:[%s6837_s24 + $0x2] sm:$0xff]  ;;  %4669 = vmatpush.msra.mxu1 %v3555_v42  ;;  %3686 = vmatpush.msra.mxu3 %v3663_v22  ;;  %v3702_v24 = vld [vmem:[#allocation11 + $0x90] sm:$0xff]  ;;  %v3701_v59 = vld [vmem:[#allocation11 + $0x88] sm:$0xff] }
 0x52f   : >> { %4618 = vmatmul.msk.f32.vlgmr.msra.gmra.mxu1 %vm3534_vm7, %v3553_v54  ;;  %3646 = vmatpush.msra.mxu2 %v3621_v43  ;;  %v3820_v52 = vld [vmem:[#allocation11 + $0xf8] sm:$0xff]  ;;  %v3548_v31 = vld [vmem:[#allocation11] sm:$0xff]  ;;  %v3819_v58 = vld [vmem:[#allocation11 + $0xf0] sm:$0xff] }
 0x530   : >> { %3607 = vmatpush.msrb.mxu1 %v3551_v46  ;;  %4621 = vmatmul.msk.f32.vlgmr.msra.gmra.mxu2 %vm3534_vm7, %v3618_v37  ;;  %v3546_v39 = vld [vmem:[%s6837_s24] sm:$0xff]  ;;  %v3619_v34 = vld [vmem:[%s6837_s24 + $0xa] sm:$0x3]  ;;  %v3818_v21 = vld [vmem:[#allocation11 + $0xe8] sm:$0xff] }
 0x531   : >> { %3801 = vmatpush.msrb.mxu2 %v3782_v38  ;;  %3581 = vmatpush.msra.mxu0 %v3555_v42  ;;  %v3741_v35 = vld [vmem:[#allocation11 + $0xb8] sm:$0xff]  ;;  %v3700_v8 = vld [vmem:[#allocation11 + $0x80] sm:$0xff]  ;;  %v3740_v17 = vld [vmem:[#allocation11 + $0xb0] sm:$0xff] }
 0x532   : >> { %3608 = vmatpush.msrb.mxu1 %v3550_v11  ;;  %3687 = vmatpush.msra.mxu3 %v3662_v0  ;;  %v3780_v60 = vld [vmem:[#allocation11 + $0xc8] sm:$0xff]  ;;  %v4625_v40 = vld [vmem:[%s6837_s24 + $0x18] sm:$0x3]  ;;  %v3858_v36 = vld [vmem:[#allocation11 + $0x118] sm:$0xff] }
 0x533   : >> { %4617 = vmatmul.msk.f32.vlgmr.msra.gmra.mxu0 %vm3534_vm7, %v3552_v12  ;;  %4626 = vmatmul.msk.f32.vlgmr.msra.gmra.mxu3 %vm3534_vm7, %v4624_v62  ;;  %v4628_v29 = vld [vmem:[%s6837_s24 + $0x11] sm:$0xff]  ;;  %v3779_v41 = vld [vmem:[#allocation11 + $0xc0] sm:$0xff]  ;;  %v4637_v28 = vld [vmem:[%s6837_s24 + $0x20] sm:$0xff] }
 0x534   : >> { %3609 = vmatpush.msrb.mxu1 %v3549_v56  ;;  %3722 = vmatpush.msrb.mxu0 %v3703_v32  ;;  %v3739_v1 = vld [vmem:[#allocation11 + $0xa8] sm:$0xff]  ;;  %v3817_v50 = vld [vmem:[#allocation11 + $0xe0] sm:$0xff]  ;;  %v3857_v7 = vld [vmem:[#allocation11 + $0x110] sm:$0xff] }
 0x535   : >> { %3839 = vmatpush.msrb.mxu3 %v3820_v52  ;;  %3802 = vmatpush.msrb.mxu2 %v3781_v23  ;;  %v3738_v47 = vld [vmem:[#allocation11 + $0xa0] sm:$0xff]  ;;  %v3856_v5 = vld [vmem:[#allocation11 + $0x108] sm:$0xff]  ;;  %v4629_v14 = vld [vmem:[%s6837_s24 + $0x19] sm:$0x3] }
 0x536   : >> { %3610 = vmatpush.msrb.mxu1 %v3548_v31  ;;  %3723 = vmatpush.msrb.mxu0 %v3702_v24  ;;  %v3547_v2 = vld [vmem:[%s6837_s24 + $0x8] sm:$0x3]  ;;  %v4632_v49 = vld [vmem:[%s6837_s24 + $0x12] sm:$0xff]  ;;  %v4633_v9 = vld [vmem:[%s6837_s24 + $0x1a] sm:$0x3] }
 0x537   : >> { %4619 = vmatmul.msk.f32.vlgmr.msrb.gmra.mxu1 %vm3534_vm7, %v3546_v39  ;;  %3840 = vmatpush.msrb.mxu3 %v3819_v58  ;;  %v4641_v27 = vld [vmem:[%s6837_s24 + $0x21] sm:$0xff]  ;;  %v4642_v30 = vld [vmem:[%s6837_s24 + $0x29] sm:$0x3] }
 0x538   : >> { %3760 = vmatpush.msra.mxu1 %v3741_v35  ;;  %3724 = vmatpush.msrb.mxu0 %v3701_v59  ;;  %v3855_v51 = vld [vmem:[#allocation11 + $0x100] sm:$0xff] }
 0x539   : >> { %4622 = vmatmul.msk.f32.gmra.mxu2 %vm3534_vm7, %v3619_v34  ;;  %3841 = vmatpush.msrb.mxu3 %v3818_v21  ;;  %v4638_v16 = vld [vmem:[%s6837_s24 + $0x28] sm:$0x3]  ;;  %v4646_v57 = vld [vmem:[%s6837_s24 + $0x2a] sm:$0x3] }
 0x53a   : >> { %3725 = vmatpush.msrb.mxu0 %v3700_v8  ;;  %3761 = vmatpush.msra.mxu1 %v3740_v17  ;;  %v4645_v20 = vld [vmem:[%s6837_s24 + $0x22] sm:$0xff] }
 0x53b   : >> { %3803 = vmatpush.msrb.mxu2 %v3780_v60  ;;  %4627 = vmatmul.msk.f32.gmra.mxu3 %vm3534_vm7, %v4625_v40  ;;  %v4771_v38 = vld [vmem:[#allocation12] ss:$0 sm:$0xff] }
 0x53c   : >> { %4630 = vmatmul.msk.f32.vlgmr.msrb.gmra.mxu0 %vm3534_vm7, %v4628_v29  ;;  %3762 = vmatpush.msra.mxu1 %v3739_v1 }
 0x53d   : >> { %3877 = vmatpush.msra.mxu0 %v3858_v36  ;;  %3804 = vmatpush.msrb.mxu2 %v3779_v41 }
 0x53e   : >> { %3842 = vmatpush.msrb.mxu3 %v3817_v50  ;;  %3763 = vmatpush.msra.mxu1 %v3738_v47 }
 0x53f   : >> { %4620 = vmatmul.msk.f32.gmra.mxu1 %vm3534_vm7, %v3547_v2  ;;  %3878 = vmatpush.msra.mxu0 %v3857_v7 }
 0x541   : >> { %4639 = vmatmul.msk.f32.vlgmr.msrb.gmra.mxu2 %vm3534_vm7, %v4637_v28  ;;  %3879 = vmatpush.msra.mxu0 %v3856_v5 }
 0x543   : >> { %4643 = vmatmul.msk.f32.vlgmr.msrb.gmra.mxu3 %vm3534_vm7, %v4641_v27  ;;  %3880 = vmatpush.msra.mxu0 %v3855_v51 }
 0x544   : >> { %4631 = vmatmul.msk.f32.gmra.mxu0 %vm3534_vm7, %v4629_v14 }
 0x547   : >> { %4634 = vmatmul.msk.f32.vlgmr.msra.gmra.mxu1 %vm3534_vm7, %v4632_v49 }
 0x549   : >> { %4640 = vmatmul.msk.f32.gmra.mxu2 %vm3534_vm7, %v4638_v16 }
 0x54b   : >> { %4644 = vmatmul.msk.f32.gmra.mxu3 %vm3534_vm7, %v4642_v30 }
 0x54c   : >> { %4647 = vmatmul.msk.f32.vlgmr.msra.gmra.mxu0 %vm3534_vm7, %v4645_v20 }
 0x54f   : >> { %4635 = vmatmul.msk.f32.gmra.mxu1 %vm3534_vm7, %v4633_v9 }
 0x554   : >> { %4648 = vmatmul.msk.f32.gmra.mxu0 %vm3534_vm7, %v4646_v57 }
 0x5ac   : >> { %v3586_v63 = vpop.f32.mrf.mxu1 }
 0x5b0   : >> { %v3583_v25 = vpop.f32.mrf.mxu0 }
 0x5b3   : >> { %v3648_v33 = vpop.f32.mrf.mxu2 }
 0x5b4   : >> { %v3612_v45 = vpop.f32.mrf.mxu1 }
 0x5b5   : >> { %v3613_v44 = vadd.f32 %v3612_v45, %v3583_v25 }
 0x5b6   : >> { %v3689_v26 = vpop.f32.mrf.mxu3 }
 0x5b7   : >> { %v3654_v53 = vadd.f32 %v3648_v33, %v3613_v44 }
 0x5b9   : >> { %v3727_v6 = vpop.f32.mrf.mxu0  ;;  %v3695_v19 = vadd.f32 %v3689_v26, %v3654_v53 }
 0x5bb   : >> { %v3733_v18 = vadd.f32 %v3727_v6, %v3695_v19 }
 0x5bc   : >> { %v3615_v13 = vpop.f32.mrf.mxu1  ;;  %v3651_v15 = vpop.f32.mrf.mxu2 }
 0x5bd   : >> { %v3616_v48 = vadd.f32 %v3615_v13, %v3586_v63 }
 0x5be   : >> { %v3692_v4 = vpop.f32.mrf.mxu3 }
 0x5bf   : >> { %v3655_v61 = vadd.f32 %v3651_v15, %v3616_v48 }
 0x5c1   : >> { %v3730_v10 = vpop.f32.mrf.mxu0  ;;  %v3696_v54 = vadd.f32 %v3692_v4, %v3655_v61 }
 0x5c3   : >> { %v3734_v11 = vadd.f32 %v3730_v10, %v3696_v54 }
 0x5c4   : >> { %v3765_v3 = vpop.f32.mrf.mxu1  ;;  %v3806_v55 = vpop.f32.mrf.mxu2 }
 0x5c5   : >> { %v3771_v42 = vadd.f32 %v3765_v3, %v3733_v18 }
 0x5c6   : >> { %v3844_v22 = vpop.f32.mrf.mxu3 }
 0x5c7   : >> { %v3812_v43 = vadd.f32 %v3806_v55, %v3771_v42 }
 0x5c9   : >> { %v3850_v46 = vadd.f32 %v3844_v22, %v3812_v43  ;;  %v3882_v37 = vpop.f32.mrf.mxu0 }
 0x5cb   : >> { %v3888_v0 = vadd.f32 %v3882_v37, %v3850_v46 }
 0x5cc   : >> { %v3768_v12 = vpop.f32.mrf.mxu1  ;;  %v3809_v62 = vpop.f32.mrf.mxu2 }
 0x5cd   : >> { %v3894_v56 = vadd.f32 %v4771_v38, %v3888_v0  ;;  %v3772_v32 = vadd.f32 %v3768_v12, %v3734_v11 }
 0x5ce   : >> { %v3847_v52 = vpop.f32.mrf.mxu3 }
 0x5cf   : >> { %3898 = vst.msk [vmem:[%s3896_s22] sm:$0xff] %vm459_vm1, %v3894_v56  ;;  %v3813_v23 = vadd.f32 %v3809_v62, %v3772_v32 }
 0x5d1   : >> { %v3851_v31 = vadd.f32 %v3847_v52, %v3813_v23  ;;  %v3885_v24 = vpop.f32.mrf.mxu0 }
 0x5d3   : >> { %v3889_v39 = vadd.f32 %v3885_v24, %v3851_v31  ;;  %3542 = sbr.rel (!%p3540_p9) target bundleno = 1319 (0x527), region = 193 }
 0x5d5   : >> { %v3895_v58 = vadd.f32 %v4771_v38, %v3889_v39 }
 0x5d7   : >> { %3900 = vst.msk [vmem:[%s3896_s22 + $0x8] sm:$0x3] %vm3899_vm9, %v3895_v58 }
 0x5d8 PF: > { %s23_s30 = sadd.s32 1, %s4986_s30  }
 0x5d9   : > { %p20_p10 = scmp.ge.s32.totalorder %s23_s30, 4  }
 0x5db   :  { %22 = sbr.rel (!%p20_p10) target bundleno = 4 (0x4), region = 204 }
 0x5e0   :  { %3922 = vsyncpa [#allocation5], 1 }
 0x5e1   :  { %3924 = vsyncpa [#allocation5 + $0x1], 1 }
 0x5e2   :  { %3925 = vsyncpa [#allocation7], 1 }
 0x5e3   :  { %3926 = vsyncpa [#allocation10], 1 }
 0x5e4   :  { %3927 = vsyncpa [#allocation13], 1 }

// kernel: _lambda_.3
= control target key start
LH: loop header
LB: loop body
LE: loop exit
PB: predicated region body
PF: predicated region fallthrough
CT: control target
= control target key end

     0   :  { %s10599_s0 = inlined_call_operand.vmem [shape: f32[2,300], index: 0, kind: input, shape index: {}]   ;;  %s10600_s1 = inlined_call_operand.hbm [shape: f32[300,32], index: 1, kind: input, shape index: {}]   ;;  %s10601_s2 = inlined_call_operand.hbm [shape: f32[1,32], index: 2, kind: input, shape index: {}]   ;;  %s10602_s3 = inlined_call_operand.hbm [shape: f32[32,300], index: 3, kind: input, shape index: {}]   ;;  %s10603_s4 = inlined_call_operand.hbm [shape: f32[1,300], index: 4, kind: input, shape index: {}]   ;;  %s10604_s5 = inlined_call_operand.hbm [shape: bf16[300,19200], index: 5, kind: input, shape index: {}]   ;;  %s10605_s6 = inlined_call_operand.hbm [shape: f32[1,19200], index: 6, kind: input, shape index: {}]   ;;  %s10606_s7 = inlined_call_operand.hbm [shape: f32[2,19200], index: 7, kind: output, shape index: {}]  }
   0x1   :  { %10613 = sst [smem:[#allocation22_spill]] %s10600_s1 }
   0x2   :  { %10614 = sst [smem:[#allocation23_spill]] %s10601_s2 }
   0x3   :  { %10615 = sst [smem:[#allocation24_spill]] %s10602_s3 }
   0x4   :  { %10616 = sst [smem:[#allocation25_spill]] %s10604_s5 }
   0x5   :  { %12 = vsyncpa [#allocation3], 0 }
   0x6   :  { %13 = vsyncpa [#allocation6], 0 }
   0x7   :  { %14 = vsyncpa [#allocation9], 0 }
   0x8   :  { %15 = vsyncpa [#allocation4], 0 }
   0x9   :  { %17 = vsyncpa [#allocation4 + $0x1], 0  ;;  %s8885_s24 = smov 0   ;;  %s8887_s25 = smov 0  }
   0xa   :  { %s8889_s26 = smov 0   ;;  %s8891_s27 = smov 0  }
   0xb LB: > { %10617 = sst [smem:[#allocation18_spill]] %s8820_s24  ;;  %s8906_s28 = sadd.s32 4294967295, %s8832_s27   ;;  %s8832_s27 = sphi %s8891_s27, %s10641_s27   ;;  %s8828_s26 = sphi %s8889_s26, %s10645_s26   ;;  %s8824_s25 = sphi %s8887_s25, %s10644_s25   ;;  %s8820_s24 = sphi %s8885_s24, %s10643_s24  }
   0xc   : > { %s5565_s29 = sadd.s32 4294967294, %s8832_s27   ;;  %s8910_s30 = sadd.s32 1, %s8832_s27  }
   0xd   : > { %10618 = sst [smem:[#allocation19_spill]] %s8910_s30  ;;  %s135_s8 = sadd.s32 1, %s8828_s26 }
   0xe   : > { %s132_s9 = ssub.s32 %s8832_s27, %s8910_s30  ;;  %p142_p0 = scmp.ne.s32.totalorder %s8828_s26, %s8824_s25 }
   0xf   : > { %p133_p1 = scmp.eq.s32.totalorder %s132_s9, 0  ;;  %p143_p2 = scmp.eq.s32.totalorder %s8832_s27, 0 }
  0x10   : > { %p148_p3 = scmp.ne.s32.totalorder %s8824_s25, %s8820_s24  ;;  %p10611_p4 = scmp.eq.s32.totalorder %s8906_s28, 0 }
  0x11   : > { %s8922_s10 = scalar_select %p133_p1, %s8828_s26, %s135_s8  }
  0x12   : > { %p8924_p5 = por %p143_p2, %p142_p0  ;;  %p8930_p6 = por %p10611_p4, %p148_p3 }
  0x13   : > { %10619 = sst [smem:[#allocation20_spill]] %s8922_s10  ;;  %p198_p7 = scmp.eq.s32.totalorder %s8906_s28, 4 }
  0x14   : > { %p204_p8 = scmp.eq.s32.totalorder %s5565_s29, 4  ;;  %p5566_p9 = scmp.ge.s32.totalorder %s8832_s27, 1 }
  0x15   : > { %p211_p10 = scmp.lt.s32.totalorder %s8832_s27, 6  ;;  %p8937_p11 = por %p198_p7, %p142_p0 }
  0x16   : > { %p8941_p12 = por %p204_p8, %p148_p3  ;;  %s10626_s1 = sld [smem:[#allocation22_spill]] }
  0x17   : > { %p8945_p13 = pnand %p5566_p9, %p211_p10  ;;  %s8834_s19 = smov [#allocation2]  }
  0x18   : > { %s10623_s14 = scalar_select %p8941_p12, 1, 0 }
  0x19   : > { %p8495_p1 = pneg %p8945_p13  ;;  %s227_s20 = sshll.u32 %s8834_s19, 4  ;;  %s228_s20 = int_to_ptr.vmem [resolvable:$true] %s227_s20 }
  0x1a   : > { %10624 = sst [smem:[#allocation21_spill]] %s10623_s14  ;;  %p8523_p2 = scmp.lt.s32.totalorder %s8832_s27, 5 }
  0x1b   : > { %p8956_p0 = pnand %p8495_p1, %p10611_p4  ;;  %s8835_s22 = smov 128  }
  0x1c   : > { %s225_s18 = sshll.u32 %s10626_s1, 4  ;;  %s8836_s23 = smov 8   ;;  %s226_s18 = int_to_ptr.hbm [resolvable:$true] %s225_s18 }
  0x1d   : > { %8498 = dma.hbm_to_vmem [thread:$0]  (!%p8956_p0), %s226_s18, 4864, %s228_s20, [#allocation3], %s8835_s22, %s8835_s22, %s8836_s23  }
  0x1e   : > { %p8965_p3 = pnand %p8523_p2, %p8924_p5  ;;  %s10629_s2 = sld [smem:[#allocation23_spill]] }
  0x1f   : > { %s8837_s17 = smov [#allocation5]   ;;  %s279_s1 = sand.u32 1, %s8832_s27  }
  0x20   : > { %s242_s19 = sshll.u32 %s8837_s17, 4  ;;  %s10612_s10 = sand.u32 1, %s8828_s26   ;;  %s243_s19 = int_to_ptr.vmem [resolvable:$true] %s242_s19 }
  0x21   : > { %s8468_s11 = smul.u32 4560, %s10612_s10  ;;  %s10630_s5 = sld [smem:[#allocation25_spill]] }
  0x22   : > { %s7896_s18 = smul.u32 120, %s8832_s27  ;;  %s10631_s3 = sld [smem:[#allocation24_spill]] }
  0x23   : > { %s283_s30 = scalar_lea.vmem [#allocation10], %s8468_s11  ;;  %p8638_p7 = pneg %p8965_p3 }
  0x24   : > { %s240_s16 = sshll.u32 %s10629_s2, 4  ;;  %s291_s8 = sshll.u32 %s283_s30, 4  ;;  %s241_s16 = int_to_ptr.hbm [resolvable:$true] %s240_s16  ;;  %s292_s8 = int_to_ptr.vmem [resolvable:$true] %s291_s8 }
  0x25   : > { %8501 = dma.hbm_to_vmem [thread:$0]  (!%p8956_p0), %s241_s16, 16, %s243_s19, [#allocation6]  }
  0x26   : > { %s8985_s16 = scalar_lea.sflag [#allocation3], %s279_s1 }
  0x27   : > { %s288_s23 = scalar_lea.hbm %s10630_s5, %s7896_s18  ;;  %s8641_s18 = scalar_lea.hbm %s10630_s5, 22800 }
  0x28   : > { %s289_s9 = sshll.u32 %s288_s23, 4  ;;  %s251_s14 = sshll.u32 %s10631_s3, 4  ;;  %s290_s9 = int_to_ptr.hbm [resolvable:$true] %s289_s9  ;;  %s252_s14 = int_to_ptr.hbm [resolvable:$true] %s251_s14 }
  0x29   : > { %s8634_s19 = sshra.s32 %s290_s9, 4  ;;  %s8635_s19 = int_to_ptr.hbm [resolvable:$true] %s8634_s19 }
  0x2a   : > { %s8636_s24 = scalar_lea.hbm %s8635_s19, 4560  ;;  %p8642_p10 = scmp.lt.s32.totalorder %s8635_s19, %s10630_s5 }
  0x2b   : > { %p8637_p5 = scmp.ne.s32.totalorder %s8635_s19, %s8636_s24  ;;  %p8643_p1 = scmp.lt.s32.totalorder %s8641_s18, %s8636_s24 }
  0x2d   : > { %p8639_p8 = pnand %p8638_p7, %p8637_p5  ;;  %p8644_p2 = por %p8643_p1, %p8642_p10 }
  0x2f   : > { %p8640_p9 = pneg %p8639_p8 }
  0x31   : > { %p8645_p4 = pnand %p8644_p2, %p8640_p9 }
  0x33   : > { %8648 = shalt.err (!%p8645_p4)
}
  0x34   : > { %s8838_s1 = smov 9600   ;;  %s8839_s2 = smov 1920  }
  0x35   : > { %s8840_s23 = smov 120   ;;  %s8841_s17 = smov [#allocation7]  }
  0x36   : > { %8511 = dma.hbm_to_vmem [thread:$0]  (!%p8965_p3), %s290_s9, 72960, %s292_s8, %s8985_s16, %s8838_s1, %s8839_s2, %s8840_s23  }
  0x37   : > { %s253_s30 = sshll.u32 %s8841_s17, 4  ;;  %s8842_s19 = smov 384   ;;  %s254_s30 = int_to_ptr.vmem [resolvable:$true] %s253_s30 }
  0x38   : > { %s8843_s24 = smov 24   ;;  %s266_s20 = sshll.u32 %s10603_s4, 4  ;;  %s267_s20 = int_to_ptr.hbm [resolvable:$true] %s266_s20 }
  0x39   : > { %8504 = dma.hbm_to_vmem [thread:$0]  (!%p8956_p0), %s252_s14, 1536, %s254_s30, [#allocation6], %s8842_s19, %s8842_s19, %s8843_s24  }
  0x3a   : > { %s8844_s22 = smov [#allocation8]   ;;  %s10632_s3 = sand.u32 1, %s8828_s26  }
  0x3b   : > { %s268_s10 = sshll.u32 %s8844_s22, 4  ;;  %s8469_s5 = smul.u32 30, %s10632_s3  ;;  %s269_s10 = int_to_ptr.vmem [resolvable:$true] %s268_s10 }
  0x3c   : > { %8507 = dma.hbm_to_vmem [thread:$0]  (!%p8956_p0), %s267_s20, 48, %s269_s10, [#allocation9]  }
  0x3d   : > { %s306_s8 = smul.u32 30, %s8832_s27  ;;  %s305_s9 = scalar_lea.vmem [#allocation11], %s8469_s5 }
  0x3e   : > { %s313_s1 = sshll.u32 %s305_s9, 4  ;;  %s8731_s5 = scalar_lea.hbm %s10605_s6, 150  ;;  %s314_s1 = int_to_ptr.vmem [resolvable:$true] %s313_s1 }
  0x3f   : > { %s309_s14 = scalar_lea.hbm %s10605_s6, %s306_s8 }
  0x40   : > { %s311_s17 = sshll.u32 %s309_s14, 4  ;;  %s312_s17 = int_to_ptr.hbm [resolvable:$true] %s311_s17 }
  0x41   : > { %s8724_s30 = sshra.s32 %s312_s17, 4  ;;  %s8725_s30 = int_to_ptr.hbm [resolvable:$true] %s8724_s30 }
  0x42   : > { %s8726_s19 = scalar_lea.hbm %s8725_s30, 30  ;;  %p8732_p0 = scmp.lt.s32.totalorder %s8725_s30, %s10605_s6 }
  0x43   : > { %p8727_p4 = scmp.ne.s32.totalorder %s8725_s30, %s8726_s19  ;;  %p8733_p9 = scmp.lt.s32.totalorder %s8731_s5, %s8726_s19 }
  0x45   : > { %p8729_p5 = pnand %p8727_p4, %p8638_p7  ;;  %p8734_p10 = por %p8733_p9, %p8732_p0 }
  0x47   : > { %p8730_p8 = pneg %p8729_p5 }
  0x49   : > { %p8735_p1 = pnand %p8734_p10, %p8730_p8 }
  0x4b   : > { %8738 = shalt.err (!%p8735_p1)
}
  0x4c   : > { %8514 = dma.hbm_to_vmem [thread:$0]  (!%p8965_p3), %s312_s17, 480, %s314_s1, %s8985_s16  }
  0x4d   : > { %322 = sbr.rel (%p8945_p13) target bundleno = 1079 (0x437), region = 48  ;;  %p10633_p7 = scmp.eq.s32.totalorder (!%p8945_p13), %s8906_s28, 0 }
  0x52   : > { %8799 = dma.done.wait (%p10633_p7), [#allocation3], 4864   ;;  %p10634_p2 = pmov %p10633_p7 }
  0x54   : > { %8801 = vsyncadd (%p10634_p2), [#allocation3], 4294962432  ;;  %p10635_p4 = pmov %p10634_p2 }
  0x55   : > { %p10636_p5 = pmov %p10634_p2 }
  0x56   : > { %8803 = dma.done.wait (%p10635_p4), [#allocation6], 1552  }
  0x57   : > { %8805 = vsyncadd (%p10636_p5), [#allocation6], 4294965744  ;;  %p10637_p8 = pmov %p10634_p2 }
  0x58   : > { %p10638_p3 = pmov %p10634_p2 }
  0x59   : > { %8807 = dma.done.wait (%p10637_p8), [#allocation9], 48  }
  0x5a   : > { %8809 = vsyncadd (%p10638_p3), [#allocation9], 4294967248  ;;  %s344_s15 = sand.u32 1, %s8906_s28   ;;  %s9042_s29 = sand.u32 1, %s8824_s25  }
  0x5b   : > { %s8470_s16 = smul.u32 4560, %s9042_s29  ;;  %s345_s11 = scalar_lea.sflag [#allocation3], %s344_s15 }
  0x5d   : > { %s9045_s18 = scalar_lea.vmem [#allocation10], %s8470_s16 }
  0x5e   : > { %8811 = dma.done.wait (%p8930_p6), %s345_s11, 73440  }
  0x5f   : > { %8813 = vsyncadd (%p8930_p6), %s345_s11, 4294893856  ;;  %v415_v0 = vld [vmem:[#allocation2 + $0x78] sm:$0xff]  ;;  %v414_v1 = vld [vmem:[#allocation2 + $0x70] sm:$0xff]  ;;  %vm452_vm0 = vcmask 1043456   ;;  %vm449_vm1 = vcmask 359424   ;;  %vm536_vm2 = vcmask 261120  }
  0x60   : > { %v431_v2 = vld [vmem:[#allocation2 + $0xf8] sm:$0xff]  ;;  %456 = vmatpush.msra.mxu0 %v415_v0  ;;  %v430_v3 = vld [vmem:[#allocation2 + $0xf0] sm:$0xff]  ;;  %v413_v4 = vld [vmem:[#allocation2 + $0x68] sm:$0xff]  ;;  %vm4067_vm3 = vcmask 1045504   ;;  %s8471_s22 = smul.u32 30, %s9042_s29  ;;  %vm5380_vm4 = vcmask 1041408  }
  0x61   : > { %476 = vmatpush.msra.mxu1 %v431_v2  ;;  %v429_v5 = vld [vmem:[#allocation2 + $0xe8] sm:$0xff]  ;;  %v412_v6 = vld [vmem:[#allocation2 + $0x60] sm:$0xff]  ;;  %v411_v8 = vld [vmem:[#allocation2 + $0x58] sm:$0xff]  ;;  %s8472_s9 = smul.u32 60, %s9042_s29  ;;  %vm5382_vm5 = vcmask 1045508   ;;  %s8774_s24 = scalar_lea.hbm %s10606_s7, 300 }
  0x62   : > { %457 = vmatpush.msra.mxu0 %v414_v1  ;;  %v428_v7 = vld [vmem:[#allocation2 + $0xe0] sm:$0xff]  ;;  %v427_v9 = vld [vmem:[#allocation2 + $0xd8] sm:$0xff]  ;;  %v437_v10 = vld [vmem:[#allocation2 + $0x128] sm:$0xf]  ;;  %s9634_s8 = scalar_lea.vmem [#allocation11], %s8471_s22  ;;  %s8467_s2 = smul.u32 60, %s8906_s28 }
  0x63   : > { %477 = vmatpush.msra.mxu1 %v430_v3  ;;  %v436_v11 = vld [vmem:[#allocation2 + $0x120] sm:$0xff]  ;;  %v410_v12 = vld [vmem:[#allocation2 + $0x50] sm:$0xff]  ;;  %5578 = vmatpush.msk.msra.mxu2 %vm452_vm0, %v437_v10  ;;  %v435_v14 = vld [vmem:[#allocation2 + $0x118] sm:$0xff]  ;;  %s9720_s1 = scalar_lea.vmem [#allocation12], %s8472_s9  ;;  %s5421_s28 = scalar_lea.sflag [#allocation4], %s9042_s29 }
  0x64   : > { %458 = vmatpush.msra.mxu0 %v413_v4  ;;  %v426_v13 = vld [vmem:[#allocation2 + $0xd0] sm:$0xff]  ;;  %v409_v15 = vld [vmem:[#allocation2 + $0x48] sm:$0xff]  ;;  %v399_v18 = vld [vmem:[%s10599_s0] sm:$0x3f]  ;;  %s5432_s17 = scalar_lea.hbm %s10606_s7, %s8467_s2  ;;  %s5434_s30 = sshll.u32 %s9720_s1, 4  ;;  %s5435_s30 = int_to_ptr.vmem [resolvable:$true] %s5434_s30 }
  0x65   : > { %478 = vmatpush.msra.mxu1 %v429_v5  ;;  %v425_v16 = vld [vmem:[#allocation2 + $0xc8] sm:$0xff]  ;;  %507 = vmatpush.msra.mxu2 %v436_v11  ;;  %v434_v17 = vld [vmem:[#allocation2 + $0x110] sm:$0xff]  ;;  %v408_v19 = vld [vmem:[#allocation2 + $0x40] sm:$0xff]  ;;  %443 = vst [vmem:[#allocation1] ss:$4 sm:$0xff] %v399_v18  ;;  %s5436_s19 = sshll.u32 %s5432_s17, 4  ;;  %s5437_s19 = int_to_ptr.hbm [resolvable:$true] %s5436_s19 }
  0x66   : > { %459 = vmatpush.msra.mxu0 %v412_v6  ;;  %v424_v20 = vld [vmem:[#allocation2 + $0xc0] sm:$0xff]  ;;  %v433_v21 = vld [vmem:[#allocation2 + $0x108] sm:$0xff]  ;;  %v407_v22 = vld [vmem:[#allocation2 + $0x38] sm:$0xff]  ;;  %s8768_s3 = sshra.s32 %s5437_s19, 4  ;;  %s8769_s3 = int_to_ptr.hbm [resolvable:$true] %s8768_s3 }
  0x67   : > { %479 = vmatpush.msra.mxu1 %v428_v7  ;;  %508 = vmatpush.msra.mxu2 %v435_v14  ;;  %v423_v23 = vld [vmem:[#allocation2 + $0xb8] sm:$0xff]  ;;  %v432_v24 = vld [vmem:[#allocation2 + $0x100] sm:$0xff]  ;;  %v406_v25 = vld [vmem:[#allocation2 + $0x30] sm:$0xff]  ;;  %s8770_s10 = scalar_lea.hbm %s8769_s3, 60  ;;  %p8775_p9 = scmp.lt.s32.totalorder %s8769_s3, %s10606_s7 }
  0x68   : > { %460 = vmatpush.msra.mxu0 %v411_v8  ;;  %v422_v26 = vld [vmem:[#allocation2 + $0xb0] sm:$0xff]  ;;  %v405_v27 = vld [vmem:[#allocation2 + $0x28] sm:$0xff]  ;;  %v404_v30 = vld [vmem:[#allocation2 + $0x20] sm:$0xff]  ;;  %p8771_p6 = scmp.ne.s32.totalorder %s8769_s3, %s8770_s10  ;;  %p8776_p10 = scmp.lt.s32.totalorder %s8774_s24, %s8770_s10 }
  0x69   : > { %480 = vmatpush.msra.mxu1 %v427_v9  ;;  %509 = vmatpush.msra.mxu2 %v434_v17  ;;  %v421_v28 = vld [vmem:[#allocation2 + $0xa8] sm:$0xff]  ;;  %v420_v31 = vld [vmem:[#allocation2 + $0xa0] sm:$0xff]  ;;  %v403_v32 = vld [vmem:[#allocation2 + $0x18] sm:$0xff] }
  0x6a   : > { %461 = vmatpush.msra.mxu0 %v410_v12  ;;  %v419_v33 = vld [vmem:[#allocation2 + $0x98] sm:$0xff]  ;;  %v402_v34 = vld [vmem:[#allocation2 + $0x10] sm:$0xff]  ;;  %v401_v36 = vld [vmem:[#allocation2 + $0x8] sm:$0xff]  ;;  %p8772_p13 = pnand %p8771_p6, %p8937_p11  ;;  %p8777_p1 = por %p8776_p10, %p8775_p9 }
  0x6b   : > { %481 = vmatpush.msra.mxu1 %v426_v13  ;;  %510 = vmatpush.msra.mxu2 %v433_v21  ;;  %v418_v35 = vld [vmem:[#allocation2 + $0x90] sm:$0xff]  ;;  %v417_v37 = vld [vmem:[#allocation2 + $0x88] sm:$0xff]  ;;  %v400_v38 = vld [vmem:[#allocation2] sm:$0xff] }
  0x6c   : > { %462 = vmatpush.msra.mxu0 %v409_v15  ;;  %v446_v29 = vld.sshfl [vmem:[#allocation1 + $0x10] sm:$0xff pattern:$0x73625140]  ;;  %v416_v39 = vld [vmem:[#allocation2 + $0x80] sm:$0xff]  ;;  %v524_v45 = vld [vmem:[#allocation7 + $0x40] sm:$0xff]  ;;  %p8773_p0 = pneg %p8772_p13 }
  0x6d   : > { %482 = vmatpush.msra.mxu1 %v425_v16  ;;  %511 = vmatpush.msra.mxu2 %v432_v24  ;;  %v444_v40 = vld.sshfl [vmem:[#allocation1] sm:$0xff pattern:$0x73625140]  ;;  %v445_v41 = vld.sshfl [vmem:[#allocation1 + $0x8] sm:$0xff pattern:$0x73625140] }
  0x6e   : > { %463 = vmatpush.msra.mxu0 %v408_v19  ;;  %5579 = vmatmul.msk.f32.vlgmr.msra.gmra.mxu2 %vm449_vm1, %v446_v29  ;;  %v525_v42 = vld [vmem:[#allocation7 + $0x48] sm:$0xff]  ;;  %v527_v43 = vld [vmem:[#allocation7 + $0x58] sm:$0xff]  ;;  %v522_v44 = vld [vmem:[#allocation7 + $0x30] sm:$0xff]  ;;  %p8778_p7 = pnand %p8777_p1, %p8773_p0 }
  0x6f   : > { %483 = vmatpush.msra.mxu1 %v424_v20  ;;  %552 = vmatpush.msra.mxu3 %v525_v42  ;;  %v519_v46 = vld [vmem:[#allocation7 + $0x18] sm:$0xff]  ;;  %v521_v47 = vld [vmem:[#allocation7 + $0x28] sm:$0xff]  ;;  %v516_v48 = vld [vmem:[#allocation7] sm:$0xff] }
  0x70   : > { %464 = vmatpush.msra.mxu0 %v407_v22  ;;  %592 = vmatpush.msrb.mxu2 %v527_v43  ;;  %v518_v49 = vld [vmem:[#allocation7 + $0x10] sm:$0xff]  ;;  %v523_v51 = vld [vmem:[#allocation7 + $0x38] sm:$0xff]  ;;  %v520_v52 = vld [vmem:[#allocation7 + $0x20] sm:$0xff] }
  0x71   : > { %484 = vmatpush.msra.mxu1 %v423_v23  ;;  %553 = vmatpush.msra.mxu3 %v522_v44  ;;  %v526_v50 = vld [vmem:[#allocation7 + $0x50] sm:$0xff]  ;;  %v517_v53 = vld [vmem:[#allocation7 + $0x8] sm:$0xff]  ;;  %v8572_v21 = vld [vmem:[#allocation5] ss:$0 sm:$0xff] }
  0x72   : > { %465 = vmatpush.msra.mxu0 %v406_v25  ;;  %593 = vmatpush.msrb.mxu2 %v524_v45  ;;  %v8107_v54 = vld [vmem:[%s9045_s18 + $0x694] sm:$0xf]  ;;  %v6427_v55 = vld [vmem:[%s9045_s18 + $0x708] sm:$0xf0]  ;;  %v8077_v56 = vld [vmem:[%s9045_s18 + $0x5a4] sm:$0xf] }
  0x73   : > { %485 = vmatpush.msra.mxu1 %v422_v26  ;;  %554 = vmatpush.msra.mxu3 %v519_v46  ;;  %v6430_v57 = vor.u32 %v8107_v54, %v6427_v55  ;;  %v6307_v58 = vld [vmem:[%s9045_s18 + $0x618] sm:$0xf0]  ;;  %v8347_v59 = vld [vmem:[%s9045_s18 + $0xe14] sm:$0xf]  ;;  %v7387_v62 = vld [vmem:[%s9045_s18 + $0xe88] sm:$0xf0] }
  0x74   : > { %466 = vmatpush.msra.mxu0 %v405_v27  ;;  %594 = vmatpush.msrb.mxu2 %v521_v47  ;;  %v6310_v60 = vor.u32 %v8077_v56, %v6307_v58  ;;  %v8047_v61 = vld [vmem:[%s9045_s18 + $0x4b4] sm:$0xf]  ;;  %v6187_v63 = vld [vmem:[%s9045_s18 + $0x528] sm:$0xf0]  ;;  %v7390_v0 = vor.u32 %v8347_v59, %v7387_v62  ;;  %v8317_v1 = vld [vmem:[%s9045_s18 + $0xd24] sm:$0xf] }
  0x75   : > { %486 = vmatpush.msra.mxu1 %v421_v28  ;;  %555 = vmatpush.msra.mxu3 %v516_v48  ;;  %v7267_v2 = vld [vmem:[%s9045_s18 + $0xd98] sm:$0xf0]  ;;  %v6190_v4 = vor.u32 %v8047_v61, %v6187_v63  ;;  %v8017_v5 = vld [vmem:[%s9045_s18 + $0x3c4] sm:$0xf]  ;;  %v8287_v6 = vld [vmem:[%s9045_s18 + $0xc34] sm:$0xf] }
  0x76   : > { %467 = vmatpush.msra.mxu0 %v404_v30  ;;  %595 = vmatpush.msrb.mxu2 %v518_v49  ;;  %v7270_v3 = vor.u32 %v8317_v1, %v7267_v2  ;;  %v7147_v7 = vld [vmem:[%s9045_s18 + $0xca8] sm:$0xf0]  ;;  %v6067_v8 = vld [vmem:[%s9045_s18 + $0x438] sm:$0xf0]  ;;  %v7385_v9 = vld [vmem:[%s9045_s18 + $0xe10] sm:$0xf] }
  0x77   : > { %487 = vmatpush.msra.mxu1 %v420_v31  ;;  %572 = vmatpush.msrb.mxu3 %v526_v50  ;;  %v8362_v10 = vld [vmem:[%s9045_s18 + $0xe84] sm:$0xf0]  ;;  %v7150_v12 = vor.u32 %v8287_v6, %v7147_v7  ;;  %v8257_v13 = vld [vmem:[%s9045_s18 + $0xb44] sm:$0xf]  ;;  %v6070_v14 = vor.u32 %v8017_v5, %v6067_v8  ;;  %v7027_v15 = vld [vmem:[%s9045_s18 + $0xbb8] sm:$0xf0] }
  0x78   : > { %468 = vmatpush.msra.mxu0 %v403_v32  ;;  %v7386_v11 = vor.u32 %v8362_v10, %v7385_v9  ;;  %v7265_v16 = vld [vmem:[%s9045_s18 + $0xd20] sm:$0xf]  ;;  %v8332_v17 = vld [vmem:[%s9045_s18 + $0xd94] sm:$0xf0]  ;;  %v7987_v18 = vld [vmem:[%s9045_s18 + $0x2d4] sm:$0xf]  ;;  %v7030_v22 = vor.u32 %v8257_v13, %v7027_v15 }
  0x79   : > { %488 = vmatpush.msra.mxu1 %v419_v33  ;;  %573 = vmatpush.msrb.mxu3 %v523_v51  ;;  %v5947_v19 = vld [vmem:[%s9045_s18 + $0x348] sm:$0xf0]  ;;  %v7266_v20 = vor.u32 %v8332_v17, %v7265_v16  ;;  %v7145_v23 = vld [vmem:[%s9045_s18 + $0xc30] sm:$0xf]  ;;  %v8302_v24 = vld [vmem:[%s9045_s18 + $0xca4] sm:$0xf0] }
  0x7a   : > { %469 = vmatpush.msra.mxu0 %v402_v34  ;;  %4171 = vmatpush.bf16.msra.mxu2 %v7386_v11  ;;  %v5950_v25 = vor.u32 %v7987_v18, %v5947_v19  ;;  %v8227_v26 = vld [vmem:[%s9045_s18 + $0xa54] sm:$0xf]  ;;  %v6907_v27 = vld [vmem:[%s9045_s18 + $0xac8] sm:$0xf0]  ;;  %v7146_v28 = vor.u32 %v8302_v24, %v7145_v23  ;;  %v7957_v29 = vld [vmem:[%s9045_s18 + $0x1e4] sm:$0xf] }
  0x7b   : > { %489 = vmatpush.msra.mxu1 %v418_v35  ;;  %574 = vmatpush.msrb.mxu3 %v520_v52  ;;  %v5827_v30 = vld [vmem:[%s9045_s18 + $0x258] sm:$0xf0]  ;;  %v7025_v31 = vld [vmem:[%s9045_s18 + $0xb40] sm:$0xf]  ;;  %v8272_v34 = vld [vmem:[%s9045_s18 + $0xbb4] sm:$0xf0] }
  0x7c   : > { %470 = vmatpush.msra.mxu0 %v401_v36  ;;  %v6425_v36 = vld [vmem:[%s9045_s18 + $0x690] sm:$0xf]  ;;  %v8197_v42 = vld [vmem:[%s9045_s18 + $0x964] sm:$0xf]  ;;  %v6787_v43 = vld [vmem:[%s9045_s18 + $0x9d8] sm:$0xf0]  ;;  %v7026_v44 = vor.u32 %v8272_v34, %v7025_v31 }
  0x7d   : > { %490 = vmatpush.msra.mxu1 %v417_v37  ;;  %575 = vmatpush.msrb.mxu3 %v517_v53  ;;  %v8122_v37 = vld [vmem:[%s9045_s18 + $0x704] sm:$0xf0]  ;;  %v5707_v46 = vld [vmem:[%s9045_s18 + $0x168] sm:$0xf0]  ;;  %v6905_v47 = vld [vmem:[%s9045_s18 + $0xa50] sm:$0xf]  ;;  %v6790_v53 = vor.u32 %v8197_v42, %v6787_v43 }
  0x7e   : > { %471 = vmatpush.msra.mxu0 %v400_v38  ;;  %4172 = vmatpush.bf16.msra.mxu2 %v7266_v20  ;;  %v6910_v38 = vor.u32 %v8227_v26, %v6907_v27  ;;  %v8242_v48 = vld [vmem:[%s9045_s18 + $0xac4] sm:$0xf0]  ;;  %v6426_v49 = vor.u32 %v8122_v37, %v6425_v36  ;;  %v6305_v51 = vld [vmem:[%s9045_s18 + $0x5a0] sm:$0xf]  ;;  %v8092_v52 = vld [vmem:[%s9045_s18 + $0x614] sm:$0xf0] }
  0x7f   : > { %491 = vmatpush.msra.mxu1 %v416_v39  ;;  %472 = vmatmul.f32.vlgmr.msra.gmra.mxu0 %v444_v40  ;;  %v5830_v40 = vor.u32 %v7957_v29, %v5827_v30  ;;  %v7897_v55 = vld [vmem:[%s9045_s18 + $0x4] sm:$0xf]  ;;  %v8167_v56 = vld [vmem:[%s9045_s18 + $0x874] sm:$0xf]  ;;  %v6906_v58 = vor.u32 %v8242_v48, %v6905_v47  ;;  %v5587_v59 = vld [vmem:[%s9045_s18 + $0x78] sm:$0xf0] }
  0x80   : > { %492 = vmatmul.f32.vlgmr.msra.gmra.mxu1 %v445_v41  ;;  %4210 = vmatpush.bf16.msrb.mxu0 %v7390_v0  ;;  %v7927_v41 = vld [vmem:[%s9045_s18 + $0xf4] sm:$0xf]  ;;  %v8212_v61 = vld [vmem:[%s9045_s18 + $0x9d4] sm:$0xf0]  ;;  %v8363_v63 = vld [vmem:[%s9045_s18 + $0xe8c] sm:$0xf0]  ;;  %v6306_v0 = vor.u32 %v8092_v52, %v6305_v51 }
  0x81   : > { %4197 = vmatpush.bf16.msrb.mxu1 %v6430_v57  ;;  %v5710_v54 = vor.u32 %v7927_v41, %v5707_v46  ;;  %v6667_v57 = vld [vmem:[%s9045_s18 + $0x8e8] sm:$0xf0]  ;;  %v7393_v62 = vld [vmem:[%s9045_s18 + $0xe18] sm:$0xf]  ;;  %v6185_v1 = vld [vmem:[%s9045_s18 + $0x4b0] sm:$0xf] }
  0x82   : > { %4173 = vmatpush.bf16.msra.mxu2 %v7146_v28  ;;  %v8062_v2 = vld [vmem:[%s9045_s18 + $0x524] sm:$0xf0]  ;;  %v8137_v5 = vld [vmem:[%s9045_s18 + $0x784] sm:$0xf]  ;;  %v6547_v6 = vld [vmem:[%s9045_s18 + $0x7f8] sm:$0xf0]  ;;  %v7394_v8 = vor.u32 %v8363_v63, %v7393_v62 }
  0x83   : > { %v8108_v9 = vld [vmem:[%s9045_s18 + $0x69c] sm:$0xf]  ;;  %v6435_v10 = vld [vmem:[%s9045_s18 + $0x710] sm:$0xf0]  ;;  %v7273_v11 = vld [vmem:[%s9045_s18 + $0xd28] sm:$0xf]  ;;  %v6186_v13 = vor.u32 %v8062_v2, %v6185_v1  ;;  %v6550_v16 = vor.u32 %v8137_v5, %v6547_v6 }
  0x84   : > { %4211 = vmatpush.bf16.msrb.mxu0 %v7270_v3  ;;  %v6670_v3 = vor.u32 %v8167_v56, %v6667_v57  ;;  %v8032_v15 = vld [vmem:[%s9045_s18 + $0x434] sm:$0xf0]  ;;  %v6438_v17 = vor.u32 %v8108_v9, %v6435_v10  ;;  %v8078_v19 = vld [vmem:[%s9045_s18 + $0x5ac] sm:$0xf]  ;;  %v6315_v20 = vld [vmem:[%s9045_s18 + $0x620] sm:$0xf0] }
  0x85   : > { %4198 = vmatpush.bf16.msrb.mxu1 %v6310_v60  ;;  %v6785_v60 = vld [vmem:[%s9045_s18 + $0x960] sm:$0xf]  ;;  %v5945_v24 = vld [vmem:[%s9045_s18 + $0x2d0] sm:$0xf]  ;;  %v6318_v26 = vor.u32 %v8078_v19, %v6315_v20  ;;  %v7033_v28 = vld [vmem:[%s9045_s18 + $0xb48] sm:$0xf] }
  0x86   : > { %4174 = vmatpush.bf16.msra.mxu2 %v7026_v44  ;;  %v6786_v7 = vor.u32 %v8212_v61, %v6785_v60  ;;  %v8273_v29 = vld [vmem:[%s9045_s18 + $0xbbc] sm:$0xf0]  ;;  %v6913_v34 = vld [vmem:[%s9045_s18 + $0xa58] sm:$0xf]  ;;  %v5705_v41 = vld [vmem:[%s9045_s18 + $0xf0] sm:$0xf] }
  0x87   : > { %v5825_v31 = vld [vmem:[%s9045_s18 + $0x1e0] sm:$0xf]  ;;  %v7942_v42 = vld [vmem:[%s9045_s18 + $0x164] sm:$0xf0]  ;;  %v6665_v44 = vld [vmem:[%s9045_s18 + $0x870] sm:$0xf] }
  0x88   : > { %4212 = vmatpush.bf16.msrb.mxu0 %v7150_v12  ;;  %v8333_v12 = vld [vmem:[%s9045_s18 + $0xd9c] sm:$0xf0]  ;;  %v5706_v43 = vor.u32 %v7942_v42, %v5705_v41  ;;  %v8048_v46 = vld [vmem:[%s9045_s18 + $0x4bc] sm:$0xf]  ;;  %v6195_v48 = vld [vmem:[%s9045_s18 + $0x530] sm:$0xf0] }
  0x89   : > { %4199 = vmatpush.bf16.msrb.mxu1 %v6190_v4  ;;  %v5590_v4 = vor.u32 %v7897_v55, %v5587_v59  ;;  %v7274_v18 = vor.u32 %v8333_v12, %v7273_v11  ;;  %v8183_v51 = vld [vmem:[%s9045_s18 + $0x8ec] sm:$0xf0]  ;;  %v8437_v55 = vld [vmem:[%s9045_s18 + $0x10e4] sm:$0xf]  ;;  %v6545_v57 = vld [vmem:[%s9045_s18 + $0x780] sm:$0xf] }
  0x8a   : > { %4175 = vmatpush.bf16.msra.mxu2 %v6906_v58  ;;  %v8152_v58 = vld [vmem:[%s9045_s18 + $0x7f4] sm:$0xf0]  ;;  %v7747_v59 = vld [vmem:[%s9045_s18 + $0x1158] sm:$0x30]  ;;  %v8018_v62 = vld [vmem:[%s9045_s18 + $0x3cc] sm:$0xf] }
  0x8b   : > { %v6546_v60 = vor.u32 %v8152_v58, %v6545_v57  ;;  %v7750_v61 = vor.u32 %v8437_v55, %v7747_v59  ;;  %v6075_v63 = vld [vmem:[%s9045_s18 + $0x440] sm:$0xf0]  ;;  %v7745_v1 = vld [vmem:[%s9045_s18 + $0x10e0] sm:$0xf]  ;;  %v8452_v2 = vld [vmem:[%s9045_s18 + $0x1154] sm:$0x30] }
  0x8c   : > { %4213 = vmatpush.bf16.msrb.mxu0 %v7030_v22  ;;  %v8303_v22 = vld [vmem:[%s9045_s18 + $0xcac] sm:$0xf0]  ;;  %v7746_v5 = vor.u32 %v8452_v2, %v7745_v1  ;;  %v8153_v6 = vld [vmem:[%s9045_s18 + $0x7fc] sm:$0xf0]  ;;  %v8407_v9 = vld [vmem:[%s9045_s18 + $0xff4] sm:$0xf] }
  0x8d   : > { %4200 = vmatpush.bf16.msrb.mxu1 %v6070_v14  ;;  %v6065_v14 = vld [vmem:[%s9045_s18 + $0x3c0] sm:$0xf]  ;;  %v7627_v10 = vld [vmem:[%s9045_s18 + $0x1068] sm:$0xf0]  ;;  %v7988_v12 = vld [vmem:[%s9045_s18 + $0x2dc] sm:$0xf] }
  0x8e   : > { %4176 = vmatpush.bf16.msra.mxu2 %v6786_v7  ;;  %v6066_v23 = vor.u32 %v8032_v15, %v6065_v14  ;;  %v7630_v11 = vor.u32 %v8407_v9, %v7627_v10  ;;  %v7625_v15 = vld [vmem:[%s9045_s18 + $0xff0] sm:$0xf]  ;;  %v7507_v19 = vld [vmem:[%s9045_s18 + $0xf78] sm:$0xf0]  ;;  %v7958_v20 = vld [vmem:[%s9045_s18 + $0x1ec] sm:$0xf] }
  0x8f   : > { %v8123_v59 = vld [vmem:[%s9045_s18 + $0x70c] sm:$0xf0]  ;;  %v8034_v10 = vld [vmem:[%s9045_s18 + $0x444] sm:$0xf0] }
  0x90   : > { %4214 = vmatpush.bf16.msrb.mxu0 %v6910_v38  ;;  %v6793_v38 = vld [vmem:[%s9045_s18 + $0x968] sm:$0xf]  ;;  %v6081_v9 = vld [vmem:[%s9045_s18 + $0x3d0] sm:$0xf] }
  0x91   : > { %4201 = vmatpush.bf16.msrb.mxu1 %v5950_v25  ;;  %v8002_v25 = vld [vmem:[%s9045_s18 + $0x344] sm:$0xf0] }
  0x92   : > { %v5946_v30 = vor.u32 %v8002_v25, %v5945_v24  ;;  %v8392_v24 = vld [vmem:[%s9045_s18 + $0xf74] sm:$0xf0] }
  0x94   : > { %4215 = vmatpush.bf16.msrb.mxu0 %v6790_v53  ;;  %v5585_v53 = vld [vmem:[%s9045_s18] sm:$0xf] }
  0x95   : > { %4202 = vmatpush.bf16.msrb.mxu1 %v5830_v40 }
  0x98   : > { %4216 = vmatpush.bf16.msrb.mxu0 %v6670_v3  ;;  %v6553_v3 = vld [vmem:[%s9045_s18 + $0x788] sm:$0xf] }
  0x99   : > { %4203 = vmatpush.bf16.msrb.mxu1 %v5710_v54  ;;  %v7912_v54 = vld [vmem:[%s9045_s18 + $0x74] sm:$0xf0]  ;;  %v6554_v7 = vor.u32 %v8153_v6, %v6553_v3 }
  0x9a   : > { %v5586_v56 = vor.u32 %v7912_v54, %v5585_v53 }
  0x9c   : > { %4217 = vmatpush.bf16.msrb.mxu0 %v6550_v16  ;;  %v8422_v16 = vld [vmem:[%s9045_s18 + $0x1064] sm:$0xf0] }
  0x9d   : > { %4204 = vmatpush.bf16.msrb.mxu1 %v5590_v4  ;;  %v4072_v4 = vsel %vm4067_vm3, %v7750_v61, 0  ;;  %v8064_v61 = vld [vmem:[%s9045_s18 + $0x534] sm:$0xf0] }
  0xa0   : > { %4275 = vmatpush.bf16.msra.mxu0 %v6438_v17  ;;  %v7626_v17 = vor.u32 %v8422_v16, %v7625_v15  ;;  %v6082_v16 = vor.u32 %v8034_v10, %v6081_v9  ;;  %v6915_v9 = vld [vmem:[%s9045_s18 + $0xad0] sm:$0xf0]  ;;  %v8289_v10 = vld [vmem:[%s9045_s18 + $0xc44] sm:$0xf] }
  0xa1   : > { %4249 = vmatpush.bf16.msra.mxu1 %v7394_v8  ;;  %v4069_v8 = vsel %vm4067_vm3, %v7746_v5, 0  ;;  %v6313_v5 = vld [vmem:[%s9045_s18 + $0x5a8] sm:$0xf] }
  0xa4   : > { %4276 = vmatpush.bf16.msra.mxu0 %v6318_v26 }
  0xa5   : > { %4250 = vmatpush.bf16.msra.mxu1 %v7274_v18  ;;  %v8377_v18 = vld [vmem:[%s9045_s18 + $0xf04] sm:$0xf] }
  0xf1   : > { %v513_v39 = vpop.f32.mrf.mxu2 }
  0xfc   : > { %v473_v32 = vpop.f32.mrf.mxu0 }
  0xfd   : > { %v493_v33 = vpop.f32.mrf.mxu1  ;;  %v474_v35 = vadd.f32 %v8572_v21, %v473_v32  ;;  %v7153_v21 = vld [vmem:[%s9045_s18 + $0xc38] sm:$0xf] }
  0xfe   : > { %v7154_v27 = vor.u32 %v8303_v22, %v7153_v21  ;;  %v7972_v32 = vld [vmem:[%s9045_s18 + $0x254] sm:$0xf0]  ;;  %v7510_v21 = vor.u32 %v8377_v18, %v7507_v19  ;;  %v5835_v22 = vld [vmem:[%s9045_s18 + $0x260] sm:$0xf0]  ;;  %v8063_v18 = vld [vmem:[%s9045_s18 + $0x52c] sm:$0xf0] }
  0xff   : > { %v494_v45 = vadd.f32 %v493_v33, %v474_v35  ;;  %v7034_v33 = vor.u32 %v8273_v29, %v7033_v28  ;;  %v8243_v35 = vld [vmem:[%s9045_s18 + $0xacc] sm:$0xf0]  ;;  %v5826_v36 = vor.u32 %v7972_v32, %v5825_v31  ;;  %v5838_v25 = vor.u32 %v7958_v20, %v5835_v22  ;;  %v5715_v28 = vld [vmem:[%s9045_s18 + $0x170] sm:$0xf0]  ;;  %v5595_v31 = vld [vmem:[%s9045_s18 + $0x80] sm:$0xf0] }
 0x100   : > { %4251 = vmatpush.bf16.msra.mxu1 %v7154_v27  ;;  %v6914_v37 = vor.u32 %v8243_v35, %v6913_v34  ;;  %v7928_v27 = vld [vmem:[%s9045_s18 + $0xfc] sm:$0xf]  ;;  %v7753_v35 = vld [vmem:[%s9045_s18 + $0x10e8] sm:$0xf]  ;;  %v5961_v22 = vld [vmem:[%s9045_s18 + $0x2e0] sm:$0xf] }
 0x101   : > { %v514_v50 = vadd.f32 %v513_v39, %v494_v45  ;;  %v8213_v39 = vld [vmem:[%s9045_s18 + $0x9dc] sm:$0xf0]  ;;  %v8182_v45 = vld [vmem:[%s9045_s18 + $0x8e4] sm:$0xf0]  ;;  %v5718_v29 = vor.u32 %v7928_v27, %v5715_v28  ;;  %v8348_v19 = vld [vmem:[%s9045_s18 + $0xe1c] sm:$0xf] }
 0x102   : > { %v6794_v40 = vor.u32 %v8213_v39, %v6793_v38  ;;  %v6666_v47 = vor.u32 %v8182_v45, %v6665_v44  ;;  %v6441_v39 = vld [vmem:[%s9045_s18 + $0x6a0] sm:$0xf]  ;;  %v6321_v44 = vld [vmem:[%s9045_s18 + $0x5b0] sm:$0xf]  ;;  %v8094_v45 = vld [vmem:[%s9045_s18 + $0x624] sm:$0xf0] }
 0x103   : > { %5580 = vmatmul.msk.f32.vlgmr.msra.gmra.mxu3 %vm536_vm2, %v514_v50  ;;  %5582 = vmatmul.msk.f32.vlgmr.msrb.gmra.mxu2 %vm536_vm2, %v514_v50  ;;  %v6322_v55 = vor.u32 %v8094_v45, %v6321_v44  ;;  %v7155_v44 = vld [vmem:[%s9045_s18 + $0xcb0] sm:$0xf0]  ;;  %v5721_v45 = vld [vmem:[%s9045_s18 + $0x100] sm:$0xf] }
 0x104   : > { %4158 = vmatpush.bf16.msra.mxu3 %v6426_v49  ;;  %4252 = vmatpush.bf16.msra.mxu1 %v7034_v33  ;;  %v6673_v49 = vld [vmem:[%s9045_s18 + $0x878] sm:$0xf]  ;;  %v528_v33 = vld [vmem:[#allocation8] sm:$0x7] }
 0x105   : > { %4177 = vmatpush.bf16.msra.mxu2 %v6666_v47  ;;  %v6674_v52 = vor.u32 %v8183_v51, %v6673_v49  ;;  %v530_v34 = vperm.slane %v528_v33, 0  ;;  %v531_v47 = vperm.slane %v528_v33, 1  ;;  %v7633_v49 = vld [vmem:[%s9045_s18 + $0xff8] sm:$0xf]  ;;  %v7761_v51 = vld [vmem:[%s9045_s18 + $0x10f0] sm:$0xf] }
 0x106   : > { %v532_v53 = vperm.slane %v528_v33, 2  ;;  %v8318_v33 = vld [vmem:[%s9045_s18 + $0xd2c] sm:$0xf] }
 0x108   : > { %4159 = vmatpush.bf16.msra.mxu3 %v6306_v0  ;;  %4253 = vmatpush.bf16.msra.mxu1 %v6914_v37  ;;  %v6078_v0 = vor.u32 %v8018_v62, %v6075_v63  ;;  %v7513_v63 = vld [vmem:[%s9045_s18 + $0xf08] sm:$0xf] }
 0x109   : > { %4178 = vmatpush.bf16.msra.mxu2 %v6546_v60  ;;  %v6201_v60 = vld [vmem:[%s9045_s18 + $0x4c0] sm:$0xf] }
 0x10b   : > { %5581 = vmatmul.msk.f32.vlgmr.msrb.gmra.mxu3 %vm536_vm2, %v514_v50  ;;  %v6198_v50 = vor.u32 %v8048_v46, %v6195_v48 }
 0x10c   : > { %4160 = vmatpush.bf16.msra.mxu3 %v6186_v13  ;;  %4254 = vmatpush.bf16.msra.mxu1 %v6794_v40  ;;  %v5955_v13 = vld [vmem:[%s9045_s18 + $0x350] sm:$0xf0]  ;;  %v8124_v40 = vld [vmem:[%s9045_s18 + $0x714] sm:$0xf0] }
 0x10d   : > { %4277 = vmatpush.bf16.msra.mxu0 %v6198_v50  ;;  %4189 = vmatpush.bf16.msrb.mxu2 %v4069_v8  ;;  %v5958_v14 = vor.u32 %v7988_v12, %v5955_v13  ;;  %v8423_v50 = vld [vmem:[%s9045_s18 + $0x106c] sm:$0xf0]  ;;  %v8093_v8 = vld [vmem:[%s9045_s18 + $0x61c] sm:$0xf0] }
 0x10e   : > { %v7634_v57 = vor.u32 %v8423_v50, %v7633_v49  ;;  %v7641_v13 = vld [vmem:[%s9045_s18 + $0x1000] sm:$0xf]  ;;  %v6314_v15 = vor.u32 %v8093_v8, %v6313_v5  ;;  %v7403_v49 = vld [vmem:[%s9045_s18 + $0xe98] sm:$0xf0]  ;;  %v5833_v50 = vld [vmem:[%s9045_s18 + $0x1e8] sm:$0xf] }
 0x10f   : > { %v8228_v8 = vld [vmem:[%s9045_s18 + $0xa5c] sm:$0xf] }
 0x110   : > { %4161 = vmatpush.bf16.msra.mxu3 %v6066_v23  ;;  %4255 = vmatpush.bf16.msra.mxu1 %v6674_v52  ;;  %v7505_v23 = vld [vmem:[%s9045_s18 + $0xf00] sm:$0xf]  ;;  %v8454_v52 = vld [vmem:[%s9045_s18 + $0x1164] sm:$0x30] }
 0x111   : > { %4278 = vmatpush.bf16.msra.mxu0 %v6078_v0  ;;  %4190 = vmatpush.bf16.msrb.mxu2 %v7626_v17  ;;  %v7506_v26 = vor.u32 %v8392_v24, %v7505_v23  ;;  %v8393_v0 = vld [vmem:[%s9045_s18 + $0xf7c] sm:$0xf0]  ;;  %v7762_v1 = vor.u32 %v8454_v52, %v7761_v51  ;;  %v6193_v17 = vld [vmem:[%s9045_s18 + $0x4b8] sm:$0xf] }
 0x112   : > { %v8004_v24 = vld [vmem:[%s9045_s18 + $0x354] sm:$0xf0]  ;;  %v6194_v27 = vor.u32 %v8063_v18, %v6193_v17  ;;  %v6918_v18 = vor.u32 %v8228_v8, %v6915_v9  ;;  %v8079_v8 = vld [vmem:[%s9045_s18 + $0x5b4] sm:$0xf] }
 0x113   : > { %v4081_v12 = vsel %vm4067_vm3, %v7762_v1, 0 }
 0x114   : > { %4162 = vmatpush.bf16.msra.mxu3 %v5946_v30  ;;  %4256 = vmatpush.bf16.msra.mxu1 %v6554_v7  ;;  %v7898_v30 = vld [vmem:[%s9045_s18 + $0xc] sm:$0xf] }
 0x115   : > { %4279 = vmatpush.bf16.msra.mxu0 %v5958_v14  ;;  %4191 = vmatpush.bf16.msrb.mxu2 %v7506_v26  ;;  %v5598_v32 = vor.u32 %v7898_v30, %v5595_v31  ;;  %v8424_v14 = vld [vmem:[%s9045_s18 + $0x1074] sm:$0xf0]  ;;  %v8394_v26 = vld [vmem:[%s9045_s18 + $0xf84] sm:$0xf0]  ;;  %v5962_v31 = vor.u32 %v8004_v24, %v5961_v22  ;;  %v8198_v22 = vld [vmem:[%s9045_s18 + $0x96c] sm:$0xf] }
 0x116   : > { %v7642_v23 = vor.u32 %v8424_v14, %v7641_v13  ;;  %v7755_v13 = vld [vmem:[%s9045_s18 + $0x1160] sm:$0x30] }
 0x118   : > { %4163 = vmatpush.bf16.msra.mxu3 %v5826_v36  ;;  %v8453_v36 = vld [vmem:[%s9045_s18 + $0x115c] sm:$0x30] }
 0x119   : > { %4280 = vmatpush.bf16.msra.mxu0 %v5838_v25  ;;  %v7754_v41 = vor.u32 %v8453_v36, %v7753_v35  ;;  %v7521_v25 = vld [vmem:[%s9045_s18 + $0xf10] sm:$0xf] }
 0x11a   : > { %v7522_v35 = vor.u32 %v8394_v26, %v7521_v25  ;;  %v5841_v36 = vld [vmem:[%s9045_s18 + $0x1f0] sm:$0xf]  ;;  %v8259_v26 = vld [vmem:[%s9045_s18 + $0xb54] sm:$0xf] }
 0x11b   : > { %v4075_v48 = vsel %vm4067_vm3, %v7754_v41, 0  ;;  %v8003_v41 = vld [vmem:[%s9045_s18 + $0x34c] sm:$0xf0] }
 0x11c   : > { %4164 = vmatpush.bf16.msra.mxu3 %v5706_v43  ;;  %v6442_v43 = vor.u32 %v8124_v40, %v6441_v39  ;;  %v5953_v40 = vld [vmem:[%s9045_s18 + $0x2d8] sm:$0xf] }
 0x11d   : > { %4281 = vmatpush.bf16.msra.mxu0 %v5718_v29  ;;  %v6073_v29 = vld [vmem:[%s9045_s18 + $0x3c8] sm:$0xf]  ;;  %v5954_v51 = vor.u32 %v8003_v41, %v5953_v40  ;;  %v6923_v41 = vld [vmem:[%s9045_s18 + $0xad8] sm:$0xf0] }
 0x120   : > { %4165 = vmatpush.bf16.msra.mxu3 %v5586_v56  ;;  %v6433_v56 = vld [vmem:[%s9045_s18 + $0x698] sm:$0xf] }
 0x121   : > { %4282 = vmatpush.bf16.msra.mxu0 %v5598_v32  ;;  %v6434_v3 = vor.u32 %v8123_v59, %v6433_v56  ;;  %v8033_v32 = vld [vmem:[%s9045_s18 + $0x43c] sm:$0xf0]  ;;  %v7035_v59 = vld [vmem:[%s9045_s18 + $0xbc0] sm:$0xf0] }
 0x124   : > { %4228 = vmatpush.bf16.msrb.mxu3 %v4072_v4  ;;  %v6202_v4 = vor.u32 %v8064_v61, %v6201_v60  ;;  %v5601_v60 = vld [vmem:[%s9045_s18 + $0x10] sm:$0xf]  ;;  %v7914_v61 = vld [vmem:[%s9045_s18 + $0x84] sm:$0xf0] }
 0x125   : > { %v5602_v5 = vor.u32 %v7914_v61, %v5601_v60  ;;  %v7401_v60 = vld [vmem:[%s9045_s18 + $0xe20] sm:$0xf]  ;;  %v8364_v61 = vld [vmem:[%s9045_s18 + $0xe94] sm:$0xf0] }
 0x128   : > { %4229 = vmatpush.bf16.msrb.mxu3 %v7630_v11  ;;  %v7514_v11 = vor.u32 %v8393_v0, %v7513_v63  ;;  %v7283_v63 = vld [vmem:[%s9045_s18 + $0xda8] sm:$0xf0] }
 0x12c   : > { %4230 = vmatpush.bf16.msrb.mxu3 %v7510_v21  ;;  %v7395_v21 = vld [vmem:[%s9045_s18 + $0xe90] sm:$0xf0] }
 0x12d   : > { %v7398_v28 = vor.u32 %v8348_v19, %v7395_v21  ;;  %v5593_v19 = vld [vmem:[%s9045_s18 + $0x8] sm:$0xf]  ;;  %v7913_v21 = vld [vmem:[%s9045_s18 + $0x7c] sm:$0xf0] }
 0x186   : > { %v557_v37 = vpop.f32.mrf.mxu3  ;;  %v597_v62 = vpop.f32.mrf.mxu2 }
 0x187   : > { %v558_v38 = vadd.f32 %v557_v37, %v530_v34  ;;  %v598_v6 = vadd.f32 %v597_v62, %v532_v53  ;;  %v7275_v34 = vld [vmem:[%s9045_s18 + $0xda0] sm:$0xf0]  ;;  %v7974_v37 = vld [vmem:[%s9045_s18 + $0x264] sm:$0xf0]  ;;  %v7973_v53 = vld [vmem:[%s9045_s18 + $0x25c] sm:$0xf0] }
 0x188   : > { %v7278_v39 = vor.u32 %v8318_v33, %v7275_v34  ;;  %v8319_v62 = vld [vmem:[%s9045_s18 + $0xd34] sm:$0xf]  ;;  %v5834_v1 = vor.u32 %v7973_v53, %v5833_v50  ;;  %v7409_v33 = vld [vmem:[%s9045_s18 + $0xe28] sm:$0xf]  ;;  %v8365_v34 = vld [vmem:[%s9045_s18 + $0xe9c] sm:$0xf0] }
 0x189   : > { %v600_v42 = vmax.f32 %v558_v38, 0.0  ;;  %v602_v20 = vmax.f32 %v598_v6, 0.0  ;;  %v6074_v38 = vor.u32 %v8033_v32, %v6073_v29  ;;  %v7286_v6 = vor.u32 %v8319_v62, %v7283_v63  ;;  %v7523_v29 = vld [vmem:[%s9045_s18 + $0xf88] sm:$0xf0]  ;;  %v8199_v53 = vld [vmem:[%s9045_s18 + $0x974] sm:$0xf] }
 0x18a   : > { %v7169_v63 = vld [vmem:[%s9045_s18 + $0xc48] sm:$0xf] }
 0x18b   : > { %v9175_v46 = vpack.c.bf16 %v600_v42, %v600_v42  ;;  %v9210_v30 = vpack.c.bf16 %v602_v20, %v602_v20  ;;  %v5842_v42 = vor.u32 %v7974_v37, %v5841_v36 }
 0x18d   : > { %4166 = vmatmul.bf16.vlgmr.msra.gmra.mxu3 %v9175_v46  ;;  %4205 = vmatmul.bf16.vlgmr.msrb.gmra.mxu1 %v9175_v46 }
 0x18e   : > { %4314 = vmatpush.bf16.msrb.mxu1 %v6442_v43  ;;  %v577_v54 = vpop.f32.mrf.mxu3  ;;  %4267 = vmatpush.bf16.msra.mxu3 %v4075_v48  ;;  %v8288_v43 = vld [vmem:[%s9045_s18 + $0xc3c] sm:$0xf]  ;;  %v8349_v48 = vld [vmem:[%s9045_s18 + $0xe24] sm:$0xf] }
 0x18f   : > { %v578_v58 = vadd.f32 %v577_v54, %v531_v47  ;;  %v7944_v47 = vld [vmem:[%s9045_s18 + $0x174] sm:$0xf0]  ;;  %v7158_v52 = vor.u32 %v8288_v43, %v7155_v44  ;;  %v8439_v54 = vld [vmem:[%s9045_s18 + $0x10f4] sm:$0xf]  ;;  %v7410_v44 = vor.u32 %v8365_v34, %v7409_v33  ;;  %v6083_v34 = vld [vmem:[%s9045_s18 + $0x448] sm:$0xf0] }
 0x190   : > { %v5722_v56 = vor.u32 %v7944_v47, %v5721_v45  ;;  %v7635_v43 = vld [vmem:[%s9045_s18 + $0x1070] sm:$0xf0]  ;;  %v7289_v47 = vld [vmem:[%s9045_s18 + $0xd38] sm:$0xf] }
 0x191   : > { %v601_v2 = vmax.f32 %v578_v58, 0.0  ;;  %v8258_v58 = vld [vmem:[%s9045_s18 + $0xb4c] sm:$0xf]  ;;  %v8019_v33 = vld [vmem:[%s9045_s18 + $0x3d4] sm:$0xf] }
 0x192   : > { %4315 = vmatpush.bf16.msrb.mxu1 %v6322_v55  ;;  %4268 = vmatpush.bf16.msra.mxu3 %v7634_v57  ;;  %v7763_v55 = vld [vmem:[%s9045_s18 + $0x1168] sm:$0x30]  ;;  %v7406_v57 = vor.u32 %v8349_v48, %v7403_v49  ;;  %v8335_v48 = vld [vmem:[%s9045_s18 + $0xdac] sm:$0xf0] }
 0x193   : > { %v9191_v7 = vpack.c.bf16 %v601_v2, %v601_v2  ;;  %v7766_v0 = vor.u32 %v8439_v54, %v7763_v55  ;;  %v7038_v2 = vor.u32 %v8258_v58, %v7035_v59  ;;  %v8138_v49 = vld [vmem:[%s9045_s18 + $0x78c] sm:$0xf]  ;;  %v7290_v58 = vor.u32 %v8335_v48, %v7289_v47  ;;  %v6443_v59 = vld [vmem:[%s9045_s18 + $0x718] sm:$0xf0] }
 0x194   : > { %v6803_v54 = vld [vmem:[%s9045_s18 + $0x9e8] sm:$0xf0]  ;;  %v5963_v47 = vld [vmem:[%s9045_s18 + $0x358] sm:$0xf0] }
 0x195   : > { %4179 = vmatmul.bf16.vlgmr.msra.gmra.mxu2 %v9191_v7  ;;  %4218 = vmatmul.bf16.vlgmr.msrb.gmra.mxu0 %v9191_v7  ;;  %v4084_v14 = vsel %vm4067_vm3, %v7766_v0, 0  ;;  %v8378_v55 = vld [vmem:[%s9045_s18 + $0xf0c] sm:$0xf]  ;;  %v8305_v0 = vld [vmem:[%s9045_s18 + $0xcbc] sm:$0xf0] }
 0x196   : > { %4236 = vmatpush.bf16.msra.mxu2 %v6434_v3  ;;  %4316 = vmatpush.bf16.msrb.mxu1 %v6202_v4  ;;  %v5713_v3 = vld [vmem:[%s9045_s18 + $0xf8] sm:$0xf]  ;;  %v7943_v4 = vld [vmem:[%s9045_s18 + $0x16c] sm:$0xf0]  ;;  %v7170_v9 = vor.u32 %v8305_v0, %v7169_v63  ;;  %v6091_v63 = vld [vmem:[%s9045_s18 + $0x450] sm:$0xf0] }
 0x197   : > { %4269 = vmatpush.bf16.msra.mxu3 %v7514_v11  ;;  %4345 = vmatpush.bf16.msrb.mxu0 %v4081_v12  ;;  %v7163_v11 = vld [vmem:[%s9045_s18 + $0xcb8] sm:$0xf0]  ;;  %v8438_v12 = vld [vmem:[%s9045_s18 + $0x10ec] sm:$0xf]  ;;  %v5714_v17 = vor.u32 %v7943_v4, %v5713_v3  ;;  %v7402_v4 = vor.u32 %v8364_v61, %v7401_v60  ;;  %v6801_v0 = vld [vmem:[%s9045_s18 + $0x970] sm:$0xf] }
 0x198   : > { %v7166_v20 = vor.u32 %v8289_v10, %v7163_v11  ;;  %v7758_v24 = vor.u32 %v8438_v12, %v7755_v13  ;;  %v6323_v10 = vld [vmem:[%s9045_s18 + $0x628] sm:$0xf0]  ;;  %v7281_v11 = vld [vmem:[%s9045_s18 + $0xd30] sm:$0xf]  ;;  %v8334_v12 = vld [vmem:[%s9045_s18 + $0xda4] sm:$0xf0] }
 0x199   : > { %v7049_v13 = vld [vmem:[%s9045_s18 + $0xb58] sm:$0xf] }
 0x19a   : > { %4237 = vmatpush.bf16.msra.mxu2 %v6314_v15  ;;  %4317 = vmatpush.bf16.msrb.mxu1 %v6082_v16  ;;  %v8409_v15 = vld [vmem:[%s9045_s18 + $0x1004] sm:$0xf]  ;;  %v7643_v16 = vld [vmem:[%s9045_s18 + $0x1078] sm:$0xf0]  ;;  %v4078_v37 = vsel %vm4067_vm3, %v7758_v24, 0 }
 0x19b   : > { %4346 = vmatpush.bf16.msrb.mxu0 %v7642_v23  ;;  %v6795_v23 = vld [vmem:[%s9045_s18 + $0x9e0] sm:$0xf0]  ;;  %v7646_v25 = vor.u32 %v8409_v15, %v7643_v16  ;;  %v8139_v16 = vld [vmem:[%s9045_s18 + $0x794] sm:$0xf] }
 0x19c   : > { %v6798_v32 = vor.u32 %v8198_v22, %v6795_v23  ;;  %v8110_v23 = vld [vmem:[%s9045_s18 + $0x6ac] sm:$0xf]  ;;  %v6451_v24 = vld [vmem:[%s9045_s18 + $0x720] sm:$0xf0] }
 0x19d   : > { %7864 = vmatmul.msk.bf16.vlgmr.msrb.gmra.mxu3 %vm449_vm1, %v9210_v30  ;;  %4257 = vmatmul.bf16.vlgmr.msra.gmra.mxu1 %v9191_v7 }
 0x19e   : > { %4238 = vmatpush.bf16.msra.mxu2 %v6194_v27  ;;  %4288 = vmatpush.bf16.msrb.mxu3 %v7398_v28  ;;  %v7043_v27 = vld [vmem:[%s9045_s18 + $0xbc8] sm:$0xf0]  ;;  %v8379_v28 = vld [vmem:[%s9045_s18 + $0xf14] sm:$0xf] }
 0x19f   : > { %4318 = vmatpush.bf16.msrb.mxu1 %v5962_v31  ;;  %4347 = vmatpush.bf16.msrb.mxu0 %v7522_v35  ;;  %v5594_v31 = vor.u32 %v7913_v21, %v5593_v19  ;;  %v8168_v35 = vld [vmem:[%s9045_s18 + $0x87c] sm:$0xf]  ;;  %v7046_v36 = vor.u32 %v8259_v26, %v7043_v27  ;;  %v7526_v40 = vor.u32 %v8379_v28, %v7523_v29  ;;  %v6563_v19 = vld [vmem:[%s9045_s18 + $0x808] sm:$0xf0]  ;;  %v8304_v26 = vld [vmem:[%s9045_s18 + $0xcb4] sm:$0xf0] }
 0x1a0   : > { %v6203_v21 = vld [vmem:[%s9045_s18 + $0x538] sm:$0xf0]  ;;  %v6929_v27 = vld [vmem:[%s9045_s18 + $0xa68] sm:$0xf]  ;;  %v8245_v28 = vld [vmem:[%s9045_s18 + $0xadc] sm:$0xf0]  ;;  %v6566_v29 = vor.u32 %v8139_v16, %v6563_v19 }
 0x1a1   : > { %v8455_v19 = vld [vmem:[%s9045_s18 + $0x116c] sm:$0x30] }
 0x1a2   : > { %4239 = vmatpush.bf16.msra.mxu2 %v6074_v38  ;;  %4289 = vmatpush.bf16.msrb.mxu3 %v7278_v39  ;;  %v6675_v38 = vld [vmem:[%s9045_s18 + $0x8f0] sm:$0xf0]  ;;  %v8229_v39 = vld [vmem:[%s9045_s18 + $0xa64] sm:$0xf] }
 0x1a3   : > { %4319 = vmatpush.bf16.msrb.mxu1 %v5842_v42  ;;  %v8408_v42 = vld [vmem:[%s9045_s18 + $0xffc] sm:$0xf]  ;;  %v6678_v45 = vor.u32 %v8168_v35, %v6675_v38  ;;  %v6926_v50 = vor.u32 %v8229_v39, %v6923_v41  ;;  %v6331_v38 = vld [vmem:[%s9045_s18 + $0x630] sm:$0xf0]  ;;  %v7041_v39 = vld [vmem:[%s9045_s18 + $0xb50] sm:$0xf] }
 0x1a4   : > { %v6809_v41 = vld [vmem:[%s9045_s18 + $0x978] sm:$0xf] }
 0x1a5   : > { %7863 = vmatmul.msk.bf16.vlgmr.msrb.gmra.mxu2 %vm449_vm1, %v9210_v30  ;;  %4283 = vmatmul.bf16.vlgmr.msra.gmra.mxu0 %v9175_v46 }
 0x1a6   : > { %4240 = vmatpush.bf16.msra.mxu2 %v5954_v51  ;;  %4290 = vmatpush.bf16.msrb.mxu3 %v7158_v52  ;;  %v7638_v51 = vor.u32 %v8408_v42, %v7635_v43  ;;  %v6555_v52 = vld [vmem:[%s9045_s18 + $0x800] sm:$0xf0]  ;;  %v8215_v42 = vld [vmem:[%s9045_s18 + $0x9ec] sm:$0xf0]  ;;  %v6086_v43 = vor.u32 %v8019_v33, %v6083_v34  ;;  %v8154_v33 = vld [vmem:[%s9045_s18 + $0x804] sm:$0xf0] }
 0x1a7   : > { %4320 = vmatpush.bf16.msrb.mxu1 %v5722_v56  ;;  %4366 = vmatpush.bf16.msra.mxu0 %v7406_v57  ;;  %v7515_v56 = vld [vmem:[%s9045_s18 + $0xf80] sm:$0xf0]  ;;  %v6558_v62 = vor.u32 %v8138_v49, %v6555_v52  ;;  %v6810_v49 = vor.u32 %v8215_v42, %v6809_v41  ;;  %v6921_v52 = vld [vmem:[%s9045_s18 + $0xa60] sm:$0xf]  ;;  %v6449_v34 = vld [vmem:[%s9045_s18 + $0x6a8] sm:$0xf] }
 0x1a8   : > { %v8109_v57 = vld [vmem:[%s9045_s18 + $0x6a4] sm:$0xf]  ;;  %v7930_v42 = vld [vmem:[%s9045_s18 + $0x10c] sm:$0xf] }
 0x1a9   : > { %v6446_v3 = vor.u32 %v8109_v57, %v6443_v59  ;;  %v5843_v59 = vld [vmem:[%s9045_s18 + $0x268] sm:$0xf0] }
 0x1aa   : > { %4241 = vmatpush.bf16.msra.mxu2 %v5834_v1  ;;  %4291 = vmatpush.bf16.msrb.mxu3 %v7038_v2  ;;  %v6806_v1 = vor.u32 %v8199_v53, %v6803_v54  ;;  %v7518_v2 = vor.u32 %v8378_v55, %v7515_v56  ;;  %v8244_v53 = vld [vmem:[%s9045_s18 + $0xad4] sm:$0xf0]  ;;  %v6689_v54 = vld [vmem:[%s9045_s18 + $0x888] sm:$0xf]  ;;  %v8185_v55 = vld [vmem:[%s9045_s18 + $0x8fc] sm:$0xf0] }
 0x1ab   : > { %4321 = vmatpush.bf16.msrb.mxu1 %v5602_v5  ;;  %4367 = vmatpush.bf16.msra.mxu0 %v7286_v6  ;;  %v8169_v5 = vld [vmem:[%s9045_s18 + $0x884] sm:$0xf]  ;;  %v6683_v6 = vld [vmem:[%s9045_s18 + $0x8f8] sm:$0xf0]  ;;  %v6922_v60 = vor.u32 %v8244_v53, %v6921_v52  ;;  %v6690_v61 = vor.u32 %v8185_v55, %v6689_v54  ;;  %v8456_v52 = vld [vmem:[%s9045_s18 + $0x1174] sm:$0x30] }
 0x1ac   : > { %v6686_v15 = vor.u32 %v8169_v5, %v6683_v6  ;;  %v8126_v5 = vld [vmem:[%s9045_s18 + $0x724] sm:$0xf0]  ;;  %v6097_v53 = vld [vmem:[%s9045_s18 + $0x3e0] sm:$0xf]  ;;  %v8036_v54 = vld [vmem:[%s9045_s18 + $0x454] sm:$0xf0] }
 0x1ad   : > { %7865 = vmatmul.msk.bf16.vlgmr.msra.gmra.mxu3 %vm449_vm1, %v9210_v30 }
 0x1ae   : > { %4242 = vmatpush.bf16.msra.mxu2 %v5714_v17  ;;  %4292 = vmatpush.bf16.msrb.mxu3 %v6918_v18  ;;  %v6326_v17 = vor.u32 %v8079_v8, %v6323_v10  ;;  %v7282_v18 = vor.u32 %v8334_v12, %v7281_v11  ;;  %v5723_v10 = vld [vmem:[%s9045_s18 + $0x178] sm:$0xf0] }
 0x1af   : > { %4384 = vmatpush.bf16.msra.mxu1 %v4084_v14  ;;  %4368 = vmatpush.bf16.msra.mxu0 %v7166_v20  ;;  %v8275_v14 = vld [vmem:[%s9045_s18 + $0xbcc] sm:$0xf0]  ;;  %v8049_v20 = vld [vmem:[%s9045_s18 + $0x4c4] sm:$0xf] }
 0x1b0   : > { %4322 = vmatmul.bf16.vlgmr.msrb.gmra.mxu1 %v9175_v46  ;;  %v7050_v22 = vor.u32 %v8275_v14, %v7049_v13  ;;  %v7990_v13 = vld [vmem:[%s9045_s18 + $0x2ec] sm:$0xf]  ;;  %v5971_v14 = vld [vmem:[%s9045_s18 + $0x360] sm:$0xf0] }
 0x1b2   : > { %4243 = vmatpush.bf16.msra.mxu2 %v5594_v31  ;;  %4293 = vmatpush.bf16.msrb.mxu3 %v6798_v32  ;;  %v6206_v31 = vor.u32 %v8049_v20, %v6203_v21  ;;  %v6454_v32 = vor.u32 %v8110_v23, %v6451_v24  ;;  %v6337_v20 = vld [vmem:[%s9045_s18 + $0x5c0] sm:$0xf]  ;;  %v8096_v21 = vld [vmem:[%s9045_s18 + $0x634] sm:$0xf0]  ;;  %v5974_v23 = vor.u32 %v7990_v13, %v5971_v14  ;;  %v8426_v13 = vld [vmem:[%s9045_s18 + $0x1084] sm:$0xf0] }
 0x1b3   : > { %4385 = vmatpush.bf16.msra.mxu1 %v7646_v25  ;;  %4369 = vmatpush.bf16.msra.mxu0 %v7046_v36  ;;  %v7161_v25 = vld [vmem:[%s9045_s18 + $0xc40] sm:$0xf]  ;;  %v6930_v36 = vor.u32 %v8245_v28, %v6929_v27  ;;  %v7960_v27 = vld [vmem:[%s9045_s18 + $0x1fc] sm:$0xf]  ;;  %v6089_v14 = vld [vmem:[%s9045_s18 + $0x3d8] sm:$0xf] }
 0x1b4   : > { %v7162_v35 = vor.u32 %v8304_v26, %v7161_v25  ;;  %v7899_v25 = vld [vmem:[%s9045_s18 + $0x14] sm:$0xf]  ;;  %v5603_v26 = vld [vmem:[%s9045_s18 + $0x88] sm:$0xf0] }
 0x1b5   : > { %4244 = vmatmul.bf16.vlgmr.msra.gmra.mxu2 %v9175_v46  ;;  %7867 = vmatmul.msk.bf16.vlgmr.msrb.gmra.mxu0 %vm449_vm1, %v9210_v30 }
 0x1b6   : > { %4306 = vmatpush.bf16.msrb.mxu2 %v4078_v37  ;;  %4294 = vmatpush.bf16.msrb.mxu3 %v6678_v45  ;;  %v8080_v37 = vld [vmem:[%s9045_s18 + $0x5bc] sm:$0xf]  ;;  %v7989_v45 = vld [vmem:[%s9045_s18 + $0x2e4] sm:$0xf] }
 0x1b7   : > { %4386 = vmatpush.bf16.msra.mxu1 %v7526_v40  ;;  %4370 = vmatpush.bf16.msra.mxu0 %v6926_v50  ;;  %v8274_v40 = vld [vmem:[%s9045_s18 + $0xbc4] sm:$0xf0]  ;;  %v8050_v50 = vld [vmem:[%s9045_s18 + $0x4cc] sm:$0xf]  ;;  %v5966_v56 = vor.u32 %v7989_v45, %v5963_v47  ;;  %v8425_v47 = vld [vmem:[%s9045_s18 + $0x107c] sm:$0xf0] }
 0x1b8   : > { %v7042_v48 = vor.u32 %v8274_v40, %v7041_v39  ;;  %v7649_v45 = vld [vmem:[%s9045_s18 + $0x1008] sm:$0xf] }
 0x1ba   : > { %4307 = vmatpush.bf16.msrb.mxu2 %v7638_v51  ;;  %4295 = vmatpush.bf16.msrb.mxu3 %v6558_v62  ;;  %v6211_v51 = vld [vmem:[%s9045_s18 + $0x540] sm:$0xf0]  ;;  %v8020_v62 = vld [vmem:[%s9045_s18 + $0x3dc] sm:$0xf] }
 0x1bb   : > { %4405 = vmatpush.bf16.msrb.mxu1 %v7410_v44  ;;  %4371 = vmatpush.bf16.msra.mxu0 %v6806_v1  ;;  %v6334_v44 = vor.u32 %v8080_v37, %v6331_v38  ;;  %v6214_v57 = vor.u32 %v8050_v50, %v6211_v51  ;;  %v8214_v1 = vld [vmem:[%s9045_s18 + $0x9e4] sm:$0xf0]  ;;  %v6094_v8 = vor.u32 %v8020_v62, %v6091_v63  ;;  %v6217_v37 = vld [vmem:[%s9045_s18 + $0x4d0] sm:$0xf]  ;;  %v7777_v51 = vld [vmem:[%s9045_s18 + $0x1100] sm:$0xf] }
 0x1bc   : > { %v6802_v11 = vor.u32 %v8214_v1, %v6801_v0  ;;  %v8066_v38 = vld [vmem:[%s9045_s18 + $0x544] sm:$0xf0]  ;;  %v8095_v50 = vld [vmem:[%s9045_s18 + $0x62c] sm:$0xf0]  ;;  %v7529_v62 = vld [vmem:[%s9045_s18 + $0xf18] sm:$0xf] }
 0x1bd   : > { %4296 = vmatmul.bf16.vlgmr.msrb.gmra.mxu3 %v9191_v7  ;;  %v8395_v63 = vld [vmem:[%s9045_s18 + $0xf8c] sm:$0xf0]  ;;  %v6209_v0 = vld [vmem:[%s9045_s18 + $0x4c8] sm:$0xf]  ;;  %v8065_v1 = vld [vmem:[%s9045_s18 + $0x53c] sm:$0xf0] }
 0x1be   : > { %4308 = vmatpush.bf16.msrb.mxu2 %v7518_v2  ;;  %4353 = vmatpush.bf16.msra.mxu3 %v6446_v3  ;;  %v6569_v2 = vld [vmem:[%s9045_s18 + $0x798] sm:$0xf]  ;;  %v8155_v3 = vld [vmem:[%s9045_s18 + $0x80c] sm:$0xf0] }
 0x1bf   : > { %4406 = vmatpush.bf16.msrb.mxu1 %v7290_v58  ;;  %4372 = vmatpush.bf16.msra.mxu0 %v6686_v15  ;;  %v7959_v58 = vld [vmem:[%s9045_s18 + $0x1f4] sm:$0xf]  ;;  %v6570_v12 = vor.u32 %v8155_v3, %v6569_v2  ;;  %v6681_v15 = vld [vmem:[%s9045_s18 + $0x880] sm:$0xf]  ;;  %v8350_v2 = vld [vmem:[%s9045_s18 + $0xe2c] sm:$0xf] }
 0x1c0   : > { %7868 = vmatmul.msk.bf16.vlgmr.msra.gmra.mxu1 %vm449_vm1, %v9210_v30  ;;  %v5846_v6 = vor.u32 %v7959_v58, %v5843_v59  ;;  %v7900_v58 = vld [vmem:[%s9045_s18 + $0x1c] sm:$0xf]  ;;  %v5611_v59 = vld [vmem:[%s9045_s18 + $0x90] sm:$0xf0]  ;;  %v7411_v3 = vld [vmem:[%s9045_s18 + $0xea0] sm:$0xf0] }
 0x1c2   : > { %4327 = vmatpush.bf16.msra.mxu2 %v7402_v4  ;;  %4354 = vmatpush.bf16.msra.mxu3 %v6326_v17  ;;  %v6457_v4 = vld [vmem:[%s9045_s18 + $0x6b0] sm:$0xf]  ;;  %v8184_v17 = vld [vmem:[%s9045_s18 + $0x8f4] sm:$0xf0] }
 0x1c3   : > { %4407 = vmatpush.bf16.msrb.mxu1 %v7170_v9  ;;  %4373 = vmatpush.bf16.msra.mxu0 %v6566_v29  ;;  %v7929_v9 = vld [vmem:[%s9045_s18 + $0x104] sm:$0xf]  ;;  %v6458_v16 = vor.u32 %v8126_v5, %v6457_v4  ;;  %v6682_v24 = vor.u32 %v8184_v17, %v6681_v15  ;;  %v6338_v29 = vor.u32 %v8096_v21, %v6337_v20  ;;  %v5977_v5 = vld [vmem:[%s9045_s18 + $0x2f0] sm:$0xf]  ;;  %v8320_v17 = vld [vmem:[%s9045_s18 + $0xd3c] sm:$0xf] }
 0x1c4   : > { %v5614_v4 = vor.u32 %v7900_v58, %v5611_v59  ;;  %v7976_v20 = vld [vmem:[%s9045_s18 + $0x274] sm:$0xf0]  ;;  %v7945_v58 = vld [vmem:[%s9045_s18 + $0x17c] sm:$0xf0]  ;;  %v8230_v59 = vld [vmem:[%s9045_s18 + $0xa6c] sm:$0xf] }
 0x1c5   : > { %7866 = vmatmul.msk.bf16.vlgmr.msrb.gmra.mxu2 %vm449_vm1, %v9210_v30 }
 0x1c6   : > { %4328 = vmatpush.bf16.msra.mxu2 %v7282_v18  ;;  %4355 = vmatpush.bf16.msra.mxu3 %v6206_v31  ;;  %v7769_v18 = vld [vmem:[%s9045_s18 + $0x10f8] sm:$0xf]  ;;  %v5851_v31 = vld [vmem:[%s9045_s18 + $0x270] sm:$0xf0] }
 0x1c7   : > { %4408 = vmatpush.bf16.msrb.mxu1 %v7050_v22  ;;  %4431 = vmatpush.bf16.msrb.mxu0 %v6454_v32  ;;  %v5726_v22 = vor.u32 %v7929_v9, %v5723_v10  ;;  %v7770_v28 = vor.u32 %v8455_v19, %v7769_v18  ;;  %v6561_v32 = vld [vmem:[%s9045_s18 + $0x790] sm:$0xf]  ;;  %v5854_v39 = vor.u32 %v7960_v27, %v5851_v31  ;;  %v7291_v18 = vld [vmem:[%s9045_s18 + $0xdb0] sm:$0xf0]  ;;  %v5857_v19 = vld [vmem:[%s9045_s18 + $0x200] sm:$0xf] }
 0x1c8   : > { %4374 = vmatmul.bf16.vlgmr.msra.gmra.mxu0 %v9191_v7  ;;  %v6562_v40 = vor.u32 %v8154_v33, %v6561_v32  ;;  %v6210_v10 = vor.u32 %v8065_v1, %v6209_v0  ;;  %v8005_v27 = vld [vmem:[%s9045_s18 + $0x35c] sm:$0xf0]  ;;  %v7171_v31 = vld [vmem:[%s9045_s18 + $0xcc0] sm:$0xf0]  ;;  %v5737_v32 = vld [vmem:[%s9045_s18 + $0x110] sm:$0xf] }
 0x1c9   : > { %v4087_v41 = vsel %vm4067_vm3, %v7770_v28, 0  ;;  %v5858_v28 = vor.u32 %v7976_v20, %v5857_v19  ;;  %v7946_v33 = vld [vmem:[%s9045_s18 + $0x184] sm:$0xf0]  ;;  %v8411_v0 = vld [vmem:[%s9045_s18 + $0x1014] sm:$0xf] }
 0x1ca   : > { %4329 = vmatpush.bf16.msra.mxu2 %v7162_v35  ;;  %4356 = vmatpush.bf16.msra.mxu3 %v6086_v43  ;;  %v8125_v35 = vld [vmem:[%s9045_s18 + $0x71c] sm:$0xf0]  ;;  %v5731_v43 = vld [vmem:[%s9045_s18 + $0x180] sm:$0xf0]  ;;  %v7659_v1 = vld [vmem:[%s9045_s18 + $0x1088] sm:$0xf0] }
 0x1cb   : > { %4409 = vmatpush.bf16.msrb.mxu1 %v6930_v36  ;;  %4432 = vmatpush.bf16.msrb.mxu0 %v6334_v44  ;;  %v5606_v36 = vor.u32 %v7899_v25, %v5603_v26  ;;  %v6450_v44 = vor.u32 %v8125_v35, %v6449_v34  ;;  %v5734_v55 = vor.u32 %v7930_v42, %v5731_v43  ;;  %v8396_v25 = vld [vmem:[%s9045_s18 + $0xf94] sm:$0xf0]  ;;  %v5969_v26 = vld [vmem:[%s9045_s18 + $0x2e8] sm:$0xf]  ;;  %v8351_v34 = vld [vmem:[%s9045_s18 + $0xe34] sm:$0xf] }
 0x1cc   : > { %v7419_v35 = vld [vmem:[%s9045_s18 + $0xea8] sm:$0xf0]  ;;  %v7779_v42 = vld [vmem:[%s9045_s18 + $0x1178] sm:$0x30]  ;;  %v5738_v43 = vor.u32 %v7946_v33, %v5737_v32  ;;  %v7425_v19 = vld [vmem:[%s9045_s18 + $0xe38] sm:$0xf] }
 0x1cd   : > { %v8367_v20 = vld [vmem:[%s9045_s18 + $0xeac] sm:$0xf0]  ;;  %v7651_v32 = vld [vmem:[%s9045_s18 + $0x1080] sm:$0xf0]  ;;  %v7305_v33 = vld [vmem:[%s9045_s18 + $0xd48] sm:$0xf] }
 0x1ce   : > { %4330 = vmatpush.bf16.msra.mxu2 %v7042_v48  ;;  %4357 = vmatpush.bf16.msra.mxu3 %v5966_v56  ;;  %v6329_v48 = vld [vmem:[%s9045_s18 + $0x5b8] sm:$0xf]  ;;  %v7650_v56 = vor.u32 %v8425_v47, %v7649_v45  ;;  %v8260_v45 = vld [vmem:[%s9045_s18 + $0xb5c] sm:$0xf]  ;;  %v7051_v47 = vld [vmem:[%s9045_s18 + $0xbd0] sm:$0xf0] }
 0x1cf   : > { %4410 = vmatpush.bf16.msrb.mxu1 %v6810_v49  ;;  %4433 = vmatpush.bf16.msrb.mxu0 %v6214_v57  ;;  %v6218_v49 = vor.u32 %v8066_v38, %v6217_v37  ;;  %v6330_v57 = vor.u32 %v8095_v50, %v6329_v48  ;;  %v5849_v37 = vld [vmem:[%s9045_s18 + $0x1f8] sm:$0xf]  ;;  %v5970_v38 = vor.u32 %v8005_v27, %v5969_v26  ;;  %v5617_v48 = vld [vmem:[%s9045_s18 + $0x20] sm:$0xf]  ;;  %v8321_v50 = vld [vmem:[%s9045_s18 + $0xd44] sm:$0xf] }
 0x1d0   : > { %v8231_v26 = vld [vmem:[%s9045_s18 + $0xa74] sm:$0xf]  ;;  %v6939_v27 = vld [vmem:[%s9045_s18 + $0xae8] sm:$0xf0] }
 0x1d2   : > { %4331 = vmatpush.bf16.msra.mxu2 %v6922_v60  ;;  %4358 = vmatpush.bf16.msra.mxu3 %v5846_v6  ;;  %v7778_v60 = vor.u32 %v8456_v52, %v7777_v51  ;;  %v8006_v6 = vld [vmem:[%s9045_s18 + $0x364] sm:$0xf0]  ;;  %v7299_v51 = vld [vmem:[%s9045_s18 + $0xdb8] sm:$0xf0] }
 0x1d3   : > { %4411 = vmatpush.bf16.msrb.mxu1 %v6690_v61  ;;  %4434 = vmatpush.bf16.msrb.mxu0 %v6094_v8  ;;  %v6098_v61 = vor.u32 %v8036_v54, %v6097_v53  ;;  %v7530_v8 = vor.u32 %v8395_v63, %v7529_v62  ;;  %v5978_v15 = vor.u32 %v8006_v6, %v5977_v5  ;;  %v7179_v62 = vld [vmem:[%s9045_s18 + $0xcc8] sm:$0xf0] }
 0x1d4   : > { %v4093_v9 = vsel %vm4067_vm3, %v7778_v60, 0  ;;  %v7054_v54 = vor.u32 %v8260_v45, %v7051_v47  ;;  %v6931_v60 = vld [vmem:[%s9045_s18 + $0xae0] sm:$0xf0]  ;;  %v8111_v45 = vld [vmem:[%s9045_s18 + $0x6b4] sm:$0xf] }
 0x1d5   : > { %v6934_v5 = vor.u32 %v8230_v59, %v6931_v60  ;;  %v6459_v47 = vld [vmem:[%s9045_s18 + $0x728] sm:$0xf0]  ;;  %v8081_v60 = vld [vmem:[%s9045_s18 + $0x5c4] sm:$0xf] }
 0x1d6   : > { %4332 = vmatpush.bf16.msra.mxu2 %v6802_v11  ;;  %4359 = vmatpush.bf16.msra.mxu3 %v5726_v22  ;;  %v7414_v11 = vor.u32 %v8350_v2, %v7411_v3  ;;  %v7537_v22 = vld [vmem:[%s9045_s18 + $0xf20] sm:$0xf]  ;;  %v8440_v3 = vld [vmem:[%s9045_s18 + $0x10fc] sm:$0xf] }
 0x1d7   : > { %4412 = vmatpush.bf16.msrb.mxu1 %v6570_v12  ;;  %4435 = vmatpush.bf16.msrb.mxu0 %v5974_v23  ;;  %v7657_v12 = vld [vmem:[%s9045_s18 + $0x1010] sm:$0xf] }
 0x1d8   : > { %v7658_v21 = vor.u32 %v8426_v13, %v7657_v12  ;;  %v6811_v12 = vld [vmem:[%s9045_s18 + $0x9f0] sm:$0xf0]  ;;  %v8261_v13 = vld [vmem:[%s9045_s18 + $0xb64] sm:$0xf] }
 0x1da   : > { %4413 = vmatmul.bf16.vlgmr.msrb.gmra.mxu1 %v9191_v7  ;;  %4333 = vmatpush.bf16.msra.mxu2 %v6682_v24  ;;  %v7294_v24 = vor.u32 %v8320_v17, %v7291_v18  ;;  %v7539_v17 = vld [vmem:[%s9045_s18 + $0xf98] sm:$0xf0] }
 0x1db   : > { %4470 = vmatpush.bf16.msra.mxu1 %v6458_v16  ;;  %4360 = vmatpush.bf16.msra.mxu3 %v5606_v36  ;;  %v8035_v16 = vld [vmem:[%s9045_s18 + $0x44c] sm:$0xf0]  ;;  %v7538_v36 = vor.u32 %v8396_v25, %v7537_v22  ;;  %v6691_v25 = vld [vmem:[%s9045_s18 + $0x900] sm:$0xf0] }
 0x1dc   : > { %4436 = vmatpush.bf16.msrb.mxu0 %v5854_v39  ;;  %v6090_v23 = vor.u32 %v8035_v16, %v6089_v14  ;;  %v7059_v14 = vld [vmem:[%s9045_s18 + $0xbd8] sm:$0xf0]  ;;  %v8381_v16 = vld [vmem:[%s9045_s18 + $0xf24] sm:$0xf] }
 0x1dd   : > { %v7062_v22 = vor.u32 %v8261_v13, %v7059_v14  ;;  %v7177_v13 = vld [vmem:[%s9045_s18 + $0xc50] sm:$0xf]  ;;  %v8306_v14 = vld [vmem:[%s9045_s18 + $0xcc4] sm:$0xf0] }
 0x1de   : > { %4334 = vmatpush.bf16.msra.mxu2 %v6562_v40  ;;  %4361 = vmatmul.bf16.vlgmr.msra.gmra.mxu3 %v9175_v46  ;;  %v7975_v40 = vld [vmem:[%s9045_s18 + $0x26c] sm:$0xf0] }
 0x1df   : > { %4471 = vmatpush.bf16.msra.mxu1 %v6338_v29  ;;  %4423 = vmatpush.bf16.msrb.mxu3 %v4087_v41  ;;  %v8290_v29 = vld [vmem:[%s9045_s18 + $0xc4c] sm:$0xf]  ;;  %v8441_v41 = vld [vmem:[%s9045_s18 + $0x1104] sm:$0xf]  ;;  %v5850_v53 = vor.u32 %v7975_v40, %v5849_v37  ;;  %v8140_v37 = vld [vmem:[%s9045_s18 + $0x79c] sm:$0xf] }
 0x1e0   : > { %4437 = vmatpush.bf16.msrb.mxu0 %v5734_v55  ;;  %v7174_v39 = vor.u32 %v8290_v29, %v7171_v31  ;;  %v7782_v52 = vor.u32 %v8441_v41, %v7779_v42  ;;  %v7426_v29 = vor.u32 %v8367_v20, %v7425_v19  ;;  %v8410_v31 = vld [vmem:[%s9045_s18 + $0x100c] sm:$0xf]  ;;  %v6819_v41 = vld [vmem:[%s9045_s18 + $0x9f8] sm:$0xf0]  ;;  %v8021_v20 = vld [vmem:[%s9045_s18 + $0x3e4] sm:$0xf] }
 0x1e1   : > { %4335 = vmatmul.bf16.vlgmr.msra.gmra.mxu2 %v9191_v7  ;;  %v7654_v40 = vor.u32 %v8410_v31, %v7651_v32  ;;  %v8380_v42 = vld [vmem:[%s9045_s18 + $0xf1c] sm:$0xf] }
 0x1e2   : > { %4392 = vmatpush.bf16.msrb.mxu2 %v6450_v44  ;;  %v7422_v44 = vor.u32 %v8351_v34, %v7419_v35  ;;  %v4096_v63 = vsel %vm4067_vm3, %v7782_v52, 0  ;;  %v8337_v34 = vld [vmem:[%s9045_s18 + $0xdbc] sm:$0xf0] }
 0x1e3   : > { %4472 = vmatpush.bf16.msra.mxu1 %v6218_v49  ;;  %4424 = vmatpush.bf16.msrb.mxu3 %v7650_v56  ;;  %v7916_v49 = vld [vmem:[%s9045_s18 + $0x94] sm:$0xf0]  ;;  %v7302_v56 = vor.u32 %v8321_v50, %v7299_v51  ;;  %v8307_v51 = vld [vmem:[%s9045_s18 + $0xccc] sm:$0xf0] }
 0x1e4   : > { %4438 = vmatpush.bf16.msrb.mxu0 %v5614_v4  ;;  %v5618_v55 = vor.u32 %v7916_v49, %v5617_v48  ;;  %v7771_v4 = vld [vmem:[%s9045_s18 + $0x1170] sm:$0x30]  ;;  %v7417_v48 = vld [vmem:[%s9045_s18 + $0xe30] sm:$0xf]  ;;  %v8366_v49 = vld [vmem:[%s9045_s18 + $0xea4] sm:$0xf0] }
 0x1e5   : > { %v7185_v50 = vld [vmem:[%s9045_s18 + $0xc58] sm:$0xf] }
 0x1e6   : > { %4393 = vmatpush.bf16.msrb.mxu2 %v6330_v57  ;;  %v5729_v57 = vld [vmem:[%s9045_s18 + $0x108] sm:$0xf]  ;;  %v7186_v59 = vor.u32 %v8307_v51, %v7185_v50  ;;  %v8022_v51 = vld [vmem:[%s9045_s18 + $0x3ec] sm:$0xf] }
 0x1e7   : > { %4473 = vmatpush.bf16.msra.mxu1 %v6098_v61  ;;  %4425 = vmatpush.bf16.msrb.mxu3 %v7530_v8  ;;  %v8291_v61 = vld [vmem:[%s9045_s18 + $0xc54] sm:$0xf]  ;;  %v5730_v2 = vor.u32 %v7945_v58, %v5729_v57  ;;  %v5609_v8 = vld [vmem:[%s9045_s18 + $0x18] sm:$0xf]  ;;  %v6699_v57 = vld [vmem:[%s9045_s18 + $0x908] sm:$0xf0]  ;;  %v7418_v58 = vor.u32 %v8366_v49, %v7417_v48 }
 0x1e8   : > { %4501 = vmatpush.bf16.msra.mxu0 %v4093_v9  ;;  %v7182_v6 = vor.u32 %v8291_v61, %v7179_v62  ;;  %v7915_v9 = vld [vmem:[%s9045_s18 + $0x8c] sm:$0xf0]  ;;  %v6339_v61 = vld [vmem:[%s9045_s18 + $0x638] sm:$0xf0]  ;;  %v7297_v62 = vld [vmem:[%s9045_s18 + $0xd40] sm:$0xf] }
 0x1e9   : > { %4439 = vmatmul.bf16.vlgmr.msrb.gmra.mxu0 %v9175_v46  ;;  %v5610_v18 = vor.u32 %v7915_v9, %v5609_v8  ;;  %v6219_v8 = vld [vmem:[%s9045_s18 + $0x548] sm:$0xf0]  ;;  %v5859_v48 = vld [vmem:[%s9045_s18 + $0x278] sm:$0xf0] }
 0x1ea   : > { %4394 = vmatpush.bf16.msrb.mxu2 %v6210_v10  ;;  %v8200_v10 = vld [vmem:[%s9045_s18 + $0x97c] sm:$0xf] }
 0x1eb   : > { %4444 = vmatpush.bf16.msra.mxu3 %v7414_v11  ;;  %4474 = vmatpush.bf16.msra.mxu1 %v5978_v15  ;;  %v7662_v11 = vor.u32 %v8411_v0, %v7659_v1  ;;  %v7774_v15 = vor.u32 %v8440_v3, %v7771_v4  ;;  %v7065_v0 = vld [vmem:[%s9045_s18 + $0xb68] sm:$0xf]  ;;  %v8277_v1 = vld [vmem:[%s9045_s18 + $0xbdc] sm:$0xf0]  ;;  %v8141_v3 = vld [vmem:[%s9045_s18 + $0x7a4] sm:$0xf]  ;;  %v6342_v4 = vor.u32 %v8081_v60, %v6339_v61 }
 0x1ec   : > { %4502 = vmatpush.bf16.msra.mxu0 %v7658_v21  ;;  %v6814_v21 = vor.u32 %v8200_v10, %v6811_v12  ;;  %v7066_v10 = vor.u32 %v8277_v1, %v7065_v0  ;;  %v6467_v12 = vld [vmem:[%s9045_s18 + $0x730] sm:$0xf0] }
 0x1ee   : > { %4395 = vmatpush.bf16.msrb.mxu2 %v6090_v23  ;;  %7869 = vmatmul.msk.bf16.vlgmr.msrb.gmra.mxu3 %vm449_vm1, %v9210_v30  ;;  %v8170_v23 = vld [vmem:[%s9045_s18 + $0x88c] sm:$0xf] }
 0x1ef   : > { %4445 = vmatpush.bf16.msra.mxu3 %v7294_v24  ;;  %4475 = vmatpush.bf16.msra.mxu1 %v5858_v28  ;;  %v7542_v24 = vor.u32 %v8381_v16, %v7539_v17  ;;  %v4090_v28 = vsel %vm4067_vm3, %v7774_v15, 0  ;;  %v6694_v35 = vor.u32 %v8170_v23, %v6691_v25  ;;  %v6945_v15 = vld [vmem:[%s9045_s18 + $0xa78] sm:$0xf]  ;;  %v8247_v16 = vld [vmem:[%s9045_s18 + $0xaec] sm:$0xf0] }
 0x1f0   : > { %4503 = vmatpush.bf16.msra.mxu0 %v7538_v36  ;;  %v6942_v36 = vor.u32 %v8231_v26, %v6939_v27  ;;  %v6946_v23 = vor.u32 %v8247_v16, %v6945_v15  ;;  %v6347_v25 = vld [vmem:[%s9045_s18 + $0x640] sm:$0xf0]  ;;  %v7057_v26 = vld [vmem:[%s9045_s18 + $0xb60] sm:$0xf]  ;;  %v8276_v27 = vld [vmem:[%s9045_s18 + $0xbd4] sm:$0xf0] }
 0x1f2   : > { %4396 = vmatpush.bf16.msrb.mxu2 %v5970_v38  ;;  %v6571_v38 = vld [vmem:[%s9045_s18 + $0x810] sm:$0xf0] }
 0x1f3   : > { %4446 = vmatpush.bf16.msra.mxu3 %v7174_v39  ;;  %4476 = vmatpush.bf16.msra.mxu1 %v5738_v43  ;;  %v8201_v39 = vld [vmem:[%s9045_s18 + $0x984] sm:$0xf]  ;;  %v7531_v43 = vld [vmem:[%s9045_s18 + $0xf90] sm:$0xf0]  ;;  %v6574_v52 = vor.u32 %v8140_v37, %v6571_v38  ;;  %v8052_v38 = vld [vmem:[%s9045_s18 + $0x4dc] sm:$0xf] }
 0x1f4   : > { %4522 = vmatpush.bf16.msrb.mxu0 %v7422_v44  ;;  %v7306_v44 = vor.u32 %v8337_v34, %v7305_v33  ;;  %v7991_v33 = vld [vmem:[%s9045_s18 + $0x2f4] sm:$0xf]  ;;  %v5979_v34 = vld [vmem:[%s9045_s18 + $0x368] sm:$0xf0] }
 0x1f6   : > { %4397 = vmatpush.bf16.msrb.mxu2 %v5850_v53  ;;  %v6822_v53 = vor.u32 %v8201_v39, %v6819_v41  ;;  %v6227_v39 = vld [vmem:[%s9045_s18 + $0x550] sm:$0xf0]  ;;  %v8246_v41 = vld [vmem:[%s9045_s18 + $0xae4] sm:$0xf0] }
 0x1f7   : > { %4447 = vmatpush.bf16.msra.mxu3 %v7054_v54  ;;  %4477 = vmatpush.bf16.msra.mxu1 %v5618_v55  ;;  %v7534_v54 = vor.u32 %v8380_v42, %v7531_v43  ;;  %v6462_v55 = vor.u32 %v8111_v45, %v6459_v47  ;;  %v6705_v42 = vld [vmem:[%s9045_s18 + $0x898] sm:$0xf]  ;;  %v8187_v43 = vld [vmem:[%s9045_s18 + $0x90c] sm:$0xf0]  ;;  %v6230_v45 = vor.u32 %v8052_v38, %v6227_v39  ;;  %v7961_v47 = vld [vmem:[%s9045_s18 + $0x204] sm:$0xf] }
 0x1f8   : > { %4523 = vmatpush.bf16.msrb.mxu0 %v7302_v56  ;;  %v8171_v56 = vld [vmem:[%s9045_s18 + $0x894] sm:$0xf]  ;;  %v6706_v50 = vor.u32 %v8187_v43, %v6705_v42  ;;  %v5862_v60 = vor.u32 %v7961_v47, %v5859_v48  ;;  %v7932_v39 = vld [vmem:[%s9045_s18 + $0x11c] sm:$0xf]  ;;  %v7665_v42 = vld [vmem:[%s9045_s18 + $0x1018] sm:$0xf] }
 0x1f9   : > { %7871 = vmatmul.msk.bf16.vlgmr.msra.gmra.mxu0 %vm449_vm1, %v9210_v30  ;;  %v8427_v43 = vld [vmem:[%s9045_s18 + $0x108c] sm:$0xf0]  ;;  %v8097_v47 = vld [vmem:[%s9045_s18 + $0x63c] sm:$0xf0] }
 0x1fa   : > { %4478 = vmatmul.bf16.vlgmr.msra.gmra.mxu1 %v9175_v46  ;;  %4398 = vmatpush.bf16.msrb.mxu2 %v5730_v2  ;;  %v6702_v2 = vor.u32 %v8171_v56, %v6699_v57  ;;  %v8157_v56 = vld [vmem:[%s9045_s18 + $0x81c] sm:$0xf0]  ;;  %v7793_v48 = vld [vmem:[%s9045_s18 + $0x1110] sm:$0xf] }
 0x1fb   : > { %4540 = vmatpush.bf16.msrb.mxu1 %v4096_v63  ;;  %4448 = vmatpush.bf16.msra.mxu3 %v6934_v5  ;;  %v8336_v63 = vld [vmem:[%s9045_s18 + $0xdb4] sm:$0xf0]  ;;  %v6579_v5 = vld [vmem:[%s9045_s18 + $0x818] sm:$0xf0] }
 0x1fc   : > { %4524 = vmatpush.bf16.msrb.mxu0 %v7182_v6  ;;  %v8051_v6 = vld [vmem:[%s9045_s18 + $0x4d4] sm:$0xf]  ;;  %v7298_v9 = vor.u32 %v8336_v63, %v7297_v62  ;;  %v6582_v17 = vor.u32 %v8141_v3, %v6579_v5  ;;  %v5739_v63 = vld [vmem:[%s9045_s18 + $0x188] sm:$0xf0] }
 0x1fd   : > { %v7931_v62 = vld [vmem:[%s9045_s18 + $0x114] sm:$0xf] }
 0x1fe   : > { %4399 = vmatpush.bf16.msrb.mxu2 %v5610_v18  ;;  %v6222_v18 = vor.u32 %v8051_v6, %v6219_v8  ;;  %v5987_v5 = vld [vmem:[%s9045_s18 + $0x370] sm:$0xf0]  ;;  %v6697_v6 = vld [vmem:[%s9045_s18 + $0x890] sm:$0xf] }
 0x1ff   : > { %4541 = vmatpush.bf16.msrb.mxu1 %v7662_v11  ;;  %4449 = vmatpush.bf16.msra.mxu3 %v6814_v21  ;;  %v8112_v11 = vld [vmem:[%s9045_s18 + $0x6bc] sm:$0xf] }
 0x200   : > { %4525 = vmatpush.bf16.msrb.mxu0 %v7062_v22  ;;  %v6470_v19 = vor.u32 %v8112_v11, %v6467_v12  ;;  %v6099_v21 = vld [vmem:[%s9045_s18 + $0x458] sm:$0xf0]  ;;  %v7178_v22 = vor.u32 %v8306_v14, %v7177_v13  ;;  %v8457_v11 = vld [vmem:[%s9045_s18 + $0x117c] sm:$0x30]  ;;  %v6353_v12 = vld [vmem:[%s9045_s18 + $0x5d0] sm:$0xf]  ;;  %v5742_v14 = vor.u32 %v7931_v62, %v5739_v63 }
 0x201   : > { %4400 = vmatmul.bf16.vlgmr.msrb.gmra.mxu2 %v9175_v46  ;;  %v6102_v31 = vor.u32 %v8021_v20, %v6099_v21  ;;  %v8098_v13 = vld [vmem:[%s9045_s18 + $0x644] sm:$0xf0]  ;;  %v8397_v63 = vld [vmem:[%s9045_s18 + $0xf9c] sm:$0xf0] }
 0x202   : > { %4462 = vmatpush.bf16.msra.mxu2 %v4090_v28  ;;  %v6825_v28 = vld [vmem:[%s9045_s18 + $0x988] sm:$0xf]  ;;  %v6354_v21 = vor.u32 %v8098_v13, %v6353_v12 }
 0x203   : > { %4542 = vmatpush.bf16.msrb.mxu1 %v7542_v24  ;;  %4450 = vmatpush.bf16.msra.mxu3 %v6694_v35  ;;  %v8082_v24 = vld [vmem:[%s9045_s18 + $0x5cc] sm:$0xf]  ;;  %v7545_v62 = vld [vmem:[%s9045_s18 + $0xf28] sm:$0xf] }
 0x204   : > { %4526 = vmatpush.bf16.msrb.mxu0 %v6942_v36  ;;  %v6350_v32 = vor.u32 %v8082_v24, %v6347_v25  ;;  %v7058_v36 = vor.u32 %v8276_v27, %v7057_v26  ;;  %v8156_v24 = vld [vmem:[%s9045_s18 + $0x814] sm:$0xf0] }
 0x205   : > { %v6465_v27 = vld [vmem:[%s9045_s18 + $0x6b8] sm:$0xf] }
 0x206   : > { %4463 = vmatpush.bf16.msra.mxu2 %v7654_v40  ;;  %v6937_v40 = vld [vmem:[%s9045_s18 + $0xa70] sm:$0xf] }
 0x207   : > { %4561 = vmatpush.bf16.msra.mxu1 %v7426_v29  ;;  %4451 = vmatpush.bf16.msra.mxu3 %v6574_v52  ;;  %v8217_v29 = vld [vmem:[%s9045_s18 + $0x9fc] sm:$0xf0]  ;;  %v6938_v49 = vor.u32 %v8246_v41, %v6937_v40  ;;  %v6107_v52 = vld [vmem:[%s9045_s18 + $0x460] sm:$0xf0]  ;;  %v5747_v40 = vld [vmem:[%s9045_s18 + $0x190] sm:$0xf0] }
 0x208   : > { %4527 = vmatpush.bf16.msrb.mxu0 %v6822_v53  ;;  %v6826_v37 = vor.u32 %v8217_v29, %v6825_v28  ;;  %v6817_v53 = vld [vmem:[%s9045_s18 + $0x980] sm:$0xf]  ;;  %v6110_v61 = vor.u32 %v8022_v51, %v6107_v52  ;;  %v8127_v28 = vld [vmem:[%s9045_s18 + $0x72c] sm:$0xf0]  ;;  %v8038_v51 = vld [vmem:[%s9045_s18 + $0x464] sm:$0xf0]  ;;  %v5750_v52 = vor.u32 %v7932_v39, %v5747_v40 }
 0x209   : > { %v6466_v41 = vor.u32 %v8127_v28, %v6465_v27  ;;  %v7187_v39 = vld [vmem:[%s9045_s18 + $0xcd0] sm:$0xf0]  ;;  %v5753_v40 = vld [vmem:[%s9045_s18 + $0x120] sm:$0xf] }
 0x20a   : > { %4464 = vmatpush.bf16.msra.mxu2 %v7534_v54  ;;  %4452 = vmatmul.bf16.vlgmr.msra.gmra.mxu3 %v9191_v7  ;;  %v9492_v35 = vpop.f32.mrf.mxu1  ;;  %v8216_v54 = vld [vmem:[%s9045_s18 + $0x9f4] sm:$0xf0] }
 0x20b   : > { %4562 = vmatpush.bf16.msra.mxu1 %v7306_v44  ;;  %4509 = vmatpush.bf16.msrb.mxu3 %v6462_v55  ;;  %v5982_v44 = vor.u32 %v7991_v33, %v5979_v34  ;;  %v6585_v55 = vld [vmem:[%s9045_s18 + $0x7a8] sm:$0xf] }
 0x20c   : > { %7872 = vmatmul.msk.bf16.vlgmr.msrb.gmra.mxu1 %vm449_vm1, %v9210_v30  ;;  %4528 = vmatpush.bf16.msrb.mxu0 %v6702_v2  ;;  %v6818_v2 = vor.u32 %v8216_v54, %v6817_v53  ;;  %v6586_v3 = vor.u32 %v8157_v56, %v6585_v55  ;;  %v7666_v53 = vor.u32 %v8427_v43, %v7665_v42  ;;  %v7902_v55 = vld [vmem:[%s9045_s18 + $0x2c] sm:$0xf]  ;;  %v5627_v56 = vld [vmem:[%s9045_s18 + $0xa0] sm:$0xf0]  ;;  %v7948_v42 = vld [vmem:[%s9045_s18 + $0x194] sm:$0xf0] }
 0x20d   : > { %v8353_v43 = vld [vmem:[%s9045_s18 + $0xe44] sm:$0xf] }
 0x20e   : > { %4483 = vmatpush.bf16.msrb.mxu2 %v7418_v58  ;;  %v6473_v58 = vld [vmem:[%s9045_s18 + $0x6c0] sm:$0xf] }
 0x20f   : > { %4563 = vmatpush.bf16.msra.mxu1 %v7186_v59  ;;  %4510 = vmatpush.bf16.msrb.mxu3 %v6342_v4  ;;  %v8128_v59 = vld [vmem:[%s9045_s18 + $0x734] sm:$0xf0]  ;;  %v7992_v4 = vld [vmem:[%s9045_s18 + $0x2fc] sm:$0xf] }
 0x210   : > { %4529 = vmatpush.bf16.msrb.mxu0 %v6582_v17  ;;  %v9511_v57 = vpop.f32.mrf.mxu3  ;;  %v6474_v8 = vor.u32 %v8128_v59, %v6473_v58  ;;  %v5990_v15 = vor.u32 %v7992_v4, %v5987_v5  ;;  %v7901_v17 = vld [vmem:[%s9045_s18 + $0x24] sm:$0xf]  ;;  %v7427_v4 = vld [vmem:[%s9045_s18 + $0xeb0] sm:$0xf0]  ;;  %v5630_v5 = vor.u32 %v7902_v55, %v5627_v56  ;;  %v8262_v56 = vld [vmem:[%s9045_s18 + $0xb6c] sm:$0xf] }
 0x211   : > { %7870 = vmatmul.msk.bf16.vlgmr.msra.gmra.mxu2 %vm449_vm1, %v9210_v30 }
 0x212   : > { %4484 = vmatpush.bf16.msrb.mxu2 %v7298_v9  ;;  %v4208_v0 = vpop.f32.mrf.mxu1  ;;  %v9517_v1 = vpop.f32.mrf.mxu0  ;;  %v8186_v9 = vld [vmem:[%s9045_s18 + $0x904] sm:$0xf0] }
 0x213   : > { %4564 = vmatpush.bf16.msra.mxu1 %v7066_v10  ;;  %4511 = vmatpush.bf16.msrb.mxu3 %v6222_v18  ;;  %v7785_v10 = vld [vmem:[%s9045_s18 + $0x1108] sm:$0xf]  ;;  %v6698_v16 = vor.u32 %v8186_v9, %v6697_v6  ;;  %v5619_v18 = vld [vmem:[%s9045_s18 + $0x98] sm:$0xf0]  ;;  %v6225_v0 = vld [vmem:[%s9045_s18 + $0x4d8] sm:$0xf] }
 0x214   : > { %4587 = vmatpush.bf16.msra.mxu0 %v6470_v19  ;;  %v7962_v19 = vld [vmem:[%s9045_s18 + $0x20c] sm:$0xf]  ;;  %v7786_v20 = vor.u32 %v8457_v11, %v7785_v10  ;;  %v5622_v29 = vor.u32 %v7901_v17, %v5619_v18  ;;  %v5993_v9 = vld [vmem:[%s9045_s18 + $0x300] sm:$0xf]  ;;  %v8008_v10 = vld [vmem:[%s9045_s18 + $0x374] sm:$0xf0]  ;;  %v7546_v11 = vor.u32 %v8397_v63, %v7545_v62 }
 0x215   : > { %4530 = vmatmul.bf16.vlgmr.msrb.gmra.mxu0 %v9191_v7  ;;  %v6105_v17 = vld [vmem:[%s9045_s18 + $0x3e8] sm:$0xf]  ;;  %v5994_v18 = vor.u32 %v8008_v10, %v5993_v9  ;;  %v8323_v62 = vld [vmem:[%s9045_s18 + $0xd54] sm:$0xf]  ;;  %v7315_v63 = vld [vmem:[%s9045_s18 + $0xdc8] sm:$0xf0] }
 0x216   : > { %4485 = vmatpush.bf16.msrb.mxu2 %v7178_v22  ;;  %v5867_v22 = vld [vmem:[%s9045_s18 + $0x280] sm:$0xf0]  ;;  %v4099_v38 = vsel %vm4067_vm3, %v7786_v20, 0  ;;  %v8322_v20 = vld [vmem:[%s9045_s18 + $0xd4c] sm:$0xf]  ;;  %v7318_v9 = vor.u32 %v8323_v62, %v7315_v63 }
 0x217   : > { %4565 = vmatpush.bf16.msra.mxu1 %v6946_v23  ;;  %4512 = vmatpush.bf16.msrb.mxu3 %v6102_v31  ;;  %v6577_v23 = vld [vmem:[%s9045_s18 + $0x7a0] sm:$0xf]  ;;  %v5870_v33 = vor.u32 %v7962_v19, %v5867_v22  ;;  %v5873_v22 = vld [vmem:[%s9045_s18 + $0x210] sm:$0xf]  ;;  %v5745_v10 = vld [vmem:[%s9045_s18 + $0x118] sm:$0xf] }
 0x218   : > { %4588 = vmatpush.bf16.msra.mxu0 %v6350_v32  ;;  %v4169_v25 = vpop.f32.mrf.mxu3  ;;  %v9533_v26 = vpop.f32.mrf.mxu2  ;;  %v6233_v31 = vld [vmem:[%s9045_s18 + $0x4e0] sm:$0xf]  ;;  %v8068_v32 = vld [vmem:[%s9045_s18 + $0x554] sm:$0xf0]  ;;  %v7667_v62 = vld [vmem:[%s9045_s18 + $0x1090] sm:$0xf0] }
 0x219   : > { %v8037_v19 = vld [vmem:[%s9045_s18 + $0x45c] sm:$0xf0]  ;;  %v7553_v25 = vld [vmem:[%s9045_s18 + $0xf30] sm:$0xf] }
 0x21a   : > { %4486 = vmatpush.bf16.msrb.mxu2 %v7058_v36  ;;  %v4221_v34 = vpop.f32.mrf.mxu0  ;;  %v9540_v36 = vpop.f32.mrf.mxu1  ;;  %v6106_v27 = vor.u32 %v8037_v19, %v6105_v17  ;;  %v7675_v19 = vld [vmem:[%s9045_s18 + $0x1098] sm:$0xf0] }
 0x21b   : > { %4566 = vmatpush.bf16.msra.mxu1 %v6826_v37  ;;  %4513 = vmatpush.bf16.msrb.mxu3 %v5982_v44  ;;  %v6578_v37 = vor.u32 %v8156_v24, %v6577_v23  ;;  %v6345_v44 = vld [vmem:[%s9045_s18 + $0x5c8] sm:$0xf]  ;;  %v8007_v34 = vld [vmem:[%s9045_s18 + $0x36c] sm:$0xf0] }
 0x21c   : > { %4589 = vmatpush.bf16.msra.mxu0 %v6230_v45  ;;  %v6234_v45 = vor.u32 %v8068_v32, %v6233_v31  ;;  %v6346_v54 = vor.u32 %v8097_v47, %v6345_v44  ;;  %v7978_v23 = vld [vmem:[%s9045_s18 + $0x284] sm:$0xf0]  ;;  %v7435_v44 = vld [vmem:[%s9045_s18 + $0xeb8] sm:$0xf0] }
 0x21d   : > { %v8398_v32 = vld [vmem:[%s9045_s18 + $0xfa4] sm:$0xf0]  ;;  %v7438_v55 = vor.u32 %v8353_v43, %v7435_v44 }
 0x21e   : > { %4487 = vmatpush.bf16.msrb.mxu2 %v6938_v49  ;;  %v8458_v49 = vld [vmem:[%s9045_s18 + $0x1184] sm:$0x30] }
 0x21f   : > { %4567 = vmatpush.bf16.msra.mxu1 %v6706_v50  ;;  %4514 = vmatpush.bf16.msrb.mxu3 %v5862_v60  ;;  %v6113_v50 = vld [vmem:[%s9045_s18 + $0x3f0] sm:$0xf]  ;;  %v7794_v58 = vor.u32 %v8458_v49, %v7793_v48  ;;  %v5865_v47 = vld [vmem:[%s9045_s18 + $0x208] sm:$0xf] }
 0x220   : > { %4590 = vmatpush.bf16.msra.mxu0 %v6110_v61  ;;  %v6114_v59 = vor.u32 %v8038_v51, %v6113_v50  ;;  %v4182_v60 = vpop.f32.mrf.mxu2  ;;  %v9556_v61 = vpop.f32.mrf.mxu3  ;;  %v7977_v51 = vld [vmem:[%s9045_s18 + $0x27c] sm:$0xf0]  ;;  %v7441_v44 = vld [vmem:[%s9045_s18 + $0xe48] sm:$0xf] }
 0x221   : > { %v4105_v12 = vsel %vm4067_vm3, %v7794_v58, 0  ;;  %v7067_v58 = vld [vmem:[%s9045_s18 + $0xbe0] sm:$0xf0]  ;;  %v7918_v60 = vld [vmem:[%s9045_s18 + $0xa4] sm:$0xf0] }
 0x222   : > { %4488 = vmatpush.bf16.msrb.mxu2 %v6818_v2  ;;  %v8067_v2 = vld [vmem:[%s9045_s18 + $0x54c] sm:$0xf0]  ;;  %v4260_v6 = vpop.f32.mrf.mxu1 }
 0x223   : > { %4568 = vmatpush.bf16.msra.mxu1 %v6586_v3  ;;  %4515 = vmatpush.bf16.msrb.mxu3 %v5742_v14  ;;  %v8352_v3 = vld [vmem:[%s9045_s18 + $0xe3c] sm:$0xf]  ;;  %v6226_v13 = vor.u32 %v8067_v2, %v6225_v0  ;;  %v5866_v2 = vor.u32 %v7977_v51, %v5865_v47  ;;  %v9637_v47 = vld [vmem:[%s9634_s8] sm:$0xff] }
 0x224   : > { %4591 = vmatpush.bf16.msra.mxu0 %v5990_v15  ;;  %v7430_v14 = vor.u32 %v8352_v3, %v7427_v4  ;;  %v7673_v15 = vld [vmem:[%s9045_s18 + $0x1020] sm:$0xf]  ;;  %v7070_v3 = vor.u32 %v8262_v56, %v7067_v58  ;;  %v8172_v51 = vld [vmem:[%s9045_s18 + $0x89c] sm:$0xf]  ;;  %v1185_v63 = vperm.slane %v9637_v47, 1 }
 0x226   : > { %4569 = vmatmul.bf16.vlgmr.msra.gmra.mxu1 %v9191_v7  ;;  %4489 = vmatpush.bf16.msrb.mxu2 %v6698_v16  ;;  %v8428_v16 = vld [vmem:[%s9045_s18 + $0x1094] sm:$0xf0] }
 0x227   : > { %4626 = vmatpush.bf16.msrb.mxu1 %v6474_v8  ;;  %4516 = vmatpush.bf16.msrb.mxu3 %v5622_v29  ;;  %v9565_v8 = vpop.f32.mrf.mxu0  ;;  %v7674_v24 = vor.u32 %v8428_v16, %v7673_v15  ;;  %v7195_v15 = vld [vmem:[%s9045_s18 + $0xcd8] sm:$0xf0] }
 0x228   : > { %4592 = vmatpush.bf16.msra.mxu0 %v5870_v33  ;;  %v9579_v29 = vpop.f32.mrf.mxu2  ;;  %v4234_v31 = vpop.f32.mrf.mxu3  ;;  %v5985_v33 = vld [vmem:[%s9045_s18 + $0x2f8] sm:$0xf] }
 0x229   : > { %v5986_v49 = vor.u32 %v8007_v34, %v5985_v33  ;;  %v8202_v31 = vld [vmem:[%s9045_s18 + $0x98c] sm:$0xf]  ;;  %v6827_v33 = vld [vmem:[%s9045_s18 + $0xa00] sm:$0xf0]  ;;  %v8263_v34 = vld [vmem:[%s9045_s18 + $0xb74] sm:$0xf] }
 0x22a   : > { %4490 = vmatpush.bf16.msrb.mxu2 %v6578_v37  ;;  %4517 = vmatmul.bf16.vlgmr.msrb.gmra.mxu3 %v9175_v46  ;;  %v5874_v37 = vor.u32 %v7978_v23, %v5873_v22  ;;  %v8442_v22 = vld [vmem:[%s9045_s18 + $0x110c] sm:$0xf]  ;;  %v7787_v23 = vld [vmem:[%s9045_s18 + $0x1180] sm:$0x30] }
 0x22b   : > { %4627 = vmatpush.bf16.msrb.mxu1 %v6354_v21  ;;  %4579 = vmatpush.bf16.msra.mxu3 %v4099_v38  ;;  %v7307_v21 = vld [vmem:[%s9045_s18 + $0xdc0] sm:$0xf0]  ;;  %v8292_v38 = vld [vmem:[%s9045_s18 + $0xc5c] sm:$0xf] }
 0x22c   : > { %4593 = vmatpush.bf16.msra.mxu0 %v5750_v52  ;;  %v7310_v28 = vor.u32 %v8322_v20, %v7307_v21  ;;  %v7190_v50 = vor.u32 %v8292_v38, %v7187_v39  ;;  %v8443_v52 = vld [vmem:[%s9045_s18 + $0x1114] sm:$0xf]  ;;  %v7790_v38 = vor.u32 %v8442_v22, %v7787_v23 }
 0x22d   : > { %4491 = vmatmul.bf16.vlgmr.msrb.gmra.mxu2 %v9191_v7  ;;  %v9592_v48 = vpop.f32.mrf.mxu1  ;;  %v8383_v39 = vld [vmem:[%s9045_s18 + $0xf34] sm:$0xf] }
 0x22e   : > { %4548 = vmatpush.bf16.msra.mxu2 %v6466_v41  ;;  %v4102_v56 = vsel %vm4067_vm3, %v7790_v38, 0 }
 0x22f   : > { %4628 = vmatpush.bf16.msrb.mxu1 %v6234_v45  ;;  %4580 = vmatpush.bf16.msra.mxu3 %v7666_v53  ;;  %v4286_v41 = vpop.f32.mrf.mxu0  ;;  %v7554_v45 = vor.u32 %v8398_v32, %v7553_v25  ;;  %v7795_v53 = vld [vmem:[%s9045_s18 + $0x1188] sm:$0x30] }
 0x230   : > { %4594 = vmatpush.bf16.msra.mxu0 %v5630_v5  ;;  %v7798_v0 = vor.u32 %v8443_v52, %v7795_v53  ;;  %v4195_v4 = vpop.f32.mrf.mxu2  ;;  %v9604_v5 = vpop.f32.mrf.mxu3  ;;  %v6707_v53 = vld [vmem:[%s9045_s18 + $0x910] sm:$0xf0] }
 0x231   : > { %v8339_v4 = vld [vmem:[%s9045_s18 + $0xdcc] sm:$0xf0] }
 0x232   : > { %4549 = vmatpush.bf16.msra.mxu2 %v6346_v54  ;;  %v5754_v54 = vor.u32 %v7948_v42, %v5753_v40  ;;  %v4108_v16 = vsel %vm4067_vm3, %v7798_v0, 0  ;;  %v7555_v40 = vld [vmem:[%s9045_s18 + $0xfa8] sm:$0xf0]  ;;  %v1186_v0 = vperm.slane %v9637_v47, 2 }
 0x233   : > { %4629 = vmatpush.bf16.msrb.mxu1 %v6114_v59  ;;  %4581 = vmatpush.bf16.msra.mxu3 %v7546_v11  ;;  %v5633_v59 = vld [vmem:[%s9045_s18 + $0x30] sm:$0xf]  ;;  %v7558_v52 = vor.u32 %v8383_v39, %v7555_v40  ;;  %v8173_v40 = vld [vmem:[%s9045_s18 + $0x8a4] sm:$0xf] }
 0x234   : > { %4657 = vmatpush.bf16.msrb.mxu0 %v4105_v12  ;;  %v5634_v6 = vor.u32 %v7918_v60, %v5633_v59  ;;  %v7947_v11 = vld [vmem:[%s9045_s18 + $0x18c] sm:$0xf0]  ;;  %v8232_v12 = vld [vmem:[%s9045_s18 + $0xa7c] sm:$0xf] }
 0x235   : > { %4595 = vmatmul.bf16.vlgmr.msra.gmra.mxu0 %v9175_v46  ;;  %v4325_v20 = vpop.f32.mrf.mxu1  ;;  %v5746_v21 = vor.u32 %v7947_v11, %v5745_v10  ;;  %v8412_v60 = vld [vmem:[%s9045_s18 + $0x101c] sm:$0xf]  ;;  %v8142_v10 = vld [vmem:[%s9045_s18 + $0x7ac] sm:$0xf]  ;;  %v6587_v11 = vld [vmem:[%s9045_s18 + $0x820] sm:$0xf0] }
 0x236   : > { %4550 = vmatpush.bf16.msra.mxu2 %v6226_v13  ;;  %v6947_v13 = vld [vmem:[%s9045_s18 + $0xaf0] sm:$0xf0]  ;;  %v6475_v20 = vld [vmem:[%s9045_s18 + $0x738] sm:$0xf0] }
 0x237   : > { %4600 = vmatpush.bf16.msrb.mxu3 %v7430_v14  ;;  %4630 = vmatpush.bf16.msrb.mxu1 %v5994_v18  ;;  %v8293_v14 = vld [vmem:[%s9045_s18 + $0xc64] sm:$0xf]  ;;  %v9615_v17 = vpop.f32.mrf.mxu0 }
 0x238   : > { %4658 = vmatpush.bf16.msrb.mxu0 %v7674_v24  ;;  %v8413_v18 = vld [vmem:[%s9045_s18 + $0x1024] sm:$0xf]  ;;  %v6950_v24 = vor.u32 %v8232_v12, %v6947_v13  ;;  %v7198_v25 = vor.u32 %v8293_v14, %v7195_v15  ;;  %v4245_v42 = vpop.f32.mrf.mxu2  ;;  %v4273_v43 = vpop.f32.mrf.mxu3  ;;  %v8203_v12 = vld [vmem:[%s9045_s18 + $0x994] sm:$0xf]  ;;  %v7670_v13 = vor.u32 %v8412_v60, %v7667_v62  ;;  %v6835_v14 = vld [vmem:[%s9045_s18 + $0xa08] sm:$0xf0] }
 0x239   : > { %v7678_v32 = vor.u32 %v8413_v18, %v7675_v19  ;;  %v8382_v15 = vld [vmem:[%s9045_s18 + $0xf2c] sm:$0xf]  ;;  %v8113_v19 = vld [vmem:[%s9045_s18 + $0x6c4] sm:$0xf]  ;;  %v4246_v22 = vadd.f32 %v4245_v42, %v1186_v0 }
 0x23a   : > { %4551 = vmatpush.bf16.msra.mxu2 %v6106_v27  ;;  %7873 = vmatmul.msk.bf16.vlgmr.msra.gmra.mxu3 %vm449_vm1, %v9210_v30  ;;  %v5625_v27 = vld [vmem:[%s9045_s18 + $0x28] sm:$0xf]  ;;  %v6478_v39 = vor.u32 %v8113_v19, %v6475_v20  ;;  %v6595_v62 = vld [vmem:[%s9045_s18 + $0x828] sm:$0xf0] }
 0x23b   : > { %4601 = vmatpush.bf16.msrb.mxu3 %v7310_v28  ;;  %4631 = vmatpush.bf16.msrb.mxu1 %v5874_v37  ;;  %v7917_v28 = vld [vmem:[%s9045_s18 + $0x9c] sm:$0xf0]  ;;  %v7075_v37 = vld [vmem:[%s9045_s18 + $0xbe8] sm:$0xf0] }
 0x23c   : > { %4659 = vmatpush.bf16.msrb.mxu0 %v7554_v45  ;;  %v5626_v41 = vor.u32 %v7917_v28, %v5625_v27  ;;  %v8369_v45 = vld [vmem:[%s9045_s18 + $0xebc] sm:$0xf0]  ;;  %v7201_v27 = vld [vmem:[%s9045_s18 + $0xc68] sm:$0xf] }
 0x23d   : > { %v7442_v58 = vor.u32 %v8369_v45, %v7441_v44  ;;  %v8309_v28 = vld [vmem:[%s9045_s18 + $0xcdc] sm:$0xf0]  ;;  %v8083_v45 = vld [vmem:[%s9045_s18 + $0x5d4] sm:$0xf] }
 0x23e   : > { %4552 = vmatpush.bf16.msra.mxu2 %v5986_v49  ;;  %v6830_v49 = vor.u32 %v8202_v31, %v6827_v33  ;;  %v4207_v31 = vadd.f32 %v9492_v35, %v1185_v63  ;;  %v6590_v33 = vor.u32 %v8142_v10, %v6587_v11  ;;  %v7202_v43 = vor.u32 %v8309_v28, %v7201_v27  ;;  %v8053_v63 = vld [vmem:[%s9045_s18 + $0x4e4] sm:$0xf]  ;;  %v6363_v27 = vld [vmem:[%s9045_s18 + $0x650] sm:$0xf0]  ;;  %v7073_v28 = vld [vmem:[%s9045_s18 + $0xb70] sm:$0xf] }
 0x23f   : > { %4602 = vmatpush.bf16.msrb.mxu3 %v7190_v50  ;;  %4632 = vmatpush.bf16.msrb.mxu1 %v5754_v54  ;;  %v7078_v50 = vor.u32 %v8263_v34, %v7075_v37  ;;  %v8233_v54 = vld [vmem:[%s9045_s18 + $0xa84] sm:$0xf]  ;;  %v4351_v59 = vpop.f32.mrf.mxu0  ;;  %v6838_v34 = vor.u32 %v8203_v12, %v6835_v14  ;;  %v1187_v37 = vperm.slane %v9637_v47, 3  ;;  %v6961_v12 = vld [vmem:[%s9045_s18 + $0xa88] sm:$0xf] }
 0x240   : > { %4678 = vmatpush.bf16.msra.mxu0 %v7438_v55  ;;  %v6955_v55 = vld [vmem:[%s9045_s18 + $0xaf8] sm:$0xf0]  ;;  %v4247_v23 = vpop.f32.mrf.mxu2  ;;  %v4220_v35 = vadd.f32 %v9517_v1, %v4207_v31  ;;  %v8143_v59 = vld [vmem:[%s9045_s18 + $0x7b4] sm:$0xf]  ;;  %v8278_v31 = vld [vmem:[%s9045_s18 + $0xbe4] sm:$0xf0] }
 0x241   : > { %v8084_v23 = vld [vmem:[%s9045_s18 + $0x5dc] sm:$0xf] }
 0x242   : > { %4553 = vmatpush.bf16.msra.mxu2 %v5866_v2  ;;  %v9650_v2 = vpop.f32.mrf.mxu1 }
 0x243   : > { %4603 = vmatpush.bf16.msrb.mxu3 %v7070_v3  ;;  %4633 = vmatpush.bf16.msrb.mxu1 %v5634_v6  ;;  %v7321_v3 = vld [vmem:[%s9045_s18 + $0xd58] sm:$0xf]  ;;  %v6710_v6 = vor.u32 %v8172_v51, %v6707_v53  ;;  %v4259_v51 = vadd.f32 %v9540_v36, %v4246_v22  ;;  %v8338_v53 = vld [vmem:[%s9045_s18 + $0xdc4] sm:$0xf0]  ;;  %v4285_v36 = vadd.f32 %v9565_v8, %v1187_v37  ;;  %v6115_v22 = vld [vmem:[%s9045_s18 + $0x468] sm:$0xf0] }
 0x244   : > { %4679 = vmatpush.bf16.msra.mxu0 %v7318_v9  ;;  %v6958_v9 = vor.u32 %v8233_v54, %v6955_v55  ;;  %v7322_v18 = vor.u32 %v8339_v4, %v7321_v3  ;;  %v7081_v54 = vld [vmem:[%s9045_s18 + $0xb78] sm:$0xf]  ;;  %v8279_v55 = vld [vmem:[%s9045_s18 + $0xbec] sm:$0xf0]  ;;  %v8114_v4 = vld [vmem:[%s9045_s18 + $0x6cc] sm:$0xf] }
 0x245   : > { %7875 = vmatmul.msk.bf16.vlgmr.msrb.gmra.mxu0 %vm449_vm1, %v9210_v30  ;;  %v7082_v3 = vor.u32 %v8279_v55, %v7081_v54  ;;  %v4272_v8 = vadd.f32 %v9604_v5, %v4259_v51  ;;  %v8219_v37 = vld [vmem:[%s9045_s18 + $0xa0c] sm:$0xf0]  ;;  %v6243_v51 = vld [vmem:[%s9045_s18 + $0x560] sm:$0xf0]  ;;  %v6721_v54 = vld [vmem:[%s9045_s18 + $0x8a8] sm:$0xf] }
 0x246   : > { %4634 = vmatmul.bf16.vlgmr.msrb.gmra.mxu1 %v9175_v46  ;;  %4554 = vmatpush.bf16.msra.mxu2 %v5746_v21  ;;  %v7433_v21 = vld [vmem:[%s9045_s18 + $0xe40] sm:$0xf] }
 0x247   : > { %4696 = vmatpush.bf16.msra.mxu1 %v4108_v16  ;;  %4604 = vmatpush.bf16.msrb.mxu3 %v6950_v24  ;;  %v7547_v16 = vld [vmem:[%s9045_s18 + $0xfa0] sm:$0xf0]  ;;  %v4297_v24 = vpop.f32.mrf.mxu3  ;;  %v9673_v44 = vpop.f32.mrf.mxu0  ;;  %v8189_v55 = vld [vmem:[%s9045_s18 + $0x91c] sm:$0xf0] }
 0x248   : > { %4680 = vmatpush.bf16.msra.mxu0 %v7198_v25  ;;  %v8368_v25 = vld [vmem:[%s9045_s18 + $0xeb4] sm:$0xf0]  ;;  %v7550_v38 = vor.u32 %v8382_v15, %v7547_v16  ;;  %v4298_v10 = vadd.f32 %v4297_v24, %v4285_v36  ;;  %v6598_v16 = vor.u32 %v8143_v59, %v6595_v62  ;;  %v4310_v5 = vpop.f32.mrf.mxu2  ;;  %v7963_v36 = vld [vmem:[%s9045_s18 + $0x214] sm:$0xf] }
 0x249   : > { %v7434_v42 = vor.u32 %v8368_v25, %v7433_v21  ;;  %v8023_v21 = vld [vmem:[%s9045_s18 + $0x3f4] sm:$0xf] }
 0x24a   : > { %4555 = vmatpush.bf16.msra.mxu2 %v5626_v41  ;;  %v6715_v41 = vld [vmem:[%s9045_s18 + $0x918] sm:$0xf0] }
 0x24b   : > { %4697 = vmatpush.bf16.msra.mxu1 %v7678_v32  ;;  %4605 = vmatpush.bf16.msrb.mxu3 %v6830_v49  ;;  %v1184_v32 = vperm.slane %v9637_v47, 0  ;;  %v6355_v49 = vld [vmem:[%s9045_s18 + $0x648] sm:$0xf0] }
 0x24c   : > { %4681 = vmatpush.bf16.msra.mxu0 %v7078_v50  ;;  %v7313_v50 = vld [vmem:[%s9045_s18 + $0xd50] sm:$0xf]  ;;  %v6358_v60 = vor.u32 %v8083_v45, %v6355_v49  ;;  %v7074_v45 = vor.u32 %v8278_v31, %v7073_v28 }
 0x24d   : > { %4556 = vmatmul.bf16.vlgmr.msra.gmra.mxu2 %v9175_v46  ;;  %v4168_v1 = vadd.f32 %v9511_v57, %v1184_v32  ;;  %v6235_v57 = vld [vmem:[%s9045_s18 + $0x558] sm:$0xf0]  ;;  %v7314_v0 = vor.u32 %v8338_v53, %v7313_v50  ;;  %v5359_v32 = vrot.slane %v4272_v8, 4  ;;  %v8054_v50 = vld [vmem:[%s9045_s18 + $0x4ec] sm:$0xf] }
 0x24e   : > { %4618 = vmatpush.bf16.msrb.mxu2 %v4102_v56  ;;  %v4233_v56 = vadd.f32 %v9556_v61, %v4220_v35  ;;  %v6238_v19 = vor.u32 %v8053_v63, %v6235_v57  ;;  %v7993_v35 = vld [vmem:[%s9045_s18 + $0x304] sm:$0xf]  ;;  %v8248_v53 = vld [vmem:[%s9045_s18 + $0xaf4] sm:$0xf0]  ;;  %v6246_v59 = vor.u32 %v8054_v50, %v6243_v51  ;;  %v6722_v63 = vor.u32 %v8189_v55, %v6721_v54  ;;  %v8024_v57 = vld [vmem:[%s9045_s18 + $0x3fc] sm:$0xf] }
 0x24f   : > { %4698 = vmatpush.bf16.msra.mxu1 %v7558_v52  ;;  %4606 = vmatpush.bf16.msrb.mxu3 %v6710_v6  ;;  %v4390_v52 = vpop.f32.mrf.mxu1  ;;  %v4181_v61 = vadd.f32 %v9533_v26, %v4168_v1  ;;  %v6483_v6 = vld [vmem:[%s9045_s18 + $0x740] sm:$0xf0]  ;;  %v4299_v11 = vpop.f32.mrf.mxu3  ;;  %v8308_v26 = vld [vmem:[%s9045_s18 + $0xcd4] sm:$0xf0]  ;;  %v8130_v8 = vld [vmem:[%s9045_s18 + $0x744] sm:$0xf0] }
 0x250   : > { %4682 = vmatpush.bf16.msra.mxu0 %v6958_v9  ;;  %v7193_v9 = vld [vmem:[%s9045_s18 + $0xc60] sm:$0xf]  ;;  %v5358_v14 = vrot.slane %v4233_v56, 6  ;;  %v6486_v20 = vor.u32 %v8114_v4, %v6483_v6  ;;  %v4377_v25 = vpop.f32.mrf.mxu0  ;;  %v4312_v56 = vpop.f32.mrf.mxu2  ;;  %v6601_v4 = vld [vmem:[%s9045_s18 + $0x7b8] sm:$0xf] }
 0x251   : > { %v4194_v15 = vadd.f32 %v9579_v29, %v4181_v61  ;;  %v7194_v29 = vor.u32 %v8308_v26, %v7193_v9  ;;  %v6953_v52 = vld [vmem:[%s9045_s18 + $0xa80] sm:$0xf]  ;;  %v6123_v61 = vld [vmem:[%s9045_s18 + $0x470] sm:$0xf0]  ;;  %v8159_v6 = vld [vmem:[%s9045_s18 + $0x82c] sm:$0xf0] }
 0x252   : > { %4619 = vmatpush.bf16.msrb.mxu2 %v7670_v13  ;;  %v8249_v13 = vld [vmem:[%s9045_s18 + $0xafc] sm:$0xf0]  ;;  %v6954_v62 = vor.u32 %v8248_v53, %v6953_v52  ;;  %v6489_v9 = vld [vmem:[%s9045_s18 + $0x6d0] sm:$0xf]  ;;  %v6126_v11 = vor.u32 %v8024_v57, %v6123_v61  ;;  %v7933_v26 = vld [vmem:[%s9045_s18 + $0x124] sm:$0xf] }
 0x253   : > { %4717 = vmatpush.bf16.msrb.mxu1 %v7442_v58  ;;  %4607 = vmatpush.bf16.msrb.mxu3 %v6590_v33  ;;  %v6718_v58 = vor.u32 %v8173_v40, %v6715_v41  ;;  %v6962_v24 = vor.u32 %v8249_v13, %v6961_v12  ;;  %v6118_v40 = vor.u32 %v8023_v21, %v6115_v22  ;;  %v5755_v12 = vld [vmem:[%s9045_s18 + $0x198] sm:$0xf0]  ;;  %v8459_v21 = vld [vmem:[%s9045_s18 + $0x118c] sm:$0x30]  ;;  %v8070_v51 = vld [vmem:[%s9045_s18 + $0x564] sm:$0xf0] }
 0x254   : > { %4683 = vmatpush.bf16.msra.mxu0 %v6838_v34  ;;  %v6841_v34 = vld [vmem:[%s9045_s18 + $0x998] sm:$0xf]  ;;  %v6366_v41 = vor.u32 %v8084_v23, %v6363_v27  ;;  %v6369_v23 = vld [vmem:[%s9045_s18 + $0x5e0] sm:$0xf]  ;;  %v5758_v25 = vor.u32 %v7933_v26, %v5755_v12  ;;  %v1189_v27 = vperm.slane %v9637_v47, 5 }
 0x255   : > { %v6842_v49 = vor.u32 %v8219_v37, %v6841_v34  ;;  %v7964_v34 = vld [vmem:[%s9045_s18 + $0x21c] sm:$0xf]  ;;  %v6249_v50 = vld [vmem:[%s9045_s18 + $0x4f0] sm:$0xf]  ;;  %v7934_v56 = vld [vmem:[%s9045_s18 + $0x12c] sm:$0xf] }
 0x256   : > { %4620 = vmatpush.bf16.msrb.mxu2 %v7550_v38  ;;  %4608 = vmatmul.bf16.vlgmr.msrb.gmra.mxu3 %v9191_v7  ;;  %v5381_v38 = vsel %vm5380_vm4, %v4194_v15, %v5358_v14  ;;  %v6602_v14 = vor.u32 %v8159_v6, %v6601_v4  ;;  %v7994_v15 = vld [vmem:[%s9045_s18 + $0x30c] sm:$0xf]  ;;  %v7809_v4 = vld [vmem:[%s9045_s18 + $0x1120] sm:$0xf]  ;;  %v8460_v6 = vld [vmem:[%s9045_s18 + $0x1194] sm:$0x30] }
 0x257   : > { %4718 = vmatpush.bf16.msrb.mxu1 %v7322_v18  ;;  %4665 = vmatpush.bf16.msra.mxu3 %v6478_v39  ;;  %v4311_v18 = vadd.f32 %v4310_v5, %v4298_v10  ;;  %v9729_v1 = vpop.f32.mrf.mxu1  ;;  %v6713_v5 = vld [vmem:[%s9045_s18 + $0x8a0] sm:$0xf] }
 0x258   : > { %7876 = vmatmul.msk.bf16.vlgmr.msra.gmra.mxu1 %vm449_vm1, %v9210_v30  ;;  %4684 = vmatpush.bf16.msra.mxu0 %v6718_v58 }
 0x259   : > { %v5360_v33 = vrot.slane %v4311_v18, 2  ;;  %v6490_v18 = vor.u32 %v8130_v8, %v6489_v9  ;;  %v6129_v8 = vld [vmem:[%s9045_s18 + $0x400] sm:$0xf] }
 0x25a   : > { %4639 = vmatpush.bf16.msra.mxu2 %v7434_v42  ;;  %v5995_v42 = vld [vmem:[%s9045_s18 + $0x378] sm:$0xf0] }
 0x25b   : > { %4719 = vmatpush.bf16.msrb.mxu1 %v7202_v43  ;;  %4666 = vmatpush.bf16.msra.mxu3 %v6358_v60  ;;  %v5383_v39 = vsel %vm5382_vm5, %v5359_v32, %v5360_v33  ;;  %v5998_v58 = vor.u32 %v7993_v35, %v5995_v42  ;;  %v5875_v60 = vld [vmem:[%s9045_s18 + $0x288] sm:$0xf0]  ;;  %v7903_v32 = vld [vmem:[%s9045_s18 + $0x34] sm:$0xf]  ;;  %v6481_v35 = vld [vmem:[%s9045_s18 + $0x6c8] sm:$0xf] }
 0x25c   : > { %4685 = vmatpush.bf16.msra.mxu0 %v6598_v16  ;;  %v5384_v43 = vsel %vm452_vm0, %v5381_v38, %v5383_v39  ;;  %v5878_v10 = vor.u32 %v7963_v36, %v5875_v60  ;;  %v6003_v16 = vld [vmem:[%s9045_s18 + $0x380] sm:$0xf0]  ;;  %v5635_v33 = vld [vmem:[%s9045_s18 + $0xa8] sm:$0xf0]  ;;  %v5883_v39 = vld [vmem:[%s9045_s18 + $0x290] sm:$0xf0] }
 0x25d   : > { %5412 = vst [vmem:[%s9720_s1] sm:$0xff] %v5384_v43  ;;  %7874 = vmatmul.msk.bf16.vlgmr.msrb.gmra.mxu2 %vm449_vm1, %v9210_v30  ;;  %v6006_v28 = vor.u32 %v7994_v15, %v6003_v16  ;;  %v8129_v42 = vld [vmem:[%s9045_s18 + $0x73c] sm:$0xf0]  ;;  %v5886_v53 = vor.u32 %v7964_v34, %v5883_v39  ;;  %v7681_v60 = vld [vmem:[%s9045_s18 + $0x1028] sm:$0xf]  ;;  %v7561_v15 = vld [vmem:[%s9045_s18 + $0xf38] sm:$0xf] }
 0x25e   : > { %4640 = vmatpush.bf16.msra.mxu2 %v7314_v0  ;;  %v6833_v0 = vld [vmem:[%s9045_s18 + $0x990] sm:$0xf]  ;;  %v6482_v36 = vor.u32 %v8129_v42, %v6481_v35  ;;  %v6121_v39 = vld [vmem:[%s9045_s18 + $0x3f8] sm:$0xf]  ;;  %v8324_v35 = vld [vmem:[%s9045_s18 + $0xd5c] sm:$0xf] }
 0x25f   : > { %4720 = vmatpush.bf16.msrb.mxu1 %v7082_v3  ;;  %4667 = vmatpush.bf16.msra.mxu3 %v6238_v19  ;;  %v8218_v3 = vld [vmem:[%s9045_s18 + $0xa04] sm:$0xf0]  ;;  %v8188_v19 = vld [vmem:[%s9045_s18 + $0x914] sm:$0xf0]  ;;  %v4416_v22 = vpop.f32.mrf.mxu1  ;;  %v7323_v42 = vld [vmem:[%s9045_s18 + $0xdd0] sm:$0xf0] }
 0x260   : > { %4743 = vmatpush.bf16.msrb.mxu0 %v6486_v20  ;;  %v6834_v13 = vor.u32 %v8218_v3, %v6833_v0  ;;  %v7801_v20 = vld [vmem:[%s9045_s18 + $0x1118] sm:$0xf]  ;;  %v6714_v31 = vor.u32 %v8188_v19, %v6713_v5  ;;  %v6250_v0 = vor.u32 %v8070_v51, %v6249_v50  ;;  %v8099_v3 = vld [vmem:[%s9045_s18 + $0x64c] sm:$0xf0]  ;;  %v7443_v22 = vld [vmem:[%s9045_s18 + $0xec0] sm:$0xf0] }
 0x261   : > { %4686 = vmatmul.bf16.vlgmr.msra.gmra.mxu0 %v9191_v7  ;;  %v7802_v37 = vor.u32 %v8459_v21, %v7801_v20  ;;  %v8399_v5 = vld [vmem:[%s9045_s18 + $0xfac] sm:$0xf0]  ;;  %v8069_v20 = vld [vmem:[%s9045_s18 + $0x55c] sm:$0xf0]  ;;  %v8354_v21 = vld [vmem:[%s9045_s18 + $0xe4c] sm:$0xf] }
 0x262   : > { %4641 = vmatpush.bf16.msra.mxu2 %v7194_v29  ;;  %v8100_v29 = vld [vmem:[%s9045_s18 + $0x654] sm:$0xf0]  ;;  %v7446_v34 = vor.u32 %v8354_v21, %v7443_v22  ;;  %v7569_v50 = vld [vmem:[%s9045_s18 + $0xf40] sm:$0xf]  ;;  %v5761_v21 = vld [vmem:[%s9045_s18 + $0x128] sm:$0xf] }
 0x263   : > { %4721 = vmatpush.bf16.msrb.mxu1 %v6962_v24  ;;  %4668 = vmatpush.bf16.msra.mxu3 %v6118_v40  ;;  %v1188_v24 = vperm.slane %v9637_v47, 4  ;;  %v6370_v38 = vor.u32 %v8100_v29, %v6369_v23  ;;  %v6593_v40 = vld [vmem:[%s9045_s18 + $0x7b0] sm:$0xf]  ;;  %v7949_v22 = vld [vmem:[%s9045_s18 + $0x19c] sm:$0xf0] }
 0x264   : > { %4744 = vmatpush.bf16.msrb.mxu0 %v6366_v41  ;;  %v8158_v41 = vld [vmem:[%s9045_s18 + $0x824] sm:$0xf0]  ;;  %v4336_v54 = vpop.f32.mrf.mxu2 }
 0x265   : > { %v4324_v43 = vadd.f32 %v9592_v48, %v1188_v24  ;;  %v6594_v55 = vor.u32 %v8158_v41, %v6593_v40  ;;  %v4111_v48 = vsel %vm4067_vm3, %v7802_v37, 0  ;;  %v7689_v37 = vld [vmem:[%s9045_s18 + $0x1030] sm:$0xf] }
 0x266   : > { %4642 = vmatpush.bf16.msra.mxu2 %v7074_v45  ;;  %v4362_v45 = vpop.f32.mrf.mxu3  ;;  %v9772_v61 = vpop.f32.mrf.mxu0  ;;  %v8039_v41 = vld [vmem:[%s9045_s18 + $0x46c] sm:$0xf0] }
 0x267   : > { %4722 = vmatpush.bf16.msrb.mxu1 %v6842_v49  ;;  %4669 = vmatpush.bf16.msra.mxu3 %v5998_v58  ;;  %v5638_v49 = vor.u32 %v7903_v32, %v5635_v33  ;;  %v4363_v52 = vadd.f32 %v4362_v45, %v1189_v27  ;;  %v5763_v58 = vld [vmem:[%s9045_s18 + $0x1a0] sm:$0xf0]  ;;  %v8010_v27 = vld [vmem:[%s9045_s18 + $0x384] sm:$0xf0]  ;;  %v7980_v45 = vld [vmem:[%s9045_s18 + $0x294] sm:$0xf0]  ;;  %v6122_v51 = vor.u32 %v8039_v41, %v6121_v39 }
 0x268   : > { %4745 = vmatpush.bf16.msrb.mxu0 %v6246_v59  ;;  %v4337_v59 = vadd.f32 %v4336_v54, %v4324_v43  ;;  %v5889_v43 = vld [vmem:[%s9045_s18 + $0x220] sm:$0xf]  ;;  %v6001_v54 = vld [vmem:[%s9045_s18 + $0x308] sm:$0xf]  ;;  %v7803_v39 = vld [vmem:[%s9045_s18 + $0x1190] sm:$0x30] }
 0x269   : > { %v4376_v57 = vadd.f32 %v9673_v44, %v4363_v52  ;;  %v5766_v44 = vor.u32 %v7934_v56, %v5763_v58  ;;  %v7326_v52 = vor.u32 %v8324_v35, %v7323_v42  ;;  %v8294_v56 = vld [vmem:[%s9045_s18 + $0xc6c] sm:$0xf]  ;;  %v7203_v58 = vld [vmem:[%s9045_s18 + $0xce0] sm:$0xf0]  ;;  %v5641_v42 = vld [vmem:[%s9045_s18 + $0x38] sm:$0xf] }
 0x26a   : > { %4643 = vmatpush.bf16.msra.mxu2 %v6954_v62  ;;  %v8429_v62 = vld [vmem:[%s9045_s18 + $0x109c] sm:$0xf0]  ;;  %v4350_v9 = vadd.f32 %v9615_v17, %v4337_v59  ;;  %v7810_v17 = vor.u32 %v8460_v6, %v7809_v4  ;;  %v5769_v59 = vld [vmem:[%s9045_s18 + $0x130] sm:$0xf]  ;;  %v7206_v6 = vor.u32 %v8294_v56, %v7203_v58  ;;  %v7457_v58 = vld [vmem:[%s9045_s18 + $0xe58] sm:$0xf] }
 0x26b   : > { %4723 = vmatpush.bf16.msrb.mxu1 %v6722_v63  ;;  %4670 = vmatpush.bf16.msra.mxu3 %v5878_v10  ;;  %v6361_v63 = vld [vmem:[%s9045_s18 + $0x5d8] sm:$0xf]  ;;  %v7682_v26 = vor.u32 %v8429_v62, %v7681_v60  ;;  %v8355_v60 = vld [vmem:[%s9045_s18 + $0xe54] sm:$0xf]  ;;  %v7451_v62 = vld [vmem:[%s9045_s18 + $0xec8] sm:$0xf0] }
 0x26c   : > { %4746 = vmatpush.bf16.msrb.mxu0 %v6126_v11  ;;  %v8040_v10 = vld [vmem:[%s9045_s18 + $0x474] sm:$0xf0]  ;;  %v4389_v11 = vadd.f32 %v9650_v2, %v4376_v57  ;;  %v6362_v12 = vor.u32 %v8099_v3, %v6361_v63  ;;  %v4338_v24 = vpop.f32.mrf.mxu2 }
 0x26d   : > { %v6130_v2 = vor.u32 %v8040_v10, %v6129_v8  ;;  %v5881_v3 = vld [vmem:[%s9045_s18 + $0x218] sm:$0xf]  ;;  %v8445_v8 = vld [vmem:[%s9045_s18 + $0x1124] sm:$0xf]  ;;  %v7811_v10 = vld [vmem:[%s9045_s18 + $0x1198] sm:$0x30] }
 0x26e   : > { %4644 = vmatpush.bf16.msra.mxu2 %v6834_v13  ;;  %v7904_v13 = vld [vmem:[%s9045_s18 + $0x3c] sm:$0xf]  ;;  %v5361_v16 = vrot.slane %v4389_v11, 6  ;;  %v4364_v19 = vpop.f32.mrf.mxu3  ;;  %v4442_v32 = vpop.f32.mrf.mxu0  ;;  %v6963_v24 = vld [vmem:[%s9045_s18 + $0xb00] sm:$0xf0] }
 0x26f   : > { %4724 = vmatpush.bf16.msrb.mxu1 %v6602_v14  ;;  %4671 = vmatpush.bf16.msra.mxu3 %v5758_v25  ;;  %v5643_v14 = vld [vmem:[%s9045_s18 + $0xb0] sm:$0xf0]  ;;  %v6009_v25 = vld [vmem:[%s9045_s18 + $0x310] sm:$0xf] }
 0x270   : > { %4747 = vmatpush.bf16.msrb.mxu0 %v6006_v28  ;;  %v9792_v23 = vsel %vm5380_vm4, %v4350_v9, %v5361_v16  ;;  %v5646_v29 = vor.u32 %v7904_v13, %v5643_v14  ;;  %v7562_v28 = vor.u32 %v8399_v5, %v7561_v15  ;;  %v6010_v40 = vor.u32 %v8010_v27, %v6009_v25  ;;  %v7979_v9 = vld [vmem:[%s9045_s18 + $0x28c] sm:$0xf0]  ;;  %v7083_v13 = vld [vmem:[%s9045_s18 + $0xbf0] sm:$0xf0]  ;;  %v5649_v14 = vld [vmem:[%s9045_s18 + $0x40] sm:$0xf] }
 0x271   : > { %v7920_v15 = vld [vmem:[%s9045_s18 + $0xb4] sm:$0xf0]  ;;  %v7331_v16 = vld [vmem:[%s9045_s18 + $0xdd8] sm:$0xf0]  ;;  %v5882_v5 = vor.u32 %v7979_v9, %v5881_v3  ;;  %v8295_v25 = vld [vmem:[%s9045_s18 + $0xc74] sm:$0xf] }
 0x272   : > { %4725 = vmatmul.bf16.vlgmr.msrb.gmra.mxu1 %v9191_v7  ;;  %4645 = vmatpush.bf16.msra.mxu2 %v6714_v31  ;;  %v4117_v31 = vsel %vm4067_vm3, %v7810_v17, 0  ;;  %v8325_v17 = vld [vmem:[%s9045_s18 + $0xd64] sm:$0xf]  ;;  %v5650_v19 = vor.u32 %v7920_v15, %v5649_v14  ;;  %v7211_v27 = vld [vmem:[%s9045_s18 + $0xce8] sm:$0xf0] }
 0x273   : > { %4782 = vmatpush.bf16.msra.mxu1 %v6490_v18  ;;  %4672 = vmatpush.bf16.msra.mxu3 %v5638_v49  ;;  %v6241_v18 = vld [vmem:[%s9045_s18 + $0x4e8] sm:$0xf]  ;;  %v7214_v35 = vor.u32 %v8295_v25, %v7211_v27  ;;  %v6723_v3 = vld [vmem:[%s9045_s18 + $0x920] sm:$0xf0]  ;;  %v8341_v14 = vld [vmem:[%s9045_s18 + $0xddc] sm:$0xf0] }
 0x274   : > { %4748 = vmatpush.bf16.msrb.mxu0 %v5886_v53  ;;  %v6242_v33 = vor.u32 %v8069_v20, %v6241_v18  ;;  %v8400_v53 = vld [vmem:[%s9045_s18 + $0xfb4] sm:$0xf0]  ;;  %v7334_v20 = vor.u32 %v8325_v17, %v7331_v16  ;;  %v8144_v16 = vld [vmem:[%s9045_s18 + $0x7bc] sm:$0xf]  ;;  %v7449_v25 = vld [vmem:[%s9045_s18 + $0xe50] sm:$0xf] }
 0x276   : > { %4646 = vmatpush.bf16.msra.mxu2 %v6594_v55  ;;  %4673 = vmatmul.bf16.vlgmr.msra.gmra.mxu3 %v9175_v46  ;;  %v8009_v55 = vld [vmem:[%s9045_s18 + $0x37c] sm:$0xf0]  ;;  %v9816_v63 = vpop.f32.mrf.mxu3  ;;  %v9824_v11 = vpop.f32.mrf.mxu0 }
 0x277   : > { %4783 = vmatpush.bf16.msra.mxu1 %v6370_v38  ;;  %4735 = vmatpush.bf16.msrb.mxu3 %v4111_v48  ;;  %v8430_v38 = vld [vmem:[%s9045_s18 + $0x10a4] sm:$0xf0]  ;;  %v5890_v48 = vor.u32 %v7980_v45, %v5889_v43  ;;  %v9818_v57 = vpop.f32.mrf.mxu1  ;;  %v6002_v4 = vor.u32 %v8009_v55, %v6001_v54  ;;  %v7919_v43 = vld [vmem:[%s9045_s18 + $0xac] sm:$0xf0]  ;;  %v8204_v45 = vld [vmem:[%s9045_s18 + $0x99c] sm:$0xf] }
 0x278   : > { %4749 = vmatpush.bf16.msrb.mxu0 %v5766_v44  ;;  %v7690_v49 = vor.u32 %v8430_v38, %v7689_v37  ;;  %v5762_v37 = vor.u32 %v7949_v22, %v5761_v21  ;;  %v8444_v38 = vld [vmem:[%s9045_s18 + $0x111c] sm:$0xf]  ;;  %v8385_v54 = vld [vmem:[%s9045_s18 + $0xf44] sm:$0xf]  ;;  %v5642_v56 = vor.u32 %v7919_v43, %v5641_v42  ;;  %v7563_v21 = vld [vmem:[%s9045_s18 + $0xfb0] sm:$0xf0] }
 0x279   : > { %4647 = vmatmul.bf16.vlgmr.msra.gmra.mxu2 %v9191_v7  ;;  %v7571_v55 = vld [vmem:[%s9045_s18 + $0xfb8] sm:$0xf0]  ;;  %v6731_v42 = vld [vmem:[%s9045_s18 + $0x928] sm:$0xf0] }
 0x27a   : > { %4704 = vmatpush.bf16.msrb.mxu2 %v6482_v36  ;;  %v7950_v36 = vld [vmem:[%s9045_s18 + $0x1a4] sm:$0xf0] }
 0x27b   : > { %4784 = vmatpush.bf16.msra.mxu1 %v6250_v0  ;;  %4736 = vmatpush.bf16.msrb.mxu3 %v7682_v26  ;;  %v7570_v0 = vor.u32 %v8400_v53, %v7569_v50  ;;  %v5770_v44 = vor.u32 %v7950_v36, %v5769_v59  ;;  %v7454_v26 = vor.u32 %v8355_v60, %v7451_v62  ;;  %v6843_v50 = vld [vmem:[%s9045_s18 + $0xa10] sm:$0xf0]  ;;  %v8371_v59 = vld [vmem:[%s9045_s18 + $0xecc] sm:$0xf0]  ;;  %v8174_v62 = vld [vmem:[%s9045_s18 + $0x8ac] sm:$0xf] }
 0x27c   : > { %4750 = vmatpush.bf16.msrb.mxu0 %v5646_v29  ;;  %v8234_v29 = vld [vmem:[%s9045_s18 + $0xa8c] sm:$0xf]  ;;  %v7806_v53 = vor.u32 %v8444_v38, %v7803_v39  ;;  %v6846_v36 = vor.u32 %v8204_v45, %v6843_v50  ;;  %v6726_v15 = vor.u32 %v8174_v62, %v6723_v3  ;;  %v1191_v39 = vperm.slane %v9637_v47, 7 }
 0x27d   : > { %v6966_v41 = vor.u32 %v8234_v29, %v6963_v24  ;;  %v8115_v29 = vld [vmem:[%s9045_s18 + $0x6d4] sm:$0xf]  ;;  %v6491_v24 = vld [vmem:[%s9045_s18 + $0x748] sm:$0xf0] }
 0x27e   : > { %4705 = vmatpush.bf16.msrb.mxu2 %v6362_v12  ;;  %v8264_v12 = vld [vmem:[%s9045_s18 + $0xb7c] sm:$0xf]  ;;  %v4114_v9 = vsel %vm4067_vm3, %v7806_v53, 0  ;;  %v6251_v62 = vld [vmem:[%s9045_s18 + $0x568] sm:$0xf0] }
 0x27f   : > { %4785 = vmatpush.bf16.msra.mxu1 %v6130_v2  ;;  %4737 = vmatpush.bf16.msrb.mxu3 %v7562_v28  ;;  %v7814_v2 = vor.u32 %v8445_v8, %v7811_v10  ;;  %v7086_v18 = vor.u32 %v8264_v12, %v7083_v13  ;;  %v4481_v32 = vpop.f32.mrf.mxu1  ;;  %v7458_v10 = vor.u32 %v8371_v59, %v7457_v58  ;;  %v1190_v12 = vperm.slane %v9637_v47, 6  ;;  %v7337_v13 = vld [vmem:[%s9045_s18 + $0xd68] sm:$0xf]  ;;  %v7329_v47 = vld [vmem:[%s9045_s18 + $0xd60] sm:$0xf] }
 0x280   : > { %4813 = vmatpush.bf16.msra.mxu0 %v4117_v31  ;;  %v4429_v31 = vpop.f32.mrf.mxu3  ;;  %v7338_v22 = vor.u32 %v8341_v14, %v7337_v13  ;;  %v7217_v32 = vld [vmem:[%s9045_s18 + $0xc78] sm:$0xf]  ;;  %v8145_v58 = vld [vmem:[%s9045_s18 + $0x7c4] sm:$0xf]  ;;  %v4441_v59 = vadd.f32 %v9772_v61, %v1191_v39  ;;  %v8056_v39 = vld [vmem:[%s9045_s18 + $0x4fc] sm:$0xf] }
 0x281   : > { %4751 = vmatmul.bf16.vlgmr.msrb.gmra.mxu0 %v9175_v46  ;;  %v4120_v28 = vsel %vm4067_vm3, %v7814_v2, 0  ;;  %v6603_v2 = vld [vmem:[%s9045_s18 + $0x830] sm:$0xf0]  ;;  %v8370_v31 = vld [vmem:[%s9045_s18 + $0xec4] sm:$0xf0] }
 0x282   : > { %4706 = vmatpush.bf16.msrb.mxu2 %v6242_v33  ;;  %v8415_v33 = vld [vmem:[%s9045_s18 + $0x1034] sm:$0xf] }
 0x283   : > { %4756 = vmatpush.bf16.msra.mxu3 %v7446_v34  ;;  %4786 = vmatpush.bf16.msra.mxu1 %v6010_v40  ;;  %v7691_v34 = vld [vmem:[%s9045_s18 + $0x10a8] sm:$0xf0]  ;;  %v4507_v40 = vpop.f32.mrf.mxu0 }
 0x284   : > { %4814 = vmatpush.bf16.msra.mxu0 %v7690_v49  ;;  %v7694_v49 = vor.u32 %v8415_v33, %v7691_v34  ;;  %v8311_v33 = vld [vmem:[%s9045_s18 + $0xcec] sm:$0xf0] }
 0x285   : > { %v7218_v50 = vor.u32 %v8311_v33, %v7217_v32 }
 0x286   : > { %4707 = vmatpush.bf16.msrb.mxu2 %v6122_v51  ;;  %7877 = vmatmul.msk.bf16.vlgmr.msrb.gmra.mxu3 %vm449_vm1, %v9210_v30  ;;  %v8265_v51 = vld [vmem:[%s9045_s18 + $0xb84] sm:$0xf] }
 0x287   : > { %4757 = vmatpush.bf16.msra.mxu3 %v7326_v52  ;;  %4787 = vmatpush.bf16.msra.mxu1 %v5890_v48  ;;  %v7091_v52 = vld [vmem:[%s9045_s18 + $0xbf8] sm:$0xf0]  ;;  %v4401_v48 = vpop.f32.mrf.mxu2 }
 0x288   : > { %4815 = vmatpush.bf16.msra.mxu0 %v7570_v0  ;;  %v7094_v60 = vor.u32 %v8265_v51, %v7091_v52  ;;  %v7574_v0 = vor.u32 %v8385_v54, %v7571_v55  ;;  %v4402_v27 = vadd.f32 %v4401_v48, %v1190_v12  ;;  %v8085_v51 = vld [vmem:[%s9045_s18 + $0x5e4] sm:$0xf]  ;;  %v6371_v52 = vld [vmem:[%s9045_s18 + $0x658] sm:$0xf0]  ;;  %v8340_v54 = vld [vmem:[%s9045_s18 + $0xdd4] sm:$0xf0] }
 0x289   : > { %v9863_v8 = vpop.f32.mrf.mxu1  ;;  %v7097_v55 = vld [vmem:[%s9045_s18 + $0xb88] sm:$0xf]  ;;  %v8281_v48 = vld [vmem:[%s9045_s18 + $0xbfc] sm:$0xf0]  ;;  %v8251_v12 = vld [vmem:[%s9045_s18 + $0xb0c] sm:$0xf0] }
 0x28a   : > { %4708 = vmatpush.bf16.msrb.mxu2 %v6002_v4  ;;  %v8235_v4 = vld [vmem:[%s9045_s18 + $0xa94] sm:$0xf]  ;;  %v4415_v53 = vadd.f32 %v9729_v1, %v4402_v27  ;;  %v7098_v3 = vor.u32 %v8281_v48, %v7097_v55  ;;  %v5891_v55 = vld [vmem:[%s9045_s18 + $0x298] sm:$0xf0] }
 0x28b   : > { %4758 = vmatpush.bf16.msra.mxu3 %v7206_v6  ;;  %4788 = vmatpush.bf16.msra.mxu1 %v5770_v44  ;;  %v6971_v6 = vld [vmem:[%s9045_s18 + $0xb08] sm:$0xf0]  ;;  %v8055_v1 = vld [vmem:[%s9045_s18 + $0x4f4] sm:$0xf] }
 0x28c   : > { %4834 = vmatpush.bf16.msrb.mxu0 %v7454_v26  ;;  %v8414_v44 = vld [vmem:[%s9045_s18 + $0x102c] sm:$0xf]  ;;  %v7683_v26 = vld [vmem:[%s9045_s18 + $0x10a0] sm:$0xf0]  ;;  %v6974_v17 = vor.u32 %v8235_v4, %v6971_v6  ;;  %v8116_v4 = vld [vmem:[%s9045_s18 + $0x6dc] sm:$0xf] }
 0x28d   : > { %v4453_v34 = vpop.f32.mrf.mxu3  ;;  %v6499_v6 = vld [vmem:[%s9045_s18 + $0x750] sm:$0xf0] }
 0x28e   : > { %4709 = vmatpush.bf16.msrb.mxu2 %v5882_v5  ;;  %v8205_v5 = vld [vmem:[%s9045_s18 + $0x9a4] sm:$0xf]  ;;  %v4454_v61 = vadd.f32 %v4453_v34, %v4441_v59 }
 0x28f   : > { %4759 = vmatpush.bf16.msra.mxu3 %v7086_v18  ;;  %4789 = vmatpush.bf16.msra.mxu1 %v5650_v19  ;;  %v7686_v18 = vor.u32 %v8414_v44, %v7683_v26  ;;  %v6851_v19 = vld [vmem:[%s9045_s18 + $0xa18] sm:$0xf0]  ;;  %v8310_v44 = vld [vmem:[%s9045_s18 + $0xce4] sm:$0xf0]  ;;  %v6977_v26 = vld [vmem:[%s9045_s18 + $0xa98] sm:$0xf] }
 0x290   : > { %4835 = vmatpush.bf16.msrb.mxu0 %v7334_v20  ;;  %v8384_v20 = vld [vmem:[%s9045_s18 + $0xf3c] sm:$0xf]  ;;  %v6854_v38 = vor.u32 %v8205_v5, %v6851_v19  ;;  %v6139_v59 = vld [vmem:[%s9045_s18 + $0x480] sm:$0xf0] }
 0x291   : > { %7879 = vmatmul.msk.bf16.vlgmr.msra.gmra.mxu0 %vm449_vm1, %v9210_v30  ;;  %v7566_v40 = vor.u32 %v8384_v20, %v7563_v21  ;;  %v4546_v45 = vpop.f32.mrf.mxu1  ;;  %v6131_v5 = vld [vmem:[%s9045_s18 + $0x478] sm:$0xf0]  ;;  %v6978_v21 = vor.u32 %v8251_v12, %v6977_v26 }
 0x292   : > { %4790 = vmatmul.bf16.vlgmr.msra.gmra.mxu1 %v9175_v46  ;;  %4710 = vmatpush.bf16.msrb.mxu2 %v5762_v37  ;;  %v6606_v37 = vor.u32 %v8144_v16, %v6603_v2  ;;  %v9886_v43 = vpop.f32.mrf.mxu0  ;;  %v6502_v16 = vor.u32 %v8116_v4, %v6499_v6  ;;  %v8025_v2 = vld [vmem:[%s9045_s18 + $0x404] sm:$0xf]  ;;  %v6969_v45 = vld [vmem:[%s9045_s18 + $0xa90] sm:$0xf]  ;;  %v9946_v4 = vld [vmem:[%s9634_s8 + $0x8] sm:$0xff] }
 0x293   : > { %4852 = vmatpush.bf16.msrb.mxu1 %v4120_v28  ;;  %4760 = vmatpush.bf16.msra.mxu3 %v6966_v41  ;;  %v4403_v28 = vpop.f32.mrf.mxu2  ;;  %v6494_v41 = vor.u32 %v8115_v29, %v6491_v24  ;;  %v7089_v29 = vld [vmem:[%s9045_s18 + $0xb80] sm:$0xf]  ;;  %v8280_v24 = vld [vmem:[%s9045_s18 + $0xbf4] sm:$0xf0]  ;;  %v6134_v33 = vor.u32 %v8025_v2, %v6131_v5  ;;  %v7996_v12 = vld [vmem:[%s9045_s18 + $0x31c] sm:$0xf] }
 0x294   : > { %4836 = vmatpush.bf16.msrb.mxu0 %v7214_v35  ;;  %v8175_v35 = vld [vmem:[%s9045_s18 + $0x8b4] sm:$0xf]  ;;  %v6857_v28 = vld [vmem:[%s9045_s18 + $0x9a8] sm:$0xf]  ;;  %v6385_v5 = vld [vmem:[%s9045_s18 + $0x5f0] sm:$0xf] }
 0x295   : > { %v4455_v13 = vpop.f32.mrf.mxu3 }
 0x296   : > { %4711 = vmatpush.bf16.msrb.mxu2 %v5642_v56  ;;  %v6734_v56 = vor.u32 %v8175_v35, %v6731_v42  ;;  %v6259_v42 = vld [vmem:[%s9045_s18 + $0x570] sm:$0xf0] }
 0x297   : > { %4853 = vmatpush.bf16.msrb.mxu1 %v7694_v49  ;;  %4761 = vmatpush.bf16.msra.mxu3 %v6846_v36  ;;  %v7450_v49 = vor.u32 %v8370_v31, %v7449_v25  ;;  %v6374_v36 = vor.u32 %v8085_v51, %v6371_v52  ;;  %v8221_v31 = vld [vmem:[%s9045_s18 + $0xa1c] sm:$0xf0]  ;;  %v6019_v13 = vld [vmem:[%s9045_s18 + $0x390] sm:$0xf0] }
 0x298   : > { %4837 = vmatpush.bf16.msrb.mxu0 %v7094_v60  ;;  %v6611_v60 = vld [vmem:[%s9045_s18 + $0x838] sm:$0xf0]  ;;  %v6858_v35 = vor.u32 %v8221_v31, %v6857_v28 }
 0x299   : > { %4712 = vmatmul.bf16.vlgmr.msrb.gmra.mxu2 %v9175_v46 }
 0x29a   : > { %4774 = vmatpush.bf16.msra.mxu2 %v4114_v9  ;;  %v7209_v9 = vld [vmem:[%s9045_s18 + $0xc70] sm:$0xf]  ;;  %v4533_v19 = vpop.f32.mrf.mxu0 }
 0x29b   : > { %4854 = vmatpush.bf16.msrb.mxu1 %v7574_v0  ;;  %4762 = vmatpush.bf16.msra.mxu3 %v6726_v15  ;;  %v7330_v0 = vor.u32 %v8340_v54, %v7329_v47  ;;  %v4466_v14 = vpop.f32.mrf.mxu2  ;;  %v6614_v15 = vor.u32 %v8145_v58, %v6611_v60  ;;  %v7210_v20 = vor.u32 %v8310_v44, %v7209_v9  ;;  %v7965_v54 = vld [vmem:[%s9045_s18 + $0x224] sm:$0xf]  ;;  %v8026_v58 = vld [vmem:[%s9045_s18 + $0x40c] sm:$0xf]  ;;  %v8220_v60 = vld [vmem:[%s9045_s18 + $0xa14] sm:$0xf0] }
 0x29c   : > { %4838 = vmatpush.bf16.msrb.mxu0 %v6974_v17  ;;  %v6254_v17 = vor.u32 %v8055_v1, %v6251_v62  ;;  %v6617_v1 = vld [vmem:[%s9045_s18 + $0x7c8] sm:$0xf]  ;;  %v8161_v62 = vld [vmem:[%s9045_s18 + $0x83c] sm:$0xf0]  ;;  %v5894_v6 = vor.u32 %v7965_v54, %v5891_v55  ;;  %v6142_v9 = vor.u32 %v8026_v58, %v6139_v59  ;;  %v1192_v19 = vperm.slane %v9946_v4, 0 }
 0x29d   : > { %v6618_v26 = vor.u32 %v8161_v62, %v6617_v1  ;;  %v7697_v55 = vld [vmem:[%s9045_s18 + $0x1038] sm:$0xf]  ;;  %v7825_v1 = vld [vmem:[%s9045_s18 + $0x1130] sm:$0xf]  ;;  %v8462_v62 = vld [vmem:[%s9045_s18 + $0x11a4] sm:$0x30] }
 0x29e   : > { %4775 = vmatpush.bf16.msra.mxu2 %v7686_v18  ;;  %v8086_v18 = vld [vmem:[%s9045_s18 + $0x5ec] sm:$0xf] }
 0x29f   : > { %4873 = vmatpush.bf16.msra.mxu1 %v7458_v10  ;;  %4763 = vmatpush.bf16.msra.mxu3 %v6606_v37  ;;  %v4428_v10 = vadd.f32 %v9816_v63, %v4415_v53  ;;  %v4467_v63 = vadd.f32 %v4466_v14, %v4454_v61  ;;  %v7995_v37 = vld [vmem:[%s9045_s18 + $0x314] sm:$0xf]  ;;  %v6262_v53 = vor.u32 %v8056_v39, %v6259_v42  ;;  %v5771_v61 = vld [vmem:[%s9045_s18 + $0x1a8] sm:$0xf0]  ;;  %v6729_v14 = vld [vmem:[%s9045_s18 + $0x8b0] sm:$0xf] }
 0x2a0   : > { %4839 = vmatpush.bf16.msrb.mxu0 %v6854_v38  ;;  %v6011_v38 = vld [vmem:[%s9045_s18 + $0x388] sm:$0xf0]  ;;  %v4480_v39 = vadd.f32 %v9818_v57, %v1192_v19  ;;  %v8072_v42 = vld [vmem:[%s9045_s18 + $0x574] sm:$0xf0] }
 0x2a1   : > { %v5362_v25 = vrot.slane %v4428_v10, 4  ;;  %v5363_v27 = vrot.slane %v4467_v63, 2  ;;  %v6014_v47 = vor.u32 %v7995_v37, %v6011_v38  ;;  %v7935_v10 = vld [vmem:[%s9045_s18 + $0x134] sm:$0xf]  ;;  %v8190_v63 = vld [vmem:[%s9045_s18 + $0x924] sm:$0xf0] }
 0x2a2   : > { %4776 = vmatpush.bf16.msra.mxu2 %v7566_v40  ;;  %4764 = vmatmul.bf16.vlgmr.msra.gmra.mxu3 %v9191_v7  ;;  %v6497_v37 = vld [vmem:[%s9045_s18 + $0x6d8] sm:$0xf]  ;;  %v8131_v38 = vld [vmem:[%s9045_s18 + $0x74c] sm:$0xf0] }
 0x2a3   : > { %4874 = vmatpush.bf16.msra.mxu1 %v7338_v22  ;;  %4821 = vmatpush.bf16.msrb.mxu3 %v6494_v41  ;;  %v6379_v22 = vld [vmem:[%s9045_s18 + $0x660] sm:$0xf0]  ;;  %v5386_v32 = vsel %vm5382_vm5, %v5362_v25, %v5363_v27  ;;  %v7090_v41 = vor.u32 %v8280_v24, %v7089_v29  ;;  %v4468_v51 = vpop.f32.mrf.mxu2  ;;  %v9933_v52 = vpop.f32.mrf.mxu1  ;;  %v6730_v29 = vor.u32 %v8190_v63, %v6729_v14  ;;  %v5651_v25 = vld [vmem:[%s9045_s18 + $0xb8] sm:$0xf0]  ;;  %v7966_v27 = vld [vmem:[%s9045_s18 + $0x22c] sm:$0xf] }
 0x2a4   : > { %7880 = vmatmul.msk.bf16.vlgmr.msrb.gmra.mxu1 %vm449_vm1, %v9210_v30  ;;  %4840 = vmatpush.bf16.msrb.mxu0 %v6734_v56  ;;  %v6382_v34 = vor.u32 %v8086_v18, %v6379_v22  ;;  %v5387_v40 = vsel %vm452_vm0, %v9792_v23, %v5386_v32  ;;  %v8191_v23 = vld [vmem:[%s9045_s18 + $0x92c] sm:$0xf0]  ;;  %v8102_v18 = vld [vmem:[%s9045_s18 + $0x664] sm:$0xf0]  ;;  %v6022_v22 = vor.u32 %v7996_v12, %v6019_v13  ;;  %v7905_v24 = vld [vmem:[%s9045_s18 + $0x44] sm:$0xf] }
 0x2a5   : > { %5413 = vst [vmem:[%s9720_s1 + $0x8] sm:$0xff] %v5387_v40  ;;  %v6386_v31 = vor.u32 %v8102_v18, %v6385_v5  ;;  %v5899_v32 = vld [vmem:[%s9045_s18 + $0x2a0] sm:$0xf0]  ;;  %v7936_v51 = vld [vmem:[%s9045_s18 + $0x13c] sm:$0xf]  ;;  %v6498_v54 = vor.u32 %v8131_v38, %v6497_v37 }
 0x2a6   : > { %4795 = vmatpush.bf16.msrb.mxu2 %v7450_v49  ;;  %v8250_v49 = vld [vmem:[%s9045_s18 + $0xb04] sm:$0xf0]  ;;  %v8401_v14 = vld [vmem:[%s9045_s18 + $0xfbc] sm:$0xf0]  ;;  %v8326_v37 = vld [vmem:[%s9045_s18 + $0xd6c] sm:$0xf] }
 0x2a7   : > { %4875 = vmatpush.bf16.msra.mxu1 %v7218_v50  ;;  %4822 = vmatpush.bf16.msrb.mxu3 %v6374_v36  ;;  %v6737_v50 = vld [vmem:[%s9045_s18 + $0x8b8] sm:$0xf]  ;;  %v6970_v48 = vor.u32 %v8250_v49, %v6969_v45  ;;  %v6849_v36 = vld [vmem:[%s9045_s18 + $0x9a0] sm:$0xf]  ;;  %v5902_v49 = vor.u32 %v7966_v27, %v5899_v32  ;;  %v7577_v12 = vld [vmem:[%s9045_s18 + $0xf48] sm:$0xf] }
 0x2a8   : > { %4841 = vmatpush.bf16.msrb.mxu0 %v6614_v15  ;;  %v6738_v56 = vor.u32 %v8191_v23, %v6737_v50  ;;  %v6850_v44 = vor.u32 %v8220_v60, %v6849_v36  ;;  %v8101_v60 = vld [vmem:[%s9045_s18 + $0x65c] sm:$0xf0]  ;;  %v6137_v32 = vld [vmem:[%s9045_s18 + $0x408] sm:$0xf]  ;;  %v7339_v38 = vld [vmem:[%s9045_s18 + $0xde0] sm:$0xf0] }
 0x2a9   : > { %7878 = vmatmul.msk.bf16.vlgmr.msra.gmra.mxu2 %vm449_vm1, %v9210_v30 }
 0x2aa   : > { %4796 = vmatpush.bf16.msrb.mxu2 %v7330_v0  ;;  %v6505_v0 = vld [vmem:[%s9045_s18 + $0x6e0] sm:$0xf] }
 0x2ab   : > { %4876 = vmatpush.bf16.msra.mxu1 %v7098_v3  ;;  %4823 = vmatpush.bf16.msrb.mxu3 %v6254_v17  ;;  %v8132_v3 = vld [vmem:[%s9045_s18 + $0x754] sm:$0xf0]  ;;  %v7817_v17 = vld [vmem:[%s9045_s18 + $0x1128] sm:$0xf]  ;;  %v4572_v2 = vpop.f32.mrf.mxu1 }
 0x2ac   : > { %4899 = vmatpush.bf16.msra.mxu0 %v6502_v16  ;;  %v6506_v15 = vor.u32 %v8132_v3, %v6505_v0  ;;  %v8461_v16 = vld [vmem:[%s9045_s18 + $0x119c] sm:$0x30]  ;;  %v6145_v3 = vld [vmem:[%s9045_s18 + $0x410] sm:$0xf]  ;;  %v7459_v2 = vld [vmem:[%s9045_s18 + $0xed0] sm:$0xf0] }
 0x2ad   : > { %4842 = vmatmul.bf16.vlgmr.msrb.gmra.mxu0 %v9191_v7  ;;  %v7818_v28 = vor.u32 %v8461_v16, %v7817_v17  ;;  %v4518_v40 = vpop.f32.mrf.mxu3  ;;  %v8071_v17 = vld [vmem:[%s9045_s18 + $0x56c] sm:$0xf0]  ;;  %v8356_v16 = vld [vmem:[%s9045_s18 + $0xe5c] sm:$0xf] }
 0x2ae   : > { %4797 = vmatpush.bf16.msrb.mxu2 %v7210_v20  ;;  %v5774_v20 = vor.u32 %v7935_v10, %v5771_v61  ;;  %v7462_v27 = vor.u32 %v8356_v16, %v7459_v2  ;;  %v5777_v16 = vld [vmem:[%s9045_s18 + $0x138] sm:$0xf]  ;;  %v7951_v2 = vld [vmem:[%s9045_s18 + $0x1ac] sm:$0xf0] }
 0x2af   : > { %4877 = vmatpush.bf16.msra.mxu1 %v6978_v21  ;;  %4824 = vmatpush.bf16.msrb.mxu3 %v6134_v33  ;;  %v1193_v21 = vperm.slane %v9946_v4, 1  ;;  %v6609_v33 = vld [vmem:[%s9045_s18 + $0x7c0] sm:$0xf]  ;;  %v4123_v57 = vsel %vm4067_vm3, %v7818_v28, 0 }
 0x2b0   : > { %4900 = vmatpush.bf16.msra.mxu0 %v6382_v34  ;;  %v8160_v34 = vld [vmem:[%s9045_s18 + $0x834] sm:$0xf0]  ;;  %v4492_v50 = vpop.f32.mrf.mxu2  ;;  %v7705_v28 = vld [vmem:[%s9045_s18 + $0x1040] sm:$0xf] }
 0x2b1   : > { %v4519_v45 = vadd.f32 %v4518_v40, %v1193_v21  ;;  %v6610_v23 = vor.u32 %v8160_v34, %v6609_v33  ;;  %v8012_v21 = vld [vmem:[%s9045_s18 + $0x394] sm:$0xf0]  ;;  %v8041_v34 = vld [vmem:[%s9045_s18 + $0x47c] sm:$0xf0]  ;;  %v7982_v40 = vld [vmem:[%s9045_s18 + $0x2a4] sm:$0xf0] }
 0x2b2   : > { %4798 = vmatpush.bf16.msrb.mxu2 %v7090_v41  ;;  %v5654_v41 = vor.u32 %v7905_v24, %v5651_v25  ;;  %v9979_v59 = vpop.f32.mrf.mxu0 }
 0x2b3   : > { %4878 = vmatpush.bf16.msra.mxu1 %v6858_v35  ;;  %4825 = vmatpush.bf16.msrb.mxu3 %v6014_v47  ;;  %v6265_v35 = vld [vmem:[%s9045_s18 + $0x500] sm:$0xf]  ;;  %v5779_v47 = vld [vmem:[%s9045_s18 + $0x1b0] sm:$0xf0]  ;;  %v4532_v58 = vadd.f32 %v9886_v43, %v4519_v45  ;;  %v7342_v45 = vor.u32 %v8326_v37, %v7339_v38  ;;  %v5657_v38 = vld [vmem:[%s9045_s18 + $0x48] sm:$0xf] }
 0x2b4   : > { %4901 = vmatpush.bf16.msra.mxu0 %v6262_v53  ;;  %v4493_v53 = vadd.f32 %v4492_v50, %v4480_v39  ;;  %v6266_v36 = vor.u32 %v8072_v42, %v6265_v35  ;;  %v5782_v43 = vor.u32 %v7936_v51, %v5779_v47  ;;  %v5905_v39 = vld [vmem:[%s9045_s18 + $0x230] sm:$0xf]  ;;  %v6138_v42 = vor.u32 %v8041_v34, %v6137_v32  ;;  %v6017_v50 = vld [vmem:[%s9045_s18 + $0x318] sm:$0xf]  ;;  %v8296_v51 = vld [vmem:[%s9045_s18 + $0xc7c] sm:$0xf] }
 0x2b5   : > { %v4520_v63 = vpop.f32.mrf.mxu3  ;;  %v7585_v35 = vld [vmem:[%s9045_s18 + $0xf50] sm:$0xf]  ;;  %v7219_v47 = vld [vmem:[%s9045_s18 + $0xcf0] sm:$0xf0]  ;;  %v7819_v32 = vld [vmem:[%s9045_s18 + $0x11a0] sm:$0x30] }
 0x2b6   : > { %4799 = vmatpush.bf16.msrb.mxu2 %v6970_v48  ;;  %v8431_v48 = vld [vmem:[%s9045_s18 + $0x10ac] sm:$0xf0]  ;;  %v4506_v0 = vadd.f32 %v9824_v11, %v4493_v53  ;;  %v7826_v11 = vor.u32 %v8462_v62, %v7825_v1  ;;  %v5785_v53 = vld [vmem:[%s9045_s18 + $0x140] sm:$0xf]  ;;  %v7222_v62 = vor.u32 %v8296_v51, %v7219_v47  ;;  %v7473_v47 = vld [vmem:[%s9045_s18 + $0xe68] sm:$0xf] }
 0x2b7   : > { %4879 = vmatpush.bf16.msra.mxu1 %v6738_v56  ;;  %4826 = vmatpush.bf16.msrb.mxu3 %v5894_v6  ;;  %v6377_v56 = vld [vmem:[%s9045_s18 + $0x5e8] sm:$0xf]  ;;  %v7698_v10 = vor.u32 %v8431_v48, %v7697_v55  ;;  %v8357_v55 = vld [vmem:[%s9045_s18 + $0xe64] sm:$0xf]  ;;  %v7467_v48 = vld [vmem:[%s9045_s18 + $0xed8] sm:$0xf0] }
 0x2b8   : > { %4902 = vmatpush.bf16.msra.mxu0 %v6142_v9  ;;  %v8042_v6 = vld [vmem:[%s9045_s18 + $0x484] sm:$0xf0]  ;;  %v4545_v9 = vadd.f32 %v9863_v8, %v4532_v58  ;;  %v6378_v61 = vor.u32 %v8101_v60, %v6377_v56  ;;  %v4494_v19 = vpop.f32.mrf.mxu2 }
 0x2b9   : > { %v6146_v8 = vor.u32 %v8042_v6, %v6145_v3  ;;  %v5897_v60 = vld [vmem:[%s9045_s18 + $0x228] sm:$0xf]  ;;  %v8447_v3 = vld [vmem:[%s9045_s18 + $0x1134] sm:$0xf]  ;;  %v7827_v6 = vld [vmem:[%s9045_s18 + $0x11a8] sm:$0x30] }
 0x2ba   : > { %4800 = vmatpush.bf16.msrb.mxu2 %v6850_v44  ;;  %v7906_v44 = vld [vmem:[%s9045_s18 + $0x4c] sm:$0xf]  ;;  %v5364_v13 = vrot.slane %v4545_v9, 6  ;;  %v4598_v24 = vpop.f32.mrf.mxu0  ;;  %v6979_v19 = vld [vmem:[%s9045_s18 + $0xb10] sm:$0xf0] }
 0x2bb   : > { %4880 = vmatpush.bf16.msra.mxu1 %v6618_v26  ;;  %4827 = vmatpush.bf16.msrb.mxu3 %v5774_v20  ;;  %v5659_v26 = vld [vmem:[%s9045_s18 + $0xc0] sm:$0xf0]  ;;  %v6025_v20 = vld [vmem:[%s9045_s18 + $0x320] sm:$0xf] }
 0x2bc   : > { %4903 = vmatpush.bf16.msra.mxu0 %v6022_v22  ;;  %v9999_v5 = vsel %vm5380_vm4, %v4506_v0, %v5364_v13  ;;  %v5662_v18 = vor.u32 %v7906_v44, %v5659_v26  ;;  %v7578_v22 = vor.u32 %v8401_v14, %v7577_v12  ;;  %v6026_v33 = vor.u32 %v8012_v21, %v6025_v20  ;;  %v7981_v0 = vld [vmem:[%s9045_s18 + $0x29c] sm:$0xf0]  ;;  %v7099_v44 = vld [vmem:[%s9045_s18 + $0xc00] sm:$0xf0]  ;;  %v5665_v26 = vld [vmem:[%s9045_s18 + $0x50] sm:$0xf] }
 0x2bd   : > { %v10023_v56 = vpop.f32.mrf.mxu3  ;;  %v7922_v12 = vld [vmem:[%s9045_s18 + $0xc4] sm:$0xf0]  ;;  %v7347_v13 = vld [vmem:[%s9045_s18 + $0xde8] sm:$0xf0]  ;;  %v5898_v14 = vor.u32 %v7981_v0, %v5897_v60  ;;  %v8297_v20 = vld [vmem:[%s9045_s18 + $0xc84] sm:$0xf] }
 0x2be   : > { %4881 = vmatmul.bf16.vlgmr.msra.gmra.mxu1 %v9191_v7  ;;  %4801 = vmatpush.bf16.msrb.mxu2 %v6730_v29  ;;  %v4129_v29 = vsel %vm4067_vm3, %v7826_v11, 0  ;;  %v8327_v11 = vld [vmem:[%s9045_s18 + $0xd74] sm:$0xf]  ;;  %v5666_v63 = vor.u32 %v7922_v12, %v5665_v26  ;;  %v7227_v21 = vld [vmem:[%s9045_s18 + $0xcf8] sm:$0xf0] }
 0x2bf   : > { %4938 = vmatpush.bf16.msrb.mxu1 %v6506_v15  ;;  %4828 = vmatpush.bf16.msrb.mxu3 %v5654_v41  ;;  %v6257_v15 = vld [vmem:[%s9045_s18 + $0x4f8] sm:$0xf]  ;;  %v7230_v37 = vor.u32 %v8297_v20, %v7227_v21  ;;  %v6739_v60 = vld [vmem:[%s9045_s18 + $0x930] sm:$0xf0]  ;;  %v8343_v26 = vld [vmem:[%s9045_s18 + $0xdec] sm:$0xf0] }
 0x2c0   : > { %4904 = vmatpush.bf16.msra.mxu0 %v5902_v49  ;;  %v6258_v25 = vor.u32 %v8071_v17, %v6257_v15  ;;  %v8402_v49 = vld [vmem:[%s9045_s18 + $0xfc4] sm:$0xf0]  ;;  %v7350_v17 = vor.u32 %v8327_v11, %v7347_v13  ;;  %v8146_v13 = vld [vmem:[%s9045_s18 + $0x7cc] sm:$0xf]  ;;  %v7465_v20 = vld [vmem:[%s9045_s18 + $0xe60] sm:$0xf] }
 0x2c2   : > { %4802 = vmatpush.bf16.msrb.mxu2 %v6610_v23  ;;  %4829 = vmatmul.bf16.vlgmr.msrb.gmra.mxu3 %v9175_v46  ;;  %v8011_v23 = vld [vmem:[%s9045_s18 + $0x38c] sm:$0xf0]  ;;  %v10031_v9 = vpop.f32.mrf.mxu0 }
 0x2c3   : > { %4939 = vmatpush.bf16.msrb.mxu1 %v6386_v31  ;;  %4891 = vmatpush.bf16.msra.mxu3 %v4123_v57  ;;  %v8432_v31 = vld [vmem:[%s9045_s18 + $0x10b4] sm:$0xf0]  ;;  %v5906_v57 = vor.u32 %v7982_v40, %v5905_v39  ;;  %v10025_v58 = vpop.f32.mrf.mxu1  ;;  %v6018_v1 = vor.u32 %v8011_v23, %v6017_v50  ;;  %v7921_v39 = vld [vmem:[%s9045_s18 + $0xbc] sm:$0xf0]  ;;  %v8206_v40 = vld [vmem:[%s9045_s18 + $0x9ac] sm:$0xf] }
 0x2c4   : > { %4905 = vmatpush.bf16.msra.mxu0 %v5782_v43  ;;  %v7706_v41 = vor.u32 %v8432_v31, %v7705_v28  ;;  %v5778_v28 = vor.u32 %v7951_v2, %v5777_v16  ;;  %v8446_v31 = vld [vmem:[%s9045_s18 + $0x112c] sm:$0xf]  ;;  %v8387_v50 = vld [vmem:[%s9045_s18 + $0xf54] sm:$0xf]  ;;  %v5658_v51 = vor.u32 %v7921_v39, %v5657_v38  ;;  %v7579_v16 = vld [vmem:[%s9045_s18 + $0xfc0] sm:$0xf0] }
 0x2c5   : > { %4803 = vmatmul.bf16.vlgmr.msrb.gmra.mxu2 %v9191_v7  ;;  %v7587_v23 = vld [vmem:[%s9045_s18 + $0xfc8] sm:$0xf0]  ;;  %v6747_v38 = vld [vmem:[%s9045_s18 + $0x938] sm:$0xf0] }
 0x2c6   : > { %4860 = vmatpush.bf16.msra.mxu2 %v6498_v54  ;;  %v7952_v54 = vld [vmem:[%s9045_s18 + $0x1b4] sm:$0xf0] }
 0x2c7   : > { %4940 = vmatpush.bf16.msrb.mxu1 %v6266_v36  ;;  %4892 = vmatpush.bf16.msra.mxu3 %v7698_v10  ;;  %v7586_v36 = vor.u32 %v8402_v49, %v7585_v35  ;;  %v5786_v43 = vor.u32 %v7952_v54, %v5785_v53  ;;  %v7470_v10 = vor.u32 %v8357_v55, %v7467_v48  ;;  %v6859_v35 = vld [vmem:[%s9045_s18 + $0xa20] sm:$0xf0]  ;;  %v8373_v53 = vld [vmem:[%s9045_s18 + $0xedc] sm:$0xf0]  ;;  %v8176_v48 = vld [vmem:[%s9045_s18 + $0x8bc] sm:$0xf] }
 0x2c8   : > { %4906 = vmatpush.bf16.msra.mxu0 %v5662_v18  ;;  %v8236_v18 = vld [vmem:[%s9045_s18 + $0xa9c] sm:$0xf]  ;;  %v7822_v49 = vor.u32 %v8446_v31, %v7819_v32  ;;  %v6862_v54 = vor.u32 %v8206_v40, %v6859_v35  ;;  %v6742_v12 = vor.u32 %v8176_v48, %v6739_v60  ;;  %v1195_v32 = vperm.slane %v9946_v4, 3  ;;  %v6627_v48 = vld [vmem:[%s9045_s18 + $0x848] sm:$0xf0] }
 0x2c9   : > { %v6982_v34 = vor.u32 %v8236_v18, %v6979_v19  ;;  %v8117_v18 = vld [vmem:[%s9045_s18 + $0x6e4] sm:$0xf]  ;;  %v6507_v19 = vld [vmem:[%s9045_s18 + $0x758] sm:$0xf0] }
 0x2ca   : > { %4861 = vmatpush.bf16.msra.mxu2 %v6378_v61  ;;  %v8266_v61 = vld [vmem:[%s9045_s18 + $0xb8c] sm:$0xf]  ;;  %v4126_v0 = vsel %vm4067_vm3, %v7822_v49, 0  ;;  %v7345_v49 = vld [vmem:[%s9045_s18 + $0xd70] sm:$0xf] }
 0x2cb   : > { %4941 = vmatpush.bf16.msrb.mxu1 %v6146_v8  ;;  %4893 = vmatpush.bf16.msra.mxu3 %v7578_v22  ;;  %v7830_v8 = vor.u32 %v8447_v3, %v7827_v6  ;;  %v7102_v15 = vor.u32 %v8266_v61, %v7099_v44  ;;  %v4637_v24 = vpop.f32.mrf.mxu1  ;;  %v7474_v6 = vor.u32 %v8373_v53, %v7473_v47  ;;  %v1194_v61 = vperm.slane %v9946_v4, 2  ;;  %v7353_v44 = vld [vmem:[%s9045_s18 + $0xd78] sm:$0xf]  ;;  %v8147_v53 = vld [vmem:[%s9045_s18 + $0x7d4] sm:$0xf] }
 0x2cc   : > { %4969 = vmatpush.bf16.msrb.mxu0 %v4129_v29  ;;  %v4585_v29 = vpop.f32.mrf.mxu3  ;;  %v7354_v2 = vor.u32 %v8343_v26, %v7353_v44  ;;  %v7233_v24 = vld [vmem:[%s9045_s18 + $0xc88] sm:$0xf]  ;;  %v8253_v44 = vld [vmem:[%s9045_s18 + $0xb1c] sm:$0xf0] }
 0x2cd   : > { %4907 = vmatmul.bf16.vlgmr.msra.gmra.mxu0 %v9175_v46  ;;  %v4132_v22 = vsel %vm4067_vm3, %v7830_v8, 0  ;;  %v6619_v8 = vld [vmem:[%s9045_s18 + $0x840] sm:$0xf0]  ;;  %v8372_v29 = vld [vmem:[%s9045_s18 + $0xed4] sm:$0xf0] }
 0x2ce   : > { %4862 = vmatpush.bf16.msra.mxu2 %v6258_v25  ;;  %v8417_v25 = vld [vmem:[%s9045_s18 + $0x1044] sm:$0xf] }
 0x2cf   : > { %4912 = vmatpush.bf16.msrb.mxu3 %v7462_v27  ;;  %4942 = vmatpush.bf16.msrb.mxu1 %v6026_v33  ;;  %v7707_v27 = vld [vmem:[%s9045_s18 + $0x10b8] sm:$0xf0]  ;;  %v4663_v33 = vpop.f32.mrf.mxu0 }
 0x2d0   : > { %4970 = vmatpush.bf16.msrb.mxu0 %v7706_v41  ;;  %v7710_v41 = vor.u32 %v8417_v25, %v7707_v27  ;;  %v8313_v25 = vld [vmem:[%s9045_s18 + $0xcfc] sm:$0xf0] }
 0x2d1   : > { %v7234_v35 = vor.u32 %v8313_v25, %v7233_v24  ;;  %v8223_v24 = vld [vmem:[%s9045_s18 + $0xa2c] sm:$0xf0] }
 0x2d2   : > { %4863 = vmatpush.bf16.msra.mxu2 %v6138_v42  ;;  %7881 = vmatmul.msk.bf16.vlgmr.msra.gmra.mxu3 %vm449_vm1, %v9210_v30  ;;  %v8267_v42 = vld [vmem:[%s9045_s18 + $0xb94] sm:$0xf] }
 0x2d3   : > { %4913 = vmatpush.bf16.msrb.mxu3 %v7342_v45  ;;  %4943 = vmatpush.bf16.msrb.mxu1 %v5906_v57  ;;  %v7107_v45 = vld [vmem:[%s9045_s18 + $0xc08] sm:$0xf0]  ;;  %v4557_v57 = vpop.f32.mrf.mxu2 }
 0x2d4   : > { %4971 = vmatpush.bf16.msrb.mxu0 %v7586_v36  ;;  %v7110_v55 = vor.u32 %v8267_v42, %v7107_v45  ;;  %v7590_v36 = vor.u32 %v8387_v50, %v7587_v23  ;;  %v4558_v21 = vadd.f32 %v4557_v57, %v1194_v61  ;;  %v8087_v42 = vld [vmem:[%s9045_s18 + $0x5f4] sm:$0xf]  ;;  %v6387_v45 = vld [vmem:[%s9045_s18 + $0x668] sm:$0xf0]  ;;  %v8342_v23 = vld [vmem:[%s9045_s18 + $0xde4] sm:$0xf0] }
 0x2d5   : > { %v10070_v3 = vpop.f32.mrf.mxu1  ;;  %v7113_v57 = vld [vmem:[%s9045_s18 + $0xb98] sm:$0xf]  ;;  %v7346_v60 = vor.u32 %v8342_v23, %v7345_v49  ;;  %v6993_v61 = vld [vmem:[%s9045_s18 + $0xaa8] sm:$0xf] }
 0x2d6   : > { %4864 = vmatpush.bf16.msra.mxu2 %v6018_v1  ;;  %v8237_v1 = vld [vmem:[%s9045_s18 + $0xaa4] sm:$0xf]  ;;  %v4571_v50 = vadd.f32 %v9933_v52, %v4558_v21 }
 0x2d7   : > { %4914 = vmatpush.bf16.msrb.mxu3 %v7222_v62  ;;  %4944 = vmatpush.bf16.msrb.mxu1 %v5786_v43  ;;  %v6987_v62 = vld [vmem:[%s9045_s18 + $0xb18] sm:$0xf0]  ;;  %v8057_v52 = vld [vmem:[%s9045_s18 + $0x504] sm:$0xf] }
 0x2d8   : > { %4990 = vmatpush.bf16.msra.mxu0 %v7470_v10  ;;  %v8416_v43 = vld [vmem:[%s9045_s18 + $0x103c] sm:$0xf]  ;;  %v7699_v10 = vld [vmem:[%s9045_s18 + $0x10b0] sm:$0xf0]  ;;  %v6990_v11 = vor.u32 %v8237_v1, %v6987_v62  ;;  %v8118_v62 = vld [vmem:[%s9045_s18 + $0x6ec] sm:$0xf] }
 0x2d9   : > { %v4609_v27 = vpop.f32.mrf.mxu3 }
 0x2da   : > { %4865 = vmatpush.bf16.msra.mxu2 %v5898_v14  ;;  %v8207_v14 = vld [vmem:[%s9045_s18 + $0x9b4] sm:$0xf] }
 0x2db   : > { %4915 = vmatpush.bf16.msrb.mxu3 %v7102_v15  ;;  %4945 = vmatpush.bf16.msrb.mxu1 %v5666_v63  ;;  %v7702_v15 = vor.u32 %v8416_v43, %v7699_v10  ;;  %v6867_v63 = vld [vmem:[%s9045_s18 + $0xa28] sm:$0xf0]  ;;  %v4584_v43 = vadd.f32 %v10023_v56, %v4571_v50  ;;  %v8312_v10 = vld [vmem:[%s9045_s18 + $0xcf4] sm:$0xf0] }
 0x2dc   : > { %4991 = vmatpush.bf16.msra.mxu0 %v7350_v17  ;;  %v8386_v17 = vld [vmem:[%s9045_s18 + $0xf4c] sm:$0xf]  ;;  %v6870_v31 = vor.u32 %v8207_v14, %v6867_v63  ;;  %v8027_v14 = vld [vmem:[%s9045_s18 + $0x414] sm:$0xf]  ;;  %v8088_v63 = vld [vmem:[%s9045_s18 + $0x5fc] sm:$0xf] }
 0x2dd   : > { %7883 = vmatmul.msk.bf16.vlgmr.msrb.gmra.mxu0 %vm449_vm1, %v9210_v30  ;;  %v7582_v33 = vor.u32 %v8386_v17, %v7579_v16  ;;  %v4702_v40 = vpop.f32.mrf.mxu1  ;;  %v5365_v21 = vrot.slane %v4584_v43, 4  ;;  %v7937_v43 = vld [vmem:[%s9045_s18 + $0x144] sm:$0xf] }
 0x2de   : > { %4946 = vmatmul.bf16.vlgmr.msrb.gmra.mxu1 %v9175_v46  ;;  %4866 = vmatpush.bf16.msra.mxu2 %v5778_v28  ;;  %v6622_v28 = vor.u32 %v8146_v13, %v6619_v8  ;;  %v10093_v39 = vpop.f32.mrf.mxu0  ;;  %v6275_v40 = vld [vmem:[%s9045_s18 + $0x580] sm:$0xf0] }
 0x2df   : > { %5008 = vmatpush.bf16.msra.mxu1 %v4132_v22  ;;  %4916 = vmatpush.bf16.msrb.mxu3 %v6982_v34  ;;  %v4559_v22 = vpop.f32.mrf.mxu2  ;;  %v6510_v34 = vor.u32 %v8117_v18, %v6507_v19  ;;  %v6395_v18 = vld [vmem:[%s9045_s18 + $0x670] sm:$0xf0]  ;;  %v7105_v19 = vld [vmem:[%s9045_s18 + $0xb90] sm:$0xf] }
 0x2e0   : > { %4992 = vmatpush.bf16.msra.mxu0 %v7230_v37  ;;  %v8177_v37 = vld [vmem:[%s9045_s18 + $0x8c4] sm:$0xf] }
 0x2e1   : > { %v6750_v47 = vor.u32 %v8177_v37, %v6747_v38  ;;  %v4611_v26 = vpop.f32.mrf.mxu3 }
 0x2e2   : > { %4867 = vmatpush.bf16.msra.mxu2 %v5658_v51  ;;  %v8283_v51 = vld [vmem:[%s9045_s18 + $0xc0c] sm:$0xf0]  ;;  %v6035_v26 = vld [vmem:[%s9045_s18 + $0x3a0] sm:$0xf0] }
 0x2e3   : > { %5009 = vmatpush.bf16.msra.mxu1 %v7710_v41  ;;  %4917 = vmatpush.bf16.msrb.mxu3 %v6862_v54  ;;  %v7466_v41 = vor.u32 %v8372_v29, %v7465_v20  ;;  %v4597_v54 = vadd.f32 %v9979_v59, %v1195_v32  ;;  %v7114_v1 = vor.u32 %v8283_v51, %v7113_v57  ;;  %v8282_v20 = vld [vmem:[%s9045_s18 + $0xc04] sm:$0xf0]  ;;  %v6873_v29 = vld [vmem:[%s9045_s18 + $0x9b8] sm:$0xf]  ;;  %v6027_v32 = vld [vmem:[%s9045_s18 + $0x398] sm:$0xf0] }
 0x2e4   : > { %4993 = vmatpush.bf16.msra.mxu0 %v7110_v55  ;;  %v6390_v55 = vor.u32 %v8087_v42, %v6387_v45  ;;  %v7106_v37 = vor.u32 %v8282_v20, %v7105_v19  ;;  %v6874_v38 = vor.u32 %v8223_v24, %v6873_v29  ;;  %v6753_v42 = vld [vmem:[%s9045_s18 + $0x8c8] sm:$0xf]  ;;  %v7967_v57 = vld [vmem:[%s9045_s18 + $0x234] sm:$0xf]  ;;  %v5907_v51 = vld [vmem:[%s9045_s18 + $0x2a8] sm:$0xf0] }
 0x2e5   : > { %4868 = vmatmul.bf16.vlgmr.msra.gmra.mxu2 %v9175_v46  ;;  %v4610_v59 = vadd.f32 %v4609_v27, %v4597_v54  ;;  %v8028_v54 = vld [vmem:[%s9045_s18 + $0x41c] sm:$0xf]  ;;  %v7907_v20 = vld [vmem:[%s9045_s18 + $0x54] sm:$0xf] }
 0x2e6   : > { %4930 = vmatpush.bf16.msrb.mxu2 %v4126_v0  ;;  %v6515_v0 = vld [vmem:[%s9045_s18 + $0x760] sm:$0xf0]  ;;  %v4689_v17 = vpop.f32.mrf.mxu0 }
 0x2e7   : > { %5010 = vmatpush.bf16.msra.mxu1 %v7590_v36  ;;  %4918 = vmatpush.bf16.msrb.mxu3 %v6742_v12  ;;  %v6267_v36 = vld [vmem:[%s9045_s18 + $0x578] sm:$0xf0]  ;;  %v4622_v12 = vpop.f32.mrf.mxu2  ;;  %v6518_v8 = vor.u32 %v8118_v62, %v6515_v0  ;;  %v8134_v62 = vld [vmem:[%s9045_s18 + $0x764] sm:$0xf0]  ;;  %v5910_v0 = vor.u32 %v7967_v57, %v5907_v51  ;;  %v1196_v17 = vperm.slane %v9946_v4, 4 }
 0x2e8   : > { %4994 = vmatpush.bf16.msra.mxu0 %v6990_v11  ;;  %v6630_v11 = vor.u32 %v8147_v53, %v6627_v48  ;;  %v4623_v56 = vadd.f32 %v4622_v12, %v4610_v59  ;;  %v6270_v13 = vor.u32 %v8057_v52, %v6267_v36  ;;  %v6865_v48 = vld [vmem:[%s9045_s18 + $0x9b0] sm:$0xf]  ;;  %v8222_v52 = vld [vmem:[%s9045_s18 + $0xa24] sm:$0xf0]  ;;  %v6633_v36 = vld [vmem:[%s9045_s18 + $0x7d8] sm:$0xf] }
 0x2e9   : > { %v5787_v59 = vld [vmem:[%s9045_s18 + $0x1b8] sm:$0xf0]  ;;  %v6745_v12 = vld [vmem:[%s9045_s18 + $0x8c0] sm:$0xf]  ;;  %v7713_v57 = vld [vmem:[%s9045_s18 + $0x1048] sm:$0xf] }
 0x2ea   : > { %4931 = vmatpush.bf16.msrb.mxu2 %v7702_v15  ;;  %v6147_v15 = vld [vmem:[%s9045_s18 + $0x488] sm:$0xf0]  ;;  %v5366_v22 = vrot.slane %v4623_v56, 2  ;;  %v8192_v56 = vld [vmem:[%s9045_s18 + $0x934] sm:$0xf0] }
 0x2eb   : > { %5029 = vmatpush.bf16.msrb.mxu1 %v7474_v6  ;;  %4919 = vmatpush.bf16.msrb.mxu3 %v6622_v28  ;;  %v7225_v6 = vld [vmem:[%s9045_s18 + $0xc80] sm:$0xf]  ;;  %v6150_v27 = vor.u32 %v8027_v14, %v6147_v15  ;;  %v6398_v28 = vor.u32 %v8088_v63, %v6395_v18  ;;  %v8104_v63 = vld [vmem:[%s9045_s18 + $0x674] sm:$0xf0]  ;;  %v6746_v19 = vor.u32 %v8192_v56, %v6745_v12  ;;  %v6273_v12 = vld [vmem:[%s9045_s18 + $0x508] sm:$0xf] }
 0x2ec   : > { %4995 = vmatpush.bf16.msra.mxu0 %v6870_v31  ;;  %v7226_v16 = vor.u32 %v8312_v10, %v7225_v6  ;;  %v5389_v25 = vsel %vm5382_vm5, %v5365_v21, %v5366_v22  ;;  %v7997_v31 = vld [vmem:[%s9045_s18 + $0x324] sm:$0xf]  ;;  %v6866_v10 = vor.u32 %v8222_v52, %v6865_v48  ;;  %v6401_v15 = vld [vmem:[%s9045_s18 + $0x600] sm:$0xf]  ;;  %v5667_v21 = vld [vmem:[%s9045_s18 + $0xc8] sm:$0xf0] }
 0x2ed   : > { %v6030_v50 = vor.u32 %v7997_v31, %v6027_v32  ;;  %v7968_v22 = vld [vmem:[%s9045_s18 + $0x23c] sm:$0xf]  ;;  %v6402_v24 = vor.u32 %v8104_v63, %v6401_v15  ;;  %v6513_v31 = vld [vmem:[%s9045_s18 + $0x6e8] sm:$0xf]  ;;  %v8133_v32 = vld [vmem:[%s9045_s18 + $0x75c] sm:$0xf0] }
 0x2ee   : > { %4932 = vmatpush.bf16.msrb.mxu2 %v7582_v33  ;;  %4920 = vmatmul.bf16.vlgmr.msrb.gmra.mxu3 %v9191_v7  ;;  %v8058_v33 = vld [vmem:[%s9045_s18 + $0x50c] sm:$0xf]  ;;  %v8433_v51 = vld [vmem:[%s9045_s18 + $0x10bc] sm:$0xf0]  ;;  %v8103_v48 = vld [vmem:[%s9045_s18 + $0x66c] sm:$0xf0] }
 0x2ef   : > { %5030 = vmatpush.bf16.msrb.mxu1 %v7354_v2  ;;  %4977 = vmatpush.bf16.msra.mxu3 %v6510_v34  ;;  %v6994_v2 = vor.u32 %v8253_v44, %v6993_v61  ;;  %v5390_v34 = vsel %vm452_vm0, %v9999_v5, %v5389_v25  ;;  %v8193_v5 = vld [vmem:[%s9045_s18 + $0x93c] sm:$0xf0]  ;;  %v4624_v45 = vpop.f32.mrf.mxu2  ;;  %v10140_v49 = vpop.f32.mrf.mxu1  ;;  %v6278_v23 = vor.u32 %v8058_v33, %v6275_v40  ;;  %v7998_v44 = vld [vmem:[%s9045_s18 + $0x32c] sm:$0xf]  ;;  %v5915_v25 = vld [vmem:[%s9045_s18 + $0x2b0] sm:$0xf0] }
 0x2f0   : > { %7884 = vmatmul.msk.bf16.vlgmr.msra.gmra.mxu1 %vm449_vm1, %v9210_v30  ;;  %4996 = vmatpush.bf16.msra.mxu0 %v6750_v47  ;;  %5414 = vst [vmem:[%s9720_s1 + $0x10] sm:$0xff] %v5390_v34  ;;  %v6754_v53 = vor.u32 %v8193_v5, %v6753_v42  ;;  %v6038_v18 = vor.u32 %v7998_v44, %v6035_v26  ;;  %v7938_v5 = vld [vmem:[%s9045_s18 + $0x14c] sm:$0xf]  ;;  %v5795_v45 = vld [vmem:[%s9045_s18 + $0x1c0] sm:$0xf0] }
 0x2f1   : > { %v5670_v34 = vor.u32 %v7907_v20, %v5667_v21  ;;  %v7841_v52 = vld [vmem:[%s9045_s18 + $0x1140] sm:$0xf]  ;;  %v8403_v26 = vld [vmem:[%s9045_s18 + $0xfcc] sm:$0xf0] }
 0x2f2   : > { %4951 = vmatpush.bf16.msra.mxu2 %v7466_v41  ;;  %v6985_v41 = vld [vmem:[%s9045_s18 + $0xaa0] sm:$0xf] }
 0x2f3   : > { %5031 = vmatpush.bf16.msrb.mxu1 %v7234_v35  ;;  %4978 = vmatpush.bf16.msra.mxu3 %v6390_v55  ;;  %v8252_v35 = vld [vmem:[%s9045_s18 + $0xb14] sm:$0xf0]  ;;  %v6155_v55 = vld [vmem:[%s9045_s18 + $0x490] sm:$0xf0]  ;;  %v8073_v56 = vld [vmem:[%s9045_s18 + $0x57c] sm:$0xf0] }
 0x2f4   : > { %4997 = vmatpush.bf16.msra.mxu0 %v6630_v11  ;;  %v6986_v47 = vor.u32 %v8252_v35, %v6985_v41  ;;  %v6158_v6 = vor.u32 %v8028_v54, %v6155_v55  ;;  %v5918_v41 = vor.u32 %v7968_v22, %v5915_v25  ;;  %v6274_v20 = vor.u32 %v8073_v56, %v6273_v12  ;;  %v7721_v22 = vld [vmem:[%s9045_s18 + $0x1050] sm:$0xf]  ;;  %v5793_v56 = vld [vmem:[%s9045_s18 + $0x148] sm:$0xf] }
 0x2f5   : > { %7882 = vmatmul.msk.bf16.vlgmr.msrb.gmra.mxu2 %vm449_vm1, %v9210_v30 }
 0x2f6   : > { %4952 = vmatpush.bf16.msra.mxu2 %v7346_v60  ;;  %v8163_v60 = vld [vmem:[%s9045_s18 + $0x84c] sm:$0xf0] }
 0x2f7   : > { %5032 = vmatpush.bf16.msrb.mxu1 %v7114_v1  ;;  %4979 = vmatpush.bf16.msra.mxu3 %v6270_v13  ;;  %v6521_v1 = vld [vmem:[%s9045_s18 + $0x6f0] sm:$0xf]  ;;  %v6634_v61 = vor.u32 %v8163_v60, %v6633_v36  ;;  %v7833_v13 = vld [vmem:[%s9045_s18 + $0x1138] sm:$0xf]  ;;  %v4728_v14 = vpop.f32.mrf.mxu1 }
 0x2f8   : > { %5055 = vmatpush.bf16.msrb.mxu0 %v6518_v8  ;;  %v6522_v11 = vor.u32 %v8134_v62, %v6521_v1  ;;  %v8463_v8 = vld [vmem:[%s9045_s18 + $0x11ac] sm:$0x30]  ;;  %v8464_v36 = vld [vmem:[%s9045_s18 + $0x11b4] sm:$0x30]  ;;  %v6161_v1 = vld [vmem:[%s9045_s18 + $0x420] sm:$0xf] }
 0x2f9   : > { %4998 = vmatmul.bf16.vlgmr.msra.gmra.mxu0 %v9191_v7  ;;  %v7834_v29 = vor.u32 %v8463_v8, %v7833_v13  ;;  %v4674_v33 = vpop.f32.mrf.mxu3  ;;  %v8044_v62 = vld [vmem:[%s9045_s18 + $0x494] sm:$0xf0]  ;;  %v8358_v13 = vld [vmem:[%s9045_s18 + $0xe6c] sm:$0xf]  ;;  %v7475_v8 = vld [vmem:[%s9045_s18 + $0xee0] sm:$0xf0] }
 0x2fa   : > { %4953 = vmatpush.bf16.msra.mxu2 %v7226_v16  ;;  %v5790_v16 = vor.u32 %v7937_v43, %v5787_v59  ;;  %v7908_v59 = vld [vmem:[%s9045_s18 + $0x5c] sm:$0xf]  ;;  %v7478_v21 = vor.u32 %v8358_v13, %v7475_v8  ;;  %v7953_v13 = vld [vmem:[%s9045_s18 + $0x1bc] sm:$0xf0]  ;;  %v8238_v8 = vld [vmem:[%s9045_s18 + $0xaac] sm:$0xf] }
 0x2fb   : > { %5033 = vmatpush.bf16.msrb.mxu1 %v6994_v2  ;;  %4980 = vmatpush.bf16.msra.mxu3 %v6150_v27  ;;  %v1197_v2 = vperm.slane %v9946_v4, 5  ;;  %v6625_v27 = vld [vmem:[%s9045_s18 + $0x7d0] sm:$0xf]  ;;  %v4636_v4 = vadd.f32 %v10025_v58, %v1196_v17  ;;  %v4135_v58 = vsel %vm4067_vm3, %v7834_v29, 0  ;;  %v8434_v29 = vld [vmem:[%s9045_s18 + $0x10c4] sm:$0xf0] }
 0x2fc   : > { %5056 = vmatpush.bf16.msrb.mxu0 %v6398_v28  ;;  %v8162_v28 = vld [vmem:[%s9045_s18 + $0x844] sm:$0xf0]  ;;  %v4648_v35 = vpop.f32.mrf.mxu2  ;;  %v6041_v17 = vld [vmem:[%s9045_s18 + $0x330] sm:$0xf] }
 0x2fd   : > { %v4675_v40 = vadd.f32 %v4674_v33, %v1197_v2  ;;  %v6626_v42 = vor.u32 %v8162_v28, %v6625_v27  ;;  %v8043_v27 = vld [vmem:[%s9045_s18 + $0x48c] sm:$0xf0]  ;;  %v8328_v28 = vld [vmem:[%s9045_s18 + $0xd7c] sm:$0xf]  ;;  %v7722_v33 = vor.u32 %v8434_v29, %v7721_v22  ;;  %v7835_v29 = vld [vmem:[%s9045_s18 + $0x11b0] sm:$0x30] }
 0x2fe   : > { %4954 = vmatpush.bf16.msra.mxu2 %v7106_v37  ;;  %v6281_v37 = vld [vmem:[%s9045_s18 + $0x510] sm:$0xf]  ;;  %v10183_v54 = vpop.f32.mrf.mxu0  ;;  %v8448_v22 = vld [vmem:[%s9045_s18 + $0x113c] sm:$0xf] }
 0x2ff   : > { %5034 = vmatpush.bf16.msrb.mxu1 %v6874_v38  ;;  %4981 = vmatpush.bf16.msra.mxu3 %v6030_v50  ;;  %v8074_v38 = vld [vmem:[%s9045_s18 + $0x584] sm:$0xf0]  ;;  %v4649_v50 = vadd.f32 %v4648_v35, %v4636_v4  ;;  %v7984_v4 = vld [vmem:[%s9045_s18 + $0x2b4] sm:$0xf0]  ;;  %v8013_v35 = vld [vmem:[%s9045_s18 + $0x39c] sm:$0xf0] }
 0x300   : > { %5057 = vmatpush.bf16.msrb.mxu0 %v6278_v23  ;;  %v6514_v23 = vor.u32 %v8133_v32, %v6513_v31  ;;  %v6282_v55 = vor.u32 %v8074_v38, %v6281_v37  ;;  %v7355_v31 = vld [vmem:[%s9045_s18 + $0xdf0] sm:$0xf0]  ;;  %v5921_v32 = vld [vmem:[%s9045_s18 + $0x240] sm:$0xf] }
 0x301   : > { %v4662_v60 = vadd.f32 %v10031_v9, %v4649_v50  ;;  %v7842_v9 = vor.u32 %v8464_v36, %v7841_v52  ;;  %v7358_v38 = vor.u32 %v8328_v28, %v7355_v31  ;;  %v7954_v50 = vld [vmem:[%s9045_s18 + $0x1c4] sm:$0xf0]  ;;  %v7983_v36 = vld [vmem:[%s9045_s18 + $0x2ac] sm:$0xf0]  ;;  %v5673_v28 = vld [vmem:[%s9045_s18 + $0x58] sm:$0xf] }
 0x302   : > { %4955 = vmatpush.bf16.msra.mxu2 %v6986_v47  ;;  %v6393_v47 = vld [vmem:[%s9045_s18 + $0x5f8] sm:$0xf]  ;;  %v7923_v31 = vld [vmem:[%s9045_s18 + $0xcc] sm:$0xf0] }
 0x303   : > { %5035 = vmatpush.bf16.msrb.mxu1 %v6754_v53  ;;  %4982 = vmatpush.bf16.msra.mxu3 %v5910_v0  ;;  %v4688_v53 = vadd.f32 %v10093_v39, %v4675_v40  ;;  %v5798_v39 = vor.u32 %v7938_v5, %v5795_v45  ;;  %v6394_v43 = vor.u32 %v8103_v48, %v6393_v47  ;;  %v8404_v40 = vld [vmem:[%s9045_s18 + $0xfd4] sm:$0xf0]  ;;  %v7235_v5 = vld [vmem:[%s9045_s18 + $0xd00] sm:$0xf0]  ;;  %v5801_v45 = vld [vmem:[%s9045_s18 + $0x150] sm:$0xf] }
 0x304   : > { %5058 = vmatpush.bf16.msrb.mxu0 %v6158_v6  ;;  %v7714_v6 = vor.u32 %v8433_v51, %v7713_v57  ;;  %v4650_v63 = vpop.f32.mrf.mxu2  ;;  %v7483_v57 = vld [vmem:[%s9045_s18 + $0xee8] sm:$0xf0] }
 0x305   : > { %v4701_v0 = vadd.f32 %v10070_v3, %v4688_v53  ;;  %v6162_v3 = vor.u32 %v8044_v62, %v6161_v1  ;;  %v7843_v1 = vld [vmem:[%s9045_s18 + $0x11b8] sm:$0x30]  ;;  %v8299_v63 = vld [vmem:[%s9045_s18 + $0xc94] sm:$0xf] }
 0x306   : > { %4956 = vmatpush.bf16.msra.mxu2 %v6866_v10  ;;  %v5675_v10 = vld [vmem:[%s9045_s18 + $0xd0] sm:$0xf0] }
 0x307   : > { %5036 = vmatpush.bf16.msrb.mxu1 %v6634_v61  ;;  %4983 = vmatpush.bf16.msra.mxu3 %v5790_v16  ;;  %v7593_v61 = vld [vmem:[%s9045_s18 + $0xf58] sm:$0xf]  ;;  %v5367_v44 = vrot.slane %v4701_v0, 6  ;;  %v5678_v15 = vor.u32 %v7908_v59, %v5675_v10  ;;  %v8014_v16 = vld [vmem:[%s9045_s18 + $0x3a4] sm:$0xf0]  ;;  %v5802_v0 = vor.u32 %v7954_v50, %v5801_v45 }
 0x308   : > { %5059 = vmatpush.bf16.msrb.mxu0 %v6038_v18  ;;  %v7594_v2 = vor.u32 %v8403_v26, %v7593_v61  ;;  %v4141_v18 = vsel %vm4067_vm3, %v7842_v9, 0  ;;  %v6042_v25 = vor.u32 %v8014_v16, %v6041_v17  ;;  %v5681_v59 = vld [vmem:[%s9045_s18 + $0x60] sm:$0xf]  ;;  %v7924_v10 = vld [vmem:[%s9045_s18 + $0xd4] sm:$0xf0] }
 0x309   : > { %v10203_v14 = vsel %vm5380_vm4, %v4662_v60, %v5367_v44  ;;  %v8449_v60 = vld [vmem:[%s9045_s18 + $0x1144] sm:$0xf]  ;;  %v7363_v9 = vld [vmem:[%s9045_s18 + $0xdf8] sm:$0xf0]  ;;  %v5682_v12 = vor.u32 %v7924_v10, %v5681_v59  ;;  %v7243_v17 = vld [vmem:[%s9045_s18 + $0xd08] sm:$0xf0] }
 0x30a   : > { %5037 = vmatmul.bf16.vlgmr.msrb.gmra.mxu1 %v9191_v7  ;;  %4957 = vmatpush.bf16.msra.mxu2 %v6746_v19  ;;  %v4754_v19 = vpop.f32.mrf.mxu0  ;;  %v8329_v61 = vld [vmem:[%s9045_s18 + $0xd84] sm:$0xf]  ;;  %v7846_v44 = vor.u32 %v8449_v60, %v7843_v1  ;;  %v8418_v1 = vld [vmem:[%s9045_s18 + $0x104c] sm:$0xf]  ;;  %v8345_v59 = vld [vmem:[%s9045_s18 + $0xdfc] sm:$0xf0] }
 0x30b   : > { %5094 = vmatpush.bf16.msra.mxu1 %v6522_v11  ;;  %4984 = vmatpush.bf16.msra.mxu3 %v5670_v34  ;;  %v4676_v11 = vpop.f32.mrf.mxu3  ;;  %v7601_v34 = vld [vmem:[%s9045_s18 + $0xf60] sm:$0xf]  ;;  %v8419_v19 = vld [vmem:[%s9045_s18 + $0x1054] sm:$0xf] }
 0x30c   : > { %5060 = vmatpush.bf16.msrb.mxu0 %v5918_v41  ;;  %v6033_v41 = vld [vmem:[%s9045_s18 + $0x328] sm:$0xf]  ;;  %v7602_v53 = vor.u32 %v8404_v40, %v7601_v34  ;;  %v7366_v11 = vor.u32 %v8329_v61, %v7363_v9  ;;  %v4144_v16 = vsel %vm4067_vm3, %v7846_v44, 0  ;;  %v8269_v34 = vld [vmem:[%s9045_s18 + $0xba4] sm:$0xf] }
 0x30d   : > { %v6034_v48 = vor.u32 %v8013_v35, %v6033_v41  ;;  %v8389_v40 = vld [vmem:[%s9045_s18 + $0xf64] sm:$0xf]  ;;  %v7603_v41 = vld [vmem:[%s9045_s18 + $0xfd8] sm:$0xf0]  ;;  %v6635_v44 = vld [vmem:[%s9045_s18 + $0x850] sm:$0xf0] }
 0x30e   : > { %4958 = vmatpush.bf16.msra.mxu2 %v6626_v42  ;;  %4985 = vmatmul.bf16.vlgmr.msra.gmra.mxu3 %v9175_v46  ;;  %v5922_v42 = vor.u32 %v7984_v4, %v5921_v32  ;;  %v8208_v32 = vld [vmem:[%s9045_s18 + $0x9bc] sm:$0xf] }
 0x30f   : > { %5095 = vmatpush.bf16.msra.mxu1 %v6402_v24  ;;  %5047 = vmatpush.bf16.msrb.mxu3 %v4135_v58  ;;  %v6153_v24 = vld [vmem:[%s9045_s18 + $0x418] sm:$0xf]  ;;  %v8298_v58 = vld [vmem:[%s9045_s18 + $0xc8c] sm:$0xf]  ;;  %v10229_v47 = vpop.f32.mrf.mxu1  ;;  %v8148_v9 = vld [vmem:[%s9045_s18 + $0x7dc] sm:$0xf] }
 0x310   : > { %5061 = vmatpush.bf16.msrb.mxu0 %v5798_v39  ;;  %v6154_v37 = vor.u32 %v8043_v27, %v6153_v24  ;;  %v7238_v52 = vor.u32 %v8298_v58, %v7235_v5  ;;  %v7246_v27 = vor.u32 %v8299_v63, %v7243_v17  ;;  %v7489_v58 = vld [vmem:[%s9045_s18 + $0xe78] sm:$0xf]  ;;  %v8375_v5 = vld [vmem:[%s9045_s18 + $0xeec] sm:$0xf0] }
 0x311   : > { %4959 = vmatmul.bf16.vlgmr.msra.gmra.mxu2 %v9191_v7  ;;  %v7490_v60 = vor.u32 %v8375_v5, %v7489_v58  ;;  %v7481_v63 = vld [vmem:[%s9045_s18 + $0xe70] sm:$0xf]  ;;  %v8149_v5 = vld [vmem:[%s9045_s18 + $0x7e4] sm:$0xf] }
 0x312   : > { %5016 = vmatpush.bf16.msrb.mxu2 %v6514_v23  ;;  %v8359_v23 = vld [vmem:[%s9045_s18 + $0xe74] sm:$0xf]  ;;  %v10235_v62 = vpop.f32.mrf.mxu0 }
 0x313   : > { %5096 = vmatpush.bf16.msra.mxu1 %v6282_v55  ;;  %5048 = vmatpush.bf16.msrb.mxu3 %v7714_v6  ;;  %v10227_v51 = vpop.f32.mrf.mxu3  ;;  %v5913_v55 = vld [vmem:[%s9045_s18 + $0x238] sm:$0xf]  ;;  %v7486_v39 = vor.u32 %v8359_v23, %v7483_v57  ;;  %v8268_v6 = vld [vmem:[%s9045_s18 + $0xb9c] sm:$0xf]  ;;  %v8178_v23 = vld [vmem:[%s9045_s18 + $0x8cc] sm:$0xf]  ;;  %v7606_v57 = vor.u32 %v8389_v40, %v7603_v41 }
 0x314   : > { %5062 = vmatpush.bf16.msrb.mxu0 %v5678_v15  ;;  %v6995_v15 = vld [vmem:[%s9045_s18 + $0xb20] sm:$0xf0]  ;;  %v8344_v41 = vld [vmem:[%s9045_s18 + $0xdf4] sm:$0xf0] }
 0x316   : > { %5017 = vmatpush.bf16.msrb.mxu2 %v6394_v43  ;;  %v7115_v43 = vld [vmem:[%s9045_s18 + $0xc10] sm:$0xf0] }
 0x317   : > { %5097 = vmatpush.bf16.msra.mxu1 %v6162_v3  ;;  %5049 = vmatpush.bf16.msrb.mxu3 %v7594_v2  ;;  %v5914_v3 = vor.u32 %v7983_v36, %v5913_v55  ;;  %v7118_v26 = vor.u32 %v8268_v6, %v7115_v43  ;;  %v8239_v55 = vld [vmem:[%s9045_s18 + $0xab4] sm:$0xf]  ;;  %v7369_v43 = vld [vmem:[%s9045_s18 + $0xd88] sm:$0xf] }
 0x318   : > { %5125 = vmatpush.bf16.msra.mxu0 %v4141_v18  ;;  %v4793_v18 = vpop.f32.mrf.mxu1 }
 0x319   : > { %5063 = vmatmul.bf16.vlgmr.msrb.gmra.mxu0 %v9175_v46  ;;  %v7249_v18 = vld [vmem:[%s9045_s18 + $0xc98] sm:$0xf] }
 0x31a   : > { %5018 = vmatpush.bf16.msrb.mxu2 %v6274_v20  ;;  %v7723_v20 = vld [vmem:[%s9045_s18 + $0x10c8] sm:$0xf0]  ;;  %v4819_v24 = vpop.f32.mrf.mxu0 }
 0x31b   : > { %5068 = vmatpush.bf16.msra.mxu3 %v7478_v21  ;;  %5098 = vmatpush.bf16.msra.mxu1 %v6042_v25  ;;  %v4741_v2 = vpop.f32.mrf.mxu3  ;;  %v5794_v21 = vor.u32 %v7953_v13, %v5793_v56  ;;  %v6998_v25 = vor.u32 %v8238_v8, %v6995_v15  ;;  %v7726_v4 = vor.u32 %v8419_v19, %v7723_v20  ;;  %v7595_v56 = vld [vmem:[%s9045_s18 + $0xfd0] sm:$0xf0]  ;;  %v6523_v15 = vld [vmem:[%s9045_s18 + $0x768] sm:$0xf0]  ;;  %v8315_v19 = vld [vmem:[%s9045_s18 + $0xd0c] sm:$0xf0] }
 0x31c   : > { %5126 = vmatpush.bf16.msra.mxu0 %v7722_v33  ;;  %v6875_v33 = vld [vmem:[%s9045_s18 + $0xa30] sm:$0xf0]  ;;  %v4713_v35 = vpop.f32.mrf.mxu2  ;;  %v7370_v13 = vor.u32 %v8345_v59, %v7369_v43  ;;  %v8374_v2 = vld [vmem:[%s9045_s18 + $0xee4] sm:$0xf0] }
 0x31d   : > { %v6878_v45 = vor.u32 %v8208_v32, %v6875_v33  ;;  %v8119_v8 = vld [vmem:[%s9045_s18 + $0x6f4] sm:$0xf]  ;;  %v7250_v33 = vor.u32 %v8315_v19, %v7249_v18 }
 0x31e   : > { %5019 = vmatpush.bf16.msrb.mxu2 %v6154_v37  ;;  %7885 = vmatmul.msk.bf16.vlgmr.msrb.gmra.mxu3 %vm449_vm1, %v9210_v30  ;;  %v7123_v37 = vld [vmem:[%s9045_s18 + $0xc18] sm:$0xf0] }
 0x31f   : > { %5069 = vmatpush.bf16.msra.mxu3 %v7358_v38  ;;  %5099 = vmatpush.bf16.msra.mxu1 %v5922_v42  ;;  %v7838_v38 = vor.u32 %v8448_v22, %v7835_v29  ;;  %v5674_v42 = vor.u32 %v7923_v31, %v5673_v28  ;;  %v7126_v50 = vor.u32 %v8269_v34, %v7123_v37  ;;  %v6763_v28 = vld [vmem:[%s9045_s18 + $0x948] sm:$0xf0]  ;;  %v8089_v34 = vld [vmem:[%s9045_s18 + $0x604] sm:$0xf]  ;;  %v6403_v37 = vld [vmem:[%s9045_s18 + $0x678] sm:$0xf0] }
 0x320   : > { %5127 = vmatpush.bf16.msra.mxu0 %v7602_v53  ;;  %v6755_v53 = vld [vmem:[%s9045_s18 + $0x940] sm:$0xf0] }
 0x321   : > { %v10274_v36 = vpop.f32.mrf.mxu1  ;;  %v6758_v10 = vor.u32 %v8178_v23, %v6755_v53  ;;  %v6643_v23 = vld [vmem:[%s9045_s18 + $0x858] sm:$0xf0] }
 0x322   : > { %5020 = vmatpush.bf16.msrb.mxu2 %v6034_v48  ;;  %v7003_v48 = vld [vmem:[%s9045_s18 + $0xb28] sm:$0xf0] }
 0x323   : > { %5070 = vmatpush.bf16.msra.mxu3 %v7238_v52  ;;  %5100 = vmatpush.bf16.msra.mxu1 %v5802_v0  ;;  %v4138_v52 = vsel %vm4067_vm3, %v7838_v38, 0  ;;  %v7715_v0 = vld [vmem:[%s9045_s18 + $0x10c0] sm:$0xf0]  ;;  %v7006_v61 = vor.u32 %v8239_v55, %v7003_v48  ;;  %v7361_v38 = vld [vmem:[%s9045_s18 + $0xd80] sm:$0xf] }
 0x324   : > { %5146 = vmatpush.bf16.msrb.mxu0 %v7486_v39  ;;  %v8573_v39 = vld [vmem:[%s9634_s8 + $0x8] sm:$0xff]  ;;  %v7362_v53 = vor.u32 %v8344_v41, %v7361_v38  ;;  %v7969_v41 = vld [vmem:[%s9045_s18 + $0x244] sm:$0xf] }
 0x325   : > { %v1198_v6 = vperm.slane %v8573_v39, 6  ;;  %v4765_v20 = vpop.f32.mrf.mxu3  ;;  %v1199_v29 = vperm.slane %v8573_v39, 7  ;;  %v8120_v48 = vld [vmem:[%s9045_s18 + $0x6fc] sm:$0xf]  ;;  %v7009_v39 = vld [vmem:[%s9045_s18 + $0xab8] sm:$0xf] }
 0x326   : > { %5021 = vmatpush.bf16.msrb.mxu2 %v5914_v3  ;;  %v8209_v3 = vld [vmem:[%s9045_s18 + $0x9c4] sm:$0xf] }
 0x327   : > { %5071 = vmatpush.bf16.msra.mxu3 %v7118_v26  ;;  %5101 = vmatpush.bf16.msra.mxu1 %v5682_v12  ;;  %v7718_v26 = vor.u32 %v8418_v1, %v7715_v0  ;;  %v6883_v12 = vld [vmem:[%s9045_s18 + $0xa38] sm:$0xf0]  ;;  %v4714_v17 = vadd.f32 %v4713_v35, %v1198_v6  ;;  %v7129_v35 = vld [vmem:[%s9045_s18 + $0xba8] sm:$0xf]  ;;  %v8255_v6 = vld [vmem:[%s9045_s18 + $0xb2c] sm:$0xf0] }
 0x328   : > { %5147 = vmatpush.bf16.msrb.mxu0 %v7366_v11  ;;  %v8388_v11 = vld [vmem:[%s9045_s18 + $0xf5c] sm:$0xf]  ;;  %v6886_v22 = vor.u32 %v8209_v3, %v6883_v12  ;;  %v8314_v0 = vld [vmem:[%s9045_s18 + $0xd04] sm:$0xf0] }
 0x329   : > { %7887 = vmatmul.msk.bf16.vlgmr.msra.gmra.mxu0 %vm449_vm1, %v9210_v30  ;;  %v7598_v24 = vor.u32 %v8388_v11, %v7595_v56  ;;  %v4858_v32 = vpop.f32.mrf.mxu1  ;;  %v4727_v40 = vadd.f32 %v10140_v49, %v4714_v17  ;;  %v8059_v49 = vld [vmem:[%s9045_s18 + $0x514] sm:$0xf]  ;;  %v6163_v3 = vld [vmem:[%s9045_s18 + $0x498] sm:$0xf0]  ;;  %v7010_v56 = vor.u32 %v8255_v6, %v7009_v39 }
 0x32a   : > { %5102 = vmatmul.bf16.vlgmr.msra.gmra.mxu1 %v9175_v46  ;;  %5022 = vmatpush.bf16.msrb.mxu2 %v5794_v21  ;;  %v6638_v21 = vor.u32 %v8148_v9, %v6635_v44  ;;  %v10296_v31 = vpop.f32.mrf.mxu0  ;;  %v8029_v44 = vld [vmem:[%s9045_s18 + $0x424] sm:$0xf]  ;;  %v7001_v32 = vld [vmem:[%s9045_s18 + $0xab0] sm:$0xf]  ;;  %v8000_v6 = vld [vmem:[%s9045_s18 + $0x33c] sm:$0xf] }
 0x32b   : > { %5164 = vmatpush.bf16.msrb.mxu1 %v4144_v16  ;;  %5072 = vmatpush.bf16.msra.mxu3 %v6998_v25  ;;  %v4715_v16 = vpop.f32.mrf.mxu2  ;;  %v6526_v25 = vor.u32 %v8119_v8, %v6523_v15  ;;  %v4740_v1 = vadd.f32 %v10227_v51, %v4727_v40  ;;  %v7121_v8 = vld [vmem:[%s9045_s18 + $0xba0] sm:$0xf]  ;;  %v8284_v15 = vld [vmem:[%s9045_s18 + $0xc14] sm:$0xf0]  ;;  %v6166_v19 = vor.u32 %v8029_v44, %v6163_v3  ;;  %v6417_v3 = vld [vmem:[%s9045_s18 + $0x610] sm:$0xf] }
 0x32c   : > { %5148 = vmatpush.bf16.msrb.mxu0 %v7246_v27  ;;  %v8179_v27 = vld [vmem:[%s9045_s18 + $0x8d4] sm:$0xf]  ;;  %v6889_v16 = vld [vmem:[%s9045_s18 + $0x9c8] sm:$0xf] }
 0x32d   : > { %v6766_v58 = vor.u32 %v8179_v27, %v6763_v28  ;;  %v4767_v43 = vpop.f32.mrf.mxu3  ;;  %v6291_v28 = vld [vmem:[%s9045_s18 + $0x590] sm:$0xf0] }
 0x32e   : > { %5023 = vmatpush.bf16.msrb.mxu2 %v5674_v42  ;;  %v8285_v42 = vld [vmem:[%s9045_s18 + $0xc1c] sm:$0xf0]  ;;  %v6051_v43 = vld [vmem:[%s9045_s18 + $0x3b0] sm:$0xf0] }
 0x32f   : > { %5165 = vmatpush.bf16.msrb.mxu1 %v7726_v4  ;;  %5073 = vmatpush.bf16.msra.mxu3 %v6878_v45  ;;  %v7482_v4 = vor.u32 %v8374_v2, %v7481_v63  ;;  %v4753_v45 = vadd.f32 %v10183_v54, %v1199_v29  ;;  %v7130_v55 = vor.u32 %v8285_v42, %v7129_v35  ;;  %v5368_v63 = vrot.slane %v4740_v1, 4  ;;  %v8225_v2 = vld [vmem:[%s9045_s18 + $0xa3c] sm:$0xf0]  ;;  %v8060_v29 = vld [vmem:[%s9045_s18 + $0x51c] sm:$0xf] }
 0x330   : > { %5149 = vmatpush.bf16.msrb.mxu0 %v7126_v50  ;;  %v6406_v50 = vor.u32 %v8089_v34, %v6403_v37  ;;  %v6890_v27 = vor.u32 %v8225_v2, %v6889_v16  ;;  %v6294_v40 = vor.u32 %v8060_v29, %v6291_v28  ;;  %v5923_v35 = vld [vmem:[%s9045_s18 + $0x2b8] sm:$0xf0]  ;;  %v7939_v1 = vld [vmem:[%s9045_s18 + $0x154] sm:$0xf]  ;;  %v8076_v28 = vld [vmem:[%s9045_s18 + $0x594] sm:$0xf0] }
 0x331   : > { %5024 = vmatmul.bf16.vlgmr.msrb.gmra.mxu2 %v9175_v46  ;;  %v4766_v54 = vadd.f32 %v4765_v20, %v4753_v45  ;;  %v6171_v45 = vld [vmem:[%s9045_s18 + $0x4a0] sm:$0xf0] }
 0x332   : > { %5086 = vmatpush.bf16.msra.mxu2 %v4138_v52  ;;  %v6531_v52 = vld [vmem:[%s9045_s18 + $0x770] sm:$0xf0]  ;;  %v4845_v12 = vpop.f32.mrf.mxu0 }
 0x333   : > { %5166 = vmatpush.bf16.msrb.mxu1 %v7606_v57  ;;  %5074 = vmatpush.bf16.msra.mxu3 %v6758_v10  ;;  %v6283_v57 = vld [vmem:[%s9045_s18 + $0x588] sm:$0xf0]  ;;  %v4778_v59 = vpop.f32.mrf.mxu2  ;;  %v6646_v10 = vor.u32 %v8149_v5, %v6643_v23  ;;  %v6534_v9 = vor.u32 %v8120_v48, %v6531_v52  ;;  %v8224_v23 = vld [vmem:[%s9045_s18 + $0xa34] sm:$0xf0]  ;;  %v10356_v48 = vld [vmem:[%s9634_s8 + $0x10] sm:$0xff]  ;;  %v5926_v52 = vor.u32 %v7969_v41, %v5923_v35 }
 0x334   : > { %5150 = vmatpush.bf16.msrb.mxu0 %v7006_v61  ;;  %v4779_v51 = vadd.f32 %v4778_v59, %v4766_v54  ;;  %v6286_v61 = vor.u32 %v8059_v49, %v6283_v57  ;;  %v8030_v5 = vld [vmem:[%s9045_s18 + $0x42c] sm:$0xf]  ;;  %v6649_v49 = vld [vmem:[%s9045_s18 + $0x7e8] sm:$0xf]  ;;  %v8165_v57 = vld [vmem:[%s9045_s18 + $0x85c] sm:$0xf0] }
 0x335   : > { %v5803_v54 = vld [vmem:[%s9045_s18 + $0x1c8] sm:$0xf0]  ;;  %v6650_v39 = vor.u32 %v8165_v57, %v6649_v49  ;;  %v6761_v59 = vld [vmem:[%s9045_s18 + $0x8d0] sm:$0xf]  ;;  %v1200_v12 = vperm.slane %v10356_v48, 0 }
 0x336   : > { %5087 = vmatpush.bf16.msra.mxu2 %v7718_v26  ;;  %v8090_v26 = vld [vmem:[%s9045_s18 + $0x60c] sm:$0xf]  ;;  %v5369_v17 = vrot.slane %v4779_v51, 2  ;;  %v8194_v51 = vld [vmem:[%s9045_s18 + $0x944] sm:$0xf0] }
 0x337   : > { %5185 = vmatpush.bf16.msra.mxu1 %v7490_v60  ;;  %5075 = vmatpush.bf16.msra.mxu3 %v6638_v21  ;;  %v7241_v60 = vld [vmem:[%s9045_s18 + $0xc90] sm:$0xf]  ;;  %v7999_v21 = vld [vmem:[%s9045_s18 + $0x334] sm:$0xf]  ;;  %v4792_v29 = vadd.f32 %v10229_v47, %v1200_v12  ;;  %v7729_v35 = vld [vmem:[%s9045_s18 + $0x1058] sm:$0xf] }
 0x338   : > { %5151 = vmatpush.bf16.msrb.mxu0 %v6886_v22  ;;  %v7242_v11 = vor.u32 %v8314_v0, %v7241_v60  ;;  %v5392_v18 = vsel %vm5382_vm5, %v5368_v63, %v5369_v17  ;;  %v6043_v22 = vld [vmem:[%s9045_s18 + $0x3a8] sm:$0xf0]  ;;  %v6174_v60 = vor.u32 %v8030_v5, %v6171_v45  ;;  %v5683_v63 = vld [vmem:[%s9045_s18 + $0xd8] sm:$0xf0]  ;;  %v7857_v49 = vld [vmem:[%s9045_s18 + $0x1150] sm:$0xf] }
 0x339   : > { %v6046_v38 = vor.u32 %v7999_v21, %v6043_v22  ;;  %v7970_v17 = vld [vmem:[%s9045_s18 + $0x24c] sm:$0xf]  ;;  %v6529_v21 = vld [vmem:[%s9045_s18 + $0x6f8] sm:$0xf]  ;;  %v8135_v22 = vld [vmem:[%s9045_s18 + $0x76c] sm:$0xf0] }
 0x33a   : > { %5088 = vmatpush.bf16.msra.mxu2 %v7598_v24  ;;  %5076 = vmatmul.bf16.vlgmr.msra.gmra.mxu3 %v9191_v7  ;;  %v5393_v24 = vsel %vm452_vm0, %v10203_v14, %v5392_v18  ;;  %v8195_v14 = vld [vmem:[%s9045_s18 + $0x94c] sm:$0xf0]  ;;  %v5931_v18 = vld [vmem:[%s9045_s18 + $0x2c0] sm:$0xf0]  ;;  %v6530_v41 = vor.u32 %v8135_v22, %v6529_v21  ;;  %v8466_v57 = vld [vmem:[%s9045_s18 + $0x11c4] sm:$0x30] }
 0x33b   : > { %5186 = vmatpush.bf16.msra.mxu1 %v7370_v13  ;;  %5133 = vmatpush.bf16.msrb.mxu3 %v6526_v25  ;;  %v6411_v13 = vld [vmem:[%s9045_s18 + $0x680] sm:$0xf0]  ;;  %v7122_v25 = vor.u32 %v8284_v15, %v7121_v8  ;;  %5415 = vst [vmem:[%s9720_s1 + $0x18] sm:$0xff] %v5393_v24  ;;  %v4780_v34 = vpop.f32.mrf.mxu2  ;;  %v10343_v37 = vpop.f32.mrf.mxu1  ;;  %v6762_v8 = vor.u32 %v8194_v51, %v6761_v59  ;;  %v8405_v59 = vld [vmem:[%s9045_s18 + $0xfdc] sm:$0xf0] }
 0x33c   : > { %7888 = vmatmul.msk.bf16.vlgmr.msrb.gmra.mxu1 %vm449_vm1, %v9210_v30  ;;  %5152 = vmatpush.bf16.msrb.mxu0 %v6766_v58  ;;  %v6414_v20 = vor.u32 %v8090_v26, %v6411_v13  ;;  %v8106_v26 = vld [vmem:[%s9045_s18 + $0x684] sm:$0xf0]  ;;  %v6054_v13 = vor.u32 %v8000_v6, %v6051_v43  ;;  %v7909_v15 = vld [vmem:[%s9045_s18 + $0x64] sm:$0xf]  ;;  %v7940_v34 = vld [vmem:[%s9045_s18 + $0x15c] sm:$0xf] }
 0x33d   : > { %v6418_v2 = vor.u32 %v8106_v26, %v6417_v3  ;;  %v7609_v6 = vld [vmem:[%s9045_s18 + $0xf68] sm:$0xf]  ;;  %v8330_v21 = vld [vmem:[%s9045_s18 + $0xd8c] sm:$0xf]  ;;  %v7371_v22 = vld [vmem:[%s9045_s18 + $0xe00] sm:$0xf0] }
 0x33e   : > { %5107 = vmatpush.bf16.msrb.mxu2 %v7482_v4  ;;  %v8254_v4 = vld [vmem:[%s9045_s18 + $0xb24] sm:$0xf0] }
 0x33f   : > { %5187 = vmatpush.bf16.msra.mxu1 %v7250_v33  ;;  %5134 = vmatpush.bf16.msrb.mxu3 %v6406_v50  ;;  %v6769_v33 = vld [vmem:[%s9045_s18 + $0x8d8] sm:$0xf]  ;;  %v7002_v42 = vor.u32 %v8254_v4, %v7001_v32  ;;  %v6881_v50 = vld [vmem:[%s9045_s18 + $0x9c0] sm:$0xf]  ;;  %v5934_v4 = vor.u32 %v7970_v17, %v5931_v18  ;;  %v6169_v18 = vld [vmem:[%s9045_s18 + $0x428] sm:$0xf] }
 0x340   : > { %5153 = vmatpush.bf16.msrb.mxu0 %v6646_v10  ;;  %v6770_v58 = vor.u32 %v8195_v14, %v6769_v33  ;;  %v6882_v0 = vor.u32 %v8224_v23, %v6881_v50  ;;  %v8105_v23 = vld [vmem:[%s9045_s18 + $0x67c] sm:$0xf0] }
 0x341   : > { %7886 = vmatmul.msk.bf16.vlgmr.msra.gmra.mxu2 %vm449_vm1, %v9210_v30 }
 0x342   : > { %5108 = vmatpush.bf16.msrb.mxu2 %v7362_v53  ;;  %v6537_v53 = vld [vmem:[%s9045_s18 + $0x700] sm:$0xf] }
 0x343   : > { %5188 = vmatpush.bf16.msra.mxu1 %v7130_v55  ;;  %5135 = vmatpush.bf16.msrb.mxu3 %v6286_v61  ;;  %v8136_v55 = vld [vmem:[%s9045_s18 + $0x774] sm:$0xf0]  ;;  %v7849_v61 = vld [vmem:[%s9045_s18 + $0x1148] sm:$0xf]  ;;  %v4884_v44 = vpop.f32.mrf.mxu1 }
 0x344   : > { %5211 = vmatpush.bf16.msra.mxu0 %v6534_v9  ;;  %v6538_v10 = vor.u32 %v8136_v55, %v6537_v53  ;;  %v8465_v9 = vld [vmem:[%s9045_s18 + $0x11bc] sm:$0x30]  ;;  %v6177_v55 = vld [vmem:[%s9045_s18 + $0x430] sm:$0xf]  ;;  %v7491_v44 = vld [vmem:[%s9045_s18 + $0xef0] sm:$0xf0] }
 0x345   : > { %5154 = vmatmul.bf16.vlgmr.msrb.gmra.mxu0 %v9191_v7  ;;  %v7850_v16 = vor.u32 %v8465_v9, %v7849_v61  ;;  %v4830_v24 = vpop.f32.mrf.mxu3  ;;  %v8075_v61 = vld [vmem:[%s9045_s18 + $0x58c] sm:$0xf0]  ;;  %v8360_v9 = vld [vmem:[%s9045_s18 + $0xe7c] sm:$0xf] }
 0x346   : > { %5109 = vmatpush.bf16.msrb.mxu2 %v7242_v11  ;;  %v5806_v11 = vor.u32 %v7939_v1, %v5803_v54  ;;  %v7494_v17 = vor.u32 %v8360_v9, %v7491_v44  ;;  %v5809_v9 = vld [vmem:[%s9045_s18 + $0x158] sm:$0xf]  ;;  %v7955_v44 = vld [vmem:[%s9045_s18 + $0x1cc] sm:$0xf0] }
 0x347   : > { %5189 = vmatpush.bf16.msra.mxu1 %v7010_v56  ;;  %5136 = vmatpush.bf16.msrb.mxu3 %v6166_v19  ;;  %v1201_v56 = vperm.slane %v10356_v48, 1  ;;  %v6641_v19 = vld [vmem:[%s9045_s18 + $0x7e0] sm:$0xf]  ;;  %v4147_v47 = vsel %vm4067_vm3, %v7850_v16, 0 }
 0x348   : > { %5212 = vmatpush.bf16.msra.mxu0 %v6414_v20  ;;  %v8164_v20 = vld [vmem:[%s9045_s18 + $0x854] sm:$0xf0]  ;;  %v4804_v33 = vpop.f32.mrf.mxu2  ;;  %v7737_v16 = vld [vmem:[%s9045_s18 + $0x1060] sm:$0xf] }
 0x349   : > { %v4831_v32 = vadd.f32 %v4830_v24, %v1201_v56  ;;  %v6642_v14 = vor.u32 %v8164_v20, %v6641_v19  ;;  %v8016_v56 = vld [vmem:[%s9045_s18 + $0x3b4] sm:$0xf0]  ;;  %v8045_v20 = vld [vmem:[%s9045_s18 + $0x49c] sm:$0xf0]  ;;  %v7986_v24 = vld [vmem:[%s9045_s18 + $0x2c4] sm:$0xf0] }
 0x34a   : > { %5110 = vmatpush.bf16.msrb.mxu2 %v7122_v25  ;;  %v5686_v25 = vor.u32 %v7909_v15, %v5683_v63  ;;  %v10389_v45 = vpop.f32.mrf.mxu0 }
 0x34b   : > { %5190 = vmatpush.bf16.msra.mxu1 %v6890_v27  ;;  %5137 = vmatpush.bf16.msrb.mxu3 %v6046_v38  ;;  %v6297_v27 = vld [vmem:[%s9045_s18 + $0x520] sm:$0xf]  ;;  %v5811_v38 = vld [vmem:[%s9045_s18 + $0x1d0] sm:$0xf0]  ;;  %v4844_v5 = vadd.f32 %v10296_v31, %v4831_v32  ;;  %v7374_v32 = vor.u32 %v8330_v21, %v7371_v22  ;;  %v5689_v22 = vld [vmem:[%s9045_s18 + $0x68] sm:$0xf] }
 0x34c   : > { %5213 = vmatpush.bf16.msra.mxu0 %v6294_v40  ;;  %v4805_v40 = vadd.f32 %v4804_v33, %v4792_v29  ;;  %v6298_v50 = vor.u32 %v8076_v28, %v6297_v27  ;;  %v5814_v31 = vor.u32 %v7940_v34, %v5811_v38  ;;  %v5937_v29 = vld [vmem:[%s9045_s18 + $0x250] sm:$0xf]  ;;  %v6170_v28 = vor.u32 %v8045_v20, %v6169_v18  ;;  %v6049_v33 = vld [vmem:[%s9045_s18 + $0x338] sm:$0xf]  ;;  %v8300_v34 = vld [vmem:[%s9045_s18 + $0xc9c] sm:$0xf] }
 0x34d   : > { %v4832_v51 = vpop.f32.mrf.mxu3  ;;  %v7617_v27 = vld [vmem:[%s9045_s18 + $0xf70] sm:$0xf]  ;;  %v7251_v38 = vld [vmem:[%s9045_s18 + $0xd10] sm:$0xf0]  ;;  %v7851_v18 = vld [vmem:[%s9045_s18 + $0x11c0] sm:$0x30] }
 0x34e   : > { %5111 = vmatpush.bf16.msrb.mxu2 %v7002_v42  ;;  %v8435_v42 = vld [vmem:[%s9045_s18 + $0x10cc] sm:$0xf0]  ;;  %v4818_v53 = vadd.f32 %v10235_v62, %v4805_v40  ;;  %v7858_v62 = vor.u32 %v8466_v57, %v7857_v49  ;;  %v5817_v40 = vld [vmem:[%s9045_s18 + $0x160] sm:$0xf]  ;;  %v7254_v57 = vor.u32 %v8300_v34, %v7251_v38 }
 0x34f   : > { %5191 = vmatpush.bf16.msra.mxu1 %v6770_v58  ;;  %5138 = vmatpush.bf16.msrb.mxu3 %v5926_v52  ;;  %v6409_v58 = vld [vmem:[%s9045_s18 + $0x608] sm:$0xf]  ;;  %v7730_v1 = vor.u32 %v8435_v42, %v7729_v35  ;;  %v8361_v35 = vld [vmem:[%s9045_s18 + $0xe84] sm:$0xf]  ;;  %v7499_v42 = vld [vmem:[%s9045_s18 + $0xef8] sm:$0xf0] }
 0x350   : > { %5214 = vmatpush.bf16.msra.mxu0 %v6174_v60  ;;  %v8046_v52 = vld [vmem:[%s9045_s18 + $0x4a4] sm:$0xf0]  ;;  %v4857_v60 = vadd.f32 %v10274_v36, %v4844_v5  ;;  %v6410_v54 = vor.u32 %v8105_v23, %v6409_v58  ;;  %v4806_v12 = vpop.f32.mrf.mxu2 }
 0x351   : > { %v6178_v36 = vor.u32 %v8046_v52, %v6177_v55  ;;  %v5929_v23 = vld [vmem:[%s9045_s18 + $0x248] sm:$0xf]  ;;  %v8451_v55 = vld [vmem:[%s9045_s18 + $0x1154] sm:$0xf]  ;;  %v7859_v52 = vld [vmem:[%s9045_s18 + $0x11c8] sm:$0x30] }
 0x352   : > { %5112 = vmatpush.bf16.msrb.mxu2 %v6882_v0  ;;  %v7910_v0 = vld [vmem:[%s9045_s18 + $0x6c] sm:$0xf]  ;;  %v5370_v43 = vrot.slane %v4857_v60, 6  ;;  %v4910_v15 = vpop.f32.mrf.mxu0  ;;  %v7011_v12 = vld [vmem:[%s9045_s18 + $0xb30] sm:$0xf0] }
 0x353   : > { %5192 = vmatpush.bf16.msra.mxu1 %v6650_v39  ;;  %5139 = vmatpush.bf16.msrb.mxu3 %v5806_v11  ;;  %v5691_v39 = vld [vmem:[%s9045_s18 + $0xe0] sm:$0xf0]  ;;  %v6057_v11 = vld [vmem:[%s9045_s18 + $0x340] sm:$0xf] }
 0x354   : > { %5215 = vmatpush.bf16.msra.mxu0 %v6054_v13  ;;  %v10409_v3 = vsel %vm5380_vm4, %v4818_v53, %v5370_v43  ;;  %v5694_v26 = vor.u32 %v7910_v0, %v5691_v39  ;;  %v7610_v13 = vor.u32 %v8405_v59, %v7609_v6  ;;  %v6058_v19 = vor.u32 %v8016_v56, %v6057_v11  ;;  %v7985_v53 = vld [vmem:[%s9045_s18 + $0x2bc] sm:$0xf0]  ;;  %v7131_v0 = vld [vmem:[%s9045_s18 + $0xc20] sm:$0xf0]  ;;  %v5697_v39 = vld [vmem:[%s9045_s18 + $0x70] sm:$0xf] }
 0x355   : > { %v10433_v58 = vpop.f32.mrf.mxu3  ;;  %v7926_v6 = vld [vmem:[%s9045_s18 + $0xe4] sm:$0xf0]  ;;  %v7379_v43 = vld [vmem:[%s9045_s18 + $0xe08] sm:$0xf0]  ;;  %v5930_v59 = vor.u32 %v7985_v53, %v5929_v23  ;;  %v8301_v11 = vld [vmem:[%s9045_s18 + $0xca4] sm:$0xf] }
 0x356   : > { %5193 = vmatmul.bf16.vlgmr.msra.gmra.mxu1 %v9191_v7  ;;  %5113 = vmatpush.bf16.msrb.mxu2 %v6762_v8  ;;  %v4153_v8 = vsel %vm4067_vm3, %v7858_v62, 0  ;;  %v8331_v62 = vld [vmem:[%s9045_s18 + $0xd94] sm:$0xf]  ;;  %v5698_v51 = vor.u32 %v7926_v6, %v5697_v39  ;;  %v7259_v56 = vld [vmem:[%s9045_s18 + $0xd18] sm:$0xf0] }
 0x357   : > { %5250 = vmatpush.bf16.msrb.mxu1 %v6538_v10  ;;  %5140 = vmatpush.bf16.msrb.mxu3 %v5686_v25  ;;  %v6289_v10 = vld [vmem:[%s9045_s18 + $0x518] sm:$0xf]  ;;  %v7262_v21 = vor.u32 %v8301_v11, %v7259_v56  ;;  %v8420_v53 = vld [vmem:[%s9045_s18 + $0x105c] sm:$0xf]  ;;  %v8211_v6 = vld [vmem:[%s9045_s18 + $0x9d4] sm:$0xf] }
 0x358   : > { %5216 = vmatpush.bf16.msra.mxu0 %v5934_v4  ;;  %v6290_v63 = vor.u32 %v8075_v61, %v6289_v10  ;;  %v8406_v4 = vld [vmem:[%s9045_s18 + $0xfe4] sm:$0xf0]  ;;  %v7382_v61 = vor.u32 %v8331_v62, %v7379_v43  ;;  %v6899_v62 = vld [vmem:[%s9045_s18 + $0xa48] sm:$0xf0]  ;;  %v1203_v56 = vperm.slane %v10356_v48, 3 }
 0x359   : > { %v8390_v43 = vld [vmem:[%s9045_s18 + $0xf6c] sm:$0xf]  ;;  %v6902_v11 = vor.u32 %v8211_v6, %v6899_v62  ;;  %v6059_v6 = vld [vmem:[%s9045_s18 + $0x3b8] sm:$0xf0]  ;;  %v7017_v62 = vld [vmem:[%s9045_s18 + $0xac0] sm:$0xf] }
 0x35a   : > { %5114 = vmatpush.bf16.msrb.mxu2 %v6642_v14  ;;  %5141 = vmatmul.bf16.vlgmr.msrb.gmra.mxu3 %v9175_v46  ;;  %v8015_v14 = vld [vmem:[%s9045_s18 + $0x3ac] sm:$0xf0]  ;;  %v10441_v60 = vpop.f32.mrf.mxu0 }
 0x35b   : > { %5251 = vmatpush.bf16.msrb.mxu1 %v6418_v2  ;;  %5203 = vmatpush.bf16.msra.mxu3 %v4147_v47  ;;  %v8436_v2 = vld [vmem:[%s9045_s18 + $0x10d4] sm:$0xf0]  ;;  %v5938_v47 = vor.u32 %v7986_v24, %v5937_v29  ;;  %v10435_v5 = vpop.f32.mrf.mxu1  ;;  %v6050_v49 = vor.u32 %v8015_v14, %v6049_v33  ;;  %v7925_v29 = vld [vmem:[%s9045_s18 + $0xdc] sm:$0xf0]  ;;  %v8210_v24 = vld [vmem:[%s9045_s18 + $0x9cc] sm:$0xf] }
 0x35c   : > { %5217 = vmatpush.bf16.msra.mxu0 %v5814_v31  ;;  %v7738_v25 = vor.u32 %v8436_v2, %v7737_v16  ;;  %v5810_v16 = vor.u32 %v7955_v44, %v5809_v9  ;;  %v8450_v2 = vld [vmem:[%s9045_s18 + $0x114c] sm:$0xf]  ;;  %v8391_v33 = vld [vmem:[%s9045_s18 + $0xf74] sm:$0xf]  ;;  %v5690_v34 = vor.u32 %v7925_v29, %v5689_v22  ;;  %v7497_v9 = vld [vmem:[%s9045_s18 + $0xe80] sm:$0xf] }
 0x35d   : > { %5115 = vmatmul.bf16.vlgmr.msrb.gmra.mxu2 %v9191_v7  ;;  %v7619_v14 = vld [vmem:[%s9045_s18 + $0xfe8] sm:$0xf0]  ;;  %v8376_v44 = vld [vmem:[%s9045_s18 + $0xef4] sm:$0xf0]  ;;  %v8346_v22 = vld [vmem:[%s9045_s18 + $0xe04] sm:$0xf0] }
 0x35e   : > { %5172 = vmatpush.bf16.msra.mxu2 %v6530_v41  ;;  %v7956_v41 = vld [vmem:[%s9045_s18 + $0x1d4] sm:$0xf0]  ;;  %v7622_v23 = vor.u32 %v8391_v33, %v7619_v14  ;;  %v6299_v33 = vld [vmem:[%s9045_s18 + $0x598] sm:$0xf0] }
 0x35f   : > { %5252 = vmatpush.bf16.msrb.mxu1 %v6298_v50  ;;  %5204 = vmatpush.bf16.msra.mxu3 %v7730_v1  ;;  %v7618_v50 = vor.u32 %v8406_v4, %v7617_v27  ;;  %v5818_v31 = vor.u32 %v7956_v41, %v5817_v40  ;;  %v7502_v1 = vor.u32 %v8361_v35, %v7499_v42  ;;  %v8271_v27 = vld [vmem:[%s9045_s18 + $0xbb4] sm:$0xf]  ;;  %v8180_v41 = vld [vmem:[%s9045_s18 + $0x8dc] sm:$0xf]  ;;  %v8241_v42 = vld [vmem:[%s9045_s18 + $0xac4] sm:$0xf] }
 0x360   : > { %5218 = vmatpush.bf16.msra.mxu0 %v5694_v26  ;;  %v8240_v26 = vld [vmem:[%s9045_s18 + $0xabc] sm:$0xf]  ;;  %v7854_v4 = vor.u32 %v8450_v2, %v7851_v18  ;;  %v6771_v35 = vld [vmem:[%s9045_s18 + $0x950] sm:$0xf0]  ;;  %v7498_v2 = vor.u32 %v8376_v44, %v7497_v9  ;;  %v6897_v9 = vld [vmem:[%s9045_s18 + $0x9d0] sm:$0xf] }
 0x361   : > { %v7014_v20 = vor.u32 %v8240_v26, %v7011_v12  ;;  %v8091_v18 = vld [vmem:[%s9045_s18 + $0x614] sm:$0xf]  ;;  %v8226_v44 = vld [vmem:[%s9045_s18 + $0xa44] sm:$0xf0] }
 0x362   : > { %5173 = vmatpush.bf16.msra.mxu2 %v6410_v54  ;;  %v8270_v54 = vld [vmem:[%s9045_s18 + $0xbac] sm:$0xf] }
 0x363   : > { %5253 = vmatpush.bf16.msrb.mxu1 %v6178_v36  ;;  %5205 = vmatpush.bf16.msra.mxu3 %v7610_v13  ;;  %v7862_v36 = vor.u32 %v8451_v55, %v7859_v52  ;;  %v7134_v10 = vor.u32 %v8270_v54, %v7131_v0  ;;  %v4897_v13 = vpop.f32.mrf.mxu3  ;;  %v7731_v55 = vld [vmem:[%s9045_s18 + $0x10d0] sm:$0xf0]  ;;  %v1202_v52 = vperm.slane %v10356_v48, 2  ;;  %v8150_v54 = vld [vmem:[%s9045_s18 + $0x7ec] sm:$0xf] }
 0x364   : > { %5281 = vmatpush.bf16.msrb.mxu0 %v4153_v8  ;;  %v4949_v8 = vpop.f32.mrf.mxu1  ;;  %v6651_v0 = vld [vmem:[%s9045_s18 + $0x860] sm:$0xf0]  ;;  %v7734_v39 = vor.u32 %v8420_v53, %v7731_v55  ;;  %v7137_v55 = vld [vmem:[%s9045_s18 + $0xbb0] sm:$0xf] }
 0x365   : > { %5219 = vmatmul.bf16.vlgmr.msra.gmra.mxu0 %v9175_v46  ;;  %v4156_v15 = vsel %vm4067_vm3, %v7862_v36, 0  ;;  %v7611_v36 = vld [vmem:[%s9045_s18 + $0xfe0] sm:$0xf0]  ;;  %v6654_v12 = vor.u32 %v8150_v54, %v6651_v0 }
 0x366   : > { %5174 = vmatpush.bf16.msra.mxu2 %v6290_v63  ;;  %v8421_v63 = vld [vmem:[%s9045_s18 + $0x1064] sm:$0xf]  ;;  %v7614_v13 = vor.u32 %v8390_v43, %v7611_v36  ;;  %v8256_v43 = vld [vmem:[%s9045_s18 + $0xb34] sm:$0xf0] }
 0x367   : > { %5224 = vmatpush.bf16.msrb.mxu3 %v7494_v17  ;;  %5254 = vmatpush.bf16.msrb.mxu1 %v6058_v19  ;;  %v7739_v17 = vld [vmem:[%s9045_s18 + $0x10d8] sm:$0xf0]  ;;  %v4975_v19 = vpop.f32.mrf.mxu0 }
 0x368   : > { %5282 = vmatpush.bf16.msrb.mxu0 %v7738_v25  ;;  %v6891_v25 = vld [vmem:[%s9045_s18 + $0xa40] sm:$0xf0]  ;;  %v6419_v19 = vld [vmem:[%s9045_s18 + $0x688] sm:$0xf0] }
 0x369   : > { %v6894_v38 = vor.u32 %v8210_v24, %v6891_v25  ;;  %v4909_v24 = vadd.f32 %v10389_v45, %v1203_v56  ;;  %v6422_v25 = vor.u32 %v8091_v18, %v6419_v19  ;;  %v7257_v45 = vld [vmem:[%s9045_s18 + $0xca0] sm:$0xf]  ;;  %v7911_v18 = vld [vmem:[%s9045_s18 + $0x74] sm:$0xf]  ;;  %v5699_v19 = vld [vmem:[%s9045_s18 + $0xe8] sm:$0xf0] }
 0x36a   : > { %5175 = vmatpush.bf16.msra.mxu2 %v6170_v28  ;;  %7889 = vmatmul.msk.bf16.vlgmr.msra.gmra.mxu3 %vm449_vm1, %v9210_v30  ;;  %v7139_v28 = vld [vmem:[%s9045_s18 + $0xc28] sm:$0xf0]  ;;  %v6777_v56 = vld [vmem:[%s9045_s18 + $0x8e0] sm:$0xf] }
 0x36b   : > { %5225 = vmatpush.bf16.msrb.mxu3 %v7374_v32  ;;  %5255 = vmatpush.bf16.msrb.mxu1 %v5938_v47  ;;  %v7742_v32 = vor.u32 %v8421_v63, %v7739_v17  ;;  %v4869_v47 = vpop.f32.mrf.mxu2  ;;  %v7142_v40 = vor.u32 %v8271_v27, %v7139_v28  ;;  %v6779_v63 = vld [vmem:[%s9045_s18 + $0x958] sm:$0xf0]  ;;  %v8151_v27 = vld [vmem:[%s9045_s18 + $0x7f4] sm:$0xf]  ;;  %v6659_v28 = vld [vmem:[%s9045_s18 + $0x868] sm:$0xf0] }
 0x36c   : > { %5283 = vmatpush.bf16.msrb.mxu0 %v7618_v50  ;;  %v7019_v50 = vld [vmem:[%s9045_s18 + $0xb38] sm:$0xf0] }
 0x36e   : > { %5176 = vmatpush.bf16.msra.mxu2 %v6050_v49  ;;  %v4150_v49 = vsel %vm4067_vm3, %v7854_v4, 0  ;;  %v8061_v4 = vld [vmem:[%s9045_s18 + $0x524] sm:$0xf] }
 0x36f   : > { %5226 = vmatpush.bf16.msrb.mxu3 %v7254_v57  ;;  %5256 = vmatpush.bf16.msrb.mxu1 %v5818_v31  ;;  %v10478_v57 = vpop.f32.mrf.mxu1  ;;  %v6774_v31 = vor.u32 %v8180_v41, %v6771_v35  ;;  %v6302_v35 = vor.u32 %v8061_v4, %v6299_v33 }
 0x370   : > { %5302 = vmatpush.bf16.msra.mxu0 %v7502_v1  ;;  %v7022_v1 = vor.u32 %v8241_v42, %v7019_v50  ;;  %v8031_v50 = vld [vmem:[%s9045_s18 + $0x434] sm:$0xf] }
 0x371   : > { %v4921_v26 = vpop.f32.mrf.mxu3 }
 0x372   : > { %5177 = vmatpush.bf16.msra.mxu2 %v5930_v59  ;;  %v8121_v59 = vld [vmem:[%s9045_s18 + $0x704] sm:$0xf]  ;;  %v4922_v14 = vadd.f32 %v4921_v26, %v4909_v24  ;;  %v6898_v26 = vor.u32 %v8226_v44, %v6897_v9  ;;  %v5702_v24 = vor.u32 %v7911_v18, %v5699_v19 }
 0x373   : > { %5227 = vmatpush.bf16.msrb.mxu3 %v7134_v10  ;;  %5257 = vmatpush.bf16.msrb.mxu1 %v5698_v51  ;;  %v6539_v10 = vld [vmem:[%s9045_s18 + $0x778] sm:$0xf0]  ;;  %v4870_v51 = vadd.f32 %v4869_v47, %v1202_v52  ;;  %v8316_v47 = vld [vmem:[%s9045_s18 + $0xd14] sm:$0xf0]  ;;  %v8286_v52 = vld [vmem:[%s9045_s18 + $0xc24] sm:$0xf0] }
 0x374   : > { %5303 = vmatpush.bf16.msra.mxu0 %v7382_v61  ;;  %v4871_v61 = vpop.f32.mrf.mxu2  ;;  %v6542_v8 = vor.u32 %v8121_v59, %v6539_v10  ;;  %v7258_v42 = vor.u32 %v8316_v47, %v7257_v45  ;;  %v7138_v0 = vor.u32 %v8286_v52, %v7137_v55  ;;  %v7018_v10 = vor.u32 %v8256_v43, %v7017_v62 }
 0x375   : > { %7891 = vmatmul.msk.bf16.vlgmr.msrb.gmra.mxu0 %vm449_vm1, %v9210_v30  ;;  %v5939_v61 = vld [vmem:[%s9045_s18 + $0x2c8] sm:$0xf0] }
 0x376   : > { %5258 = vmatmul.bf16.vlgmr.msrb.gmra.mxu1 %v9175_v46  ;;  %5178 = vmatpush.bf16.msra.mxu2 %v5810_v16  ;;  %v10497_v17 = vpop.f32.mrf.mxu0 }
 0x377   : > { %5320 = vmatpush.bf16.msra.mxu1 %v4156_v15  ;;  %5228 = vmatpush.bf16.msrb.mxu3 %v7014_v20  ;;  %v8181_v15 = vld [vmem:[%s9045_s18 + $0x8e4] sm:$0xf]  ;;  %v5014_v16 = vpop.f32.mrf.mxu1  ;;  %v4883_v20 = vadd.f32 %v10343_v37, %v4870_v51  ;;  %v7971_v51 = vld [vmem:[%s9045_s18 + $0x254] sm:$0xf] }
 0x378   : > { %5304 = vmatpush.bf16.msra.mxu0 %v7262_v21  ;;  %v7377_v21 = vld [vmem:[%s9045_s18 + $0xd90] sm:$0xf]  ;;  %v6782_v29 = vor.u32 %v8181_v15, %v6779_v63  ;;  %v1204_v15 = vperm.slane %v10356_v48, 4 }
 0x379   : > { %v4896_v37 = vadd.f32 %v10433_v58, %v4883_v20  ;;  %v6657_v20 = vld [vmem:[%s9045_s18 + $0x7f0] sm:$0xf] }
 0x37a   : > { %5179 = vmatpush.bf16.msra.mxu2 %v5690_v34  ;;  %v4923_v34 = vpop.f32.mrf.mxu3 }
 0x37b   : > { %5321 = vmatpush.bf16.msra.mxu1 %v7742_v32  ;;  %5229 = vmatpush.bf16.msrb.mxu3 %v6894_v38  ;;  %v7378_v32 = vor.u32 %v8346_v22, %v7377_v21  ;;  %v8166_v21 = vld [vmem:[%s9045_s18 + $0x864] sm:$0xf0]  ;;  %v4948_v22 = vadd.f32 %v10435_v5, %v1204_v15 }
 0x37c   : > { %5305 = vmatpush.bf16.msra.mxu0 %v7142_v40  ;;  %v4934_v38 = vpop.f32.mrf.mxu2  ;;  %v6662_v40 = vor.u32 %v8151_v27, %v6659_v28  ;;  %v6658_v28 = vor.u32 %v8166_v21, %v6657_v20 }
 0x37d   : > { %5180 = vmatmul.bf16.vlgmr.msra.gmra.mxu2 %v9175_v46  ;;  %v4935_v41 = vadd.f32 %v4934_v38, %v4922_v14 }
 0x37e   : > { %5242 = vmatpush.bf16.msrb.mxu2 %v4150_v49  ;;  %v5001_v58 = vpop.f32.mrf.mxu0  ;;  %v5371_v49 = vrot.slane %v4896_v37, 4 }
 0x37f   : > { %5322 = vmatpush.bf16.msra.mxu1 %v7622_v23  ;;  %5230 = vmatpush.bf16.msrb.mxu3 %v6774_v31  ;;  %v6179_v23 = vld [vmem:[%s9045_s18 + $0x4a8] sm:$0xf0]  ;;  %v5372_v53 = vrot.slane %v4935_v41, 2 }
 0x380   : > { %5306 = vmatpush.bf16.msra.mxu0 %v7022_v1  ;;  %v6182_v1 = vor.u32 %v8031_v50, %v6179_v23 }
 0x381   : > { %v5395_v31 = vsel %vm5382_vm5, %v5371_v49, %v5372_v53 }
 0x382   : > { %5243 = vmatpush.bf16.msrb.mxu2 %v7734_v39  ;;  %v5396_v54 = vsel %vm452_vm0, %v10409_v3, %v5395_v31  ;;  %v8001_v39 = vld [vmem:[%s9045_s18 + $0x344] sm:$0xf] }
 0x383   : > { %5231 = vmatpush.bf16.msrb.mxu3 %v6654_v12  ;;  %5416 = vst [vmem:[%s9720_s1 + $0x20] sm:$0xff] %v5396_v54  ;;  %v6062_v59 = vor.u32 %v8001_v39, %v6059_v6  ;;  %v7941_v12 = vld [vmem:[%s9045_s18 + $0x164] sm:$0xf] }
 0x384   : > { %5307 = vmatpush.bf16.msra.mxu0 %v6902_v11  ;;  %v4936_v36 = vpop.f32.mrf.mxu2  ;;  %v5819_v11 = vld [vmem:[%s9045_s18 + $0x1d8] sm:$0xf0] }
 0x385   : > { %v5822_v63 = vor.u32 %v7941_v12, %v5819_v11 }
 0x386   : > { %5244 = vmatpush.bf16.msrb.mxu2 %v7614_v13  ;;  %5232 = vmatmul.bf16.vlgmr.msrb.gmra.mxu3 %v9191_v7  ;;  %v8196_v13 = vld [vmem:[%s9045_s18 + $0x954] sm:$0xf0] }
 0x387   : > { %5289 = vmatpush.bf16.msra.mxu3 %v6542_v8  ;;  %7892 = vmatmul.msk.bf16.vlgmr.msra.gmra.mxu1 %vm449_vm1, %v9210_v30  ;;  %v10530_v3 = vpop.f32.mrf.mxu1  ;;  %v6778_v16 = vor.u32 %v8196_v13, %v6777_v56 }
 0x388   : > { %5308 = vmatpush.bf16.msra.mxu0 %v6782_v29 }
 0x38a   : > { %5263 = vmatpush.bf16.msra.mxu2 %v7498_v2  ;;  %v1205_v2 = vperm.slane %v10356_v48, 5 }
 0x38b   : > { %5290 = vmatpush.bf16.msra.mxu3 %v6422_v25 }
 0x38c   : > { %5309 = vmatpush.bf16.msra.mxu0 %v6662_v40 }
 0x38d   : > { %7890 = vmatmul.msk.bf16.vlgmr.msrb.gmra.mxu2 %vm449_vm1, %v9210_v30  ;;  %v5942_v30 = vor.u32 %v7971_v51, %v5939_v61  ;;  %v1179_v61 = vld [vmem:[%s9634_s8 + $0x18] sm:$0x3f] }
 0x38e   : > { %5264 = vmatpush.bf16.msra.mxu2 %v7378_v32  ;;  %v1208_v44 = vperm.slane %v1179_v61, 0 }
 0x38f   : > { %5291 = vmatpush.bf16.msra.mxu3 %v6302_v35  ;;  %5310 = vmatmul.bf16.vlgmr.msra.gmra.mxu0 %v9191_v7  ;;  %v5040_v8 = vpop.f32.mrf.mxu1 }
 0x391   : > { %v4986_v29 = vpop.f32.mrf.mxu3 }
 0x392   : > { %5265 = vmatpush.bf16.msra.mxu2 %v7258_v42  ;;  %v4987_v25 = vadd.f32 %v4986_v29, %v1205_v2 }
 0x393   : > { %5292 = vmatpush.bf16.msra.mxu3 %v6182_v1 }
 0x394   : > { %v4960_v27 = vpop.f32.mrf.mxu2  ;;  %v5000_v4 = vadd.f32 %v10497_v17, %v4987_v25 }
 0x395   : > { %v4961_v32 = vadd.f32 %v4960_v27, %v4948_v22 }
 0x396   : > { %5266 = vmatpush.bf16.msra.mxu2 %v7138_v0  ;;  %v5064_v33 = vpop.f32.mrf.mxu0  ;;  %v5013_v14 = vadd.f32 %v10478_v57, %v5000_v4  ;;  %v1206_v57 = vperm.slane %v10356_v48, 6  ;;  %v1210_v4 = vperm.slane %v1179_v61, 2 }
 0x397   : > { %5293 = vmatpush.bf16.msra.mxu3 %v6062_v59  ;;  %v4974_v37 = vadd.f32 %v10441_v60, %v4961_v32 }
 0x398   : > { %v5373_v45 = vrot.slane %v5013_v14, 6 }
 0x399   : > { %v4988_v5 = vpop.f32.mrf.mxu3 }
 0x39a   : > { %5267 = vmatpush.bf16.msra.mxu2 %v7018_v10  ;;  %v5397_v47 = vsel %vm5380_vm4, %v4974_v37, %v5373_v45  ;;  %v1211_v45 = vperm.slane %v1179_v61, 3 }
 0x39b   : > { %5294 = vmatpush.bf16.msra.mxu3 %v5942_v30 }
 0x39c   : > { %v4962_v34 = vpop.f32.mrf.mxu2 }
 0x39e   : > { %5268 = vmatpush.bf16.msra.mxu2 %v6898_v26  ;;  %v5066_v38 = vpop.f32.mrf.mxu0 }
 0x39f   : > { %5295 = vmatpush.bf16.msra.mxu3 %v5822_v63 }
 0x3a1   : > { %v5051_v40 = vpop.f32.mrf.mxu3 }
 0x3a2   : > { %5269 = vmatpush.bf16.msra.mxu2 %v6778_v16 }
 0x3a3   : > { %5296 = vmatpush.bf16.msra.mxu3 %v5702_v24 }
 0x3a6   : > { %5270 = vmatpush.bf16.msra.mxu2 %v6658_v28  ;;  %5297 = vmatmul.bf16.vlgmr.msra.gmra.mxu3 %v9175_v46  ;;  %v5129_v17 = vpop.f32.mrf.mxu0 }
 0x3a7   : > { %v5103_v41 = vpop.f32.mrf.mxu1 }
 0x3a8   : > { %v5104_v30 = vadd.f32 %v5103_v41, %v1208_v44 }
 0x3a9   : > { %5271 = vmatmul.bf16.vlgmr.msra.gmra.mxu2 %v9191_v7  ;;  %v5053_v35 = vpop.f32.mrf.mxu3  ;;  %v1207_v7 = vperm.slane %v10356_v48, 7 }
 0x3ab   : > { %v5065_v31 = vadd.f32 %v5064_v33, %v1207_v7  ;;  %v1213_v7 = vperm.slane %v1179_v61, 5 }
 0x3ae   : > { %v5131_v42 = vpop.f32.mrf.mxu0 }
 0x3af   : > { %v5105_v58 = vpop.f32.mrf.mxu1 }
 0x3b4   : > { %v5025_v60 = vpop.f32.mrf.mxu2 }
 0x3b5   : > { %v5026_v23 = vadd.f32 %v5025_v60, %v1206_v57 }
 0x3b7   : > { %v5039_v52 = vadd.f32 %v10530_v3, %v5026_v23  ;;  %v1209_v3 = vperm.slane %v1179_v61, 1 }
 0x3b9   : > { %v5168_v50 = vpop.f32.mrf.mxu1  ;;  %v5052_v1 = vadd.f32 %v5051_v40, %v5039_v52 }
 0x3bb   : > { %v5374_v43 = vrot.slane %v5052_v1, 4 }
 0x3bc   : > { %v5027_v49 = vpop.f32.mrf.mxu2 }
 0x3bd   : > { %v5077_v46 = vpop.f32.mrf.mxu3 }
 0x3be   : > { %v5078_v54 = vadd.f32 %v5077_v46, %v5065_v31  ;;  %v1212_v46 = vperm.slane %v1179_v61, 4 }
 0x3c1   : > { %v5170_v55 = vpop.f32.mrf.mxu1 }
 0x3c2   : > { %v5155_v53 = vpop.f32.mrf.mxu0 }
 0x3c4   : > { %v5090_v39 = vpop.f32.mrf.mxu2 }
 0x3c5   : > { %v5079_v0 = vpop.f32.mrf.mxu3  ;;  %v5091_v6 = vadd.f32 %v5090_v39, %v5078_v54 }
 0x3c7   : > { %v5375_v36 = vrot.slane %v5091_v6, 2 }
 0x3c9   : > { %v5398_v59 = vsel %vm5382_vm5, %v5374_v43, %v5375_v36 }
 0x3ca   : > { %v5157_v62 = vpop.f32.mrf.mxu0  ;;  %v5399_v10 = vsel %vm452_vm0, %v5397_v47, %v5398_v59 }
 0x3cb   : > { %5417 = vst [vmem:[%s9720_s1 + $0x28] sm:$0xff] %v5399_v10 }
 0x3cc   : > { %v5092_v48 = vpop.f32.mrf.mxu2 }
 0x3d3   : > { %v5194_v51 = vpop.f32.mrf.mxu1 }
 0x3db   : > { %v5196_v9 = vpop.f32.mrf.mxu1 }
 0x3dd   : > { %v5142_v26 = vpop.f32.mrf.mxu3 }
 0x3de   : > { %v5143_v12 = vadd.f32 %v5142_v26, %v1209_v3 }
 0x3e0   : > { %v5116_v11 = vpop.f32.mrf.mxu2  ;;  %v5156_v13 = vadd.f32 %v5155_v53, %v5143_v12 }
 0x3e1   : > { %v5117_v56 = vadd.f32 %v5116_v11, %v5104_v30 }
 0x3e2   : > { %v5220_v8 = vpop.f32.mrf.mxu0  ;;  %v5169_v63 = vadd.f32 %v5168_v50, %v5156_v13 }
 0x3e3   : > { %v5130_v15 = vadd.f32 %v5129_v17, %v5117_v56  ;;  %v5221_v38 = vadd.f32 %v5220_v8, %v1211_v45 }
 0x3e4   : > { %v5376_v16 = vrot.slane %v5169_v63, 6 }
 0x3e5   : > { %v5144_v2 = vpop.f32.mrf.mxu3 }
 0x3e6   : > { %v5400_v18 = vsel %vm5380_vm4, %v5130_v15, %v5376_v16 }
 0x3e8   : > { %v5118_v19 = vpop.f32.mrf.mxu2 }
 0x3ea   : > { %v5222_v20 = vpop.f32.mrf.mxu0 }
 0x3ed   : > { %v5207_v21 = vpop.f32.mrf.mxu3 }
 0x3f2   : > { %v5285_v29 = vpop.f32.mrf.mxu0 }
 0x3f3   : > { %v5259_v22 = vpop.f32.mrf.mxu1 }
 0x3f4   : > { %v5260_v55 = vadd.f32 %v5259_v22, %v1212_v46 }
 0x3f5   : > { %v5209_v24 = vpop.f32.mrf.mxu3 }
 0x3fa   : > { %v5287_v27 = vpop.f32.mrf.mxu0 }
 0x3fb   : > { %v5261_v25 = vpop.f32.mrf.mxu1 }
 0x400   : > { %v5181_v28 = vpop.f32.mrf.mxu2 }
 0x401   : > { %v5182_v33 = vadd.f32 %v5181_v28, %v1210_v4 }
 0x403   : > { %v5195_v34 = vadd.f32 %v5194_v51, %v5182_v33 }
 0x404   : > { %v5324_v32 = vpop.f32.mrf.mxu1 }
 0x405   : > { %v5208_v40 = vadd.f32 %v5207_v21, %v5195_v34 }
 0x407   : > { %v5377_v60 = vrot.slane %v5208_v40, 4 }
 0x408   : > { %v5183_v37 = vpop.f32.mrf.mxu2 }
 0x409   : > { %v5233_v14 = vpop.f32.mrf.mxu3 }
 0x40a   : > { %v5234_v41 = vadd.f32 %v5233_v14, %v5221_v38 }
 0x40c   : > { %v5311_v5 = vpop.f32.mrf.mxu0  ;;  %v5326_v47 = vpop.f32.mrf.mxu1 }
 0x410   : > { %v5246_v35 = vpop.f32.mrf.mxu2 }
 0x411   : > { %v5235_v17 = vpop.f32.mrf.mxu3  ;;  %v5247_v58 = vadd.f32 %v5246_v35, %v5234_v41 }
 0x413   : > { %v5378_v50 = vrot.slane %v5247_v58, 2 }
 0x414   : > { %v5313_v42 = vpop.f32.mrf.mxu0 }
 0x415   : > { %v5401_v57 = vsel %vm5382_vm5, %v5377_v60, %v5378_v50 }
 0x416   : > { %v5402_v23 = vsel %vm452_vm0, %v5400_v18, %v5401_v57 }
 0x417   : > { %5418 = vst [vmem:[%s9720_s1 + $0x30] sm:$0xff] %v5402_v23 }
 0x418   : > { %v5248_v49 = vpop.f32.mrf.mxu2 }
 0x429   : > { %v5298_v53 = vpop.f32.mrf.mxu3 }
 0x42a   : > { %v5299_v52 = vadd.f32 %v5298_v53, %v1213_v7 }
 0x42c   : > { %v5272_v31 = vpop.f32.mrf.mxu2  ;;  %v5312_v1 = vadd.f32 %v5311_v5, %v5299_v52 }
 0x42d   : > { %v5273_v54 = vadd.f32 %v5272_v31, %v5260_v55 }
 0x42e   : > { %v5325_v0 = vadd.f32 %v5324_v32, %v5312_v1 }
 0x42f   : > { %v5286_v6 = vadd.f32 %v5285_v29, %v5273_v54 }
 0x430   : > { %v5379_v39 = vrot.slane %v5325_v0, 6 }
 0x431   : > { %v5300_v62 = vpop.f32.mrf.mxu3 }
 0x432   : > { %v5403_v43 = vsel %vm5380_vm4, %v5286_v6, %v5379_v39 }
 0x433   : > { %5419 = vst [vmem:[%s9720_s1 + $0x38] sm:$0xf] %v5403_v43 }
 0x434   : > { %v5274_v36 = vpop.f32.mrf.mxu2 }
 0x435   : > { %8781 = shalt.err (!%p8778_p7)
}
 0x436   : > { %8493 = dma.vmem_to_hbm [thread:$0]  (%p8937_p11), %s5435_s30, 960, %s5437_s19, %s5421_s28  }
 0x437 PF: > { %s10639_s29 = sld [smem:[#allocation18_spill]]  ;;  %p8528_p2 = scmp.ge.s32.totalorder %s8832_s27, 2 }
 0x439   : > { %p8516_p4 = pnand %p8528_p2, %p8941_p12 }
 0x43b   : > { %p8517_p5 = pneg %p8516_p4 }
 0x43d   : > { %s5448_s18 = sand.u32 1, %s10639_s29  }
 0x43e   : > { %s5449_s12 = scalar_lea.sflag [#allocation4], %s5448_s18 }
 0x43f   : > { %8815 = dma.done.wait (%p8517_p5), %s5449_s12, 960  }
 0x440   : > { %8817 = vsyncadd (%p8517_p5), %s5449_s12, 4294966336  ;;  %s10641_s27 = sld [smem:[#allocation19_spill]]  ;;  %s10643_s24 = smov %s8824_s25 }
 0x441   : > { %s10642_s20 = sld [smem:[#allocation20_spill]]  ;;  %s10644_s25 = smov %s8828_s26 }
 0x446   : > { %p20_p8 = scmp.ge.s32.totalorder %s10641_s27, 7  }
 0x447   : > { %s10645_s26 = smov %s10642_s20 }
 0x448   :  { %22 = sbr.rel (!%p20_p8) target bundleno = 11 (0xb), region = 119 }
 0x44d   :  { %5455 = vsyncpa [#allocation3], 1 }
 0x44e   :  { %5457 = vsyncpa [#allocation3 + $0x1], 1 }
 0x44f   :  { %5458 = vsyncpa [#allocation6], 1 }
 0x450   :  { %5459 = vsyncpa [#allocation9], 1 }
 0x451   :  { %5460 = vsyncpa [#allocation4], 1 }
 0x452   :  { %5462 = vsyncpa [#allocation4 + $0x1], 1 }

</bundles_post_ra>
